<compile_context>
chip_gen: v6e
topology: v6e:2x2x1
jax: 0.10.0
libtpu: 0.0.40
codegen_flags: <defaults>
</compile_context>

<pallas_src>
import functools

import jax
import jax.numpy as jnp
from jax import lax
from jax.experimental import pallas as pl
from jax.experimental.pallas import tpu as pltpu


_MAX_UNROLL_ROWS = 64   # cap on the static per-row unroll inside one grid step


def _twin_conv_kernel(x_ref, w_ref, b_ref, o_ref, *, TH, Wo, KH, KW, Cout):
    """One (batch, row-tile) step of the pre-blended KHxKW 'same' conv.

    x_ref: (1, Cin, Hp, Wp)    zero-padded image (whole image resident per n)
    w_ref: (KH*KW, Cout, Cin)  blended weights, tap-major (kh, kw)
    b_ref: (Cout, 1)           blended bias (f32)
    o_ref: (1, Cout, TH*Wo)    NCHW output tile, flattened spatial rows on lanes
    """
    t = pl.program_id(1)
    row0 = t * TH
    if TH % 8 == 0:
        row0 = pl.multiple_of(row0, 8)   # keeps the per-row sublane offset static

    # Hoisted loop invariants (no per-row reload / rebroadcast).
    w_taps = [w_ref[k] for k in range(KH * KW)]            # each (Cout, Cin)
    bias_row = jnp.broadcast_to(b_ref[...], (Cout, Wo))    # (Cout, Wo) f32
    prec = lax.Precision.HIGHEST if x_ref.dtype == jnp.float32 else None

    def load_row(r):
        # One padded input row for all channels: (Cin, Wp), padded width on lanes.
        return x_ref[0, :, r, :]

    # Rolling KH-row cache: each padded input row is read from VMEM once per tile
    # (the old im2col scratch pushed every row 9x through the single vst slot).
    rows = [load_row(row0 + k) for k in range(KH - 1)]
    for hl in range(TH):
        rows.append(load_row(row0 + hl + KH - 1))

        # KH*KW accumulating tap matmuls (K = Cin) into a register-resident f32
        # accumulator -- no im2col scratch, no reshape relayout, no acc spill.
        acc = None
        for kh in range(KH):
            row = rows[kh]
            for kw in range(KW):
                rhs = row[:, kw:kw + Wo]                   # static lane slice
                d = jnp.dot(w_taps[kh * KW + kw], rhs,
                            preferred_element_type=jnp.float32, precision=prec)
                acc = d if acc is None else acc + d

        # Per-row epilogue: bias + cast + lane-dense store (exactly Wo lanes).
        o_ref[0, :, hl * Wo:(hl + 1) * Wo] = (acc + bias_row).astype(o_ref.dtype)
        rows.pop(0)


def _vmem_capacity_bytes():
    """Per-core VMEM capacity (128 MiB v5e/v6e, 64 MiB per TensorCore v7x)."""
    try:
        info = pltpu.get_tpu_info()
        return int(getattr(info, "vmem_capacity_bytes", 64 * 1024 * 1024))
    except Exception:
        return 64 * 1024 * 1024      # conservative default (v7x per-core size)


def _pick_tile_rows(Ho, Wo, out_row_bytes, avail_bytes):
    """Pick the output-row tile TH.

    Requirements / preferences (in order):
      * TH divides Ho and TH <= _MAX_UNROLL_ROWS (kernel unrolls TH rows statically).
      * lane-dense output block: (TH*Wo) % 128 == 0, or the block is the whole image.
      * the double-buffered output block fits the remaining VMEM budget.
      * >= 4 row tiles (2 TensorCores x 2 for pipelining on v7x), else >= 2, else 1,
        taking the largest TH inside the best satisfiable tier.
    Fallback (nothing fits): the SMALLEST lane-dense divisor, so VMEM use is
    minimized rather than silently blowing up (fixes the old fallback).
    """
    divisors = [d for d in range(1, min(Ho, _MAX_UNROLL_ROWS) + 1) if Ho % d == 0]

    def lane_dense(d):
        return (d * Wo) % 128 == 0 or d == Ho

    def fits(d):
        return 2 * d * out_row_bytes <= avail_bytes

    cands = [d for d in divisors if lane_dense(d) and fits(d)]
    if cands:
        for min_tiles in (4, 2, 1):
            tier = [d for d in cands if Ho // d >= min_tiles]
            if tier:
                return max(tier)

    dense = [d for d in divisors if lane_dense(d)]
    if dense:
        return min(dense)
    # Last resort: whole image in one tile (block minor dim == full dim is always
    # legal).  Only reachable for unusual widths with no 128-multiple row tiling.
    return Ho


def twin_conv(x_nchw, w_pre, b_pre, w_cur, b_cur,
              interpolation_factor=None, padding=1, compute_dtype="auto"):
    """TwinConv forward. x: (N, Cin, H, W) NCHW; weights OIHW; returns NCHW.

    compute_dtype: MXU operand dtype.  "auto" (default) uses bfloat16 for float32
    inputs (accumulation is always f32); pass jnp.float32 for bit-tight results or
    None to keep the input dtype.
    """
    N, Cin, H, W = x_nchw.shape
    Cout, Cin_w, KH, KW = w_pre.shape
    assert Cin_w == Cin
    KK = KH * KW

    Hp, Wp = H + 2 * padding, W + 2 * padding
    Ho, Wo = Hp - KH + 1, Wp - KW + 1

    if isinstance(compute_dtype, str) and compute_dtype == "auto":
        cdt = jnp.bfloat16 if x_nchw.dtype == jnp.float32 else x_nchw.dtype
    elif compute_dtype is None:
        cdt = x_nchw.dtype
    else:
        cdt = jnp.dtype(compute_dtype)
    out_dtype = x_nchw.dtype

    # Conv is linear in weights and bias: blend the two convs into ONE conv (exact).
    # Works for Python floats and traced scalars alike.
    if interpolation_factor is None:
        w_use = w_cur.astype(jnp.float32)
        b_use = b_cur.astype(jnp.float32)
    else:
        r = jnp.asarray(interpolation_factor, jnp.float32)
        w_use = (1.0 - r) * w_pre.astype(jnp.float32) + r * w_cur.astype(jnp.float32)
        b_use = (1.0 - r) * b_pre.astype(jnp.float32) + r * b_cur.astype(jnp.float32)

    # OIHW -> (KH*KW, Cout, Cin), tap-major: each tap is one static leading index.
    w_taps = jnp.transpose(w_use, (2, 3, 0, 1)).reshape(KK, Cout, Cin).astype(cdt)
    b_col = b_use.reshape(Cout, 1)

    # Conv zero padding (allow_input_fusion below lets XLA fuse this pad + cast into
    # the kernel's input DMA instead of a separate HBM pass).  NCHW end to end.
    x_pad = jnp.pad(x_nchw.astype(cdt),
                    ((0, 0), (0, 0), (padding, padding), (padding, padding)))

    # Generation-aware VMEM budgeting.
    x_isz = jnp.dtype(cdt).itemsize
    o_isz = jnp.dtype(out_dtype).itemsize
    cap = _vmem_capacity_bytes()
    budget = int(cap * 0.60)                                 # tile-picker budget
    vmem_limit = max(32 * 1024 * 1024, min(int(cap * 0.80), 112 * 1024 * 1024))

    image_bytes = Cin * Hp * Wp * x_isz                      # resident padded image
    x_buffers = 2 if 2 * image_bytes <= budget // 2 else 1   # single-buffer when huge

    # TH-independent in-kernel temporaries: rolling KH-row cache, per-row f32
    # accumulator / cast temp, weights & bias, plus slack.
    fixed_bytes = (x_buffers * image_bytes
                   + 2 * KH * Cin * Wp * x_isz
                   + 6 * Cout * Wp * 4
                   + KK * Cout * Cin * x_isz + Cout * 4
                   + 512 * 1024)
    avail = budget - fixed_bytes

    TH = _pick_tile_rows(Ho, Wo, out_row_bytes=Cout * Wo * o_isz, avail_bytes=avail)
    assert Ho % TH == 0

    x_spec_kwargs = {}
    if x_buffers == 1:
        # The image block only changes at batch boundaries; single-buffering frees a
        # full image copy of VMEM at the cost of one exposed DMA per batch element.
        x_spec_kwargs["pipeline_mode"] = pl.Buffered(1)

    kernel = functools.partial(_twin_conv_kernel,
                               TH=TH, Wo=Wo, KH=KH, KW=KW, Cout=Cout)

    out_flat = pl.pallas_call(
        kernel,
        out_shape=jax.ShapeDtypeStruct((N, Cout, Ho * Wo), out_dtype),
        grid_spec=pltpu.PrefetchScalarGridSpec(
            num_scalar_prefetch=0,
            grid=(N, Ho // TH),
            in_specs=[
                pl.BlockSpec((1, Cin, Hp, Wp), lambda n, t: (n, 0, 0, 0),
                             **x_spec_kwargs),                          # resident image
                pl.BlockSpec((KK, Cout, Cin), lambda n, t: (0, 0, 0)),  # blended weights
                pl.BlockSpec((Cout, 1), lambda n, t: (0, 0)),           # blended bias
            ],
            out_specs=pl.BlockSpec((1, Cout, TH * Wo), lambda n, t: (n, 0, t)),
        ),
        compiler_params=pltpu.CompilerParams(
            dimension_semantics=("parallel", "parallel"),
            vmem_limit_bytes=vmem_limit,
            allow_input_fusion=[True, False, False],
        ),
    )(x_pad, w_taps, b_col)

    # Trailing reshape only (free): flattened spatial -> (Ho, Wo).  Output is NCHW.
    return out_flat.reshape(N, Cout, Ho, Wo)


def _conv2d_ref(x_nchw, w_oihw, b, padding=1):
    out = lax.conv_general_dilated(
        x_nchw.astype(jnp.float32), w_oihw.astype(jnp.float32),
        window_strides=(1, 1),
        padding=((padding, padding), (padding, padding)),
        dimension_numbers=("NCHW", "OIHW", "NCHW"),
        precision=lax.Precision.HIGHEST)
    return out + b.reshape(1, -1, 1, 1).astype(jnp.float32)


if __name__ == "__main__":
    # Small deterministic shapes consistent with the module: nn.Conv2d(4, 8, 3, padding=1)
    N, Cin, H, W = 2, 4, 16, 16
    Cout, K = 8, 3

    key = jax.random.PRNGKey(0)
    kx, kwp, kbp, kwc, kbc = jax.random.split(key, 5)
    x = jax.random.normal(kx, (N, Cin, H, W), jnp.float32)
    w_pre = jax.random.normal(kwp, (Cout, Cin, K, K), jnp.float32) * 0.1
    b_pre = jax.random.normal(kbp, (Cout,), jnp.float32) * 0.1
    w_cur = jax.random.normal(kwc, (Cout, Cin, K, K), jnp.float32) * 0.1
    b_cur = jax.random.normal(kbc, (Cout,), jnp.float32) * 0.1

    r = 0.3
    ref_interp = _conv2d_ref(x, w_pre, b_pre) * (1.0 - r) + _conv2d_ref(x, w_cur, b_cur) * r
    ref_none = _conv2d_ref(x, w_cur, b_cur)

    # Case 1: interpolation_factor set, f32 MXU operands (tight check).
    y32 = twin_conv(x, w_pre, b_pre, w_cur, b_cur, interpolation_factor=r,
                    compute_dtype=jnp.float32)
    y32 = jax.block_until_ready(y32)
    assert y32.shape == (N, Cout, H, W)
    assert jnp.allclose(y32, ref_interp, atol=1e-3, rtol=1e-3), "interp (f32) mismatch"

    # Case 2: default "auto" path (bf16 MXU operands, f32 accumulation) -- loose check.
    ybf = twin_conv(x, w_pre, b_pre, w_cur, b_cur, interpolation_factor=r)
    ybf = jax.block_until_ready(ybf)
    assert ybf.shape == (N, Cout, H, W)
    assert jnp.allclose(ybf, ref_interp, atol=5e-2, rtol=5e-2), "interp (bf16) mismatch"

    # Case 3: interpolation_factor is None -> pure conv_current.
    yn = twin_conv(x, w_pre, b_pre, w_cur, b_cur, interpolation_factor=None,
                   compute_dtype=jnp.float32)
    yn = jax.block_until_ready(yn)
    assert jnp.allclose(yn, ref_none, atol=1e-3, rtol=1e-3), "None-case mismatch"

    print("KERNEL_OK")
</pallas_src>

<mosaic_0001>
module attributes {stable_mosaic.version = 11 : i64} {
  func.func @_twin_conv_kernel(%arg0: i32, %arg1: i32, %arg2: memref<1x4x18x18xf32, #tpu.memory_space<vmem>>, %arg3: memref<9x8x4xf32, #tpu.memory_space<vmem>>, %arg4: memref<8x1xf32, #tpu.memory_space<vmem>>, %arg5: memref<1x8x128xf32, #tpu.memory_space<vmem>>) attributes {dimension_semantics = [#tpu.dimension_semantics<parallel>, #tpu.dimension_semantics<parallel>], iteration_bounds = array<i64: 2, 2>, scalar_prefetch = 0 : i64, scratch_operands = 0 : i64, tpu.core_type = #tpu.core_type<tc>, window_params = [{transform_indices = @transform_0, window_bounds = array<i64: 1, 4, 18, 18>}, {pipeline_mode = #tpu.pipeline_mode<synchronous>, transform_indices = @transform_1, window_bounds = array<i64: 9, 8, 4>}, {pipeline_mode = #tpu.pipeline_mode<synchronous>, transform_indices = @transform_2, window_bounds = array<i64: 8, 1>}, {transform_indices = @transform_3, window_bounds = array<i64: 1, 8, 128>}]} {
    %c8_i32 = arith.constant 8 : i32
    %0 = arith.muli %arg1, %c8_i32 : i32
    %1 = tpu.assume_multiple %0, 8 : i32
    %c0 = arith.constant 0 : index
    %c0_0 = arith.constant 0 : index
    %c0_1 = arith.constant 0 : index
    %2 = vector.load %arg3[%c0, %c0_0, %c0_1] : memref<9x8x4xf32, #tpu.memory_space<vmem>>, vector<1x8x4xf32>
    %3 = vector.shape_cast %2 : vector<1x8x4xf32> to vector<8x4xf32>
    %c1 = arith.constant 1 : index
    %c0_2 = arith.constant 0 : index
    %c0_3 = arith.constant 0 : index
    %4 = vector.load %arg3[%c1, %c0_2, %c0_3] : memref<9x8x4xf32, #tpu.memory_space<vmem>>, vector<1x8x4xf32>
    %5 = vector.shape_cast %4 : vector<1x8x4xf32> to vector<8x4xf32>
    %c2 = arith.constant 2 : index
    %c0_4 = arith.constant 0 : index
    %c0_5 = arith.constant 0 : index
    %6 = vector.load %arg3[%c2, %c0_4, %c0_5] : memref<9x8x4xf32, #tpu.memory_space<vmem>>, vector<1x8x4xf32>
    %7 = vector.shape_cast %6 : vector<1x8x4xf32> to vector<8x4xf32>
    %c3 = arith.constant 3 : index
    %c0_6 = arith.constant 0 : index
    %c0_7 = arith.constant 0 : index
    %8 = vector.load %arg3[%c3, %c0_6, %c0_7] : memref<9x8x4xf32, #tpu.memory_space<vmem>>, vector<1x8x4xf32>
    %9 = vector.shape_cast %8 : vector<1x8x4xf32> to vector<8x4xf32>
    %c4 = arith.constant 4 : index
    %c0_8 = arith.constant 0 : index
    %c0_9 = arith.constant 0 : index
    %10 = vector.load %arg3[%c4, %c0_8, %c0_9] : memref<9x8x4xf32, #tpu.memory_space<vmem>>, vector<1x8x4xf32>
    %11 = vector.shape_cast %10 : vector<1x8x4xf32> to vector<8x4xf32>
    %c5 = arith.constant 5 : index
    %c0_10 = arith.constant 0 : index
    %c0_11 = arith.constant 0 : index
    %12 = vector.load %arg3[%c5, %c0_10, %c0_11] : memref<9x8x4xf32, #tpu.memory_space<vmem>>, vector<1x8x4xf32>
    %13 = vector.shape_cast %12 : vector<1x8x4xf32> to vector<8x4xf32>
    %c6 = arith.constant 6 : index
    %c0_12 = arith.constant 0 : index
    %c0_13 = arith.constant 0 : index
    %14 = vector.load %arg3[%c6, %c0_12, %c0_13] : memref<9x8x4xf32, #tpu.memory_space<vmem>>, vector<1x8x4xf32>
    %15 = vector.shape_cast %14 : vector<1x8x4xf32> to vector<8x4xf32>
    %c7 = arith.constant 7 : index
    %c0_14 = arith.constant 0 : index
    %c0_15 = arith.constant 0 : index
    %16 = vector.load %arg3[%c7, %c0_14, %c0_15] : memref<9x8x4xf32, #tpu.memory_space<vmem>>, vector<1x8x4xf32>
    %17 = vector.shape_cast %16 : vector<1x8x4xf32> to vector<8x4xf32>
    %c8 = arith.constant 8 : index
    %c0_16 = arith.constant 0 : index
    %c0_17 = arith.constant 0 : index
    %18 = vector.load %arg3[%c8, %c0_16, %c0_17] : memref<9x8x4xf32, #tpu.memory_space<vmem>>, vector<1x8x4xf32>
    %19 = vector.shape_cast %18 : vector<1x8x4xf32> to vector<8x4xf32>
    %c0_18 = arith.constant 0 : index
    %c0_19 = arith.constant 0 : index
    %20 = vector.load %arg4[%c0_18, %c0_19] : memref<8x1xf32, #tpu.memory_space<vmem>>, vector<8x1xf32>
    %21 = vector.shape_cast %20 : vector<8x1xf32> to vector<8x1xf32>
    %22 = vector.broadcast %21 : vector<8x1xf32> to vector<8x16xf32>
    %c0_i32 = arith.constant 0 : i32
    %23 = arith.addi %1, %c0_i32 : i32
    %c0_20 = arith.constant 0 : index
    %c0_21 = arith.constant 0 : index
    %24 = arith.index_cast %23 : i32 to index
    %c0_22 = arith.constant 0 : index
    %25 = vector.load %arg2[%c0_20, %c0_21, %24, %c0_22] : memref<1x4x18x18xf32, #tpu.memory_space<vmem>>, vector<1x4x1x18xf32>
    %26 = vector.shape_cast %25 : vector<1x4x1x18xf32> to vector<4x18xf32>
    %c1_i32 = arith.constant 1 : i32
    %27 = arith.addi %1, %c1_i32 : i32
    %c0_23 = arith.constant 0 : index
    %c0_24 = arith.constant 0 : index
    %28 = arith.index_cast %27 : i32 to index
    %c0_25 = arith.constant 0 : index
    %29 = vector.load %arg2[%c0_23, %c0_24, %28, %c0_25] : memref<1x4x18x18xf32, #tpu.memory_space<vmem>>, vector<1x4x1x18xf32>
    %30 = vector.shape_cast %29 : vector<1x4x1x18xf32> to vector<4x18xf32>
    %c0_i32_26 = arith.constant 0 : i32
    %31 = arith.addi %1, %c0_i32_26 : i32
    %c3_i32 = arith.constant 3 : i32
    %32 = arith.addi %31, %c3_i32 : i32
    %c1_i32_27 = arith.constant 1 : i32
    %33 = arith.subi %32, %c1_i32_27 : i32
    %c0_28 = arith.constant 0 : index
    %c0_29 = arith.constant 0 : index
    %34 = arith.index_cast %33 : i32 to index
    %c0_30 = arith.constant 0 : index
    %35 = vector.load %arg2[%c0_28, %c0_29, %34, %c0_30] : memref<1x4x18x18xf32, #tpu.memory_space<vmem>>, vector<1x4x1x18xf32>
    %36 = vector.shape_cast %35 : vector<1x4x1x18xf32> to vector<4x18xf32>
    %37 = vector.extract_strided_slice %26 {offsets = [0, 0], sizes = [4, 16], strides = [1, 1]} : vector<4x18xf32> to vector<4x16xf32>
    %cst = arith.constant dense<0.000000e+00> : vector<8x16xf32>
    %38 = tpu.matmul %3, %37, %cst {dimension_numbers = #tpu.dot_dimension_numbers<[1], [0], [0], [1], [0, 0, 1, 1], [], []>, precision = #tpu.contract_precision<fp32>} : vector<8x4xf32>, vector<4x16xf32>, vector<8x16xf32> -> vector<8x16xf32>
    %39 = vector.extract_strided_slice %26 {offsets = [0, 1], sizes = [4, 16], strides = [1, 1]} : vector<4x18xf32> to vector<4x16xf32>
    %cst_31 = arith.constant dense<0.000000e+00> : vector<8x16xf32>
    %40 = tpu.matmul %5, %39, %cst_31 {dimension_numbers = #tpu.dot_dimension_numbers<[1], [0], [0], [1], [0, 0, 1, 1], [], []>, precision = #tpu.contract_precision<fp32>} : vector<8x4xf32>, vector<4x16xf32>, vector<8x16xf32> -> vector<8x16xf32>
    %41 = arith.addf %38, %40 : vector<8x16xf32>
    %42 = vector.extract_strided_slice %26 {offsets = [0, 2], sizes = [4, 16], strides = [1, 1]} : vector<4x18xf32> to vector<4x16xf32>
    %cst_32 = arith.constant dense<0.000000e+00> : vector<8x16xf32>
    %43 = tpu.matmul %7, %42, %cst_32 {dimension_numbers = #tpu.dot_dimension_numbers<[1], [0], [0], [1], [0, 0, 1, 1], [], []>, precision = #tpu.contract_precision<fp32>} : vector<8x4xf32>, vector<4x16xf32>, vector<8x16xf32> -> vector<8x16xf32>
    %44 = arith.addf %41, %43 : vector<8x16xf32>
    %45 = vector.extract_strided_slice %30 {offsets = [0, 0], sizes = [4, 16], strides = [1, 1]} : vector<4x18xf32> to vector<4x16xf32>
    %cst_33 = arith.constant dense<0.000000e+00> : vector<8x16xf32>
    %46 = tpu.matmul %9, %45, %cst_33 {dimension_numbers = #tpu.dot_dimension_numbers<[1], [0], [0], [1], [0, 0, 1, 1], [], []>, precision = #tpu.contract_precision<fp32>} : vector<8x4xf32>, vector<4x16xf32>, vector<8x16xf32> -> vector<8x16xf32>
    %47 = arith.addf %44, %46 : vector<8x16xf32>
    %48 = vector.extract_strided_slice %30 {offsets = [0, 1], sizes = [4, 16], strides = [1, 1]} : vector<4x18xf32> to vector<4x16xf32>
    %cst_34 = arith.constant dense<0.000000e+00> : vector<8x16xf32>
    %49 = tpu.matmul %11, %48, %cst_34 {dimension_numbers = #tpu.dot_dimension_numbers<[1], [0], [0], [1], [0, 0, 1, 1], [], []>, precision = #tpu.contract_precision<fp32>} : vector<8x4xf32>, vector<4x16xf32>, vector<8x16xf32> -> vector<8x16xf32>
    %50 = arith.addf %47, %49 : vector<8x16xf32>
    %51 = vector.extract_strided_slice %30 {offsets = [0, 2], sizes = [4, 16], strides = [1, 1]} : vector<4x18xf32> to vector<4x16xf32>
    %cst_35 = arith.constant dense<0.000000e+00> : vector<8x16xf32>
    %52 = tpu.matmul %13, %51, %cst_35 {dimension_numbers = #tpu.dot_dimension_numbers<[1], [0], [0], [1], [0, 0, 1, 1], [], []>, precision = #tpu.contract_precision<fp32>} : vector<8x4xf32>, vector<4x16xf32>, vector<8x16xf32> -> vector<8x16xf32>
    %53 = arith.addf %50, %52 : vector<8x16xf32>
    %54 = vector.extract_strided_slice %36 {offsets = [0, 0], sizes = [4, 16], strides = [1, 1]} : vector<4x18xf32> to vector<4x16xf32>
    %cst_36 = arith.constant dense<0.000000e+00> : vector<8x16xf32>
    %55 = tpu.matmul %15, %54, %cst_36 {dimension_numbers = #tpu.dot_dimension_numbers<[1], [0], [0], [1], [0, 0, 1, 1], [], []>, precision = #tpu.contract_precision<fp32>} : vector<8x4xf32>, vector<4x16xf32>, vector<8x16xf32> -> vector<8x16xf32>
    %56 = arith.addf %53, %55 : vector<8x16xf32>
    %57 = vector.extract_strided_slice %36 {offsets = [0, 1], sizes = [4, 16], strides = [1, 1]} : vector<4x18xf32> to vector<4x16xf32>
    %cst_37 = arith.constant dense<0.000000e+00> : vector<8x16xf32>
    %58 = tpu.matmul %17, %57, %cst_37 {dimension_numbers = #tpu.dot_dimension_numbers<[1], [0], [0], [1], [0, 0, 1, 1], [], []>, precision = #tpu.contract_precision<fp32>} : vector<8x4xf32>, vector<4x16xf32>, vector<8x16xf32> -> vector<8x16xf32>
    %59 = arith.addf %56, %58 : vector<8x16xf32>
    %60 = vector.extract_strided_slice %36 {offsets = [0, 2], sizes = [4, 16], strides = [1, 1]} : vector<4x18xf32> to vector<4x16xf32>
    %cst_38 = arith.constant dense<0.000000e+00> : vector<8x16xf32>
    %61 = tpu.matmul %19, %60, %cst_38 {dimension_numbers = #tpu.dot_dimension_numbers<[1], [0], [0], [1], [0, 0, 1, 1], [], []>, precision = #tpu.contract_precision<fp32>} : vector<8x4xf32>, vector<4x16xf32>, vector<8x16xf32> -> vector<8x16xf32>
    %62 = arith.addf %59, %61 : vector<8x16xf32>
    %63 = arith.addf %62, %22 : vector<8x16xf32>
    %c0_39 = arith.constant 0 : index
    %c0_40 = arith.constant 0 : index
    %c0_41 = arith.constant 0 : index
    %64 = vector.load %arg5[%c0_39, %c0_40, %c0_41] : memref<1x8x128xf32, #tpu.memory_space<vmem>>, vector<1x8x16xf32>
    %65 = vector.shape_cast %64 : vector<1x8x16xf32> to vector<8x16xf32>
    %66 = vector.shape_cast %63 : vector<8x16xf32> to vector<1x8x16xf32>
    tpu.vector_store %arg5[%c0_39, %c0_40, %c0_41], %66 {strides = array<i32>} : memref<1x8x128xf32, #tpu.memory_space<vmem>>, vector<1x8x16xf32>,
    %c1_i32_42 = arith.constant 1 : i32
    %67 = arith.addi %1, %c1_i32_42 : i32
    %c3_i32_43 = arith.constant 3 : i32
    %68 = arith.addi %67, %c3_i32_43 : i32
    %c1_i32_44 = arith.constant 1 : i32
    %69 = arith.subi %68, %c1_i32_44 : i32
    %c0_45 = arith.constant 0 : index
    %c0_46 = arith.constant 0 : index
    %70 = arith.index_cast %69 : i32 to index
    %c0_47 = arith.constant 0 : index
    %71 = vector.load %arg2[%c0_45, %c0_46, %70, %c0_47] : memref<1x4x18x18xf32, #tpu.memory_space<vmem>>, vector<1x4x1x18xf32>
    %72 = vector.shape_cast %71 : vector<1x4x1x18xf32> to vector<4x18xf32>
    %73 = vector.extract_strided_slice %30 {offsets = [0, 0], sizes = [4, 16], strides = [1, 1]} : vector<4x18xf32> to vector<4x16xf32>
    %cst_48 = arith.constant dense<0.000000e+00> : vector<8x16xf32>
    %74 = tpu.matmul %3, %73, %cst_48 {dimension_numbers = #tpu.dot_dimension_numbers<[1], [0], [0], [1], [0, 0, 1, 1], [], []>, precision = #tpu.contract_precision<fp32>} : vector<8x4xf32>, vector<4x16xf32>, vector<8x16xf32> -> vector<8x16xf32>
    %75 = vector.extract_strided_slice %30 {offsets = [0, 1], sizes = [4, 16], strides = [1, 1]} : vector<4x18xf32> to vector<4x16xf32>
    %cst_49 = arith.constant dense<0.000000e+00> : vector<8x16xf32>
    %76 = tpu.matmul %5, %75, %cst_49 {dimension_numbers = #tpu.dot_dimension_numbers<[1], [0], [0], [1], [0, 0, 1, 1], [], []>, precision = #tpu.contract_precision<fp32>} : vector<8x4xf32>, vector<4x16xf32>, vector<8x16xf32> -> vector<8x16xf32>
    %77 = arith.addf %74, %76 : vector<8x16xf32>
    %78 = vector.extract_strided_slice %30 {offsets = [0, 2], sizes = [4, 16], strides = [1, 1]} : vector<4x18xf32> to vector<4x16xf32>
    %cst_50 = arith.constant dense<0.000000e+00> : vector<8x16xf32>
    %79 = tpu.matmul %7, %78, %cst_50 {dimension_numbers = #tpu.dot_dimension_numbers<[1], [0], [0], [1], [0, 0, 1, 1], [], []>, precision = #tpu.contract_precision<fp32>} : vector<8x4xf32>, vector<4x16xf32>, vector<8x16xf32> -> vector<8x16xf32>
    %80 = arith.addf %77, %79 : vector<8x16xf32>
    %81 = vector.extract_strided_slice %36 {offsets = [0, 0], sizes = [4, 16], strides = [1, 1]} : vector<4x18xf32> to vector<4x16xf32>
    %cst_51 = arith.constant dense<0.000000e+00> : vector<8x16xf32>
    %82 = tpu.matmul %9, %81, %cst_51 {dimension_numbers = #tpu.dot_dimension_numbers<[1], [0], [0], [1], [0, 0, 1, 1], [], []>, precision = #tpu.contract_precision<fp32>} : vector<8x4xf32>, vector<4x16xf32>, vector<8x16xf32> -> vector<8x16xf32>
    %83 = arith.addf %80, %82 : vector<8x16xf32>
    %84 = vector.extract_strided_slice %36 {offsets = [0, 1], sizes = [4, 16], strides = [1, 1]} : vector<4x18xf32> to vector<4x16xf32>
    %cst_52 = arith.constant dense<0.000000e+00> : vector<8x16xf32>
    %85 = tpu.matmul %11, %84, %cst_52 {dimension_numbers = #tpu.dot_dimension_numbers<[1], [0], [0], [1], [0, 0, 1, 1], [], []>, precision = #tpu.contract_precision<fp32>} : vector<8x4xf32>, vector<4x16xf32>, vector<8x16xf32> -> vector<8x16xf32>
    %86 = arith.addf %83, %85 : vector<8x16xf32>
    %87 = vector.extract_strided_slice %36 {offsets = [0, 2], sizes = [4, 16], strides = [1, 1]} : vector<4x18xf32> to vector<4x16xf32>
    %cst_53 = arith.constant dense<0.000000e+00> : vector<8x16xf32>
    %88 = tpu.matmul %13, %87, %cst_53 {dimension_numbers = #tpu.dot_dimension_numbers<[1], [0], [0], [1], [0, 0, 1, 1], [], []>, precision = #tpu.contract_precision<fp32>} : vector<8x4xf32>, vector<4x16xf32>, vector<8x16xf32> -> vector<8x16xf32>
    %89 = arith.addf %86, %88 : vector<8x16xf32>
    %90 = vector.extract_strided_slice %72 {offsets = [0, 0], sizes = [4, 16], strides = [1, 1]} : vector<4x18xf32> to vector<4x16xf32>
    %cst_54 = arith.constant dense<0.000000e+00> : vector<8x16xf32>
    %91 = tpu.matmul %15, %90, %cst_54 {dimension_numbers = #tpu.dot_dimension_numbers<[1], [0], [0], [1], [0, 0, 1, 1], [], []>, precision = #tpu.contract_precision<fp32>} : vector<8x4xf32>, vector<4x16xf32>, vector<8x16xf32> -> vector<8x16xf32>
    %92 = arith.addf %89, %91 : vector<8x16xf32>
    %93 = vector.extract_strided_slice %72 {offsets = [0, 1], sizes = [4, 16], strides = [1, 1]} : vector<4x18xf32> to vector<4x16xf32>
    %cst_55 = arith.constant dense<0.000000e+00> : vector<8x16xf32>
    %94 = tpu.matmul %17, %93, %cst_55 {dimension_numbers = #tpu.dot_dimension_numbers<[1], [0], [0], [1], [0, 0, 1, 1], [], []>, precision = #tpu.contract_precision<fp32>} : vector<8x4xf32>, vector<4x16xf32>, vector<8x16xf32> -> vector<8x16xf32>
    %95 = arith.addf %92, %94 : vector<8x16xf32>
    %96 = vector.extract_strided_slice %72 {offsets = [0, 2], sizes = [4, 16], strides = [1, 1]} : vector<4x18xf32> to vector<4x16xf32>
    %cst_56 = arith.constant dense<0.000000e+00> : vector<8x16xf32>
    %97 = tpu.matmul %19, %96, %cst_56 {dimension_numbers = #tpu.dot_dimension_numbers<[1], [0], [0], [1], [0, 0, 1, 1], [], []>, precision = #tpu.contract_precision<fp32>} : vector<8x4xf32>, vector<4x16xf32>, vector<8x16xf32> -> vector<8x16xf32>
    %98 = arith.addf %95, %97 : vector<8x16xf32>
    %99 = arith.addf %98, %22 : vector<8x16xf32>
    %c0_57 = arith.constant 0 : index
    %c0_58 = arith.constant 0 : index
    %c16 = arith.constant 16 : index
    %100 = vector.load %arg5[%c0_57, %c0_58, %c16] : memref<1x8x128xf32, #tpu.memory_space<vmem>>, vector<1x8x16xf32>
    %101 = vector.shape_cast %100 : vector<1x8x16xf32> to vector<8x16xf32>
    %102 = vector.shape_cast %99 : vector<8x16xf32> to vector<1x8x16xf32>
    tpu.vector_store %arg5[%c0_57, %c0_58, %c16], %102 {strides = array<i32>} : memref<1x8x128xf32, #tpu.memory_space<vmem>>, vector<1x8x16xf32>,
    %c2_i32 = arith.constant 2 : i32
    %103 = arith.addi %1, %c2_i32 : i32
    %c3_i32_59 = arith.constant 3 : i32
    %104 = arith.addi %103, %c3_i32_59 : i32
    %c1_i32_60 = arith.constant 1 : i32
    %105 = arith.subi %104, %c1_i32_60 : i32
    %c0_61 = arith.constant 0 : index
    %c0_62 = arith.constant 0 : index
    %106 = arith.index_cast %105 : i32 to index
    %c0_63 = arith.constant 0 : index
    %107 = vector.load %arg2[%c0_61, %c0_62, %106, %c0_63] : memref<1x4x18x18xf32, #tpu.memory_space<vmem>>, vector<1x4x1x18xf32>
    %108 = vector.shape_cast %107 : vector<1x4x1x18xf32> to vector<4x18xf32>
    %109 = vector.extract_strided_slice %36 {offsets = [0, 0], sizes = [4, 16], strides = [1, 1]} : vector<4x18xf32> to vector<4x16xf32>
    %cst_64 = arith.constant dense<0.000000e+00> : vector<8x16xf32>
    %110 = tpu.matmul %3, %109, %cst_64 {dimension_numbers = #tpu.dot_dimension_numbers<[1], [0], [0], [1], [0, 0, 1, 1], [], []>, precision = #tpu.contract_precision<fp32>} : vector<8x4xf32>, vector<4x16xf32>, vector<8x16xf32> -> vector<8x16xf32>
    %111 = vector.extract_strided_slice %36 {offsets = [0, 1], sizes = [4, 16], strides = [1, 1]} : vector<4x18xf32> to vector<4x16xf32>
    %cst_65 = arith.constant dense<0.000000e+00> : vector<8x16xf32>
    %112 = tpu.matmul %5, %111, %cst_65 {dimension_numbers = #tpu.dot_dimension_numbers<[1], [0], [0], [1], [0, 0, 1, 1], [], []>, precision = #tpu.contract_precision<fp32>} : vector<8x4xf32>, vector<4x16xf32>, vector<8x16xf32> -> vector<8x16xf32>
    %113 = arith.addf %110, %112 : vector<8x16xf32>
    %114 = vector.extract_strided_slice %36 {offsets = [0, 2], sizes = [4, 16], strides = [1, 1]} : vector<4x18xf32> to vector<4x16xf32>
    %cst_66 = arith.constant dense<0.000000e+00> : vector<8x16xf32>
    %115 = tpu.matmul %7, %114, %cst_66 {dimension_numbers = #tpu.dot_dimension_numbers<[1], [0], [0], [1], [0, 0, 1, 1], [], []>, precision = #tpu.contract_precision<fp32>} : vector<8x4xf32>, vector<4x16xf32>, vector<8x16xf32> -> vector<8x16xf32>
    %116 = arith.addf %113, %115 : vector<8x16xf32>
    %117 = vector.extract_strided_slice %72 {offsets = [0, 0], sizes = [4, 16], strides = [1, 1]} : vector<4x18xf32> to vector<4x16xf32>
    %cst_67 = arith.constant dense<0.000000e+00> : vector<8x16xf32>
    %118 = tpu.matmul %9, %117, %cst_67 {dimension_numbers = #tpu.dot_dimension_numbers<[1], [0], [0], [1], [0, 0, 1, 1], [], []>, precision = #tpu.contract_precision<fp32>} : vector<8x4xf32>, vector<4x16xf32>, vector<8x16xf32> -> vector<8x16xf32>
    %119 = arith.addf %116, %118 : vector<8x16xf32>
    %120 = vector.extract_strided_slice %72 {offsets = [0, 1], sizes = [4, 16], strides = [1, 1]} : vector<4x18xf32> to vector<4x16xf32>
    %cst_68 = arith.constant dense<0.000000e+00> : vector<8x16xf32>
    %121 = tpu.matmul %11, %120, %cst_68 {dimension_numbers = #tpu.dot_dimension_numbers<[1], [0], [0], [1], [0, 0, 1, 1], [], []>, precision = #tpu.contract_precision<fp32>} : vector<8x4xf32>, vector<4x16xf32>, vector<8x16xf32> -> vector<8x16xf32>
    %122 = arith.addf %119, %121 : vector<8x16xf32>
    %123 = vector.extract_strided_slice %72 {offsets = [0, 2], sizes = [4, 16], strides = [1, 1]} : vector<4x18xf32> to vector<4x16xf32>
    %cst_69 = arith.constant dense<0.000000e+00> : vector<8x16xf32>
    %124 = tpu.matmul %13, %123, %cst_69 {dimension_numbers = #tpu.dot_dimension_numbers<[1], [0], [0], [1], [0, 0, 1, 1], [], []>, precision = #tpu.contract_precision<fp32>} : vector<8x4xf32>, vector<4x16xf32>, vector<8x16xf32> -> vector<8x16xf32>
    %125 = arith.addf %122, %124 : vector<8x16xf32>
    %126 = vector.extract_strided_slice %108 {offsets = [0, 0], sizes = [4, 16], strides = [1, 1]} : vector<4x18xf32> to vector<4x16xf32>
    %cst_70 = arith.constant dense<0.000000e+00> : vector<8x16xf32>
    %127 = tpu.matmul %15, %126, %cst_70 {dimension_numbers = #tpu.dot_dimension_numbers<[1], [0], [0], [1], [0, 0, 1, 1], [], []>, precision = #tpu.contract_precision<fp32>} : vector<8x4xf32>, vector<4x16xf32>, vector<8x16xf32> -> vector<8x16xf32>
    %128 = arith.addf %125, %127 : vector<8x16xf32>
    %129 = vector.extract_strided_slice %108 {offsets = [0, 1], sizes = [4, 16], strides = [1, 1]} : vector<4x18xf32> to vector<4x16xf32>
    %cst_71 = arith.constant dense<0.000000e+00> : vector<8x16xf32>
    %130 = tpu.matmul %17, %129, %cst_71 {dimension_numbers = #tpu.dot_dimension_numbers<[1], [0], [0], [1], [0, 0, 1, 1], [], []>, precision = #tpu.contract_precision<fp32>} : vector<8x4xf32>, vector<4x16xf32>, vector<8x16xf32> -> vector<8x16xf32>
    %131 = arith.addf %128, %130 : vector<8x16xf32>
    %132 = vector.extract_strided_slice %108 {offsets = [0, 2], sizes = [4, 16], strides = [1, 1]} : vector<4x18xf32> to vector<4x16xf32>
    %cst_72 = arith.constant dense<0.000000e+00> : vector<8x16xf32>
    %133 = tpu.matmul %19, %132, %cst_72 {dimension_numbers = #tpu.dot_dimension_numbers<[1], [0], [0], [1], [0, 0, 1, 1], [], []>, precision = #tpu.contract_precision<fp32>} : vector<8x4xf32>, vector<4x16xf32>, vector<8x16xf32> -> vector<8x16xf32>
    %134 = arith.addf %131, %133 : vector<8x16xf32>
    %135 = arith.addf %134, %22 : vector<8x16xf32>
    %c0_73 = arith.constant 0 : index
    %c0_74 = arith.constant 0 : index
    %c32 = arith.constant 32 : index
    %136 = vector.load %arg5[%c0_73, %c0_74, %c32] : memref<1x8x128xf32, #tpu.memory_space<vmem>>, vector<1x8x16xf32>
    %137 = vector.shape_cast %136 : vector<1x8x16xf32> to vector<8x16xf32>
    %138 = vector.shape_cast %135 : vector<8x16xf32> to vector<1x8x16xf32>
    tpu.vector_store %arg5[%c0_73, %c0_74, %c32], %138 {strides = array<i32>} : memref<1x8x128xf32, #tpu.memory_space<vmem>>, vector<1x8x16xf32>,
    %c3_i32_75 = arith.constant 3 : i32
    %139 = arith.addi %1, %c3_i32_75 : i32
    %c3_i32_76 = arith.constant 3 : i32
    %140 = arith.addi %139, %c3_i32_76 : i32
    %c1_i32_77 = arith.constant 1 : i32
    %141 = arith.subi %140, %c1_i32_77 : i32
    %c0_78 = arith.constant 0 : index
    %c0_79 = arith.constant 0 : index
    %142 = arith.index_cast %141 : i32 to index
    %c0_80 = arith.constant 0 : index
    %143 = vector.load %arg2[%c0_78, %c0_79, %142, %c0_80] : memref<1x4x18x18xf32, #tpu.memory_space<vmem>>, vector<1x4x1x18xf32>
    %144 = vector.shape_cast %143 : vector<1x4x1x18xf32> to vector<4x18xf32>
    %145 = vector.extract_strided_slice %72 {offsets = [0, 0], sizes = [4, 16], strides = [1, 1]} : vector<4x18xf32> to vector<4x16xf32>
    %cst_81 = arith.constant dense<0.000000e+00> : vector<8x16xf32>
    %146 = tpu.matmul %3, %145, %cst_81 {dimension_numbers = #tpu.dot_dimension_numbers<[1], [0], [0], [1], [0, 0, 1, 1], [], []>, precision = #tpu.contract_precision<fp32>} : vector<8x4xf32>, vector<4x16xf32>, vector<8x16xf32> -> vector<8x16xf32>
    %147 = vector.extract_strided_slice %72 {offsets = [0, 1], sizes = [4, 16], strides = [1, 1]} : vector<4x18xf32> to vector<4x16xf32>
    %cst_82 = arith.constant dense<0.000000e+00> : vector<8x16xf32>
    %148 = tpu.matmul %5, %147, %cst_82 {dimension_numbers = #tpu.dot_dimension_numbers<[1], [0], [0], [1], [0, 0, 1, 1], [], []>, precision = #tpu.contract_precision<fp32>} : vector<8x4xf32>, vector<4x16xf32>, vector<8x16xf32> -> vector<8x16xf32>
    %149 = arith.addf %146, %148 : vector<8x16xf32>
    %150 = vector.extract_strided_slice %72 {offsets = [0, 2], sizes = [4, 16], strides = [1, 1]} : vector<4x18xf32> to vector<4x16xf32>
    %cst_83 = arith.constant dense<0.000000e+00> : vector<8x16xf32>
    %151 = tpu.matmul %7, %150, %cst_83 {dimension_numbers = #tpu.dot_dimension_numbers<[1], [0], [0], [1], [0, 0, 1, 1], [], []>, precision = #tpu.contract_precision<fp32>} : vector<8x4xf32>, vector<4x16xf32>, vector<8x16xf32> -> vector<8x16xf32>
    %152 = arith.addf %149, %151 : vector<8x16xf32>
    %153 = vector.extract_strided_slice %108 {offsets = [0, 0], sizes = [4, 16], strides = [1, 1]} : vector<4x18xf32> to vector<4x16xf32>
    %cst_84 = arith.constant dense<0.000000e+00> : vector<8x16xf32>
    %154 = tpu.matmul %9, %153, %cst_84 {dimension_numbers = #tpu.dot_dimension_numbers<[1], [0], [0], [1], [0, 0, 1, 1], [], []>, precision = #tpu.contract_precision<fp32>} : vector<8x4xf32>, vector<4x16xf32>, vector<8x16xf32> -> vector<8x16xf32>
    %155 = arith.addf %152, %154 : vector<8x16xf32>
    %156 = vector.extract_strided_slice %108 {offsets = [0, 1], sizes = [4, 16], strides = [1, 1]} : vector<4x18xf32> to vector<4x16xf32>
    %cst_85 = arith.constant dense<0.000000e+00> : vector<8x16xf32>
    %157 = tpu.matmul %11, %156, %cst_85 {dimension_numbers = #tpu.dot_dimension_numbers<[1], [0], [0], [1], [0, 0, 1, 1], [], []>, precision = #tpu.contract_precision<fp32>} : vector<8x4xf32>, vector<4x16xf32>, vector<8x16xf32> -> vector<8x16xf32>
    %158 = arith.addf %155, %157 : vector<8x16xf32>
    %159 = vector.extract_strided_slice %108 {offsets = [0, 2], sizes = [4, 16], strides = [1, 1]} : vector<4x18xf32> to vector<4x16xf32>
    %cst_86 = arith.constant dense<0.000000e+00> : vector<8x16xf32>
    %160 = tpu.matmul %13, %159, %cst_86 {dimension_numbers = #tpu.dot_dimension_numbers<[1], [0], [0], [1], [0, 0, 1, 1], [], []>, precision = #tpu.contract_precision<fp32>} : vector<8x4xf32>, vector<4x16xf32>, vector<8x16xf32> -> vector<8x16xf32>
    %161 = arith.addf %158, %160 : vector<8x16xf32>
    %162 = vector.extract_strided_slice %144 {offsets = [0, 0], sizes = [4, 16], strides = [1, 1]} : vector<4x18xf32> to vector<4x16xf32>
    %cst_87 = arith.constant dense<0.000000e+00> : vector<8x16xf32>
    %163 = tpu.matmul %15, %162, %cst_87 {dimension_numbers = #tpu.dot_dimension_numbers<[1], [0], [0], [1], [0, 0, 1, 1], [], []>, precision = #tpu.contract_precision<fp32>} : vector<8x4xf32>, vector<4x16xf32>, vector<8x16xf32> -> vector<8x16xf32>
    %164 = arith.addf %161, %163 : vector<8x16xf32>
    %165 = vector.extract_strided_slice %144 {offsets = [0, 1], sizes = [4, 16], strides = [1, 1]} : vector<4x18xf32> to vector<4x16xf32>
    %cst_88 = arith.constant dense<0.000000e+00> : vector<8x16xf32>
    %166 = tpu.matmul %17, %165, %cst_88 {dimension_numbers = #tpu.dot_dimension_numbers<[1], [0], [0], [1], [0, 0, 1, 1], [], []>, precision = #tpu.contract_precision<fp32>} : vector<8x4xf32>, vector<4x16xf32>, vector<8x16xf32> -> vector<8x16xf32>
    %167 = arith.addf %164, %166 : vector<8x16xf32>
    %168 = vector.extract_strided_slice %144 {offsets = [0, 2], sizes = [4, 16], strides = [1, 1]} : vector<4x18xf32> to vector<4x16xf32>
    %cst_89 = arith.constant dense<0.000000e+00> : vector<8x16xf32>
    %169 = tpu.matmul %19, %168, %cst_89 {dimension_numbers = #tpu.dot_dimension_numbers<[1], [0], [0], [1], [0, 0, 1, 1], [], []>, precision = #tpu.contract_precision<fp32>} : vector<8x4xf32>, vector<4x16xf32>, vector<8x16xf32> -> vector<8x16xf32>
    %170 = arith.addf %167, %169 : vector<8x16xf32>
    %171 = arith.addf %170, %22 : vector<8x16xf32>
    %c0_90 = arith.constant 0 : index
    %c0_91 = arith.constant 0 : index
    %c48 = arith.constant 48 : index
    %172 = vector.load %arg5[%c0_90, %c0_91, %c48] : memref<1x8x128xf32, #tpu.memory_space<vmem>>, vector<1x8x16xf32>
    %173 = vector.shape_cast %172 : vector<1x8x16xf32> to vector<8x16xf32>
    %174 = vector.shape_cast %171 : vector<8x16xf32> to vector<1x8x16xf32>
    tpu.vector_store %arg5[%c0_90, %c0_91, %c48], %174 {strides = array<i32>} : memref<1x8x128xf32, #tpu.memory_space<vmem>>, vector<1x8x16xf32>,
    %c4_i32 = arith.constant 4 : i32
    %175 = arith.addi %1, %c4_i32 : i32
    %c3_i32_92 = arith.constant 3 : i32
    %176 = arith.addi %175, %c3_i32_92 : i32
    %c1_i32_93 = arith.constant 1 : i32
    %177 = arith.subi %176, %c1_i32_93 : i32
    %c0_94 = arith.constant 0 : index
    %c0_95 = arith.constant 0 : index
    %178 = arith.index_cast %177 : i32 to index
    %c0_96 = arith.constant 0 : index
    %179 = vector.load %arg2[%c0_94, %c0_95, %178, %c0_96] : memref<1x4x18x18xf32, #tpu.memory_space<vmem>>, vector<1x4x1x18xf32>
    %180 = vector.shape_cast %179 : vector<1x4x1x18xf32> to vector<4x18xf32>
    %181 = vector.extract_strided_slice %108 {offsets = [0, 0], sizes = [4, 16], strides = [1, 1]} : vector<4x18xf32> to vector<4x16xf32>
    %cst_97 = arith.constant dense<0.000000e+00> : vector<8x16xf32>
    %182 = tpu.matmul %3, %181, %cst_97 {dimension_numbers = #tpu.dot_dimension_numbers<[1], [0], [0], [1], [0, 0, 1, 1], [], []>, precision = #tpu.contract_precision<fp32>} : vector<8x4xf32>, vector<4x16xf32>, vector<8x16xf32> -> vector<8x16xf32>
    %183 = vector.extract_strided_slice %108 {offsets = [0, 1], sizes = [4, 16], strides = [1, 1]} : vector<4x18xf32> to vector<4x16xf32>
    %cst_98 = arith.constant dense<0.000000e+00> : vector<8x16xf32>
    %184 = tpu.matmul %5, %183, %cst_98 {dimension_numbers = #tpu.dot_dimension_numbers<[1], [0], [0], [1], [0, 0, 1, 1], [], []>, precision = #tpu.contract_precision<fp32>} : vector<8x4xf32>, vector<4x16xf32>, vector<8x16xf32> -> vector<8x16xf32>
    %185 = arith.addf %182, %184 : vector<8x16xf32>
    %186 = vector.extract_strided_slice %108 {offsets = [0, 2], sizes = [4, 16], strides = [1, 1]} : vector<4x18xf32> to vector<4x16xf32>
    %cst_99 = arith.constant dense<0.000000e+00> : vector<8x16xf32>
    %187 = tpu.matmul %7, %186, %cst_99 {dimension_numbers = #tpu.dot_dimension_numbers<[1], [0], [0], [1], [0, 0, 1, 1], [], []>, precision = #tpu.contract_precision<fp32>} : vector<8x4xf32>, vector<4x16xf32>, vector<8x16xf32> -> vector<8x16xf32>
    %188 = arith.addf %185, %187 : vector<8x16xf32>
    %189 = vector.extract_strided_slice %144 {offsets = [0, 0], sizes = [4, 16], strides = [1, 1]} : vector<4x18xf32> to vector<4x16xf32>
    %cst_100 = arith.constant dense<0.000000e+00> : vector<8x16xf32>
    %190 = tpu.matmul %9, %189, %cst_100 {dimension_numbers = #tpu.dot_dimension_numbers<[1], [0], [0], [1], [0, 0, 1, 1], [], []>, precision = #tpu.contract_precision<fp32>} : vector<8x4xf32>, vector<4x16xf32>, vector<8x16xf32> -> vector<8x16xf32>
    %191 = arith.addf %188, %190 : vector<8x16xf32>
    %192 = vector.extract_strided_slice %144 {offsets = [0, 1], sizes = [4, 16], strides = [1, 1]} : vector<4x18xf32> to vector<4x16xf32>
    %cst_101 = arith.constant dense<0.000000e+00> : vector<8x16xf32>
    %193 = tpu.matmul %11, %192, %cst_101 {dimension_numbers = #tpu.dot_dimension_numbers<[1], [0], [0], [1], [0, 0, 1, 1], [], []>, precision = #tpu.contract_precision<fp32>} : vector<8x4xf32>, vector<4x16xf32>, vector<8x16xf32> -> vector<8x16xf32>
    %194 = arith.addf %191, %193 : vector<8x16xf32>
    %195 = vector.extract_strided_slice %144 {offsets = [0, 2], sizes = [4, 16], strides = [1, 1]} : vector<4x18xf32> to vector<4x16xf32>
    %cst_102 = arith.constant dense<0.000000e+00> : vector<8x16xf32>
    %196 = tpu.matmul %13, %195, %cst_102 {dimension_numbers = #tpu.dot_dimension_numbers<[1], [0], [0], [1], [0, 0, 1, 1], [], []>, precision = #tpu.contract_precision<fp32>} : vector<8x4xf32>, vector<4x16xf32>, vector<8x16xf32> -> vector<8x16xf32>
    %197 = arith.addf %194, %196 : vector<8x16xf32>
    %198 = vector.extract_strided_slice %180 {offsets = [0, 0], sizes = [4, 16], strides = [1, 1]} : vector<4x18xf32> to vector<4x16xf32>
    %cst_103 = arith.constant dense<0.000000e+00> : vector<8x16xf32>
    %199 = tpu.matmul %15, %198, %cst_103 {dimension_numbers = #tpu.dot_dimension_numbers<[1], [0], [0], [1], [0, 0, 1, 1], [], []>, precision = #tpu.contract_precision<fp32>} : vector<8x4xf32>, vector<4x16xf32>, vector<8x16xf32> -> vector<8x16xf32>
    %200 = arith.addf %197, %199 : vector<8x16xf32>
    %201 = vector.extract_strided_slice %180 {offsets = [0, 1], sizes = [4, 16], strides = [1, 1]} : vector<4x18xf32> to vector<4x16xf32>
    %cst_104 = arith.constant dense<0.000000e+00> : vector<8x16xf32>
    %202 = tpu.matmul %17, %201, %cst_104 {dimension_numbers = #tpu.dot_dimension_numbers<[1], [0], [0], [1], [0, 0, 1, 1], [], []>, precision = #tpu.contract_precision<fp32>} : vector<8x4xf32>, vector<4x16xf32>, vector<8x16xf32> -> vector<8x16xf32>
    %203 = arith.addf %200, %202 : vector<8x16xf32>
    %204 = vector.extract_strided_slice %180 {offsets = [0, 2], sizes = [4, 16], strides = [1, 1]} : vector<4x18xf32> to vector<4x16xf32>
    %cst_105 = arith.constant dense<0.000000e+00> : vector<8x16xf32>
    %205 = tpu.matmul %19, %204, %cst_105 {dimension_numbers = #tpu.dot_dimension_numbers<[1], [0], [0], [1], [0, 0, 1, 1], [], []>, precision = #tpu.contract_precision<fp32>} : vector<8x4xf32>, vector<4x16xf32>, vector<8x16xf32> -> vector<8x16xf32>
    %206 = arith.addf %203, %205 : vector<8x16xf32>
    %207 = arith.addf %206, %22 : vector<8x16xf32>
    %c0_106 = arith.constant 0 : index
    %c0_107 = arith.constant 0 : index
    %c64 = arith.constant 64 : index
    %208 = vector.load %arg5[%c0_106, %c0_107, %c64] : memref<1x8x128xf32, #tpu.memory_space<vmem>>, vector<1x8x16xf32>
    %209 = vector.shape_cast %208 : vector<1x8x16xf32> to vector<8x16xf32>
    %210 = vector.shape_cast %207 : vector<8x16xf32> to vector<1x8x16xf32>
    tpu.vector_store %arg5[%c0_106, %c0_107, %c64], %210 {strides = array<i32>} : memref<1x8x128xf32, #tpu.memory_space<vmem>>, vector<1x8x16xf32>,
    %c5_i32 = arith.constant 5 : i32
    %211 = arith.addi %1, %c5_i32 : i32
    %c3_i32_108 = arith.constant 3 : i32
    %212 = arith.addi %211, %c3_i32_108 : i32
    %c1_i32_109 = arith.constant 1 : i32
    %213 = arith.subi %212, %c1_i32_109 : i32
    %c0_110 = arith.constant 0 : index
    %c0_111 = arith.constant 0 : index
    %214 = arith.index_cast %213 : i32 to index
    %c0_112 = arith.constant 0 : index
    %215 = vector.load %arg2[%c0_110, %c0_111, %214, %c0_112] : memref<1x4x18x18xf32, #tpu.memory_space<vmem>>, vector<1x4x1x18xf32>
    %216 = vector.shape_cast %215 : vector<1x4x1x18xf32> to vector<4x18xf32>
    %217 = vector.extract_strided_slice %144 {offsets = [0, 0], sizes = [4, 16], strides = [1, 1]} : vector<4x18xf32> to vector<4x16xf32>
    %cst_113 = arith.constant dense<0.000000e+00> : vector<8x16xf32>
    %218 = tpu.matmul %3, %217, %cst_113 {dimension_numbers = #tpu.dot_dimension_numbers<[1], [0], [0], [1], [0, 0, 1, 1], [], []>, precision = #tpu.contract_precision<fp32>} : vector<8x4xf32>, vector<4x16xf32>, vector<8x16xf32> -> vector<8x16xf32>
    %219 = vector.extract_strided_slice %144 {offsets = [0, 1], sizes = [4, 16], strides = [1, 1]} : vector<4x18xf32> to vector<4x16xf32>
    %cst_114 = arith.constant dense<0.000000e+00> : vector<8x16xf32>
    %220 = tpu.matmul %5, %219, %cst_114 {dimension_numbers = #tpu.dot_dimension_numbers<[1], [0], [0], [1], [0, 0, 1, 1], [], []>, precision = #tpu.contract_precision<fp32>} : vector<8x4xf32>, vector<4x16xf32>, vector<8x16xf32> -> vector<8x16xf32>
    %221 = arith.addf %218, %220 : vector<8x16xf32>
    %222 = vector.extract_strided_slice %144 {offsets = [0, 2], sizes = [4, 16], strides = [1, 1]} : vector<4x18xf32> to vector<4x16xf32>
    %cst_115 = arith.constant dense<0.000000e+00> : vector<8x16xf32>
    %223 = tpu.matmul %7, %222, %cst_115 {dimension_numbers = #tpu.dot_dimension_numbers<[1], [0], [0], [1], [0, 0, 1, 1], [], []>, precision = #tpu.contract_precision<fp32>} : vector<8x4xf32>, vector<4x16xf32>, vector<8x16xf32> -> vector<8x16xf32>
    %224 = arith.addf %221, %223 : vector<8x16xf32>
    %225 = vector.extract_strided_slice %180 {offsets = [0, 0], sizes = [4, 16], strides = [1, 1]} : vector<4x18xf32> to vector<4x16xf32>
    %cst_116 = arith.constant dense<0.000000e+00> : vector<8x16xf32>
    %226 = tpu.matmul %9, %225, %cst_116 {dimension_numbers = #tpu.dot_dimension_numbers<[1], [0], [0], [1], [0, 0, 1, 1], [], []>, precision = #tpu.contract_precision<fp32>} : vector<8x4xf32>, vector<4x16xf32>, vector<8x16xf32> -> vector<8x16xf32>
    %227 = arith.addf %224, %226 : vector<8x16xf32>
    %228 = vector.extract_strided_slice %180 {offsets = [0, 1], sizes = [4, 16], strides = [1, 1]} : vector<4x18xf32> to vector<4x16xf32>
    %cst_117 = arith.constant dense<0.000000e+00> : vector<8x16xf32>
    %229 = tpu.matmul %11, %228, %cst_117 {dimension_numbers = #tpu.dot_dimension_numbers<[1], [0], [0], [1], [0, 0, 1, 1], [], []>, precision = #tpu.contract_precision<fp32>} : vector<8x4xf32>, vector<4x16xf32>, vector<8x16xf32> -> vector<8x16xf32>
    %230 = arith.addf %227, %229 : vector<8x16xf32>
    %231 = vector.extract_strided_slice %180 {offsets = [0, 2], sizes = [4, 16], strides = [1, 1]} : vector<4x18xf32> to vector<4x16xf32>
    %cst_118 = arith.constant dense<0.000000e+00> : vector<8x16xf32>
    %232 = tpu.matmul %13, %231, %cst_118 {dimension_numbers = #tpu.dot_dimension_numbers<[1], [0], [0], [1], [0, 0, 1, 1], [], []>, precision = #tpu.contract_precision<fp32>} : vector<8x4xf32>, vector<4x16xf32>, vector<8x16xf32> -> vector<8x16xf32>
    %233 = arith.addf %230, %232 : vector<8x16xf32>
    %234 = vector.extract_strided_slice %216 {offsets = [0, 0], sizes = [4, 16], strides = [1, 1]} : vector<4x18xf32> to vector<4x16xf32>
    %cst_119 = arith.constant dense<0.000000e+00> : vector<8x16xf32>
    %235 = tpu.matmul %15, %234, %cst_119 {dimension_numbers = #tpu.dot_dimension_numbers<[1], [0], [0], [1], [0, 0, 1, 1], [], []>, precision = #tpu.contract_precision<fp32>} : vector<8x4xf32>, vector<4x16xf32>, vector<8x16xf32> -> vector<8x16xf32>
    %236 = arith.addf %233, %235 : vector<8x16xf32>
    %237 = vector.extract_strided_slice %216 {offsets = [0, 1], sizes = [4, 16], strides = [1, 1]} : vector<4x18xf32> to vector<4x16xf32>
    %cst_120 = arith.constant dense<0.000000e+00> : vector<8x16xf32>
    %238 = tpu.matmul %17, %237, %cst_120 {dimension_numbers = #tpu.dot_dimension_numbers<[1], [0], [0], [1], [0, 0, 1, 1], [], []>, precision = #tpu.contract_precision<fp32>} : vector<8x4xf32>, vector<4x16xf32>, vector<8x16xf32> -> vector<8x16xf32>
    %239 = arith.addf %236, %238 : vector<8x16xf32>
    %240 = vector.extract_strided_slice %216 {offsets = [0, 2], sizes = [4, 16], strides = [1, 1]} : vector<4x18xf32> to vector<4x16xf32>
    %cst_121 = arith.constant dense<0.000000e+00> : vector<8x16xf32>
    %241 = tpu.matmul %19, %240, %cst_121 {dimension_numbers = #tpu.dot_dimension_numbers<[1], [0], [0], [1], [0, 0, 1, 1], [], []>, precision = #tpu.contract_precision<fp32>} : vector<8x4xf32>, vector<4x16xf32>, vector<8x16xf32> -> vector<8x16xf32>
    %242 = arith.addf %239, %241 : vector<8x16xf32>
    %243 = arith.addf %242, %22 : vector<8x16xf32>
    %c0_122 = arith.constant 0 : index
    %c0_123 = arith.constant 0 : index
    %c80 = arith.constant 80 : index
    %244 = vector.load %arg5[%c0_122, %c0_123, %c80] : memref<1x8x128xf32, #tpu.memory_space<vmem>>, vector<1x8x16xf32>
    %245 = vector.shape_cast %244 : vector<1x8x16xf32> to vector<8x16xf32>
    %246 = vector.shape_cast %243 : vector<8x16xf32> to vector<1x8x16xf32>
    tpu.vector_store %arg5[%c0_122, %c0_123, %c80], %246 {strides = array<i32>} : memref<1x8x128xf32, #tpu.memory_space<vmem>>, vector<1x8x16xf32>,
    %c6_i32 = arith.constant 6 : i32
    %247 = arith.addi %1, %c6_i32 : i32
    %c3_i32_124 = arith.constant 3 : i32
    %248 = arith.addi %247, %c3_i32_124 : i32
    %c1_i32_125 = arith.constant 1 : i32
    %249 = arith.subi %248, %c1_i32_125 : i32
    %c0_126 = arith.constant 0 : index
    %c0_127 = arith.constant 0 : index
    %250 = arith.index_cast %249 : i32 to index
    %c0_128 = arith.constant 0 : index
    %251 = vector.load %arg2[%c0_126, %c0_127, %250, %c0_128] : memref<1x4x18x18xf32, #tpu.memory_space<vmem>>, vector<1x4x1x18xf32>
    %252 = vector.shape_cast %251 : vector<1x4x1x18xf32> to vector<4x18xf32>
    %253 = vector.extract_strided_slice %180 {offsets = [0, 0], sizes = [4, 16], strides = [1, 1]} : vector<4x18xf32> to vector<4x16xf32>
    %cst_129 = arith.constant dense<0.000000e+00> : vector<8x16xf32>
    %254 = tpu.matmul %3, %253, %cst_129 {dimension_numbers = #tpu.dot_dimension_numbers<[1], [0], [0], [1], [0, 0, 1, 1], [], []>, precision = #tpu.contract_precision<fp32>} : vector<8x4xf32>, vector<4x16xf32>, vector<8x16xf32> -> vector<8x16xf32>
    %255 = vector.extract_strided_slice %180 {offsets = [0, 1], sizes = [4, 16], strides = [1, 1]} : vector<4x18xf32> to vector<4x16xf32>
    %cst_130 = arith.constant dense<0.000000e+00> : vector<8x16xf32>
    %256 = tpu.matmul %5, %255, %cst_130 {dimension_numbers = #tpu.dot_dimension_numbers<[1], [0], [0], [1], [0, 0, 1, 1], [], []>, precision = #tpu.contract_precision<fp32>} : vector<8x4xf32>, vector<4x16xf32>, vector<8x16xf32> -> vector<8x16xf32>
    %257 = arith.addf %254, %256 : vector<8x16xf32>
    %258 = vector.extract_strided_slice %180 {offsets = [0, 2], sizes = [4, 16], strides = [1, 1]} : vector<4x18xf32> to vector<4x16xf32>
    %cst_131 = arith.constant dense<0.000000e+00> : vector<8x16xf32>
    %259 = tpu.matmul %7, %258, %cst_131 {dimension_numbers = #tpu.dot_dimension_numbers<[1], [0], [0], [1], [0, 0, 1, 1], [], []>, precision = #tpu.contract_precision<fp32>} : vector<8x4xf32>, vector<4x16xf32>, vector<8x16xf32> -> vector<8x16xf32>
    %260 = arith.addf %257, %259 : vector<8x16xf32>
    %261 = vector.extract_strided_slice %216 {offsets = [0, 0], sizes = [4, 16], strides = [1, 1]} : vector<4x18xf32> to vector<4x16xf32>
    %cst_132 = arith.constant dense<0.000000e+00> : vector<8x16xf32>
    %262 = tpu.matmul %9, %261, %cst_132 {dimension_numbers = #tpu.dot_dimension_numbers<[1], [0], [0], [1], [0, 0, 1, 1], [], []>, precision = #tpu.contract_precision<fp32>} : vector<8x4xf32>, vector<4x16xf32>, vector<8x16xf32> -> vector<8x16xf32>
    %263 = arith.addf %260, %262 : vector<8x16xf32>
    %264 = vector.extract_strided_slice %216 {offsets = [0, 1], sizes = [4, 16], strides = [1, 1]} : vector<4x18xf32> to vector<4x16xf32>
    %cst_133 = arith.constant dense<0.000000e+00> : vector<8x16xf32>
    %265 = tpu.matmul %11, %264, %cst_133 {dimension_numbers = #tpu.dot_dimension_numbers<[1], [0], [0], [1], [0, 0, 1, 1], [], []>, precision = #tpu.contract_precision<fp32>} : vector<8x4xf32>, vector<4x16xf32>, vector<8x16xf32> -> vector<8x16xf32>
    %266 = arith.addf %263, %265 : vector<8x16xf32>
    %267 = vector.extract_strided_slice %216 {offsets = [0, 2], sizes = [4, 16], strides = [1, 1]} : vector<4x18xf32> to vector<4x16xf32>
    %cst_134 = arith.constant dense<0.000000e+00> : vector<8x16xf32>
    %268 = tpu.matmul %13, %267, %cst_134 {dimension_numbers = #tpu.dot_dimension_numbers<[1], [0], [0], [1], [0, 0, 1, 1], [], []>, precision = #tpu.contract_precision<fp32>} : vector<8x4xf32>, vector<4x16xf32>, vector<8x16xf32> -> vector<8x16xf32>
    %269 = arith.addf %266, %268 : vector<8x16xf32>
    %270 = vector.extract_strided_slice %252 {offsets = [0, 0], sizes = [4, 16], strides = [1, 1]} : vector<4x18xf32> to vector<4x16xf32>
    %cst_135 = arith.constant dense<0.000000e+00> : vector<8x16xf32>
    %271 = tpu.matmul %15, %270, %cst_135 {dimension_numbers = #tpu.dot_dimension_numbers<[1], [0], [0], [1], [0, 0, 1, 1], [], []>, precision = #tpu.contract_precision<fp32>} : vector<8x4xf32>, vector<4x16xf32>, vector<8x16xf32> -> vector<8x16xf32>
    %272 = arith.addf %269, %271 : vector<8x16xf32>
    %273 = vector.extract_strided_slice %252 {offsets = [0, 1], sizes = [4, 16], strides = [1, 1]} : vector<4x18xf32> to vector<4x16xf32>
    %cst_136 = arith.constant dense<0.000000e+00> : vector<8x16xf32>
    %274 = tpu.matmul %17, %273, %cst_136 {dimension_numbers = #tpu.dot_dimension_numbers<[1], [0], [0], [1], [0, 0, 1, 1], [], []>, precision = #tpu.contract_precision<fp32>} : vector<8x4xf32>, vector<4x16xf32>, vector<8x16xf32> -> vector<8x16xf32>
    %275 = arith.addf %272, %274 : vector<8x16xf32>
    %276 = vector.extract_strided_slice %252 {offsets = [0, 2], sizes = [4, 16], strides = [1, 1]} : vector<4x18xf32> to vector<4x16xf32>
    %cst_137 = arith.constant dense<0.000000e+00> : vector<8x16xf32>
    %277 = tpu.matmul %19, %276, %cst_137 {dimension_numbers = #tpu.dot_dimension_numbers<[1], [0], [0], [1], [0, 0, 1, 1], [], []>, precision = #tpu.contract_precision<fp32>} : vector<8x4xf32>, vector<4x16xf32>, vector<8x16xf32> -> vector<8x16xf32>
    %278 = arith.addf %275, %277 : vector<8x16xf32>
    %279 = arith.addf %278, %22 : vector<8x16xf32>
    %c0_138 = arith.constant 0 : index
    %c0_139 = arith.constant 0 : index
    %c96 = arith.constant 96 : index
    %280 = vector.load %arg5[%c0_138, %c0_139, %c96] : memref<1x8x128xf32, #tpu.memory_space<vmem>>, vector<1x8x16xf32>
    %281 = vector.shape_cast %280 : vector<1x8x16xf32> to vector<8x16xf32>
    %282 = vector.shape_cast %279 : vector<8x16xf32> to vector<1x8x16xf32>
    tpu.vector_store %arg5[%c0_138, %c0_139, %c96], %282 {strides = array<i32>} : memref<1x8x128xf32, #tpu.memory_space<vmem>>, vector<1x8x16xf32>,
    %c7_i32 = arith.constant 7 : i32
    %283 = arith.addi %1, %c7_i32 : i32
    %c3_i32_140 = arith.constant 3 : i32
    %284 = arith.addi %283, %c3_i32_140 : i32
    %c1_i32_141 = arith.constant 1 : i32
    %285 = arith.subi %284, %c1_i32_141 : i32
    %c0_142 = arith.constant 0 : index
    %c0_143 = arith.constant 0 : index
    %286 = arith.index_cast %285 : i32 to index
    %c0_144 = arith.constant 0 : index
    %287 = vector.load %arg2[%c0_142, %c0_143, %286, %c0_144] : memref<1x4x18x18xf32, #tpu.memory_space<vmem>>, vector<1x4x1x18xf32>
    %288 = vector.shape_cast %287 : vector<1x4x1x18xf32> to vector<4x18xf32>
    %289 = vector.extract_strided_slice %216 {offsets = [0, 0], sizes = [4, 16], strides = [1, 1]} : vector<4x18xf32> to vector<4x16xf32>
    %cst_145 = arith.constant dense<0.000000e+00> : vector<8x16xf32>
    %290 = tpu.matmul %3, %289, %cst_145 {dimension_numbers = #tpu.dot_dimension_numbers<[1], [0], [0], [1], [0, 0, 1, 1], [], []>, precision = #tpu.contract_precision<fp32>} : vector<8x4xf32>, vector<4x16xf32>, vector<8x16xf32> -> vector<8x16xf32>
    %291 = vector.extract_strided_slice %216 {offsets = [0, 1], sizes = [4, 16], strides = [1, 1]} : vector<4x18xf32> to vector<4x16xf32>
    %cst_146 = arith.constant dense<0.000000e+00> : vector<8x16xf32>
    %292 = tpu.matmul %5, %291, %cst_146 {dimension_numbers = #tpu.dot_dimension_numbers<[1], [0], [0], [1], [0, 0, 1, 1], [], []>, precision = #tpu.contract_precision<fp32>} : vector<8x4xf32>, vector<4x16xf32>, vector<8x16xf32> -> vector<8x16xf32>
    %293 = arith.addf %290, %292 : vector<8x16xf32>
    %294 = vector.extract_strided_slice %216 {offsets = [0, 2], sizes = [4, 16], strides = [1, 1]} : vector<4x18xf32> to vector<4x16xf32>
    %cst_147 = arith.constant dense<0.000000e+00> : vector<8x16xf32>
    %295 = tpu.matmul %7, %294, %cst_147 {dimension_numbers = #tpu.dot_dimension_numbers<[1], [0], [0], [1], [0, 0, 1, 1], [], []>, precision = #tpu.contract_precision<fp32>} : vector<8x4xf32>, vector<4x16xf32>, vector<8x16xf32> -> vector<8x16xf32>
    %296 = arith.addf %293, %295 : vector<8x16xf32>
    %297 = vector.extract_strided_slice %252 {offsets = [0, 0], sizes = [4, 16], strides = [1, 1]} : vector<4x18xf32> to vector<4x16xf32>
    %cst_148 = arith.constant dense<0.000000e+00> : vector<8x16xf32>
    %298 = tpu.matmul %9, %297, %cst_148 {dimension_numbers = #tpu.dot_dimension_numbers<[1], [0], [0], [1], [0, 0, 1, 1], [], []>, precision = #tpu.contract_precision<fp32>} : vector<8x4xf32>, vector<4x16xf32>, vector<8x16xf32> -> vector<8x16xf32>
    %299 = arith.addf %296, %298 : vector<8x16xf32>
    %300 = vector.extract_strided_slice %252 {offsets = [0, 1], sizes = [4, 16], strides = [1, 1]} : vector<4x18xf32> to vector<4x16xf32>
    %cst_149 = arith.constant dense<0.000000e+00> : vector<8x16xf32>
    %301 = tpu.matmul %11, %300, %cst_149 {dimension_numbers = #tpu.dot_dimension_numbers<[1], [0], [0], [1], [0, 0, 1, 1], [], []>, precision = #tpu.contract_precision<fp32>} : vector<8x4xf32>, vector<4x16xf32>, vector<8x16xf32> -> vector<8x16xf32>
    %302 = arith.addf %299, %301 : vector<8x16xf32>
    %303 = vector.extract_strided_slice %252 {offsets = [0, 2], sizes = [4, 16], strides = [1, 1]} : vector<4x18xf32> to vector<4x16xf32>
    %cst_150 = arith.constant dense<0.000000e+00> : vector<8x16xf32>
    %304 = tpu.matmul %13, %303, %cst_150 {dimension_numbers = #tpu.dot_dimension_numbers<[1], [0], [0], [1], [0, 0, 1, 1], [], []>, precision = #tpu.contract_precision<fp32>} : vector<8x4xf32>, vector<4x16xf32>, vector<8x16xf32> -> vector<8x16xf32>
    %305 = arith.addf %302, %304 : vector<8x16xf32>
    %306 = vector.extract_strided_slice %288 {offsets = [0, 0], sizes = [4, 16], strides = [1, 1]} : vector<4x18xf32> to vector<4x16xf32>
    %cst_151 = arith.constant dense<0.000000e+00> : vector<8x16xf32>
    %307 = tpu.matmul %15, %306, %cst_151 {dimension_numbers = #tpu.dot_dimension_numbers<[1], [0], [0], [1], [0, 0, 1, 1], [], []>, precision = #tpu.contract_precision<fp32>} : vector<8x4xf32>, vector<4x16xf32>, vector<8x16xf32> -> vector<8x16xf32>
    %308 = arith.addf %305, %307 : vector<8x16xf32>
    %309 = vector.extract_strided_slice %288 {offsets = [0, 1], sizes = [4, 16], strides = [1, 1]} : vector<4x18xf32> to vector<4x16xf32>
    %cst_152 = arith.constant dense<0.000000e+00> : vector<8x16xf32>
    %310 = tpu.matmul %17, %309, %cst_152 {dimension_numbers = #tpu.dot_dimension_numbers<[1], [0], [0], [1], [0, 0, 1, 1], [], []>, precision = #tpu.contract_precision<fp32>} : vector<8x4xf32>, vector<4x16xf32>, vector<8x16xf32> -> vector<8x16xf32>
    %311 = arith.addf %308, %310 : vector<8x16xf32>
    %312 = vector.extract_strided_slice %288 {offsets = [0, 2], sizes = [4, 16], strides = [1, 1]} : vector<4x18xf32> to vector<4x16xf32>
    %cst_153 = arith.constant dense<0.000000e+00> : vector<8x16xf32>
    %313 = tpu.matmul %19, %312, %cst_153 {dimension_numbers = #tpu.dot_dimension_numbers<[1], [0], [0], [1], [0, 0, 1, 1], [], []>, precision = #tpu.contract_precision<fp32>} : vector<8x4xf32>, vector<4x16xf32>, vector<8x16xf32> -> vector<8x16xf32>
    %314 = arith.addf %311, %313 : vector<8x16xf32>
    %315 = arith.addf %314, %22 : vector<8x16xf32>
    %c0_154 = arith.constant 0 : index
    %c0_155 = arith.constant 0 : index
    %c112 = arith.constant 112 : index
    %316 = vector.load %arg5[%c0_154, %c0_155, %c112] : memref<1x8x128xf32, #tpu.memory_space<vmem>>, vector<1x8x16xf32>
    %317 = vector.shape_cast %316 : vector<1x8x16xf32> to vector<8x16xf32>
    %318 = vector.shape_cast %315 : vector<8x16xf32> to vector<1x8x16xf32>
    tpu.vector_store %arg5[%c0_154, %c0_155, %c112], %318 {strides = array<i32>} : memref<1x8x128xf32, #tpu.memory_space<vmem>>, vector<1x8x16xf32>,
    return
  }
  func.func @transform_0(%arg0: i32, %arg1: i32) -> (i32, i32, i32, i32) {
    %c0_i32 = arith.constant 0 : i32
    %c0_i32_0 = arith.constant 0 : i32
    %c0_i32_1 = arith.constant 0 : i32
    %c0_i32_2 = arith.constant 0 : i32
    return %arg0, %c0_i32, %c0_i32_0, %c0_i32_1 : i32, i32, i32, i32
  }
  func.func @transform_1(%arg0: i32, %arg1: i32) -> (i32, i32, i32) {
    %c0_i32 = arith.constant 0 : i32
    %c0_i32_0 = arith.constant 0 : i32
    %c0_i32_1 = arith.constant 0 : i32
    %c0_i32_2 = arith.constant 0 : i32
    return %c0_i32, %c0_i32_0, %c0_i32_1 : i32, i32, i32
  }
  func.func @transform_2(%arg0: i32, %arg1: i32) -> (i32, i32) {
    %c0_i32 = arith.constant 0 : i32
    %c0_i32_0 = arith.constant 0 : i32
    %c0_i32_1 = arith.constant 0 : i32
    return %c0_i32, %c0_i32_0 : i32, i32
  }
  func.func @transform_3(%arg0: i32, %arg1: i32) -> (i32, i32, i32) {
    %c0_i32 = arith.constant 0 : i32
    %c0_i32_0 = arith.constant 0 : i32
    return %arg0, %c0_i32, %arg1 : i32, i32, i32
  }
}

</mosaic_0001>

<bundles_post_ra>
// kernel: tpu_custom_call.1
= control target key start
LH: loop header
LB: loop body
LE: loop exit
PB: predicated region body
PF: predicated region fallthrough
CT: control target
= control target key end

     0   :  { %8 = vsyncpa [#allocation3], 0  ;;  %s39523_s0 = inlined_call_operand.vmem [shape: f32[2,4,18,18], index: 0, kind: input, shape index: {}]   ;;  %s39524_s1 = inlined_call_operand.vmem [shape: f32[9,8,4], index: 1, kind: input, shape index: {}]   ;;  %s39525_s2 = inlined_call_operand.vmem [shape: f32[8,1], index: 2, kind: input, shape index: {}]   ;;  %s39526_s3 = inlined_call_operand.hbm [shape: f32[2,8,256], index: 3, kind: output, shape index: {}]  }
   0x1   :  { %10 = vsyncpa [#allocation3 + $0x1], 0  ;;  %s36137_s12 = smov 0   ;;  %s36139_s13 = smov 0  }
   0x2   :  { %s36141_s14 = smov 0   ;;  %s36143_s15 = smov 0  }
   0x3   :  { %s36145_s16 = smov 0   ;;  %s36147_s17 = smov 0  }
   0x4   :  { %s36149_s18 = smov 0   ;;  %s36151_s19 = smov 0  }
   0x5 LB: > { %s32835_s20 = sadd.s32 4294967295, %s36102_s19   ;;  %s32836_s21 = sadd.s32 4294967294, %s36102_s19   ;;  %s36102_s19 = sphi %s36151_s19, %s16_s19   ;;  %s36098_s18 = sphi %s36149_s18, %s39782_s18   ;;  %s36094_s17 = sphi %s36147_s17, %s39781_s17   ;;  %s36090_s16 = sphi %s36145_s16, %s39780_s16   ;;  %s36086_s15 = sphi %s36143_s15, %s39779_s15   ;;  %s36082_s14 = sphi %s36141_s14, %s39778_s14   ;;  %s36078_s13 = sphi %s36139_s13, %s39777_s13   ;;  %s36074_s12 = sphi %s36137_s12, %s39776_s12  }
   0x6   : > { %s25_s22 = sadd.s32 1, %s36094_s17  ;;  %s28_s23 = sadd.s32 1, %s36098_s18 }
   0x7   : > { %p26_p0 = scmp.ge.s32.totalorder %s25_s22, 2  ;;  %p115_p1 = scmp.ne.s32.totalorder %s36082_s14, %s36078_s13 }
   0x8   : > { %p116_p2 = scmp.eq.s32.totalorder %s32835_s20, 3  ;;  %p121_p5 = scmp.ne.s32.totalorder %s36078_s13, %s36074_s12 }
   0x9   : > { %s39784_s22 = smov (%p26_p0, %s25_s22), 0  ;;  %s39786_s23 = smov (!%p26_p0, %s28_s23), %s36098_s18 }
   0xa   : > { %s101_s24 = ssub.s32 %s36094_s17, %s39784_s22  ;;  %p36188_p3 = por %p116_p2, %p115_p1 }
   0xb   : > { %p30_p4 = scmp.ge.s32.totalorder %s39786_s23, 2  ;;  %p122_p6 = scmp.eq.s32.totalorder %s32836_s21, 3 }
   0xc   : > { %p32839_p7 = scmp.ge.s32.totalorder %s36102_s19, 1  ;;  %p154_p9 = scmp.lt.s32.totalorder %s36102_s19, 5 }
   0xd   : > { %s39788_s23 = smov (%p30_p4, %s39786_s23), 0  ;;  %p36197_p8 = por %p122_p6, %p121_p5 }
   0xe   : > { %s100_s27 = ssub.s32 %s36098_s18, %s39788_s23  ;;  %s105_s28 = sadd.s32 1, %s36082_s14 }
   0xf   : > { %s102_s29 = sor.u32 %s101_s24, %s100_s27  ;;  %p155_p10 = pnand %p32839_p7, %p154_p9 }
  0x10   : > { %p103_p11 = scmp.eq.s32.totalorder %s102_s29, 0 }
  0x11   : > { %158 = sbr.rel (%p155_p10) target bundleno = 1360 (0x550), region = 32 }
  0x12   : > { %s36206_s30 = scalar_select %p103_p11, %s36082_s14, %s105_s28  }
  0x16   : > { %p178_p12 = scmp.lt.s32.totalorder %s36090_s16, 1  ;;  %v39533_v0 = vmov 0.0   ;;  %s32842_s6 = sshll.u32 %s36086_s15, 3  ;;  %vm36105_vm0 = vmmov 0   ;;  %vm229_vm1 = vcmask 1041409   ;;  %vm232_vm2 = vcmask 1042434  }
  0x17   : > { %33765 = vmatprep.subr.mxu0 %v39533_v0  ;;  %33770 = vmatprep.subr.mxu1 %v39533_v0  ;;  %vm235_vm3 = vcmask 1043459   ;;  %s36106_s11 = smov 127   ;;  %s36107_s20 = smov 126   ;;  %v32843_v41 = vld [vmem:[%s39524_s1 + $0x8] sm:$0xff]  ;;  %vm239_vm4 = vcmask 31744   ;;  %v184_v45 = vld [vmem:[%s39524_s1] sm:$0xff] }
  0x18   : > { %s179_s4 = scalar_select %p178_p12, %s36090_s16, 1  ;;  %33767 = vmatprep.mubr.msk.f32.mxu0 %vm36105_vm0, %v39533_v0  ;;  %33772 = vmatprep.mubr.msk.f32.mxu1 %vm36105_vm0, %v39533_v0  ;;  %v241_v42 = vsel %vm239_vm4, %v32843_v41, 0  ;;  %v693_v47 = vsel %vm239_vm4, %v184_v45, 0  ;;  %vm243_vm5 = vcmask 1043456   ;;  %v32844_v58 = vld [vmem:[%s39524_s1 + $0x10] sm:$0xff]  ;;  %vm4338_vm6 = vcmask 130048  }
  0x19   : > { %v36274_v43 = vand.u32 4294901760, %v241_v42  ;;  %v36288_v49 = vand.u32 4294901760, %v693_v47  ;;  %v1146_v62 = vsel %vm239_vm4, %v32844_v58, 0  ;;  %vm8392_vm7 = vcmask 261248   ;;  %s36111_s21 = smov 48   ;;  %s36112_s24 = smov 64  }
  0x1a   : > { %s35925_s5 = smul.u32 96, %s179_s4  ;;  %vm12446_vm8 = vcmask 392448   ;;  %vm16500_vm9 = vcmask 523648   ;;  %s36113_s27 = smov 80   ;;  %vm20554_vm10 = vcmask 654848   ;;  %vm24608_vm11 = vcmask 786048  }
  0x1b   : > { %v36277_v44 = vsub.f32 %v241_v42, %v36274_v43  ;;  %39615 = vst [vmem:[#allocation6_spill] sm:$0xff] %v36288_v49  ;;  %v36297_v56 = vsub.f32 %v693_v47, %v36288_v49  ;;  %s36114_s28 = smov 96   ;;  %s36115_s29 = smov 112   ;;  %vm28662_vm12 = vcmask 917248   ;;  %vm32716_vm13 = vcmask 1048448  }
  0x1c   : > { %s182_s9 = scalar_lea.vmem %s39523_s0, %s35925_s5  ;;  %s32897_s4 = sshll.u32 %s36090_s16, 1 }
  0x1d   : > { %s36220_s10 = scalar_lea.vmem %s182_s9, %s32842_s6  ;;  %v36283_v46 = vand.u32 4294901760, %v36277_v44  ;;  %39616 = vst [vmem:[#allocation7_spill] sm:$0xff] %v36297_v56  ;;  %v36308_v61 = vand.u32 4294901760, %v36297_v56  ;;  %s36110_s9 = smov 32  }
  0x1e   : > { %v208_v1 = vld [vmem:[%s36220_s10] sm:$0x1]  ;;  %v209_v2 = vld [vmem:[%s36220_s10 + $0x18] sm:$0x1]  ;;  %v210_v3 = vld [vmem:[%s36220_s10 + $0x30] sm:$0x1]  ;;  %s32730_s5 = sadd.s32 %s36086_s15, %s32897_s4 }
  0x1f   : > { %v211_v4 = vld [vmem:[%s36220_s10 + $0x48] sm:$0x1]  ;;  %v228_v5 = vrot.slane %v209_v2, 7  ;;  %v231_v6 = vrot.slane %v210_v3, 6  ;;  %v32852_v7 = vld [vmem:[%s36220_s10 + $0x1] sm:$0x1]  ;;  %v315_v48 = vsub.f32 %v36277_v44, %v36283_v46 }
  0x20   : > { %v234_v8 = vrot.slane %v211_v4, 5  ;;  %v32853_v9 = vld [vmem:[%s36220_s10 + $0x19] sm:$0x1]  ;;  %v32854_v10 = vld [vmem:[%s36220_s10 + $0x31] sm:$0x1]  ;;  %39614 = vst [vmem:[#allocation5_spill] sm:$0xff] %v36283_v46  ;;  %v766_v4 = vsub.f32 %v36297_v56, %v36308_v61 }
  0x21   : > { %v230_v11 = vsel %vm229_vm1, %v228_v5, %v208_v1  ;;  %v32855_v12 = vld [vmem:[%s36220_s10 + $0x49] sm:$0x1]  ;;  %v1601_v13 = vrot.slane %v32853_v9, 7  ;;  %v1603_v14 = vrot.slane %v32854_v10, 6  ;;  %v32857_v15 = vld [vmem:[%s36220_s10 + $0x2] sm:$0x1] }
  0x22   : > { %v233_v16 = vsel %vm232_vm2, %v231_v6, %v230_v11  ;;  %v1605_v17 = vrot.slane %v32855_v12, 5  ;;  %v32858_v18 = vld [vmem:[%s36220_s10 + $0x1a] sm:$0x1]  ;;  %v32859_v19 = vld [vmem:[%s36220_s10 + $0x32] sm:$0x1]  ;;  %v36292_v53 = vand.u32 4294901760, %v315_v48 }
  0x23   : > { %v236_v20 = vsel %vm235_vm3, %v234_v8, %v233_v16  ;;  %v1602_v21 = vsel %vm229_vm1, %v1601_v13, %v32852_v7  ;;  %v32860_v22 = vld [vmem:[%s36220_s10 + $0x4a] sm:$0x1]  ;;  %v2971_v23 = vrot.slane %v32858_v18, 7  ;;  %v2973_v24 = vrot.slane %v32859_v19, 6  ;;  %v32863_v31 = vld [vmem:[%s36220_s10 + $0x1b] sm:$0x1] }
  0x24   : > { %237 = vrot.lane.b32.xlu0 %v236_v20, %s36106_s11  ;;  %v1604_v25 = vsel %vm232_vm2, %v1603_v14, %v1602_v21  ;;  %v2975_v28 = vrot.slane %v32860_v22, 5  ;;  %v32862_v32 = vld [vmem:[%s36220_s10 + $0x3] sm:$0x1]  ;;  %v32864_v33 = vld [vmem:[%s36220_s10 + $0x33] sm:$0x1]  ;;  %v7030_v35 = vrot.slane %v32863_v31, 7 }
  0x25   : > { %v36241_v26 = vsel %vm235_vm3, %v1605_v17, %v1604_v25  ;;  %v2972_v27 = vsel %vm229_vm1, %v2971_v23, %v32857_v15  ;;  %v32865_v34 = vld [vmem:[%s36220_s10 + $0x4b] sm:$0x1]  ;;  %v7032_v36 = vrot.slane %v32864_v33, 6  ;;  %v695_v50 = vsel %vm243_vm5, %v236_v20, 0  ;;  %39617 = vst [vmem:[#allocation8_spill] sm:$0xff] %v36308_v61  ;;  %v32845_v11 = vld [vmem:[%s39524_s1 + $0x18] sm:$0xff] }
  0x26   : > { %2059 = vrot.lane.b32.xlu1 %v36241_v26, %s36106_s11  ;;  %v2974_v29 = vsel %vm232_vm2, %v2973_v24, %v2972_v27  ;;  %v7034_v37 = vrot.slane %v32865_v34, 5  ;;  %v7031_v38 = vsel %vm229_vm1, %v7030_v35, %v32862_v32  ;;  %v36294_v54 = vand.u32 4294901760, %v695_v50  ;;  %v32846_v24 = vld [vmem:[%s39524_s1 + $0x20] sm:$0xff]  ;;  %s36116_s16 = smov [#allocation2]  }
  0x27   : > { %v36249_v30 = vsel %vm235_vm3, %v2975_v28, %v2974_v29  ;;  %v7033_v39 = vsel %vm232_vm2, %v7032_v36, %v7031_v38  ;;  %v36317_v5 = vand.u32 4294901760, %v1146_v62  ;;  %v36324_v7 = vand.u32 4294901760, %v766_v4  ;;  %s36014_s15 = sshll.u32 %s36116_s16, 4  ;;  %s36015_s15 = int_to_ptr.vmem [resolvable:$false] %s36014_s15 }
  0x28   : > { %1143 = vrot.lane.b32.xlu0 %v236_v20, %s36107_s20  ;;  %v36264_v40 = vsel %vm235_vm3, %v7034_v37, %v7033_v39  ;;  %v805_v59 = vsub.f32 %v695_v50, %v36294_v54  ;;  %v1608_v15 = vsel %vm239_vm4, %v32845_v11, 0  ;;  %v1610_v19 = vsel %vm243_vm5, %v36241_v26, 0  ;;  %v32847_v39 = vld [vmem:[%s39524_s1 + $0x28] sm:$0xff] }
  0x29   : > { %39618 = vst [vmem:[#allocation9_spill] sm:$0xff] %v36317_v5  ;;  %39619 = vst [vmem:[#allocation10_spill] sm:$0xff] %v36324_v7  ;;  %v36329_v10 = vsub.f32 %v1146_v62, %v36317_v5  ;;  %v36358_v18 = vand.u32 4294901760, %v1608_v15  ;;  %v36369_v20 = vand.u32 4294901760, %v1610_v19  ;;  %v2062_v28 = vsel %vm239_vm4, %v32846_v24, 0 }
  0x2a   : > { %2513 = vrot.lane.b32.xlu1 %v36241_v26, %s36107_s20  ;;  %v806_v2 = vand.u32 4294901760, %v805_v59  ;;  %v36411_v33 = vand.u32 4294901760, %v2062_v28  ;;  %v2516_v47 = vsel %vm239_vm4, %v32847_v39, 0 }
  0x2b   : > { %39620 = vst [vmem:[#allocation11_spill] sm:$0xff] %v36329_v10  ;;  %v36345_v14 = vand.u32 4294901760, %v36329_v10  ;;  %39622 = vst [vmem:[#allocation13_spill] sm:$0xff] %v36358_v18  ;;  %v36376_v23 = vsub.f32 %v1608_v15, %v36358_v18  ;;  %v36390_v25 = vsub.f32 %v1610_v19, %v36369_v20 }
  0x2c   : > { %3429 = vrot.lane.b32.xlu0 %v36249_v30, %s36106_s11  ;;  %v807_v9 = vsub.f32 %v805_v59, %v806_v2  ;;  %39626 = vst [vmem:[#allocation17_spill] sm:$0xff] %v36411_v33  ;;  %v36430_v38 = vsub.f32 %v2062_v28, %v36411_v33 }
  0x2d   : > { %39621 = vst [vmem:[#allocation12_spill] sm:$0xff] %v36345_v14  ;;  %v1219_v17 = vsub.f32 %v36329_v10, %v36345_v14  ;;  %39624 = vst [vmem:[#allocation15_spill] sm:$0xff] %v36376_v23  ;;  %v36395_v27 = vand.u32 4294901760, %v36376_v23  ;;  %v36409_v32 = vand.u32 4294901760, %v36390_v25 }
  0x2e   : > { %3883 = vrot.lane.b32.xlu1 %v36249_v30, %s36107_s20  ;;  %v808_v13 = vand.u32 4294901760, %v807_v9  ;;  %39628 = vst [vmem:[#allocation19_spill] sm:$0xff] %v36430_v38  ;;  %v36451_v45 = vand.u32 4294901760, %v36430_v38 }
  0x2f   : > { %v36373_v22 = vand.u32 4294901760, %v1219_v17  ;;  %39625 = vst [vmem:[#allocation16_spill] sm:$0xff] %v36395_v27  ;;  %v1681_v31 = vsub.f32 %v36376_v23, %v36395_v27  ;;  %v1722_v37 = vsub.f32 %v36390_v25, %v36409_v32 }
  0x30   : > { %7485 = vrot.lane.b32.xlu0 %v36264_v40, %s36106_s11  ;;  %39629 = vst [vmem:[#allocation20_spill] sm:$0xff] %v36451_v45 }
  0x31   : > { %39623 = vst [vmem:[#allocation14_spill] sm:$0xff] %v36373_v22  ;;  %v36423_v35 = vand.u32 4294901760, %v1681_v31  ;;  %v36448_v42 = vand.u32 4294901760, %v1722_v37 }
  0x32   : > { %7936 = vrot.lane.b32.xlu1 %v36264_v40, %s36107_s20 }
  0x33   : > { %39627 = vst [vmem:[#allocation18_spill] sm:$0xff] %v36423_v35 }
  0x96   : > { %v238_v51 = vpop.permute.xlu0 %237 }
  0x97   : > { %v244_v52 = vsel %vm243_vm5, %v238_v51, 0  ;;  %v2135_v51 = vsub.f32 %v36430_v38, %v36451_v45 }
  0x98   : > { %v277_v55 = vand.u32 4294901760, %v244_v52  ;;  %v2060_v29 = vpop.permute.xlu1 %2059 }
  0x99   : > { %v2064_v34 = vsel %vm243_vm5, %v2060_v29, 0 }
  0x9a   : > { %v354_v57 = vsub.f32 %v244_v52, %v277_v55  ;;  %33766 = vmatpush3.msra.mxu0 %v277_v55  ;;  %v1144_v1 = vpop.permute.xlu0 %1143  ;;  %v36425_v36 = vand.u32 4294901760, %v2064_v34  ;;  %v36469_v52 = vand.u32 4294901760, %v2516_v47 }
  0x9b   : > { %33768 = vmatmul.mubr.f32.vlgmr.msra.gmra.mxu0 %v36292_v53  ;;  %33775 = vmatprep.subr.mxu0 %v39533_v0  ;;  %v1148_v6 = vsel %vm243_vm5, %v1144_v1, 0 }
  0x9c   : > { %v355_v60 = vand.u32 4294901760, %v354_v57  ;;  %33776 = vmatpush3.msra.mxu0 %v354_v57  ;;  %33777 = vmatprep.mubr.msk.f32.mxu0 %vm36105_vm0, %v39533_v0  ;;  %v36326_v8 = vand.u32 4294901760, %v1148_v6  ;;  %v36446_v41 = vsub.f32 %v2064_v34, %v36425_v36  ;;  %v2514_v48 = vpop.permute.xlu1 %2513 }
  0x9d   : > { %33785 = vmatprep.subr.mxu0 %v39533_v0 }
  0x9e   : > { %v356_v63 = vsub.f32 %v354_v57, %v355_v60  ;;  %v1258_v12 = vsub.f32 %v1148_v6, %v36326_v8  ;;  %v36463_v50 = vand.u32 4294901760, %v36446_v41 }
  0x9f   : > { %33778 = vmatmul.mubr.f32.vlgmr.msra.gmra.mxu0 %v36277_v44 }
  0xa0   : > { %33786 = vmatpush3.msra.mxu0 %v355_v60  ;;  %v357_v3 = vand.u32 4294901760, %v356_v63  ;;  %33787 = vmatprep.mubr.msk.f32.mxu0 %vm36105_vm0, %v39533_v0  ;;  %v1259_v16 = vand.u32 4294901760, %v1258_v12  ;;  %v2176_v58 = vsub.f32 %v36446_v41, %v36463_v50  ;;  %v32848_v60 = vld [vmem:[%s39524_s1 + $0x30] sm:$0xff] }
  0xa1   : > { %33795 = vmatprep.subr.mxu0 %v39533_v0 }
  0xa2   : > { %33771 = vmatpush3.msra.mxu1 %v357_v3  ;;  %v1260_v21 = vsub.f32 %v1258_v12, %v1259_v16  ;;  %v36507_v63 = vand.u32 4294901760, %v2176_v58 }
  0xa3   : > { %33773 = vmatmul.mubr.f32.vlgmr.msra.gmra.mxu1 %v36274_v43  ;;  %33780 = vmatprep.subr.mxu1 %v39533_v0 }
  0xa4   : > { %33788 = vmatmul.mubr.f32.vlgmr.msra.gmra.mxu0 %v36274_v43  ;;  %33781 = vmatpush3.msra.mxu1 %v277_v55  ;;  %v1261_v26 = vand.u32 4294901760, %v1260_v21  ;;  %v3430_v21 = vpop.permute.xlu0 %3429 }
  0xa5   : > { %33782 = vmatprep.mubr.msk.f32.mxu1 %vm36105_vm0, %v39533_v0  ;;  %33790 = vmatprep.subr.mxu1 %v39533_v0  ;;  %v3434_v29 = vsel %vm243_vm5, %v3430_v21, 0 }
  0xa6   : > { %33796 = vmatpush3.msra.mxu0 %v36294_v54  ;;  %33797 = vmatprep.mubr.msk.f32.mxu0 %vm36105_vm0, %v39533_v0  ;;  %v36603_v34 = vand.u32 4294901760, %v3434_v29 }
  0xa7   : > { %33783 = vmatmul.mubr.f32.vlgmr.msra.gmra.mxu1 %v36283_v46  ;;  %33805 = vmatprep.subr.mxu0 %v39533_v0 }
  0xa8   : > { %33791 = vmatpush3.msra.mxu1 %v277_v55  ;;  %33798 = vmatmul.mubr.f32.vlgmr.msra.gmra.mxu0 %v36324_v7  ;;  %v36482_v55 = vand.u32 4294901760, %v2135_v51 }
  0xa9   : > { %33792 = vmatprep.mubr.msk.f32.mxu1 %vm36105_vm0, %v39533_v0  ;;  %33806 = vmatpush3.msra.mxu0 %v805_v59  ;;  %v36489_v59 = vsub.f32 %v2516_v47, %v36469_v52  ;;  %v32850_v47 = vld [vmem:[%s39524_s1 + $0x40] sm:$0xff] }
  0xaa   : > { %33807 = vmatprep.mubr.msk.f32.mxu0 %vm36105_vm0, %v39533_v0  ;;  %33800 = vmatprep.subr.mxu1 %v39533_v0  ;;  %39630 = vst [vmem:[#allocation21_spill] sm:$0xff] %v36482_v55  ;;  %v3886_v58 = vsel %vm239_vm4, %v32850_v47, 0 }
  0xab   : > { %33793 = vmatmul.mubr.f32.vlgmr.msra.gmra.mxu1 %v36274_v43  ;;  %33815 = vmatprep.subr.mxu0 %v39533_v0  ;;  %39631 = vst [vmem:[#allocation22_spill] sm:$0xff] %v36489_v59  ;;  %v36510_v1 = vand.u32 4294901760, %v36489_v59 }
  0xac   : > { %33808 = vmatmul.mubr.f32.vlgmr.msra.gmra.mxu0 %v36297_v56  ;;  %33801 = vmatpush3.msra.mxu1 %v808_v13  ;;  %v32849_v13 = vld [vmem:[%s39524_s1 + $0x38] sm:$0xff] }
  0xad   : > { %33802 = vmatprep.mubr.msk.f32.mxu1 %vm36105_vm0, %v39533_v0  ;;  %33816 = vmatpush3.msra.mxu0 %v806_v2  ;;  %v2978_v2 = vsel %vm239_vm4, %v32848_v60, 0  ;;  %v2589_v4 = vsub.f32 %v36489_v59, %v36510_v1  ;;  %v3432_v19 = vsel %vm239_vm4, %v32849_v13, 0  ;;  %v3884_v60 = vpop.permute.xlu1 %3883 }
  0xae   : > { %33817 = vmatprep.mubr.msk.f32.mxu0 %vm36105_vm0, %v39533_v0  ;;  %33810 = vmatprep.subr.mxu1 %v39533_v0  ;;  %v36528_v6 = vand.u32 4294901760, %v2978_v2  ;;  %v36588_v28 = vand.u32 4294901760, %v3432_v19 }
  0xaf   : > { %33803 = vmatmul.mubr.f32.vlgmr.msra.gmra.mxu1 %v36288_v49  ;;  %33825 = vmatprep.subr.mxu0 %v39533_v0 }
  0xb0   : > { %33818 = vmatmul.mubr.f32.vlgmr.msra.gmra.mxu0 %v36288_v49  ;;  %33811 = vmatpush3.msra.mxu1 %v36294_v54  ;;  %39632 = vst [vmem:[#allocation23_spill] sm:$0xff] %v36528_v6  ;;  %v36608_v39 = vsub.f32 %v3432_v19, %v36588_v28 }
  0xb1   : > { %33826 = vmatpush3.msra.mxu0 %v36326_v8  ;;  %33812 = vmatprep.mubr.msk.f32.mxu1 %vm36105_vm0, %v39533_v0 }
  0xb2   : > { %33827 = vmatprep.mubr.msk.f32.mxu0 %vm36105_vm0, %v39533_v0  ;;  %33835 = vmatprep.subr.mxu0 %v39533_v0  ;;  %39635 = vst [vmem:[#allocation26_spill] sm:$0xff] %v36608_v39 }
  0xb3   : > { %33813 = vmatmul.mubr.f32.vlgmr.msra.gmra.mxu1 %v36308_v61  ;;  %33820 = vmatprep.subr.mxu1 %v39533_v0 }
  0xb4   : > { %33828 = vmatmul.mubr.f32.vlgmr.msra.gmra.mxu0 %v36373_v22  ;;  %33821 = vmatpush3.msra.mxu1 %v36294_v54  ;;  %v2518_v54 = vsel %vm243_vm5, %v2514_v48, 0  ;;  %v36624_v48 = vsub.f32 %v3434_v29, %v36603_v34 }
  0xb5   : > { %33836 = vmatpush3.msra.mxu0 %v1258_v12  ;;  %33822 = vmatprep.mubr.msk.f32.mxu1 %vm36105_vm0, %v39533_v0  ;;  %v36484_v57 = vand.u32 4294901760, %v2518_v54  ;;  %v36549_v12 = vsub.f32 %v2978_v2, %v36528_v6 }
  0xb6   : > { %33830 = vmatprep.subr.mxu1 %v39533_v0  ;;  %33837 = vmatprep.mubr.msk.f32.mxu0 %vm36105_vm0, %v39533_v0  ;;  %v36641_v2 = vand.u32 4294901760, %v36624_v48 }
  0xb7   : > { %33845 = vmatprep.subr.mxu0 %v39533_v0  ;;  %33823 = vmatmul.mubr.f32.vlgmr.msra.gmra.mxu1 %v36288_v49  ;;  %v36504_v62 = vsub.f32 %v2518_v54, %v36484_v57  ;;  %v36570_v17 = vand.u32 4294901760, %v36549_v12  ;;  %v36629_v54 = vand.u32 4294901760, %v36608_v39 }
  0xb8   : > { %33831 = vmatpush3.msra.mxu1 %v1261_v26  ;;  %33838 = vmatmul.mubr.f32.vlgmr.msra.gmra.mxu0 %v36329_v10  ;;  %v3546_v21 = vsub.f32 %v36624_v48, %v36641_v2 }
  0xb9   : > { %33846 = vmatpush3.msra.mxu0 %v1259_v16  ;;  %33832 = vmatprep.mubr.msk.f32.mxu1 %vm36105_vm0, %v39533_v0  ;;  %v36522_v3 = vand.u32 4294901760, %v36504_v62  ;;  %39634 = vst [vmem:[#allocation25_spill] sm:$0xff] %v36570_v17  ;;  %v3051_v24 = vsub.f32 %v36549_v12, %v36570_v17 }
  0xba   : > { %33840 = vmatprep.subr.mxu1 %v39533_v0  ;;  %33847 = vmatprep.mubr.msk.f32.mxu0 %vm36105_vm0, %v39533_v0 }
  0xbb   : > { %33833 = vmatmul.mubr.f32.vlgmr.msra.gmra.mxu1 %v36317_v5  ;;  %33855 = vmatprep.subr.mxu0 %v39533_v0  ;;  %v2630_v11 = vsub.f32 %v36504_v62, %v36522_v3  ;;  %v36601_v31 = vand.u32 4294901760, %v3051_v24 }
  0xbc   : > { %33841 = vmatpush3.msra.mxu1 %v36326_v8  ;;  %33848 = vmatmul.mubr.f32.vlgmr.msra.gmra.mxu0 %v36317_v5 }
  0xbd   : > { %33842 = vmatprep.mubr.msk.f32.mxu1 %vm36105_vm0, %v39533_v0  ;;  %33850 = vmatprep.subr.mxu1 %v39533_v0  ;;  %v36567_v16 = vand.u32 4294901760, %v2630_v11  ;;  %v3888_v11 = vsel %vm243_vm5, %v3884_v60, 0 }
  0xbe   : > { %33856 = vmatpush3.msra.mxu0 %v36369_v20  ;;  %33857 = vmatprep.mubr.msk.f32.mxu0 %vm36105_vm0, %v39533_v0  ;;  %v36662_v19 = vand.u32 4294901760, %v3888_v11 }
  0xbf   : > { %33843 = vmatmul.mubr.f32.vlgmr.msra.gmra.mxu1 %v36345_v14  ;;  %33865 = vmatprep.subr.mxu0 %v39533_v0 }
  0xc0   : > { %33851 = vmatpush3.msra.mxu1 %v36326_v8  ;;  %33858 = vmatmul.mubr.f32.vlgmr.msra.gmra.mxu0 %v36423_v35  ;;  %v2980_v8 = vsel %vm243_vm5, %v36249_v30, 0  ;;  %v36544_v30 = vand.u32 4294901760, %v2589_v4  ;;  %v3505_v4 = vsub.f32 %v36608_v39, %v36629_v54  ;;  %v36679_v29 = vsub.f32 %v3888_v11, %v36662_v19 }
  0xc1   : > { %33852 = vmatprep.mubr.msk.f32.mxu1 %vm36105_vm0, %v39533_v0  ;;  %33866 = vmatpush3.msra.mxu0 %v36390_v25  ;;  %v36540_v9 = vand.u32 4294901760, %v2980_v8 }
  0xc2   : > { %33867 = vmatprep.mubr.msk.f32.mxu0 %vm36105_vm0, %v39533_v0  ;;  %33860 = vmatprep.subr.mxu1 %v39533_v0  ;;  %39633 = vst [vmem:[#allocation24_spill] sm:$0xff] %v36544_v30  ;;  %v36660_v13 = vand.u32 4294901760, %v3505_v4 }
  0xc3   : > { %33853 = vmatmul.mubr.f32.vlgmr.msra.gmra.mxu1 %v36317_v5  ;;  %33875 = vmatprep.subr.mxu0 %v39533_v0  ;;  %v36563_v15 = vsub.f32 %v2980_v8, %v36540_v9  ;;  %v36647_v8 = vand.u32 4294901760, %v3886_v58 }
  0xc4   : > { %33868 = vmatmul.mubr.f32.vlgmr.msra.gmra.mxu0 %v36376_v23  ;;  %33861 = vmatpush3.msra.mxu1 %v36448_v42  ;;  %39636 = vst [vmem:[#allocation27_spill] sm:$0xff] %v36660_v13 }
  0xc5   : > { %33862 = vmatprep.mubr.msk.f32.mxu1 %vm36105_vm0, %v39533_v0  ;;  %33876 = vmatpush3.msra.mxu0 %v36409_v32  ;;  %v36586_v26 = vand.u32 4294901760, %v36563_v15  ;;  %v36667_v24 = vsub.f32 %v3886_v58, %v36647_v8  ;;  %v36696_v58 = vand.u32 4294901760, %v36679_v29 }
  0xc6   : > { %33877 = vmatprep.mubr.msk.f32.mxu0 %vm36105_vm0, %v39533_v0  ;;  %33870 = vmatprep.subr.mxu1 %v39533_v0 }
  0xc7   : > { %33863 = vmatmul.mubr.f32.vlgmr.msra.gmra.mxu1 %v36358_v18  ;;  %33885 = vmatprep.subr.mxu0 %v39533_v0  ;;  %v3092_v37 = vsub.f32 %v36563_v15, %v36586_v26  ;;  %v36685_v47 = vand.u32 4294901760, %v36667_v24  ;;  %v4000_v11 = vsub.f32 %v36679_v29, %v36696_v58 }
  0xc8   : > { %33878 = vmatmul.mubr.f32.vlgmr.msra.gmra.mxu0 %v36358_v18  ;;  %33871 = vmatpush3.msra.mxu1 %v36369_v20 }
  0xc9   : > { %33886 = vmatpush3.msra.mxu0 %v36425_v36  ;;  %33872 = vmatprep.mubr.msk.f32.mxu1 %vm36105_vm0, %v39533_v0  ;;  %v36626_v51 = vand.u32 4294901760, %v3092_v37  ;;  %v36682_v37 = vand.u32 4294901760, %v3546_v21  ;;  %v3959_v60 = vsub.f32 %v36667_v24, %v36685_v47  ;;  %v36726_v21 = vand.u32 4294901760, %v4000_v11 }
  0xca   : > { %33887 = vmatprep.mubr.msk.f32.mxu0 %vm36105_vm0, %v39533_v0  ;;  %33895 = vmatprep.subr.mxu0 %v39533_v0 }
  0xcb   : > { %33873 = vmatmul.mubr.f32.vlgmr.msra.gmra.mxu1 %v36395_v27  ;;  %33880 = vmatprep.subr.mxu1 %v39533_v0  ;;  %v36712_v4 = vand.u32 4294901760, %v3959_v60  ;;  %v32878_v60 = vld [vmem:[%s36220_s10 + $0x1e] sm:$0x1] }
  0xcc   : > { %33888 = vmatmul.mubr.f32.vlgmr.msra.gmra.mxu0 %v36482_v55  ;;  %33881 = vmatpush3.msra.mxu1 %v36369_v20 }
  0xcd   : > { %33896 = vmatpush3.msra.mxu0 %v36446_v41  ;;  %33882 = vmatprep.mubr.msk.f32.mxu1 %vm36105_vm0, %v39533_v0 }
  0xce   : > { %33890 = vmatprep.subr.mxu1 %v39533_v0  ;;  %33897 = vmatprep.mubr.msk.f32.mxu0 %vm36105_vm0, %v39533_v0 }
  0xcf   : > { %33905 = vmatprep.subr.mxu0 %v39533_v0  ;;  %33883 = vmatmul.mubr.f32.vlgmr.msra.gmra.mxu1 %v36358_v18 }
  0xd0   : > { %33891 = vmatpush3.msra.mxu1 %v36507_v63  ;;  %33898 = vmatmul.mubr.f32.vlgmr.msra.gmra.mxu0 %v36430_v38 }
  0xd1   : > { %33906 = vmatpush3.msra.mxu0 %v36463_v50  ;;  %33892 = vmatprep.mubr.msk.f32.mxu1 %vm36105_vm0, %v39533_v0 }
  0xd2   : > { %33900 = vmatprep.subr.mxu1 %v39533_v0  ;;  %33907 = vmatprep.mubr.msk.f32.mxu0 %vm36105_vm0, %v39533_v0 }
  0xd3   : > { %33893 = vmatmul.mubr.f32.vlgmr.msra.gmra.mxu1 %v36411_v33  ;;  %33915 = vmatprep.subr.mxu0 %v39533_v0 }
  0xd4   : > { %33901 = vmatpush3.msra.mxu1 %v36425_v36  ;;  %33908 = vmatmul.mubr.f32.vlgmr.msra.gmra.mxu0 %v36411_v33 }
  0xd5   : > { %33916 = vmatpush3.msra.mxu0 %v36484_v57  ;;  %33902 = vmatprep.mubr.msk.f32.mxu1 %vm36105_vm0, %v39533_v0 }
  0xd6   : > { %33910 = vmatprep.subr.mxu1 %v39533_v0  ;;  %33917 = vmatprep.mubr.msk.f32.mxu0 %vm36105_vm0, %v39533_v0 }
  0xd7   : > { %33925 = vmatprep.subr.mxu0 %v39533_v0  ;;  %33903 = vmatmul.mubr.f32.vlgmr.msra.gmra.mxu1 %v36451_v45 }
  0xd8   : > { %33911 = vmatpush3.msra.mxu1 %v36425_v36  ;;  %33918 = vmatmul.mubr.f32.vlgmr.msra.gmra.mxu0 %v36544_v30 }
  0xd9   : > { %33926 = vmatpush3.msra.mxu0 %v36504_v62  ;;  %33912 = vmatprep.mubr.msk.f32.mxu1 %vm36105_vm0, %v39533_v0 }
  0xda   : > { %33920 = vmatprep.subr.mxu1 %v39533_v0  ;;  %33927 = vmatprep.mubr.msk.f32.mxu0 %vm36105_vm0, %v39533_v0 }
  0xdb   : > { %33935 = vmatprep.subr.mxu0 %v39533_v0  ;;  %33913 = vmatmul.mubr.f32.vlgmr.msra.gmra.mxu1 %v36411_v33 }
  0xdc   : > { %33921 = vmatpush3.msra.mxu1 %v36567_v16  ;;  %33928 = vmatmul.mubr.f32.vlgmr.msra.gmra.mxu0 %v36489_v59 }
  0xdd   : > { %33936 = vmatpush3.msra.mxu0 %v36522_v3  ;;  %33922 = vmatprep.mubr.msk.f32.mxu1 %vm36105_vm0, %v39533_v0 }
  0xde   : > { %33930 = vmatprep.subr.mxu1 %v39533_v0  ;;  %33937 = vmatprep.mubr.msk.f32.mxu0 %vm36105_vm0, %v39533_v0 }
  0xdf   : > { %33923 = vmatmul.mubr.f32.vlgmr.msra.gmra.mxu1 %v36469_v52  ;;  %33945 = vmatprep.subr.mxu0 %v39533_v0 }
  0xe0   : > { %33931 = vmatpush3.msra.mxu1 %v36484_v57  ;;  %33938 = vmatmul.mubr.f32.vlgmr.msra.gmra.mxu0 %v36469_v52 }
  0xe1   : > { %33932 = vmatprep.mubr.msk.f32.mxu1 %vm36105_vm0, %v39533_v0  ;;  %33940 = vmatprep.subr.mxu1 %v39533_v0 }
  0xe2   : > { %33946 = vmatpush3.msra.mxu0 %v36540_v9  ;;  %33947 = vmatprep.mubr.msk.f32.mxu0 %vm36105_vm0, %v39533_v0 }
  0xe3   : > { %33933 = vmatmul.mubr.f32.vlgmr.msra.gmra.mxu1 %v36510_v1  ;;  %33955 = vmatprep.subr.mxu0 %v39533_v0 }
  0xe4   : > { %33941 = vmatpush3.msra.mxu1 %v36484_v57  ;;  %33948 = vmatmul.mubr.f32.vlgmr.msra.gmra.mxu0 %v36601_v31 }
  0xe5   : > { %33942 = vmatprep.mubr.msk.f32.mxu1 %vm36105_vm0, %v39533_v0  ;;  %33956 = vmatpush3.msra.mxu0 %v36563_v15 }
  0xe6   : > { %33957 = vmatprep.mubr.msk.f32.mxu0 %vm36105_vm0, %v39533_v0  ;;  %33950 = vmatprep.subr.mxu1 %v39533_v0 }
  0xe7   : > { %33943 = vmatmul.mubr.f32.vlgmr.msra.gmra.mxu1 %v36469_v52  ;;  %33965 = vmatprep.subr.mxu0 %v39533_v0 }
  0xe8   : > { %33958 = vmatmul.mubr.f32.vlgmr.msra.gmra.mxu0 %v36549_v12  ;;  %33951 = vmatpush3.msra.mxu1 %v36626_v51 }
  0xe9   : > { %33952 = vmatprep.mubr.msk.f32.mxu1 %vm36105_vm0, %v39533_v0  ;;  %33966 = vmatpush3.msra.mxu0 %v36586_v26 }
  0xea   : > { %33967 = vmatprep.mubr.msk.f32.mxu0 %vm36105_vm0, %v39533_v0  ;;  %33960 = vmatprep.subr.mxu1 %v39533_v0 }
  0xeb   : > { %33953 = vmatmul.mubr.f32.vlgmr.msra.gmra.mxu1 %v36528_v6  ;;  %33975 = vmatprep.subr.mxu0 %v39533_v0 }
  0xec   : > { %33968 = vmatmul.mubr.f32.vlgmr.msra.gmra.mxu0 %v36528_v6  ;;  %33961 = vmatpush3.msra.mxu1 %v36540_v9 }
  0xed   : > { %33976 = vmatpush3.msra.mxu0 %v36603_v34  ;;  %33962 = vmatprep.mubr.msk.f32.mxu1 %vm36105_vm0, %v39533_v0 }
  0xee   : > { %33977 = vmatprep.mubr.msk.f32.mxu0 %vm36105_vm0, %v39533_v0  ;;  %33985 = vmatprep.subr.mxu0 %v39533_v0 }
  0xef   : > { %33963 = vmatmul.mubr.f32.vlgmr.msra.gmra.mxu1 %v36570_v17  ;;  %33970 = vmatprep.subr.mxu1 %v39533_v0 }
  0xf0   : > { %33978 = vmatmul.mubr.f32.vlgmr.msra.gmra.mxu0 %v36660_v13  ;;  %33971 = vmatpush3.msra.mxu1 %v36540_v9 }
  0xf1   : > { %33986 = vmatpush3.msra.mxu0 %v36624_v48  ;;  %33972 = vmatprep.mubr.msk.f32.mxu1 %vm36105_vm0, %v39533_v0 }
  0xf2   : > { %33980 = vmatprep.subr.mxu1 %v39533_v0  ;;  %33987 = vmatprep.mubr.msk.f32.mxu0 %vm36105_vm0, %v39533_v0 }
  0xf3   : > { %33995 = vmatprep.subr.mxu0 %v39533_v0  ;;  %33973 = vmatmul.mubr.f32.vlgmr.msra.gmra.mxu1 %v36528_v6 }
  0xf4   : > { %33981 = vmatpush3.msra.mxu1 %v36682_v37  ;;  %33988 = vmatmul.mubr.f32.vlgmr.msra.gmra.mxu0 %v36608_v39 }
  0xf5   : > { %33996 = vmatpush3.msra.mxu0 %v36641_v2  ;;  %33982 = vmatprep.mubr.msk.f32.mxu1 %vm36105_vm0, %v39533_v0 }
  0xf6   : > { %33990 = vmatprep.subr.mxu1 %v39533_v0  ;;  %33997 = vmatprep.mubr.msk.f32.mxu0 %vm36105_vm0, %v39533_v0 }
  0xf7   : > { %33983 = vmatmul.mubr.f32.vlgmr.msra.gmra.mxu1 %v36588_v28  ;;  %34005 = vmatprep.subr.mxu0 %v39533_v0 }
  0xf8   : > { %33991 = vmatpush3.msra.mxu1 %v36603_v34  ;;  %33998 = vmatmul.mubr.f32.vlgmr.msra.gmra.mxu0 %v36588_v28 }
  0xf9   : > { %34006 = vmatpush3.msra.mxu0 %v36662_v19  ;;  %33992 = vmatprep.mubr.msk.f32.mxu1 %vm36105_vm0, %v39533_v0 }
  0xfa   : > { %34000 = vmatprep.subr.mxu1 %v39533_v0  ;;  %34007 = vmatprep.mubr.msk.f32.mxu0 %vm36105_vm0, %v39533_v0 }
  0xfb   : > { %34015 = vmatprep.subr.mxu0 %v39533_v0  ;;  %33993 = vmatmul.mubr.f32.vlgmr.msra.gmra.mxu1 %v36629_v54 }
  0xfc   : > { %34001 = vmatpush3.msra.mxu1 %v36603_v34  ;;  %34008 = vmatmul.mubr.f32.vlgmr.msra.gmra.mxu0 %v36712_v4 }
  0xfd   : > { %34016 = vmatpush3.msra.mxu0 %v36679_v29  ;;  %34002 = vmatprep.mubr.msk.f32.mxu1 %vm36105_vm0, %v39533_v0 }
  0xfe   : > { %34010 = vmatprep.subr.mxu1 %v39533_v0  ;;  %34017 = vmatprep.mubr.msk.f32.mxu0 %vm36105_vm0, %v39533_v0 }
  0xff   : > { %34025 = vmatprep.subr.mxu0 %v39533_v0  ;;  %34003 = vmatmul.mubr.f32.vlgmr.msra.gmra.mxu1 %v36588_v28 }
 0x100   : > { %34011 = vmatpush3.msra.mxu1 %v36726_v21  ;;  %34018 = vmatmul.mubr.f32.vlgmr.msra.gmra.mxu0 %v36667_v24 }
 0x101   : > { %34026 = vmatpush3.msra.mxu0 %v36696_v58  ;;  %34012 = vmatprep.mubr.msk.f32.mxu1 %vm36105_vm0, %v39533_v0 }
 0x102   : > { %34020 = vmatprep.subr.mxu1 %v39533_v0  ;;  %34027 = vmatprep.mubr.msk.f32.mxu0 %vm36105_vm0, %v39533_v0 }
 0x103   : > { %34035 = vmatprep.subr.mxu0 %v39533_v0  ;;  %34013 = vmatmul.mubr.f32.vlgmr.msra.gmra.mxu1 %v36647_v8 }
 0x104   : > { %34021 = vmatpush3.msra.mxu1 %v36662_v19  ;;  %34028 = vmatmul.mubr.f32.vlgmr.msra.gmra.mxu0 %v36647_v8 }
 0x105   : > { %34036 = vmatpush3.msra.mxu0 %v36425_v36  ;;  %34022 = vmatprep.mubr.msk.f32.mxu1 %vm36105_vm0, %v39533_v0 }
 0x106   : > { %34030 = vmatprep.subr.mxu1 %v39533_v0  ;;  %34037 = vmatprep.mubr.msk.f32.mxu0 %vm36105_vm0, %v39533_v0 }
 0x107   : > { %34045 = vmatprep.subr.mxu0 %v39533_v0  ;;  %34023 = vmatmul.mubr.f32.vlgmr.msra.gmra.mxu1 %v36685_v47 }
 0x108   : > { %34031 = vmatpush3.msra.mxu1 %v36662_v19  ;;  %34038 = vmatmul.mubr.f32.vlgmr.msra.gmra.mxu0 %v36292_v53 }
 0x109   : > { %34046 = vmatpush3.msra.mxu0 %v36446_v41  ;;  %34032 = vmatprep.mubr.msk.f32.mxu1 %vm36105_vm0, %v39533_v0  ;;  %v32873_v41 = vld [vmem:[%s36220_s10 + $0x1d] sm:$0x1] }
 0x10a   : > { %34040 = vmatprep.subr.mxu1 %v39533_v0  ;;  %34047 = vmatprep.mubr.msk.f32.mxu0 %vm36105_vm0, %v39533_v0 }
 0x10b   : > { %34055 = vmatprep.subr.mxu0 %v39533_v0  ;;  %34033 = vmatmul.mubr.f32.vlgmr.msra.gmra.mxu1 %v36647_v8 }
 0x10c   : > { %34041 = vmatpush3.msra.mxu1 %v36507_v63  ;;  %34048 = vmatmul.mubr.f32.vlgmr.msra.gmra.mxu0 %v36277_v44  ;;  %v15138_v63 = vrot.slane %v32873_v41, 7  ;;  %v19192_v41 = vrot.slane %v32878_v60, 7 }
 0x10d   : > { %34056 = vmatpush3.msra.mxu0 %v36463_v50  ;;  %34042 = vmatprep.mubr.msk.f32.mxu1 %vm36105_vm0, %v39533_v0 }
 0x10e   : > { %34050 = vmatprep.subr.mxu1 %v39533_v0  ;;  %34057 = vmatprep.mubr.msk.f32.mxu0 %vm36105_vm0, %v39533_v0 }
 0x10f   : > { %34043 = vmatmul.mubr.f32.vlgmr.msra.gmra.mxu1 %v36274_v43  ;;  %34065 = vmatprep.subr.mxu0 %v39533_v0 }
 0x110   : > { %34051 = vmatpush3.msra.mxu1 %v36425_v36  ;;  %34058 = vmatmul.mubr.f32.vlgmr.msra.gmra.mxu0 %v36274_v43 }
 0x111   : > { %34052 = vmatprep.mubr.msk.f32.mxu1 %vm36105_vm0, %v39533_v0  ;;  %34060 = vmatprep.subr.mxu1 %v39533_v0 }
 0x112   : > { %34066 = vmatpush3.msra.mxu0 %v36369_v20  ;;  %34067 = vmatprep.mubr.msk.f32.mxu0 %vm36105_vm0, %v39533_v0 }
 0x113   : > { %34053 = vmatmul.mubr.f32.vlgmr.msra.gmra.mxu1 %v36283_v46  ;;  %34075 = vmatprep.subr.mxu0 %v39533_v0 }
 0x114   : > { %34061 = vmatpush3.msra.mxu1 %v36425_v36  ;;  %34068 = vmatmul.mubr.f32.vlgmr.msra.gmra.mxu0 %v36324_v7  ;;  %v32867_v36 = vld [vmem:[%s36220_s10 + $0x4] sm:$0x1] }
 0x115   : > { %34062 = vmatprep.mubr.msk.f32.mxu1 %vm36105_vm0, %v39533_v0  ;;  %34076 = vmatpush3.msra.mxu0 %v36390_v25  ;;  %v32869_v25 = vld [vmem:[%s36220_s10 + $0x34] sm:$0x1] }
 0x116   : > { %34077 = vmatprep.mubr.msk.f32.mxu0 %vm36105_vm0, %v39533_v0  ;;  %34070 = vmatprep.subr.mxu1 %v39533_v0  ;;  %v11086_v50 = vrot.slane %v32869_v25, 6 }
 0x117   : > { %34063 = vmatmul.mubr.f32.vlgmr.msra.gmra.mxu1 %v36274_v43  ;;  %34085 = vmatprep.subr.mxu0 %v39533_v0 }
 0x118   : > { %34078 = vmatmul.mubr.f32.vlgmr.msra.gmra.mxu0 %v36297_v56  ;;  %34071 = vmatpush3.msra.mxu1 %v36448_v42  ;;  %v32870_v42 = vld [vmem:[%s36220_s10 + $0x4c] sm:$0x1] }
 0x119   : > { %34086 = vmatpush3.msra.mxu0 %v36409_v32  ;;  %34072 = vmatprep.mubr.msk.f32.mxu1 %vm36105_vm0, %v39533_v0 }
 0x11a   : > { %34087 = vmatprep.mubr.msk.f32.mxu0 %vm36105_vm0, %v39533_v0  ;;  %34095 = vmatprep.subr.mxu0 %v39533_v0 }
 0x11b   : > { %34073 = vmatmul.mubr.f32.vlgmr.msra.gmra.mxu1 %v36288_v49  ;;  %34080 = vmatprep.subr.mxu1 %v39533_v0 }
 0x11c   : > { %34088 = vmatmul.mubr.f32.vlgmr.msra.gmra.mxu0 %v36288_v49  ;;  %34081 = vmatpush3.msra.mxu1 %v36369_v20 }
 0x11d   : > { %34096 = vmatpush3.msra.mxu0 %v36484_v57  ;;  %34082 = vmatprep.mubr.msk.f32.mxu1 %vm36105_vm0, %v39533_v0 }
 0x11e   : > { %34097 = vmatprep.mubr.msk.f32.mxu0 %vm36105_vm0, %v39533_v0  ;;  %34105 = vmatprep.subr.mxu0 %v39533_v0 }
 0x11f   : > { %34083 = vmatmul.mubr.f32.vlgmr.msra.gmra.mxu1 %v36308_v61  ;;  %34090 = vmatprep.subr.mxu1 %v39533_v0 }
 0x120   : > { %34098 = vmatmul.mubr.f32.vlgmr.msra.gmra.mxu0 %v36373_v22  ;;  %34091 = vmatpush3.msra.mxu1 %v36369_v20  ;;  %v32868_v20 = vld [vmem:[%s36220_s10 + $0x1c] sm:$0x1] }
 0x121   : > { %34106 = vmatpush3.msra.mxu0 %v36504_v62  ;;  %34092 = vmatprep.mubr.msk.f32.mxu1 %vm36105_vm0, %v39533_v0  ;;  %v11084_v32 = vrot.slane %v32868_v20, 7  ;;  %v32874_v62 = vld [vmem:[%s36220_s10 + $0x35] sm:$0x1]  ;;  %v32875_v20 = vld [vmem:[%s36220_s10 + $0x4d] sm:$0x1] }
 0x122   : > { %34100 = vmatprep.subr.mxu1 %v39533_v0  ;;  %34107 = vmatprep.mubr.msk.f32.mxu0 %vm36105_vm0, %v39533_v0  ;;  %v15140_v25 = vrot.slane %v32874_v62, 6  ;;  %v32883_v62 = vld [vmem:[%s36220_s10 + $0x1f] sm:$0x1] }
 0x123   : > { %34115 = vmatprep.subr.mxu0 %v39533_v0  ;;  %34093 = vmatmul.mubr.f32.vlgmr.msra.gmra.mxu1 %v36288_v49 }
 0x124   : > { %34101 = vmatpush3.msra.mxu1 %v36567_v16  ;;  %34108 = vmatmul.mubr.f32.vlgmr.msra.gmra.mxu0 %v36329_v10  ;;  %v32872_v16 = vld [vmem:[%s36220_s10 + $0x5] sm:$0x1] }
 0x125   : > { %34116 = vmatpush3.msra.mxu0 %v36522_v3  ;;  %34102 = vmatprep.mubr.msk.f32.mxu1 %vm36105_vm0, %v39533_v0  ;;  %v11088_v3 = vrot.slane %v32870_v42, 5 }
 0x126   : > { %34110 = vmatprep.subr.mxu1 %v39533_v0  ;;  %34117 = vmatprep.mubr.msk.f32.mxu0 %vm36105_vm0, %v39533_v0 }
 0x127   : > { %34103 = vmatmul.mubr.f32.vlgmr.msra.gmra.mxu1 %v36317_v5  ;;  %34125 = vmatprep.subr.mxu0 %v39533_v0 }
 0x128   : > { %34111 = vmatpush3.msra.mxu1 %v36484_v57  ;;  %34118 = vmatmul.mubr.f32.vlgmr.msra.gmra.mxu0 %v36317_v5 }
 0x129   : > { %34112 = vmatprep.mubr.msk.f32.mxu1 %vm36105_vm0, %v39533_v0  ;;  %34120 = vmatprep.subr.mxu1 %v39533_v0 }
 0x12a   : > { %34126 = vmatpush3.msra.mxu0 %v36540_v9  ;;  %34127 = vmatprep.mubr.msk.f32.mxu0 %vm36105_vm0, %v39533_v0 }
 0x12b   : > { %34113 = vmatmul.mubr.f32.vlgmr.msra.gmra.mxu1 %v36345_v14  ;;  %34135 = vmatprep.subr.mxu0 %v39533_v0 }
 0x12c   : > { %34121 = vmatpush3.msra.mxu1 %v36484_v57  ;;  %34128 = vmatmul.mubr.f32.vlgmr.msra.gmra.mxu0 %v36423_v35  ;;  %v11085_v57 = vsel %vm229_vm1, %v11084_v32, %v32867_v36  ;;  %v15139_v32 = vsel %vm229_vm1, %v15138_v63, %v32872_v16  ;;  %v32879_v36 = vld [vmem:[%s36220_s10 + $0x36] sm:$0x1]  ;;  %v32880_v16 = vld [vmem:[%s36220_s10 + $0x4e] sm:$0x1] }
 0x12d   : > { %34122 = vmatprep.mubr.msk.f32.mxu1 %vm36105_vm0, %v39533_v0  ;;  %34136 = vmatpush3.msra.mxu0 %v36563_v15  ;;  %v11087_v11 = vsel %vm232_vm2, %v11086_v50, %v11085_v57  ;;  %v32877_v50 = vld [vmem:[%s36220_s10 + $0x6] sm:$0x1]  ;;  %v15142_v57 = vrot.slane %v32875_v20, 5  ;;  %v15141_v63 = vsel %vm232_vm2, %v15140_v25, %v15139_v32  ;;  %v19194_v60 = vrot.slane %v32879_v36, 6  ;;  %v32882_v36 = vld [vmem:[%s36220_s10 + $0x7] sm:$0x1] }
 0x12e   : > { %34137 = vmatprep.mubr.msk.f32.mxu0 %vm36105_vm0, %v39533_v0  ;;  %34130 = vmatprep.subr.mxu1 %v39533_v0  ;;  %v36898_v42 = vsel %vm235_vm3, %v11088_v3, %v11087_v11  ;;  %v19193_v3 = vsel %vm229_vm1, %v19192_v41, %v32877_v50  ;;  %v32884_v11 = vld [vmem:[%s36220_s10 + $0x37] sm:$0x1]  ;;  %v23246_v20 = vrot.slane %v32883_v62, 7  ;;  %v19196_v32 = vrot.slane %v32880_v16, 5  ;;  %v32888_v41 = vld [vmem:[%s36220_s10 + $0x20] sm:$0x1] }
 0x12f   : > { %34123 = vmatmul.mubr.f32.vlgmr.msra.gmra.mxu1 %v36317_v5  ;;  %34145 = vmatprep.subr.mxu0 %v39533_v0  ;;  %v36920_v25 = vsel %vm235_vm3, %v15142_v57, %v15141_v63  ;;  %v19195_v50 = vsel %vm232_vm2, %v19194_v60, %v19193_v3  ;;  %v7036_v62 = vsel %vm243_vm5, %v36264_v40, 0  ;;  %v32885_v57 = vld [vmem:[%s36220_s10 + $0x4f] sm:$0x1]  ;;  %v23248_v63 = vrot.slane %v32884_v11, 6  ;;  %v32887_v3 = vld [vmem:[%s36220_s10 + $0x8] sm:$0x1] }
 0x130   : > { %34138 = vmatmul.mubr.f32.vlgmr.msra.gmra.mxu0 %v36376_v23  ;;  %34131 = vmatpush3.msra.mxu1 %v36626_v51  ;;  %39637 = vst [vmem:[#allocation28_spill] sm:$0xff] %v36920_v25  ;;  %v23247_v16 = vsel %vm229_vm1, %v23246_v20, %v32882_v36  ;;  %v27300_v60 = vrot.slane %v32888_v41, 7  ;;  %v36942_v40 = vsel %vm235_vm3, %v19196_v32, %v19195_v50  ;;  %v32893_v11 = vld [vmem:[%s36220_s10 + $0x21] sm:$0x1]  ;;  %v23250_v20 = vrot.slane %v32885_v57, 5 }
 0x131   : > { %34146 = vmatpush3.msra.mxu0 %v36586_v26  ;;  %34132 = vmatprep.mubr.msk.f32.mxu1 %vm36105_vm0, %v39533_v0  ;;  %39638 = vst [vmem:[#allocation29_spill] sm:$0xff] %v36942_v40  ;;  %v23249_v36 = vsel %vm232_vm2, %v23248_v63, %v23247_v16  ;;  %v32890_v41 = vld [vmem:[%s36220_s10 + $0x50] sm:$0x1]  ;;  %v32894_v50 = vld [vmem:[%s36220_s10 + $0x39] sm:$0x1] }
 0x132   : > { %34147 = vmatprep.mubr.msk.f32.mxu0 %vm36105_vm0, %v39533_v0  ;;  %34155 = vmatprep.subr.mxu0 %v39533_v0  ;;  %v27301_v32 = vsel %vm229_vm1, %v27300_v60, %v32887_v3  ;;  %v32892_v57 = vld [vmem:[%s36220_s10 + $0x9] sm:$0x1]  ;;  %v27304_v16 = vrot.slane %v32890_v41, 5  ;;  %v32895_v3 = vld [vmem:[%s36220_s10 + $0x51] sm:$0x1] }
 0x133   : > { %34133 = vmatmul.mubr.f32.vlgmr.msra.gmra.mxu1 %v36358_v18  ;;  %34140 = vmatprep.subr.mxu1 %v39533_v0 }
 0x134   : > { %34148 = vmatmul.mubr.f32.vlgmr.msra.gmra.mxu0 %v36358_v18  ;;  %34141 = vmatpush3.msra.mxu1 %v36540_v9 }
 0x135   : > { %34156 = vmatpush3.msra.mxu0 %v36603_v34  ;;  %34142 = vmatprep.mubr.msk.f32.mxu1 %vm36105_vm0, %v39533_v0 }
 0x136   : > { %34157 = vmatprep.mubr.msk.f32.mxu0 %vm36105_vm0, %v39533_v0  ;;  %34165 = vmatprep.subr.mxu0 %v39533_v0 }
 0x137   : > { %34143 = vmatmul.mubr.f32.vlgmr.msra.gmra.mxu1 %v36395_v27  ;;  %34150 = vmatprep.subr.mxu1 %v39533_v0 }
 0x138   : > { %34158 = vmatmul.mubr.f32.vlgmr.msra.gmra.mxu0 %v36482_v55  ;;  %34151 = vmatpush3.msra.mxu1 %v36540_v9 }
 0x139   : > { %34166 = vmatpush3.msra.mxu0 %v36624_v48  ;;  %34152 = vmatprep.mubr.msk.f32.mxu1 %vm36105_vm0, %v39533_v0 }
 0x13a   : > { %34160 = vmatprep.subr.mxu1 %v39533_v0  ;;  %34167 = vmatprep.mubr.msk.f32.mxu0 %vm36105_vm0, %v39533_v0 }
 0x13b   : > { %34175 = vmatprep.subr.mxu0 %v39533_v0  ;;  %34153 = vmatmul.mubr.f32.vlgmr.msra.gmra.mxu1 %v36358_v18 }
 0x13c   : > { %34161 = vmatpush3.msra.mxu1 %v36682_v37  ;;  %34168 = vmatmul.mubr.f32.vlgmr.msra.gmra.mxu0 %v36430_v38  ;;  %v32889_v38 = vld [vmem:[%s36220_s10 + $0x38] sm:$0x1]  ;;  %s32898_s10 = sshll.u32 %s32730_s5, 7 }
 0x13d   : > { %34176 = vmatpush3.msra.mxu0 %v36641_v2  ;;  %11539 = vrot.lane.b32.xlu0 %v36898_v42, %s36106_s11  ;;  %v27302_v55 = vrot.slane %v32889_v38, 6  ;;  %v36970_v38 = vsel %vm235_vm3, %v23250_v20, %v23249_v36  ;;  %v7486_v20 = vpop.permute.xlu0 %7485  ;;  %v31358_v36 = vrot.slane %v32895_v3, 5 }
 0x13e   : > { %34162 = vmatprep.mubr.msk.f32.mxu1 %vm36105_vm0, %v39533_v0  ;;  %34170 = vmatprep.subr.mxu1 %v39533_v0  ;;  %39640 = vst [vmem:[#allocation30_spill] sm:$0xff] %v36970_v38 }
 0x13f   : > { %34177 = vmatprep.mubr.msk.f32.mxu0 %vm36105_vm0, %v39533_v0  ;;  %34185 = vmatprep.subr.mxu0 %v39533_v0  ;;  %v27303_v60 = vsel %vm232_vm2, %v27302_v55, %v27301_v32  ;;  %v7487_v32 = vsel %vm243_vm5, %v7486_v20, 0  ;;  %v7937_v20 = vpop.permute.xlu1 %7936 }
 0x140   : > { %34163 = vmatmul.mubr.f32.vlgmr.msra.gmra.mxu1 %v36411_v33  ;;  %34178 = vmatmul.mubr.f32.vlgmr.msra.gmra.mxu0 %v36411_v33  ;;  %v36987_v55 = vsel %vm235_vm3, %v27304_v16, %v27303_v60  ;;  %v37012_v16 = vand.u32 4294901760, %v7487_v32  ;;  %v201_v60 = vld [vmem:[%s39525_s2] sm:$0xff] }
 0x141   : > { %34171 = vmatpush3.msra.mxu1 %v36603_v34  ;;  %34186 = vmatpush3.msra.mxu0 %v36662_v19  ;;  %39641 = vst [vmem:[#allocation31_spill] sm:$0xff] %v36987_v55 }
 0x142   : > { %15593 = vrot.lane.b32.xlu0 %v36920_v25, %s36106_s11  ;;  %34172 = vmatprep.mubr.msk.f32.mxu1 %vm36105_vm0, %v39533_v0  ;;  %v36946_v25 = vand.u32 4294901760, %v7036_v62 }
 0x143   : > { %34180 = vmatprep.subr.mxu1 %v39533_v0  ;;  %34187 = vmatprep.mubr.msk.f32.mxu0 %vm36105_vm0, %v39533_v0 }
 0x144   : > { %34195 = vmatprep.subr.mxu0 %v39533_v0  ;;  %34173 = vmatmul.mubr.f32.vlgmr.msra.gmra.mxu1 %v36451_v45  ;;  %v31354_v0 = vrot.slane %v32893_v11, 7  ;;  %v39639_v45 = vmov 0.0   ;;  %v36964_v63 = vsub.f32 %v7036_v62, %v36946_v25  ;;  %v31356_v11 = vrot.slane %v32894_v50, 6 }
 0x145   : > { %34181 = vmatpush3.msra.mxu1 %v36603_v34  ;;  %34188 = vmatmul.mubr.f32.vlgmr.msra.gmra.mxu0 %v36544_v30 }
 0x146   : > { %34196 = vmatpush3.msra.mxu0 %v36679_v29  ;;  %19647 = vrot.lane.b32.xlu0 %v36942_v40, %s36106_s11  ;;  %v31355_v62 = vsel %vm229_vm1, %v31354_v0, %v32892_v57  ;;  %v36990_v41 = vand.u32 4294901760, %v36964_v63 }
 0x147   : > { %34182 = vmatprep.mubr.msk.f32.mxu1 %vm36105_vm0, %v39639_v45  ;;  %34190 = vmatprep.subr.mxu1 %v39639_v45  ;;  %v31357_v0 = vsel %vm232_vm2, %v31356_v11, %v31355_v62  ;;  %v37028_v11 = vsub.f32 %v7487_v32, %v37012_v16  ;;  %v36108_v62 = vmov 0  }
 0x148   : > { %34197 = vmatprep.mubr.msk.f32.mxu0 %vm36105_vm0, %v39639_v45  ;;  %34205 = vmatprep.subr.mxu0 %v39639_v45  ;;  %39642 = vst [vmem:[#allocation32_spill] sm:$0xff] %v36990_v41  ;;  %v37005_v50 = vsel %vm235_vm3, %v31358_v36, %v31357_v0  ;;  %v7148_v57 = vsub.f32 %v36964_v63, %v36990_v41  ;;  %v7938_v0 = vsel %vm243_vm5, %v7937_v20, 0 }
 0x149   : > { %34183 = vmatmul.mubr.f32.vlgmr.msra.gmra.mxu1 %v36411_v33  ;;  %34198 = vmatmul.mubr.f32.vlgmr.msra.gmra.mxu0 %v36489_v59  ;;  %39643 = vst [vmem:[#allocation33_spill] sm:$0xff] %v37005_v50  ;;  %v37038_v36 = vand.u32 4294901760, %v37028_v11 }
 0x14a   : > { %34191 = vmatpush3.msra.mxu1 %v36726_v21  ;;  %34206 = vmatpush3.msra.mxu0 %v36696_v58  ;;  %v37025_v3 = vand.u32 4294901760, %v7148_v57  ;;  %v37054_v57 = vand.u32 4294901760, %v7938_v0 }
 0x14b   : > { %23701 = vrot.lane.b32.xlu0 %v36970_v38, %s36106_s11  ;;  %34192 = vmatprep.mubr.msk.f32.mxu1 %vm36105_vm0, %v39639_v45 }
 0x14c   : > { %34200 = vmatprep.subr.mxu1 %v39639_v45  ;;  %34207 = vmatprep.mubr.msk.f32.mxu0 %vm36105_vm0, %v39639_v45  ;;  %39644 = vst [vmem:[#allocation34_spill] sm:$0xff] %v37025_v3 }
 0x14d   : > { %34193 = vmatmul.mubr.f32.vlgmr.msra.gmra.mxu1 %v36469_v52  ;;  %34208 = vmatmul.mubr.f32.vlgmr.msra.gmra.mxu0 %v36469_v52 }
 0x14e   : > { %34201 = vmatpush3.msra.mxu1 %v36662_v19  ;;  %34215 = vmatprep.subr.mxu0 %v39639_v45 }
 0x14f   : > { %27755 = vrot.lane.b32.xlu0 %v36987_v55, %s36106_s11  ;;  %34202 = vmatprep.mubr.msk.f32.mxu1 %vm36105_vm0, %v39639_v45 }
 0x150   : > { %34210 = vmatprep.subr.mxu1 %v39639_v45  ;;  %34216 = vmatpush3.msra.mxu0 %v36946_v25 }
 0x151   : > { %34217 = vmatprep.mubr.msk.f32.mxu0 %vm36105_vm0, %v39639_v45  ;;  %34203 = vmatmul.mubr.f32.vlgmr.msra.gmra.mxu1 %v36510_v1 }
 0x152   : > { %34211 = vmatpush3.msra.mxu1 %v36662_v19  ;;  %34218 = vmatmul.mubr.f32.vlgmr.msra.gmra.mxu0 %v36601_v31 }
 0x153   : > { %31809 = vrot.lane.b32.xlu0 %v37005_v50, %s36106_s11  ;;  %34225 = vmatprep.subr.mxu0 %v39639_v45  ;;  %v37068_v50 = vsub.f32 %v7938_v0, %v37054_v57  ;;  %s175_s11 = sand.u32 1, %s36078_s13  }
 0x154   : > { %34212 = vmatprep.mubr.msk.f32.mxu1 %vm36105_vm0, %v39639_v45  ;;  %34226 = vmatpush3.msra.mxu0 %v36964_v63  ;;  %s32840_s7 = sshll.u32 %s175_s11, 3 }
 0x155   : > { %34227 = vmatprep.mubr.msk.f32.mxu0 %vm36105_vm0, %v39639_v45  ;;  %36009 = vset.pattern.permute.xlu0 %v36108_v62  ;;  %s37500_s8 = scalar_lea.vmem [#allocation2], %s32840_s7 }
 0x156   : > { %34213 = vmatmul.mubr.f32.vlgmr.msra.gmra.mxu1 %v36469_v52  ;;  %34220 = vmatprep.subr.mxu1 %v39639_v45  ;;  %s32734_s6 = sshll.u32 %s37500_s8, 4  ;;  %s32735_s6 = int_to_ptr.vmem [resolvable:$true] %s32734_s6 }
 0x157   : > { %34228 = vmatmul.mubr.f32.vlgmr.msra.gmra.mxu0 %v36549_v12  ;;  %204 = vperm.xlu0 %36009, %v201_v60   ;;  %v7599_v60 = vsub.f32 %v37028_v11, %v37038_v36  ;;  %p36017_p2 = scmp.lt.s32.totalorder %s32735_s6, %s36015_s15 }
 0x158   : > { %34221 = vmatpush3.msra.mxu1 %v37025_v3  ;;  %34235 = vmatprep.subr.mxu0 %v39639_v45 }
 0x159   : > { %11990 = vrot.lane.b32.xlu1 %v36898_v42, %s36107_s20  ;;  %34222 = vmatprep.mubr.msk.f32.mxu1 %vm36105_vm0, %v39639_v45 }
 0x15a   : > { %34236 = vmatpush3.msra.mxu0 %v36990_v41  ;;  %34237 = vmatprep.mubr.msk.f32.mxu0 %vm36105_vm0, %v39639_v45 }
 0x15b   : > { %34223 = vmatmul.mubr.f32.vlgmr.msra.gmra.mxu1 %v36528_v6  ;;  %34230 = vmatprep.subr.mxu1 %v39639_v45  ;;  %v318_v32 = vpop.f32.mrf.mxu0 }
 0x15c   : > { %34238 = vmatmul.mubr.f32.vlgmr.msra.gmra.mxu0 %v36528_v6  ;;  %34245 = vmatprep.subr.mxu0 %v39639_v45 }
 0x15d   : > { %34231 = vmatpush3.msra.mxu1 %v36946_v25  ;;  %34246 = vmatpush3.msra.mxu0 %v37012_v16  ;;  %v33769_v62 = vpop.f32.mrf.mxu0 }
 0x15e   : > { %34232 = vmatprep.mubr.msk.f32.mxu1 %vm36105_vm0, %v39639_v45  ;;  %34247 = vmatprep.mubr.msk.f32.mxu0 %vm36105_vm0, %v39639_v45  ;;  %v37071_v62 = vand.u32 4294901760, %v7599_v60  ;;  %v37082_v60 = vand.u32 4294901760, %v37068_v50 }
 0x15f   : > { %34255 = vmatprep.subr.mxu0 %v39639_v45  ;;  %34233 = vmatmul.mubr.f32.vlgmr.msra.gmra.mxu1 %v36570_v17  ;;  %v468_v20 = vpop.f32.mrf.mxu0 }
 0x160   : > { %34240 = vmatprep.subr.mxu1 %v39639_v45  ;;  %34248 = vmatmul.mubr.f32.vlgmr.msra.gmra.mxu0 %v36660_v13 }
 0x161   : > { %34256 = vmatpush3.msra.mxu0 %v37028_v11  ;;  %34241 = vmatpush3.msra.mxu1 %v36946_v25  ;;  %v33779_v55 = vpop.f32.mrf.mxu0 }
 0x162   : > { %34242 = vmatprep.mubr.msk.f32.mxu1 %vm36105_vm0, %v39639_v45  ;;  %34250 = vmatprep.subr.mxu1 %v39639_v45 }
 0x163   : > { %34257 = vmatprep.mubr.msk.f32.mxu0 %vm36105_vm0, %v39639_v45  ;;  %34265 = vmatprep.subr.mxu0 %v39639_v45  ;;  %v394_v38 = vpop.f32.mrf.mxu1 }
 0x164   : > { %34243 = vmatmul.mubr.f32.vlgmr.msra.gmra.mxu1 %v36528_v6  ;;  %34258 = vmatmul.mubr.f32.vlgmr.msra.gmra.mxu0 %v36608_v39  ;;  %v395_v0 = vadd.f32 %v394_v38, %v318_v32  ;;  %v616_v40 = vpop.f32.mrf.mxu0 }
 0x165   : > { %34251 = vmatpush3.msra.mxu1 %v37071_v62  ;;  %34266 = vmatpush3.msra.mxu0 %v37038_v36  ;;  %v33774_v55 = vpop.f32.mrf.mxu1 }
 0x166   : > { %34252 = vmatprep.mubr.msk.f32.mxu1 %vm36105_vm0, %v39639_v45  ;;  %34260 = vmatprep.subr.mxu1 %v39639_v45  ;;  %v469_v13 = vadd.f32 %v468_v20, %v395_v0  ;;  %v33789_v17 = vpop.f32.mrf.mxu0 }
 0x167   : > { %34267 = vmatprep.mubr.msk.f32.mxu0 %vm36105_vm0, %v39639_v45  ;;  %34275 = vmatprep.subr.mxu0 %v39639_v45  ;;  %v542_v38 = vpop.f32.mrf.mxu1  ;;  %v8050_v17 = vsub.f32 %v37068_v50, %v37082_v60 }
 0x168   : > { %34253 = vmatmul.mubr.f32.vlgmr.msra.gmra.mxu1 %v36588_v28  ;;  %34268 = vmatmul.mubr.f32.vlgmr.msra.gmra.mxu0 %v36588_v28  ;;  %v543_v32 = vadd.f32 %v542_v38, %v469_v13  ;;  %v769_v39 = vpop.f32.mrf.mxu0 }
 0x169   : > { %34261 = vmatpush3.msra.mxu1 %v37012_v16  ;;  %34276 = vmatpush3.msra.mxu0 %v37054_v57  ;;  %v33784_v55 = vpop.f32.mrf.mxu1  ;;  %v37108_v6 = vand.u32 4294901760, %v8050_v17 }
 0x16a   : > { %34262 = vmatprep.mubr.msk.f32.mxu1 %vm36105_vm0, %v39639_v45  ;;  %34270 = vmatprep.subr.mxu1 %v39639_v45  ;;  %v617_v20 = vadd.f32 %v616_v40, %v543_v32  ;;  %v33799_v0 = vpop.f32.mrf.mxu0 }
 0x16b   : > { %34277 = vmatprep.mubr.msk.f32.mxu0 %vm36105_vm0, %v39639_v45  ;;  %34285 = vmatprep.subr.mxu0 %v39639_v45  ;;  %v688_v13 = vpop.f32.mrf.mxu1 }
 0x16c   : > { %34263 = vmatmul.mubr.f32.vlgmr.msra.gmra.mxu1 %v36629_v54  ;;  %34278 = vmatmul.mubr.f32.vlgmr.msra.gmra.mxu0 %v36712_v4  ;;  %v689_v38 = vadd.f32 %v688_v13, %v617_v20  ;;  %v919_v55 = vpop.f32.mrf.mxu0 }
 0x16d   : > { %34271 = vmatpush3.msra.mxu1 %v37012_v16  ;;  %34286 = vmatpush3.msra.mxu0 %v37068_v50  ;;  %v33794_v40 = vpop.f32.mrf.mxu1 }
 0x16e   : > { %34272 = vmatprep.mubr.msk.f32.mxu1 %vm36105_vm0, %v39639_v45  ;;  %34280 = vmatprep.subr.mxu1 %v39639_v45  ;;  %v770_v32 = vadd.f32 %v769_v39, %v689_v38  ;;  %v33809_v0 = vpop.f32.mrf.mxu0 }
 0x16f   : > { %34287 = vmatprep.mubr.msk.f32.mxu0 %vm36105_vm0, %v39639_v45  ;;  %34295 = vmatprep.subr.mxu0 %v39639_v45  ;;  %v845_v20 = vpop.f32.mrf.mxu1 }
 0x170   : > { %34273 = vmatmul.mubr.f32.vlgmr.msra.gmra.mxu1 %v36588_v28  ;;  %34288 = vmatmul.mubr.f32.vlgmr.msra.gmra.mxu0 %v36667_v24  ;;  %v846_v17 = vadd.f32 %v845_v20, %v770_v32  ;;  %v1067_v13 = vpop.f32.mrf.mxu0 }
 0x171   : > { %34281 = vmatpush3.msra.mxu1 %v37108_v6  ;;  %34296 = vmatpush3.msra.mxu0 %v37082_v60  ;;  %v33804_v40 = vpop.f32.mrf.mxu1 }
 0x172   : > { %34282 = vmatprep.mubr.msk.f32.mxu1 %vm36105_vm0, %v39639_v45  ;;  %34290 = vmatprep.subr.mxu1 %v39639_v45  ;;  %v920_v39 = vadd.f32 %v919_v55, %v846_v17  ;;  %v33819_v38 = vpop.f32.mrf.mxu0 }
 0x173   : > { %34297 = vmatprep.mubr.msk.f32.mxu0 %vm36105_vm0, %v39639_v45  ;;  %34305 = vmatprep.subr.mxu0 %v39639_v45  ;;  %v993_v0 = vpop.f32.mrf.mxu1 }
 0x174   : > { %34283 = vmatmul.mubr.f32.vlgmr.msra.gmra.mxu1 %v36647_v8  ;;  %34298 = vmatmul.mubr.f32.vlgmr.msra.gmra.mxu0 %v36647_v8  ;;  %v994_v32 = vadd.f32 %v993_v0, %v920_v39  ;;  %v1222_v20 = vpop.f32.mrf.mxu0 }
 0x175   : > { %34291 = vmatpush3.msra.mxu1 %v37054_v57  ;;  %34306 = vmatpush3.msra.mxu0 %v36603_v34  ;;  %v33814_v40 = vpop.f32.mrf.mxu1 }
 0x176   : > { %34292 = vmatprep.mubr.msk.f32.mxu1 %vm36105_vm0, %v39639_v45  ;;  %34300 = vmatprep.subr.mxu1 %v39639_v45  ;;  %v1068_v55 = vadd.f32 %v1067_v13, %v994_v32  ;;  %v33829_v17 = vpop.f32.mrf.mxu0 }
 0x177   : > { %34307 = vmatprep.mubr.msk.f32.mxu0 %vm36105_vm0, %v39639_v45  ;;  %34315 = vmatprep.subr.mxu0 %v39639_v45  ;;  %v1139_v38 = vpop.f32.mrf.mxu1 }
 0x178   : > { %34293 = vmatmul.mubr.f32.vlgmr.msra.gmra.mxu1 %v36685_v47  ;;  %34308 = vmatmul.mubr.f32.vlgmr.msra.gmra.mxu0 %v36292_v53  ;;  %v1140_v39 = vadd.f32 %v1139_v38, %v1068_v55  ;;  %v1372_v0 = vpop.f32.mrf.mxu0 }
 0x179   : > { %34301 = vmatpush3.msra.mxu1 %v37054_v57  ;;  %34316 = vmatpush3.msra.mxu0 %v36624_v48  ;;  %v33824_v40 = vpop.f32.mrf.mxu1 }
 0x17a   : > { %34302 = vmatprep.mubr.msk.f32.mxu1 %vm36105_vm0, %v39639_v45  ;;  %34310 = vmatprep.subr.mxu1 %v39639_v45  ;;  %v33839_v13 = vpop.f32.mrf.mxu0 }
 0x17b   : > { %34317 = vmatprep.mubr.msk.f32.mxu0 %vm36105_vm0, %v39639_v45  ;;  %34325 = vmatprep.subr.mxu0 %v39639_v45  ;;  %v1298_v32 = vpop.f32.mrf.mxu1 }
 0x17c   : > { %34303 = vmatmul.mubr.f32.vlgmr.msra.gmra.mxu1 %v36647_v8  ;;  %34318 = vmatmul.mubr.f32.vlgmr.msra.gmra.mxu0 %v36277_v44  ;;  %v1299_v55 = vadd.f32 %v1298_v32, %v1222_v20  ;;  %v1520_v17 = vpop.f32.mrf.mxu0 }
 0x17d   : > { %34311 = vmatpush3.msra.mxu1 %v36682_v37  ;;  %34326 = vmatpush3.msra.mxu0 %v36641_v2  ;;  %v33834_v48 = vpop.f32.mrf.mxu1 }
 0x17e   : > { %34312 = vmatprep.mubr.msk.f32.mxu1 %vm36105_vm0, %v39639_v45  ;;  %34320 = vmatprep.subr.mxu1 %v39639_v45  ;;  %v1373_v38 = vadd.f32 %v1372_v0, %v1299_v55  ;;  %v33849_v40 = vpop.f32.mrf.mxu0 }
 0x17f   : > { %34327 = vmatprep.mubr.msk.f32.mxu0 %vm36105_vm0, %v39639_v45  ;;  %34335 = vmatprep.subr.mxu0 %v39639_v45  ;;  %v1446_v13 = vpop.f32.mrf.mxu1 }
 0x180   : > { %34313 = vmatmul.mubr.f32.vlgmr.msra.gmra.mxu1 %v36274_v43  ;;  %34328 = vmatmul.mubr.f32.vlgmr.msra.gmra.mxu0 %v36274_v43  ;;  %v1447_v37 = vadd.f32 %v1446_v13, %v1373_v38  ;;  %v37158_v2 = vpop.f32.mrf.mxu0 }
 0x181   : > { %34321 = vmatpush3.msra.mxu1 %v36603_v34  ;;  %34322 = vmatprep.mubr.msk.f32.mxu1 %vm36105_vm0, %v39639_v45  ;;  %v33844_v20 = vpop.f32.mrf.mxu1 }
 0x182   : > { %34330 = vmatprep.subr.mxu1 %v39639_v45  ;;  %34336 = vmatpush3.msra.mxu0 %v36540_v9  ;;  %v1521_v0 = vadd.f32 %v1520_v17, %v1447_v37  ;;  %v33859_v32 = vpop.f32.mrf.mxu0 }
 0x183   : > { %34337 = vmatprep.mubr.msk.f32.mxu0 %vm36105_vm0, %v39639_v45  ;;  %34345 = vmatprep.subr.mxu0 %v39639_v45  ;;  %v1592_v55 = vpop.f32.mrf.mxu1 }
 0x184   : > { %34323 = vmatmul.mubr.f32.vlgmr.msra.gmra.mxu1 %v36283_v46  ;;  %34338 = vmatmul.mubr.f32.vlgmr.msra.gmra.mxu0 %v36324_v7  ;;  %v1593_v48 = vadd.f32 %v1592_v55, %v1521_v0  ;;  %v37170_v38 = vpop.f32.mrf.mxu0 }
 0x185   : > { %34331 = vmatpush3.msra.mxu1 %v36603_v34  ;;  %34332 = vmatprep.mubr.msk.f32.mxu1 %vm36105_vm0, %v39639_v45  ;;  %v33854_v17 = vpop.f32.mrf.mxu1 }
 0x186   : > { %34346 = vmatpush3.msra.mxu0 %v36563_v15  ;;  %34347 = vmatprep.mubr.msk.f32.mxu0 %vm36105_vm0, %v39639_v45  ;;  %v37178_v40 = vadd.f32 %v1593_v48, %v1140_v39  ;;  %v33869_v13 = vpop.f32.mrf.mxu0 }
 0x187   : > { %34340 = vmatprep.subr.mxu1 %v39639_v45  ;;  %34355 = vmatprep.subr.mxu0 %v39639_v45  ;;  %v37182_v37 = vpop.f32.mrf.mxu1 }
 0x188   : > { %34333 = vmatmul.mubr.f32.vlgmr.msra.gmra.mxu1 %v36274_v43  ;;  %34348 = vmatmul.mubr.f32.vlgmr.msra.gmra.mxu0 %v36297_v56  ;;  %v37186_v34 = vpop.f32.mrf.mxu0 }
 0x189   : > { %34341 = vmatpush3.msra.mxu1 %v36626_v51  ;;  %34356 = vmatpush3.msra.mxu0 %v36586_v26  ;;  %v33864_v15 = vpop.f32.mrf.mxu1 }
 0x18a   : > { %34342 = vmatprep.mubr.msk.f32.mxu1 %vm36105_vm0, %v39639_v45  ;;  %34357 = vmatprep.mubr.msk.f32.mxu0 %vm36105_vm0, %v39639_v45  ;;  %v33879_v39 = vpop.f32.mrf.mxu0 }
 0x18b   : > { %34365 = vmatprep.subr.mxu0 %v39639_v45  ;;  %34350 = vmatprep.subr.mxu1 %v39639_v45  ;;  %v37196_v20 = vpop.f32.mrf.mxu1 }
 0x18c   : > { %34343 = vmatmul.mubr.f32.vlgmr.msra.gmra.mxu1 %v36288_v49  ;;  %34358 = vmatmul.mubr.f32.vlgmr.msra.gmra.mxu0 %v36288_v49  ;;  %v37200_v51 = vpop.f32.mrf.mxu0 }
 0x18d   : > { %34366 = vmatpush3.msra.mxu0 %v36662_v19  ;;  %34351 = vmatpush3.msra.mxu1 %v36540_v9  ;;  %v33874_v26 = vpop.f32.mrf.mxu1 }
 0x18e   : > { %34352 = vmatprep.mubr.msk.f32.mxu1 %vm36105_vm0, %v39639_v45  ;;  %34367 = vmatprep.mubr.msk.f32.mxu0 %vm36105_vm0, %v39639_v45  ;;  %v33889_v0 = vpop.f32.mrf.mxu0 }
 0x18f   : > { %34375 = vmatprep.subr.mxu0 %v39639_v45  ;;  %34360 = vmatprep.subr.mxu1 %v39639_v45  ;;  %v37210_v32 = vpop.f32.mrf.mxu1 }
 0x190   : > { %34353 = vmatmul.mubr.f32.vlgmr.msra.gmra.mxu1 %v36308_v61  ;;  %34368 = vmatmul.mubr.f32.vlgmr.msra.gmra.mxu0 %v36373_v22  ;;  %v37214_v55 = vpop.f32.mrf.mxu0 }
 0x191   : > { %34376 = vmatpush3.msra.mxu0 %v36679_v29  ;;  %34361 = vmatpush3.msra.mxu1 %v36540_v9  ;;  %v33884_v48 = vpop.f32.mrf.mxu1 }
 0x192   : > { %34362 = vmatprep.mubr.msk.f32.mxu1 %vm36105_vm0, %v39639_v45  ;;  %34370 = vmatprep.subr.mxu1 %v39639_v45  ;;  %v33899_v17 = vpop.f32.mrf.mxu0 }
 0x193   : > { %34377 = vmatprep.mubr.msk.f32.mxu0 %vm36105_vm0, %v39639_v45  ;;  %34385 = vmatprep.subr.mxu0 %v39639_v45  ;;  %v37224_v13 = vpop.f32.mrf.mxu1 }
 0x194   : > { %34363 = vmatmul.mubr.f32.vlgmr.msra.gmra.mxu1 %v36288_v49  ;;  %34378 = vmatmul.mubr.f32.vlgmr.msra.gmra.mxu0 %v36329_v10  ;;  %v37228_v29 = vpop.f32.mrf.mxu0 }
 0x195   : > { %34371 = vmatpush3.msra.mxu1 %v36726_v21  ;;  %34386 = vmatpush3.msra.mxu0 %v36696_v58  ;;  %v33894_v9 = vpop.f32.mrf.mxu1 }
 0x196   : > { %34372 = vmatprep.mubr.msk.f32.mxu1 %vm36105_vm0, %v39639_v45  ;;  %34380 = vmatprep.subr.mxu1 %v39639_v45  ;;  %v33909_v15 = vpop.f32.mrf.mxu0 }
 0x197   : > { %34387 = vmatprep.mubr.msk.f32.mxu0 %vm36105_vm0, %v39639_v45  ;;  %34395 = vmatprep.subr.mxu0 %v39639_v45  ;;  %v37238_v39 = vpop.f32.mrf.mxu1 }
 0x198   : > { %34373 = vmatmul.mubr.f32.vlgmr.msra.gmra.mxu1 %v36317_v5  ;;  %34388 = vmatmul.mubr.f32.vlgmr.msra.gmra.mxu0 %v36317_v5  ;;  %v37242_v21 = vpop.f32.mrf.mxu0 }
 0x199   : > { %34381 = vmatpush3.msra.mxu1 %v36662_v19  ;;  %34382 = vmatprep.mubr.msk.f32.mxu1 %vm36105_vm0, %v39639_v45  ;;  %v33904_v58 = vpop.f32.mrf.mxu1 }
 0x19a   : > { %34390 = vmatprep.subr.mxu1 %v39639_v45  ;;  %34396 = vmatpush3.msra.mxu0 %v36946_v25  ;;  %v33919_v26 = vpop.f32.mrf.mxu0 }
 0x19b   : > { %34397 = vmatprep.mubr.msk.f32.mxu0 %vm36105_vm0, %v39639_v45  ;;  %34405 = vmatprep.subr.mxu0 %v39639_v45  ;;  %v37252_v0 = vpop.f32.mrf.mxu1 }
 0x19c   : > { %34383 = vmatmul.mubr.f32.vlgmr.msra.gmra.mxu1 %v36345_v14  ;;  %34398 = vmatmul.mubr.f32.vlgmr.msra.gmra.mxu0 %v36423_v35  ;;  %v37256_v48 = vpop.f32.mrf.mxu0  ;;  %v39645_v35 = vld [vmem:[#allocation21_spill] sm:$0xff] }
 0x19d   : > { %34391 = vmatpush3.msra.mxu1 %v36662_v19  ;;  %34392 = vmatprep.mubr.msk.f32.mxu1 %vm36105_vm0, %v39639_v45  ;;  %v33914_v17 = vpop.f32.mrf.mxu1 }
 0x19e   : > { %34406 = vmatpush3.msra.mxu0 %v36964_v63  ;;  %34407 = vmatprep.mubr.msk.f32.mxu0 %vm36105_vm0, %v39639_v45  ;;  %v33929_v9 = vpop.f32.mrf.mxu0 }
 0x19f   : > { %34400 = vmatprep.subr.mxu1 %v39639_v45  ;;  %34415 = vmatprep.subr.mxu0 %v39639_v45  ;;  %v37266_v15 = vpop.f32.mrf.mxu1 }
 0x1a0   : > { %34393 = vmatmul.mubr.f32.vlgmr.msra.gmra.mxu1 %v36317_v5  ;;  %34408 = vmatmul.mubr.f32.vlgmr.msra.gmra.mxu0 %v36376_v23  ;;  %v37270_v19 = vpop.f32.mrf.mxu0 }
 0x1a1   : > { %34401 = vmatpush3.msra.mxu1 %v37025_v3  ;;  %34416 = vmatpush3.msra.mxu0 %v36990_v41  ;;  %v33924_v58 = vpop.f32.mrf.mxu1  ;;  %v39647_v41 = vld [vmem:[#allocation20_spill] sm:$0xff] }
 0x1a2   : > { %34402 = vmatprep.mubr.msk.f32.mxu1 %vm36105_vm0, %v39639_v45  ;;  %34417 = vmatprep.mubr.msk.f32.mxu0 %vm36105_vm0, %v39639_v45  ;;  %v33939_v26 = vpop.f32.mrf.mxu0 }
 0x1a3   : > { %34425 = vmatprep.subr.mxu0 %v39639_v45  ;;  %34410 = vmatprep.subr.mxu1 %v39639_v45  ;;  %v37280_v17 = vpop.f32.mrf.mxu1 }
 0x1a4   : > { %34403 = vmatmul.mubr.f32.vlgmr.msra.gmra.mxu1 %v36358_v18  ;;  %34418 = vmatmul.mubr.f32.vlgmr.msra.gmra.mxu0 %v36358_v18  ;;  %v37284_v9 = vpop.f32.mrf.mxu0 }
 0x1a5   : > { %34426 = vmatpush3.msra.mxu0 %v37012_v16  ;;  %34411 = vmatpush3.msra.mxu1 %v36946_v25  ;;  %v33934_v58 = vpop.f32.mrf.mxu1 }
 0x1a6   : > { %34412 = vmatprep.mubr.msk.f32.mxu1 %vm36105_vm0, %v39639_v45  ;;  %34427 = vmatprep.mubr.msk.f32.mxu0 %vm36105_vm0, %v39639_v45  ;;  %v33949_v26 = vpop.f32.mrf.mxu0 }
 0x1a7   : > { %34435 = vmatprep.subr.mxu0 %v39639_v45  ;;  %34420 = vmatprep.subr.mxu1 %v39639_v45  ;;  %v37294_v23 = vpop.f32.mrf.mxu1 }
 0x1a8   : > { %34413 = vmatmul.mubr.f32.vlgmr.msra.gmra.mxu1 %v36395_v27  ;;  %34428 = vmatmul.mubr.f32.vlgmr.msra.gmra.mxu0 %v39645_v35  ;;  %v37298_v14 = vpop.f32.mrf.mxu0  ;;  %v39646_v35 = vld [vmem:[#allocation19_spill] sm:$0xff] }
 0x1a9   : > { %34436 = vmatpush3.msra.mxu0 %v37028_v11  ;;  %34421 = vmatpush3.msra.mxu1 %v36946_v25  ;;  %v33944_v58 = vpop.f32.mrf.mxu1 }
 0x1aa   : > { %34422 = vmatprep.mubr.msk.f32.mxu1 %vm36105_vm0, %v39639_v45  ;;  %34430 = vmatprep.subr.mxu1 %v39639_v45  ;;  %v33959_v26 = vpop.f32.mrf.mxu0 }
 0x1ab   : > { %34437 = vmatprep.mubr.msk.f32.mxu0 %vm36105_vm0, %v39639_v45  ;;  %34445 = vmatprep.subr.mxu0 %v39639_v45  ;;  %v3130_v27 = vpop.f32.mrf.mxu1  ;;  %v11090_v26 = vsel %vm243_vm5, %v36898_v42, 0 }
 0x1ac   : > { %34423 = vmatmul.mubr.f32.vlgmr.msra.gmra.mxu1 %v36358_v18  ;;  %34438 = vmatmul.mubr.f32.vlgmr.msra.gmra.mxu0 %v39646_v35  ;;  %v37310_v5 = vpop.f32.mrf.mxu0  ;;  %v37328_v22 = vand.u32 4294901760, %v11090_v26 }
 0x1ad   : > { %34431 = vmatpush3.msra.mxu1 %v37071_v62  ;;  %34446 = vmatpush3.msra.mxu0 %v37038_v36  ;;  %v33954_v58 = vpop.f32.mrf.mxu1 }
 0x1ae   : > { %34432 = vmatprep.mubr.msk.f32.mxu1 %vm36105_vm0, %v39639_v45  ;;  %34440 = vmatprep.subr.mxu1 %v39639_v45  ;;  %v33969_v10 = vpop.f32.mrf.mxu0  ;;  %v1761_v58 = vadd.f32 %v37182_v37, %v37158_v2  ;;  %v2215_v2 = vadd.f32 %v37224_v13, %v37200_v51  ;;  %v2669_v51 = vadd.f32 %v37266_v15, %v37242_v21 }
 0x1af   : > { %34447 = vmatprep.mubr.msk.f32.mxu0 %vm36105_vm0, %v39639_v45  ;;  %34455 = vmatprep.subr.mxu0 %v39639_v45  ;;  %v37322_v35 = vpop.f32.mrf.mxu1  ;;  %v11540_v18 = vpop.permute.xlu0 %11539 }
 0x1b0   : > { %34433 = vmatmul.mubr.f32.vlgmr.msra.gmra.mxu1 %v36411_v33  ;;  %34448 = vmatmul.mubr.f32.vlgmr.msra.gmra.mxu0 %v36411_v33  ;;  %v3508_v42 = vpop.f32.mrf.mxu0  ;;  %v1835_v49 = vadd.f32 %v37170_v38, %v1761_v58  ;;  %v2289_v58 = vadd.f32 %v37214_v55, %v2215_v2 }
 0x1b1   : > { %34441 = vmatpush3.msra.mxu1 %v37012_v16  ;;  %34456 = vmatpush3.msra.mxu0 %v37054_v57  ;;  %v33964_v10 = vpop.f32.mrf.mxu1 }
 0x1b2   : > { %34442 = vmatprep.mubr.msk.f32.mxu1 %vm36105_vm0, %v39639_v45  ;;  %34450 = vmatprep.subr.mxu1 %v39639_v45  ;;  %v33979_v61 = vpop.f32.mrf.mxu0  ;;  %v1909_v15 = vadd.f32 %v37196_v20, %v1835_v49  ;;  %v11541_v49 = vsel %vm243_vm5, %v11540_v18, 0 }
 0x1b3   : > { %34457 = vmatprep.mubr.msk.f32.mxu0 %vm36105_vm0, %v39639_v45  ;;  %34465 = vmatprep.subr.mxu0 %v39639_v45  ;;  %v37340_v37 = vpop.f32.mrf.mxu1  ;;  %v37348_v61 = vsub.f32 %v11090_v26, %v37328_v22 }
 0x1b4   : > { %34443 = vmatmul.mubr.f32.vlgmr.msra.gmra.mxu1 %v39647_v41  ;;  %34458 = vmatmul.mubr.f32.vlgmr.msra.gmra.mxu0 %v36544_v30  ;;  %v3658_v10 = vpop.f32.mrf.mxu0  ;;  %v37345_v3 = vpop.permute.xlu0 %15593 }
 0x1b5   : > { %39648 = vst [vmem:[#allocation35_spill] sm:$0xff] %v37345_v3  ;;  %34451 = vmatpush3.msra.mxu1 %v37012_v16  ;;  %34466 = vmatpush3.msra.mxu0 %v37068_v50  ;;  %v33974_v13 = vpop.f32.mrf.mxu1  ;;  %v3131_v3 = vadd.f32 %v3130_v27, %v37284_v9  ;;  %v37371_v9 = vand.u32 4294901760, %v37348_v61 }
 0x1b6   : > { %34452 = vmatprep.mubr.msk.f32.mxu1 %vm36105_vm0, %v39639_v45  ;;  %34460 = vmatprep.subr.mxu1 %v39639_v45  ;;  %v33989_v38 = vpop.f32.mrf.mxu0  ;;  %v2743_v13 = vadd.f32 %v37256_v48, %v2669_v51  ;;  %v2363_v48 = vadd.f32 %v37238_v39, %v2289_v58 }
 0x1b7   : > { %34467 = vmatprep.mubr.msk.f32.mxu0 %vm36105_vm0, %v39639_v45  ;;  %34475 = vmatprep.subr.mxu0 %v39639_v45  ;;  %v3584_v21 = vpop.f32.mrf.mxu1  ;;  %v3205_v51 = vadd.f32 %v37298_v14, %v3131_v3  ;;  %v1983_v38 = vadd.f32 %v37186_v34, %v1909_v15  ;;  %v11202_v39 = vsub.f32 %v37348_v61, %v37371_v9 }
 0x1b8   : > { %34453 = vmatmul.mubr.f32.vlgmr.msra.gmra.mxu1 %v36411_v33  ;;  %34468 = vmatmul.mubr.f32.vlgmr.msra.gmra.mxu0 %v36489_v59  ;;  %v37365_v26 = vpop.f32.mrf.mxu0  ;;  %v3585_v27 = vadd.f32 %v3584_v21, %v3508_v42  ;;  %v37377_v2 = vpop.permute.xlu0 %19647  ;;  %v2817_v21 = vadd.f32 %v37280_v17, %v2743_v13  ;;  %v2437_v58 = vadd.f32 %v37228_v29, %v2363_v48 }
 0x1b9   : > { %34461 = vmatpush3.msra.mxu1 %v37108_v6  ;;  %34476 = vmatpush3.msra.mxu0 %v37082_v60  ;;  %v33984_v55 = vpop.f32.mrf.mxu1  ;;  %39649 = vst [vmem:[#allocation36_spill] sm:$0xff] %v37377_v2  ;;  %v3279_v17 = vadd.f32 %v37322_v35, %v3205_v51  ;;  %v2055_v15 = vadd.f32 %v37210_v32, %v1983_v38  ;;  %v37414_v48 = vand.u32 4294901760, %v11202_v39 }
 0x1ba   : > { %34462 = vmatprep.mubr.msk.f32.mxu1 %vm36105_vm0, %v39639_v45  ;;  %34470 = vmatprep.subr.mxu1 %v39639_v45  ;;  %v33999_v20 = vpop.f32.mrf.mxu0  ;;  %v37388_v55 = vand.u32 4294901760, %v11541_v49  ;;  %v3659_v14 = vadd.f32 %v3658_v10, %v3585_v27 }
 0x1bb   : > { %34477 = vmatprep.mubr.msk.f32.mxu0 %vm36105_vm0, %v39639_v45  ;;  %34485 = vmatprep.subr.mxu0 %v39639_v45  ;;  %v3732_v42 = vpop.f32.mrf.mxu1  ;;  %v2891_v20 = vadd.f32 %v37270_v19, %v2817_v21  ;;  %v2509_v19 = vadd.f32 %v37252_v0, %v2437_v58  ;;  %v39651_v0 = vld [vmem:[#allocation28_spill] sm:$0xff] }
 0x1bc   : > { %34463 = vmatmul.mubr.f32.vlgmr.msra.gmra.mxu1 %v36469_v52  ;;  %34478 = vmatmul.mubr.f32.vlgmr.msra.gmra.mxu0 %v36469_v52  ;;  %v3962_v18 = vpop.f32.mrf.mxu0  ;;  %v37409_v29 = vsub.f32 %v11541_v49, %v37388_v55  ;;  %v3733_v35 = vadd.f32 %v3732_v42, %v3659_v14  ;;  %v3353_v49 = vadd.f32 %v37310_v5, %v3279_v17 }
 0x1bd   : > { %34471 = vmatpush3.msra.mxu1 %v37054_v57  ;;  %34472 = vmatprep.mubr.msk.f32.mxu1 %vm36105_vm0, %v39639_v45  ;;  %v33994_v3 = vpop.f32.mrf.mxu1  ;;  %v37405_v13 = vpop.permute.xlu0 %23701  ;;  %v2058_v14 = vadd.f32 %v2055_v15, %v37178_v40  ;;  %v39653_v15 = vld [vmem:[#allocation23_spill] sm:$0xff] }
 0x1be   : > { %34480 = vmatprep.subr.mxu1 %v39639_v45  ;;  %34486 = vmatpush3.msra.mxu0 %v37328_v22  ;;  %v34009_v34 = vpop.f32.mrf.mxu0  ;;  %39650 = vst [vmem:[#allocation37_spill] sm:$0xff] %v37405_v13  ;;  %v2963_v3 = vadd.f32 %v37294_v23, %v2891_v20  ;;  %v37428_v39 = vand.u32 4294901760, %v37409_v29  ;;  %v3807_v5 = vadd.f32 %v37365_v26, %v3733_v35 }
 0x1bf   : > { %34487 = vmatprep.mubr.msk.f32.mxu0 %vm36105_vm0, %v39639_v45  ;;  %34495 = vmatprep.subr.mxu0 %v39639_v45  ;;  %v3878_v10 = vpop.f32.mrf.mxu1  ;;  %v2512_v58 = vadd.f32 %v2509_v19, %v2058_v14  ;;  %v3425_v17 = vadd.f32 %v37340_v37, %v3353_v49  ;;  %v39654_v14 = vld [vmem:[#allocation25_spill] sm:$0xff] }
 0x1c0   : > { %34473 = vmatmul.mubr.f32.vlgmr.msra.gmra.mxu1 %v36510_v1  ;;  %34488 = vmatmul.mubr.f32.vlgmr.msra.gmra.mxu0 %v36601_v31  ;;  %v4112_v27 = vpop.f32.mrf.mxu0  ;;  %v11653_v37 = vsub.f32 %v37409_v29, %v37428_v39 }
 0x1c1   : > { %34481 = vmatpush3.msra.mxu1 %v37054_v57  ;;  %34482 = vmatprep.mubr.msk.f32.mxu1 %vm36105_vm0, %v39639_v45  ;;  %v34004_v32 = vpop.f32.mrf.mxu1  ;;  %v37437_v40 = vpop.permute.xlu0 %27755 }
 0x1c2   : > { %34496 = vmatpush3.msra.mxu0 %v37348_v61  ;;  %34497 = vmatprep.mubr.msk.f32.mxu0 %vm36105_vm0, %v39639_v45  ;;  %v34019_v51 = vpop.f32.mrf.mxu0  ;;  %39652 = vst [vmem:[#allocation28_spill] sm:$0xff] %v37437_v40  ;;  %v2966_v32 = vadd.f32 %v2963_v3, %v2512_v58 }
 0x1c3   : > { %34490 = vmatprep.subr.mxu1 %v39639_v45  ;;  %34505 = vmatprep.subr.mxu0 %v39639_v45  ;;  %v4038_v42 = vpop.f32.mrf.mxu1 }
 0x1c4   : > { %34483 = vmatmul.mubr.f32.vlgmr.msra.gmra.mxu1 %v36469_v52  ;;  %34498 = vmatmul.mubr.f32.vlgmr.msra.gmra.mxu0 %v36549_v12  ;;  %v4039_v38 = vadd.f32 %v4038_v42, %v3962_v18  ;;  %v4260_v21 = vpop.f32.mrf.mxu0  ;;  %v3428_v42 = vadd.f32 %v3425_v17, %v2966_v32  ;;  %v37465_v17 = vand.u32 4294901760, %v11653_v37 }
 0x1c5   : > { %34491 = vmatpush3.msra.mxu1 %v37414_v48  ;;  %16044 = vrot.lane.b32.xlu1 %v39651_v0, %s36107_s20  ;;  %v34014_v34 = vpop.f32.mrf.mxu1 }
 0x1c6   : > { %34492 = vmatprep.mubr.msk.f32.mxu1 %vm36105_vm0, %v39639_v45  ;;  %34506 = vmatpush3.msra.mxu0 %v37371_v9  ;;  %v4113_v18 = vadd.f32 %v4112_v27, %v4039_v38  ;;  %v34029_v23 = vpop.f32.mrf.mxu0  ;;  %v3879_v27 = vadd.f32 %v3878_v10, %v3807_v5  ;;  %v37458_v5 = vpop.permute.xlu0 %31809 }
 0x1c7   : > { %34507 = vmatprep.mubr.msk.f32.mxu0 %vm36105_vm0, %v39639_v45  ;;  %34500 = vmatprep.subr.mxu1 %v39639_v45  ;;  %v4186_v26 = vpop.f32.mrf.mxu1  ;;  %39655 = vst [vmem:[#allocation23_spill] sm:$0xff] %v37458_v5  ;;  %v39656_v23 = vld [vmem:[#allocation27_spill] sm:$0xff]  ;;  %v39669_v5 = vld [vmem:[#allocation13_spill] sm:$0xff] }
 0x1c8   : > { %34493 = vmatmul.mubr.f32.vlgmr.msra.gmra.mxu1 %v39653_v15  ;;  %34508 = vmatmul.mubr.f32.vlgmr.msra.gmra.mxu0 %v39653_v15  ;;  %v4187_v20 = vadd.f32 %v4186_v26, %v4113_v18  ;;  %v4418_v35 = vpop.f32.mrf.mxu0 }
 0x1c9   : > { %34515 = vmatprep.subr.mxu0 %v39639_v45  ;;  %34501 = vmatpush3.msra.mxu1 %v37328_v22  ;;  %v34024_v51 = vpop.f32.mrf.mxu1 }
 0x1ca   : > { %34516 = vmatpush3.msra.mxu0 %v37388_v55  ;;  %34502 = vmatprep.mubr.msk.f32.mxu1 %vm36105_vm0, %v39639_v45  ;;  %v4261_v19 = vadd.f32 %v4260_v21, %v4187_v20  ;;  %v34039_v49 = vpop.f32.mrf.mxu0  ;;  %v3882_v21 = vadd.f32 %v3879_v27, %v3428_v42  ;;  %v39658_v42 = vld [vmem:[#allocation26_spill] sm:$0xff] }
 0x1cb   : > { %34517 = vmatprep.mubr.msk.f32.mxu0 %vm36105_vm0, %v39639_v45  ;;  %34525 = vmatprep.subr.mxu0 %v39639_v45  ;;  %v11991_v10 = vpop.permute.xlu1 %11990  ;;  %v4332_v38 = vpop.f32.mrf.mxu1 }
 0x1cc   : > { %34503 = vmatmul.mubr.f32.vlgmr.msra.gmra.mxu1 %v39654_v14  ;;  %34510 = vmatprep.subr.mxu1 %v39639_v45  ;;  %v11992_v3 = vsel %vm243_vm5, %v11991_v10, 0  ;;  %v4333_v34 = vadd.f32 %v4332_v38, %v4261_v19  ;;  %v4568_v18 = vpop.f32.mrf.mxu0 }
 0x1cd   : > { %34518 = vmatmul.mubr.f32.vlgmr.msra.gmra.mxu0 %v39656_v23  ;;  %v37462_v58 = vand.u32 4294901760, %v11992_v3  ;;  %34511 = vmatpush3.msra.mxu1 %v37328_v22  ;;  %v34034_v26 = vpop.f32.mrf.mxu1 }
 0x1ce   : > { %34526 = vmatpush3.msra.mxu0 %v37409_v29  ;;  %34512 = vmatprep.mubr.msk.f32.mxu1 %vm36105_vm0, %v39639_v45  ;;  %v34049_v20 = vpop.f32.mrf.mxu0  ;;  %v4336_v27 = vadd.f32 %v4333_v34, %v3882_v21 }
 0x1cf   : > { %v37471_v32 = vsub.f32 %v11992_v3, %v37462_v58  ;;  %34520 = vmatprep.subr.mxu1 %v39639_v45  ;;  %34527 = vmatprep.mubr.msk.f32.mxu0 %vm36105_vm0, %v39639_v45  ;;  %v4494_v51 = vpop.f32.mrf.mxu1 }
 0x1d0   : > { %34535 = vmatprep.subr.mxu0 %v39639_v45  ;;  %34513 = vmatmul.mubr.f32.vlgmr.msra.gmra.mxu1 %v39653_v15  ;;  %v4495_v37 = vadd.f32 %v4494_v51, %v4418_v35  ;;  %v4716_v19 = vpop.f32.mrf.mxu0 }
 0x1d1   : > { %39657 = vst [vmem:[#allocation25_spill] sm:$0xff] %v37471_v32  ;;  %v37481_v49 = vand.u32 4294901760, %v37471_v32  ;;  %34521 = vmatpush3.msra.mxu1 %v37465_v17  ;;  %34528 = vmatmul.mubr.f32.vlgmr.msra.gmra.mxu0 %v39658_v42  ;;  %v34044_v10 = vpop.f32.mrf.mxu1 }
 0x1d2   : > { %34536 = vmatpush3.msra.mxu0 %v37428_v39  ;;  %34522 = vmatprep.mubr.msk.f32.mxu1 %vm36105_vm0, %v39639_v45  ;;  %v37488_v38 = vpop.permute.xlu0 %204  ;;  %v4569_v3 = vadd.f32 %v4568_v18, %v4495_v37  ;;  %v34059_v34 = vpop.f32.mrf.mxu0 }
 0x1d3   : > { %34530 = vmatprep.subr.mxu1 %v39639_v45  ;;  %34537 = vmatprep.mubr.msk.f32.mxu0 %vm36105_vm0, %v39639_v45  ;;  %v4642_v35 = vpop.f32.mrf.mxu1  ;;  %v4337_v21 = vadd.f32 %v4336_v27, %v37488_v38  ;;  %v12104_v51 = vsub.f32 %v37471_v32, %v37481_v49 }
 0x1d4   : > { %34523 = vmatmul.mubr.f32.vlgmr.msra.gmra.mxu1 %v36588_v28  ;;  %34545 = vmatprep.subr.mxu0 %v39639_v45  ;;  %v4643_v26 = vadd.f32 %v4642_v35, %v4569_v3  ;;  %v4864_v20 = vpop.f32.mrf.mxu0 }
 0x1d5   : > { %34531 = vmatpush3.msra.mxu1 %v37388_v55  ;;  %34538 = vmatmul.mubr.f32.vlgmr.msra.gmra.mxu0 %v36588_v28  ;;  %v34054_v18 = vpop.f32.mrf.mxu1  ;;  %4339 = vst.msk [vmem:[%s37500_s8] sm:$0xff] %vm4338_vm6, %v4337_v21  ;;  %v37513_v35 = vand.u32 4294901760, %v12104_v51 }
 0x1d6   : > { %34546 = vmatpush3.msra.mxu0 %v37462_v58  ;;  %34532 = vmatprep.mubr.msk.f32.mxu1 %vm36105_vm0, %v39639_v45  ;;  %v4717_v27 = vadd.f32 %v4716_v19, %v4643_v26  ;;  %v34069_v37 = vpop.f32.mrf.mxu0 }
 0x1d7   : > { %34540 = vmatprep.subr.mxu1 %v39639_v45  ;;  %34547 = vmatprep.mubr.msk.f32.mxu0 %vm36105_vm0, %v39639_v45  ;;  %v4788_v10 = vpop.f32.mrf.mxu1 }
 0x1d8   : > { %34555 = vmatprep.subr.mxu0 %v39639_v45  ;;  %34533 = vmatmul.mubr.f32.vlgmr.msra.gmra.mxu1 %v36629_v54  ;;  %v4789_v3 = vadd.f32 %v4788_v10, %v4717_v27  ;;  %v5014_v34 = vpop.f32.mrf.mxu0 }
 0x1d9   : > { %34541 = vmatpush3.msra.mxu1 %v37388_v55  ;;  %34548 = vmatmul.mubr.f32.vlgmr.msra.gmra.mxu0 %v36712_v4  ;;  %v34064_v19 = vpop.f32.mrf.mxu1 }
 0x1da   : > { %34556 = vmatpush3.msra.mxu0 %v37471_v32  ;;  %34542 = vmatprep.mubr.msk.f32.mxu1 %vm36105_vm0, %v39639_v45  ;;  %v4865_v21 = vadd.f32 %v4864_v20, %v4789_v3  ;;  %v34079_v26 = vpop.f32.mrf.mxu0 }
 0x1db   : > { %34550 = vmatprep.subr.mxu1 %v39639_v45  ;;  %34557 = vmatprep.mubr.msk.f32.mxu0 %vm36105_vm0, %v39639_v45  ;;  %v4940_v18 = vpop.f32.mrf.mxu1 }
 0x1dc   : > { %34565 = vmatprep.subr.mxu0 %v39639_v45  ;;  %34543 = vmatmul.mubr.f32.vlgmr.msra.gmra.mxu1 %v36588_v28  ;;  %v4941_v51 = vadd.f32 %v4940_v18, %v4865_v21  ;;  %v5162_v27 = vpop.f32.mrf.mxu0 }
 0x1dd   : > { %34551 = vmatpush3.msra.mxu1 %v37513_v35  ;;  %34558 = vmatmul.mubr.f32.vlgmr.msra.gmra.mxu0 %v36667_v24  ;;  %v34074_v37 = vpop.f32.mrf.mxu1 }
 0x1de   : > { %34566 = vmatpush3.msra.mxu0 %v37481_v49  ;;  %34552 = vmatprep.mubr.msk.f32.mxu1 %vm36105_vm0, %v39639_v45  ;;  %v5015_v20 = vadd.f32 %v5014_v34, %v4941_v51  ;;  %v34089_v10 = vpop.f32.mrf.mxu0 }
 0x1df   : > { %34560 = vmatprep.subr.mxu1 %v39639_v45  ;;  %34567 = vmatprep.mubr.msk.f32.mxu0 %vm36105_vm0, %v39639_v45  ;;  %v5088_v3 = vpop.f32.mrf.mxu1 }
 0x1e0   : > { %34575 = vmatprep.subr.mxu0 %v39639_v45  ;;  %34553 = vmatmul.mubr.f32.vlgmr.msra.gmra.mxu1 %v36647_v8  ;;  %v5089_v19 = vadd.f32 %v5088_v3, %v5015_v20  ;;  %v5310_v21 = vpop.f32.mrf.mxu0 }
 0x1e1   : > { %34561 = vmatpush3.msra.mxu1 %v37462_v58  ;;  %34568 = vmatmul.mubr.f32.vlgmr.msra.gmra.mxu0 %v36647_v8  ;;  %v34084_v26 = vpop.f32.mrf.mxu1 }
 0x1e2   : > { %34576 = vmatpush3.msra.mxu0 %v37012_v16  ;;  %34562 = vmatprep.mubr.msk.f32.mxu1 %vm36105_vm0, %v39639_v45  ;;  %v5163_v34 = vadd.f32 %v5162_v27, %v5089_v19  ;;  %v34099_v18 = vpop.f32.mrf.mxu0 }
 0x1e3   : > { %34570 = vmatprep.subr.mxu1 %v39639_v45  ;;  %34577 = vmatprep.mubr.msk.f32.mxu0 %vm36105_vm0, %v39639_v45  ;;  %v5234_v51 = vpop.f32.mrf.mxu1 }
 0x1e4   : > { %34585 = vmatprep.subr.mxu0 %v39639_v45  ;;  %34563 = vmatmul.mubr.f32.vlgmr.msra.gmra.mxu1 %v36685_v47  ;;  %v5235_v37 = vadd.f32 %v5234_v51, %v5163_v34  ;;  %v5460_v20 = vpop.f32.mrf.mxu0 }
 0x1e5   : > { %34571 = vmatpush3.msra.mxu1 %v37462_v58  ;;  %34578 = vmatmul.mubr.f32.vlgmr.msra.gmra.mxu0 %v36292_v53  ;;  %v34094_v10 = vpop.f32.mrf.mxu1 }
 0x1e6   : > { %34586 = vmatpush3.msra.mxu0 %v37028_v11  ;;  %34572 = vmatprep.mubr.msk.f32.mxu1 %vm36105_vm0, %v39639_v45  ;;  %v34109_v27 = vpop.f32.mrf.mxu0 }
 0x1e7   : > { %34580 = vmatprep.subr.mxu1 %v39639_v45  ;;  %34587 = vmatprep.mubr.msk.f32.mxu0 %vm36105_vm0, %v39639_v45  ;;  %v5386_v3 = vpop.f32.mrf.mxu1 }
 0x1e8   : > { %34595 = vmatprep.subr.mxu0 %v39639_v45  ;;  %34573 = vmatmul.mubr.f32.vlgmr.msra.gmra.mxu1 %v36647_v8  ;;  %v5387_v19 = vadd.f32 %v5386_v3, %v5310_v21  ;;  %v5608_v26 = vpop.f32.mrf.mxu0 }
 0x1e9   : > { %34581 = vmatpush3.msra.mxu1 %v37071_v62  ;;  %34588 = vmatmul.mubr.f32.vlgmr.msra.gmra.mxu0 %v36277_v44  ;;  %v34104_v11 = vpop.f32.mrf.mxu1 }
 0x1ea   : > { %34596 = vmatpush3.msra.mxu0 %v37038_v36  ;;  %34582 = vmatprep.mubr.msk.f32.mxu1 %vm36105_vm0, %v39639_v45  ;;  %v5461_v34 = vadd.f32 %v5460_v20, %v5387_v19  ;;  %v34119_v18 = vpop.f32.mrf.mxu0 }
 0x1eb   : > { %34590 = vmatprep.subr.mxu1 %v39639_v45  ;;  %34597 = vmatprep.mubr.msk.f32.mxu0 %vm36105_vm0, %v39639_v45  ;;  %v5534_v51 = vpop.f32.mrf.mxu1 }
 0x1ec   : > { %34583 = vmatmul.mubr.f32.vlgmr.msra.gmra.mxu1 %v36274_v43  ;;  %34605 = vmatprep.subr.mxu0 %v39639_v45  ;;  %v5535_v62 = vadd.f32 %v5534_v51, %v5461_v34  ;;  %v5757_v21 = vpop.f32.mrf.mxu0 }
 0x1ed   : > { %34591 = vmatpush3.msra.mxu1 %v37012_v16  ;;  %34598 = vmatmul.mubr.f32.vlgmr.msra.gmra.mxu0 %v36274_v43  ;;  %v34114_v36 = vpop.f32.mrf.mxu1 }
 0x1ee   : > { %34592 = vmatprep.mubr.msk.f32.mxu1 %vm36105_vm0, %v39639_v45  ;;  %34600 = vmatprep.subr.mxu1 %v39639_v45  ;;  %v5609_v20 = vadd.f32 %v5608_v26, %v5535_v62  ;;  %v34129_v10 = vpop.f32.mrf.mxu0  ;;  %v39659_v62 = vld [vmem:[#allocation34_spill] sm:$0xff] }
 0x1ef   : > { %34606 = vmatpush3.msra.mxu0 %v36946_v25  ;;  %34607 = vmatprep.mubr.msk.f32.mxu0 %vm36105_vm0, %v39639_v45  ;;  %v5680_v27 = vpop.f32.mrf.mxu1 }
 0x1f0   : > { %34593 = vmatmul.mubr.f32.vlgmr.msra.gmra.mxu1 %v36283_v46  ;;  %34615 = vmatprep.subr.mxu0 %v39639_v45  ;;  %v5681_v3 = vadd.f32 %v5680_v27, %v5609_v20  ;;  %v5907_v19 = vpop.f32.mrf.mxu0 }
 0x1f1   : > { %34601 = vmatpush3.msra.mxu1 %v37012_v16  ;;  %34608 = vmatmul.mubr.f32.vlgmr.msra.gmra.mxu0 %v36324_v7  ;;  %v34124_v11 = vpop.f32.mrf.mxu1 }
 0x1f2   : > { %34602 = vmatprep.mubr.msk.f32.mxu1 %vm36105_vm0, %v39639_v45  ;;  %34616 = vmatpush3.msra.mxu0 %v36964_v63  ;;  %v5684_v26 = vadd.f32 %v5681_v3, %v5235_v37  ;;  %v34139_v34 = vpop.f32.mrf.mxu0  ;;  %v39660_v63 = vld [vmem:[#allocation32_spill] sm:$0xff] }
 0x1f3   : > { %34617 = vmatprep.mubr.msk.f32.mxu0 %vm36105_vm0, %v39639_v45  ;;  %34610 = vmatprep.subr.mxu1 %v39639_v45  ;;  %v5833_v18 = vpop.f32.mrf.mxu1 }
 0x1f4   : > { %34603 = vmatmul.mubr.f32.vlgmr.msra.gmra.mxu1 %v36274_v43  ;;  %34625 = vmatprep.subr.mxu0 %v39639_v45  ;;  %v5834_v16 = vadd.f32 %v5833_v18, %v5757_v21  ;;  %v6055_v51 = vpop.f32.mrf.mxu0  ;;  %v39661_v21 = vld [vmem:[#allocation6_spill] sm:$0xff] }
 0x1f5   : > { %34618 = vmatmul.mubr.f32.vlgmr.msra.gmra.mxu0 %v36297_v56  ;;  %34611 = vmatpush3.msra.mxu1 %v39659_v62  ;;  %v34134_v36 = vpop.f32.mrf.mxu1 }
 0x1f6   : > { %34626 = vmatpush3.msra.mxu0 %v39660_v63  ;;  %34612 = vmatprep.mubr.msk.f32.mxu1 %vm36105_vm0, %v39639_v45  ;;  %v5908_v37 = vadd.f32 %v5907_v19, %v5834_v16  ;;  %v34149_v20 = vpop.f32.mrf.mxu0  ;;  %v39662_v16 = vld [vmem:[#allocation8_spill] sm:$0xff]  ;;  %v39663_v63 = vld [vmem:[#allocation14_spill] sm:$0xff] }
 0x1f7   : > { %34627 = vmatprep.mubr.msk.f32.mxu0 %vm36105_vm0, %v39639_v45  ;;  %34635 = vmatprep.subr.mxu0 %v39639_v45  ;;  %v5981_v10 = vpop.f32.mrf.mxu1 }
 0x1f8   : > { %34613 = vmatmul.mubr.f32.vlgmr.msra.gmra.mxu1 %v39661_v21  ;;  %34620 = vmatprep.subr.mxu1 %v39639_v45  ;;  %v5982_v27 = vadd.f32 %v5981_v10, %v5908_v37  ;;  %v37593_v3 = vpop.f32.mrf.mxu0 }
 0x1f9   : > { %34628 = vmatmul.mubr.f32.vlgmr.msra.gmra.mxu0 %v39661_v21  ;;  %34621 = vmatpush3.msra.mxu1 %v36946_v25  ;;  %v34144_v11 = vpop.f32.mrf.mxu1 }
 0x1fa   : > { %34636 = vmatpush3.msra.mxu0 %v37054_v57  ;;  %34622 = vmatprep.mubr.msk.f32.mxu1 %vm36105_vm0, %v39639_v45  ;;  %v6056_v19 = vadd.f32 %v6055_v51, %v5982_v27  ;;  %v34159_v34 = vpop.f32.mrf.mxu0  ;;  %v39665_v11 = vld [vmem:[#allocation9_spill] sm:$0xff] }
 0x1fb   : > { %34637 = vmatprep.mubr.msk.f32.mxu0 %vm36105_vm0, %v39639_v45  ;;  %34645 = vmatprep.subr.mxu0 %v39639_v45  ;;  %v6127_v18 = vpop.f32.mrf.mxu1 }
 0x1fc   : > { %34623 = vmatmul.mubr.f32.vlgmr.msra.gmra.mxu1 %v39662_v16  ;;  %34630 = vmatprep.subr.mxu1 %v39639_v45  ;;  %v6128_v62 = vadd.f32 %v6127_v18, %v6056_v19  ;;  %v37605_v36 = vpop.f32.mrf.mxu0  ;;  %v39666_v18 = vld [vmem:[#allocation12_spill] sm:$0xff] }
 0x1fd   : > { %34638 = vmatmul.mubr.f32.vlgmr.msra.gmra.mxu0 %v39663_v63  ;;  %34631 = vmatpush3.msra.mxu1 %v36946_v25  ;;  %v34154_v37 = vpop.f32.mrf.mxu1 }
 0x1fe   : > { %34646 = vmatpush3.msra.mxu0 %v37068_v50  ;;  %34632 = vmatprep.mubr.msk.f32.mxu1 %vm36105_vm0, %v39639_v45  ;;  %v37612_v51 = vadd.f32 %v6128_v62, %v5684_v26  ;;  %v34169_v20 = vpop.f32.mrf.mxu0  ;;  %v39664_v50 = vld [vmem:[#allocation11_spill] sm:$0xff]  ;;  %v39667_v62 = vld [vmem:[#allocation18_spill] sm:$0xff] }
 0x1ff   : > { %34640 = vmatprep.subr.mxu1 %v39639_v45  ;;  %34647 = vmatprep.mubr.msk.f32.mxu0 %vm36105_vm0, %v39639_v45 }
 0x200   : > { %34655 = vmatprep.subr.mxu0 %v39639_v45  ;;  %34633 = vmatmul.mubr.f32.vlgmr.msra.gmra.mxu1 %v39661_v21  ;;  %v37619_v10 = vpop.f32.mrf.mxu1  ;;  %v37621_v25 = vpop.f32.mrf.mxu0 }
 0x201   : > { %34641 = vmatpush3.msra.mxu1 %v37108_v6  ;;  %34648 = vmatmul.mubr.f32.vlgmr.msra.gmra.mxu0 %v39664_v50  ;;  %v6281_v16 = vadd.f32 %v37619_v10, %v37593_v3 }
 0x202   : > { %34656 = vmatpush3.msra.mxu0 %v37082_v60  ;;  %34642 = vmatprep.mubr.msk.f32.mxu1 %vm36105_vm0, %v39639_v45  ;;  %v34164_v26 = vpop.f32.mrf.mxu1  ;;  %v34179_v27 = vpop.f32.mrf.mxu0 }
 0x203   : > { %34650 = vmatprep.subr.mxu1 %v39639_v45  ;;  %34657 = vmatprep.mubr.msk.f32.mxu0 %vm36105_vm0, %v39639_v45 }
 0x204   : > { %34643 = vmatmul.mubr.f32.vlgmr.msra.gmra.mxu1 %v39665_v11  ;;  %34665 = vmatprep.subr.mxu0 %v39639_v45  ;;  %v37633_v19 = vpop.f32.mrf.mxu1 }
 0x205   : > { %34651 = vmatpush3.msra.mxu1 %v37054_v57  ;;  %34658 = vmatmul.mubr.f32.vlgmr.msra.gmra.mxu0 %v39665_v11  ;;  %v37637_v6 = vpop.f32.mrf.mxu0 }
 0x206   : > { %34652 = vmatprep.mubr.msk.f32.mxu1 %vm36105_vm0, %v39639_v45  ;;  %34660 = vmatprep.subr.mxu1 %v39639_v45  ;;  %v34174_v60 = vpop.f32.mrf.mxu1 }
 0x207   : > { %34666 = vmatpush3.msra.mxu0 %v37328_v22  ;;  %34667 = vmatprep.mubr.msk.f32.mxu0 %vm36105_vm0, %v39639_v45  ;;  %v34189_v34 = vpop.f32.mrf.mxu0 }
 0x208   : > { %34653 = vmatmul.mubr.f32.vlgmr.msra.gmra.mxu1 %v39666_v18  ;;  %34675 = vmatprep.subr.mxu0 %v39639_v45  ;;  %v15144_v18 = vsel %vm243_vm5, %v39651_v0, 0 }
 0x209   : > { %34661 = vmatpush3.msra.mxu1 %v37054_v57  ;;  %34668 = vmatmul.mubr.f32.vlgmr.msra.gmra.mxu0 %v39667_v62  ;;  %v37649_v37 = vpop.f32.mrf.mxu1  ;;  %v37651_v20 = vpop.f32.mrf.mxu0  ;;  %v39668_v57 = vld [vmem:[#allocation15_spill] sm:$0xff] }
 0x20a   : > { %34662 = vmatprep.mubr.msk.f32.mxu1 %vm36105_vm0, %v39639_v45  ;;  %34676 = vmatpush3.msra.mxu0 %v37348_v61 }
 0x20b   : > { %34677 = vmatprep.mubr.msk.f32.mxu0 %vm36105_vm0, %v39639_v45  ;;  %34670 = vmatprep.subr.mxu1 %v39639_v45  ;;  %v34184_v26 = vpop.f32.mrf.mxu1  ;;  %v34199_v27 = vpop.f32.mrf.mxu0 }
 0x20c   : > { %34663 = vmatmul.mubr.f32.vlgmr.msra.gmra.mxu1 %v39665_v11  ;;  %34685 = vmatprep.subr.mxu0 %v39639_v45 }
 0x20d   : > { %34678 = vmatmul.mubr.f32.vlgmr.msra.gmra.mxu0 %v39668_v57  ;;  %34671 = vmatpush3.msra.mxu1 %v37414_v48  ;;  %v37663_v60 = vpop.f32.mrf.mxu1  ;;  %v37665_v34 = vpop.f32.mrf.mxu0  ;;  %v39671_v57 = vld [vmem:[#allocation21_spill] sm:$0xff] }
 0x20e   : > { %34686 = vmatpush3.msra.mxu0 %v37371_v9  ;;  %34672 = vmatprep.mubr.msk.f32.mxu1 %vm36105_vm0, %v39639_v45 }
 0x20f   : > { %34687 = vmatprep.mubr.msk.f32.mxu0 %vm36105_vm0, %v39639_v45  ;;  %34695 = vmatprep.subr.mxu0 %v39639_v45  ;;  %v34194_v26 = vpop.f32.mrf.mxu1  ;;  %v34209_v27 = vpop.f32.mrf.mxu0 }
 0x210   : > { %34673 = vmatmul.mubr.f32.vlgmr.msra.gmra.mxu1 %v39669_v5  ;;  %34680 = vmatprep.subr.mxu1 %v39639_v45  ;;  %v39670_v27 = vld [vmem:[#allocation16_spill] sm:$0xff] }
 0x211   : > { %34688 = vmatmul.mubr.f32.vlgmr.msra.gmra.mxu0 %v39669_v5  ;;  %34681 = vmatpush3.msra.mxu1 %v37328_v22  ;;  %v37677_v40 = vpop.f32.mrf.mxu1 }
 0x212   : > { %34696 = vmatpush3.msra.mxu0 %v37388_v55  ;;  %34682 = vmatprep.mubr.msk.f32.mxu1 %vm36105_vm0, %v39639_v45  ;;  %v37682_v13 = vpop.f32.mrf.mxu0 }
 0x213   : > { %34697 = vmatprep.mubr.msk.f32.mxu0 %vm36105_vm0, %v39639_v45  ;;  %34705 = vmatprep.subr.mxu0 %v39639_v45  ;;  %v34204_v26 = vpop.f32.mrf.mxu1 }
 0x214   : > { %34683 = vmatmul.mubr.f32.vlgmr.msra.gmra.mxu1 %v39670_v27  ;;  %34690 = vmatprep.subr.mxu1 %v39639_v45  ;;  %v34219_v2 = vpop.f32.mrf.mxu0 }
 0x215   : > { %34698 = vmatmul.mubr.f32.vlgmr.msra.gmra.mxu0 %v39671_v57  ;;  %34691 = vmatpush3.msra.mxu1 %v37328_v22  ;;  %v39672_v57 = vld [vmem:[#allocation19_spill] sm:$0xff] }
 0x216   : > { %34706 = vmatpush3.msra.mxu0 %v37409_v29  ;;  %34692 = vmatprep.mubr.msk.f32.mxu1 %vm36105_vm0, %v39639_v45  ;;  %v37694_v62 = vpop.f32.mrf.mxu1 }
 0x217   : > { %34700 = vmatprep.subr.mxu1 %v39639_v45  ;;  %34707 = vmatprep.mubr.msk.f32.mxu0 %vm36105_vm0, %v39639_v45  ;;  %v37699_v26 = vpop.f32.mrf.mxu0 }
 0x218   : > { %34715 = vmatprep.subr.mxu0 %v39639_v45  ;;  %34693 = vmatmul.mubr.f32.vlgmr.msra.gmra.mxu1 %v39669_v5  ;;  %v34214_v2 = vpop.f32.mrf.mxu1 }
 0x219   : > { %34701 = vmatpush3.msra.mxu1 %v37465_v17  ;;  %34708 = vmatmul.mubr.f32.vlgmr.msra.gmra.mxu0 %v39672_v57  ;;  %v34229_v27 = vpop.f32.mrf.mxu0 }
 0x21a   : > { %34716 = vmatpush3.msra.mxu0 %v37428_v39  ;;  %34702 = vmatprep.mubr.msk.f32.mxu1 %vm36105_vm0, %v39639_v45  ;;  %v37717_v27 = vand.u32 4294901760, %v15144_v18 }
 0x21b   : > { %34710 = vmatprep.subr.mxu1 %v39639_v45  ;;  %34717 = vmatprep.mubr.msk.f32.mxu0 %vm36105_vm0, %v39639_v45  ;;  %v7186_v5 = vpop.f32.mrf.mxu1 }
 0x21c   : > { %34725 = vmatprep.subr.mxu0 %v39639_v45  ;;  %34703 = vmatmul.mubr.f32.vlgmr.msra.gmra.mxu1 %v36411_v33  ;;  %v37715_v2 = vpop.f32.mrf.mxu0 }
 0x21d   : > { %34711 = vmatpush3.msra.mxu1 %v37388_v55  ;;  %34718 = vmatmul.mubr.f32.vlgmr.msra.gmra.mxu0 %v36411_v33  ;;  %v34224_v0 = vpop.f32.mrf.mxu1 }
 0x21e   : > { %34726 = vmatpush3.msra.mxu0 %v37462_v58  ;;  %34712 = vmatprep.mubr.msk.f32.mxu1 %vm36105_vm0, %v39639_v45  ;;  %v34239_v57 = vpop.f32.mrf.mxu0  ;;  %v37732_v0 = vsub.f32 %v15144_v18, %v37717_v27 }
 0x21f   : > { %34720 = vmatprep.subr.mxu1 %v39639_v45  ;;  %34727 = vmatprep.mubr.msk.f32.mxu0 %vm36105_vm0, %v39639_v45  ;;  %v37727_v11 = vpop.f32.mrf.mxu1 }
 0x220   : > { %34735 = vmatprep.subr.mxu0 %v39639_v45  ;;  %34713 = vmatmul.mubr.f32.vlgmr.msra.gmra.mxu1 %v39647_v41  ;;  %v7561_v50 = vpop.f32.mrf.mxu0  ;;  %39673 = vst [vmem:[#allocation27_spill] sm:$0xff] %v37732_v0  ;;  %v37753_v3 = vand.u32 4294901760, %v37732_v0  ;;  %v39675_v41 = vld [vmem:[#allocation35_spill] sm:$0xff] }
 0x221   : > { %34721 = vmatpush3.msra.mxu1 %v37388_v55  ;;  %34728 = vmatmul.mubr.f32.vlgmr.msra.gmra.mxu0 %v36544_v30  ;;  %v34234_v57 = vpop.f32.mrf.mxu1  ;;  %v6728_v30 = vadd.f32 %v37663_v60, %v37637_v6  ;;  %v7187_v6 = vadd.f32 %v7186_v5, %v37682_v13 }
 0x222   : > { %34736 = vmatpush3.msra.mxu0 %v37471_v32  ;;  %34722 = vmatprep.mubr.msk.f32.mxu1 %vm36105_vm0, %v39639_v45  ;;  %v34249_v63 = vpop.f32.mrf.mxu0  ;;  %39674 = vst [vmem:[#allocation26_spill] sm:$0xff] %v37753_v3  ;;  %v6355_v32 = vadd.f32 %v37605_v36, %v6281_v16 }
 0x223   : > { %34730 = vmatprep.subr.mxu1 %v39639_v45  ;;  %34737 = vmatprep.mubr.msk.f32.mxu0 %vm36105_vm0, %v39639_v45 }
 0x224   : > { %34745 = vmatprep.subr.mxu0 %v39639_v45  ;;  %v37745_v18 = vpop.f32.mrf.mxu1  ;;  %34723 = vmatmul.mubr.f32.vlgmr.msra.gmra.mxu1 %v36411_v33  ;;  %v7711_v57 = vpop.f32.mrf.mxu0  ;;  %v15595_v33 = vsel %vm243_vm5, %v39675_v41, 0  ;;  %v15256_v41 = vsub.f32 %v37732_v0, %v37753_v3  ;;  %v6429_v36 = vadd.f32 %v37633_v19, %v6355_v32 }
 0x225   : > { %34731 = vmatpush3.msra.mxu1 %v37513_v35  ;;  %34738 = vmatmul.mubr.f32.vlgmr.msra.gmra.mxu0 %v36489_v59  ;;  %v37772_v13 = vand.u32 4294901760, %v15595_v33 }
 0x226   : > { %34746 = vmatpush3.msra.mxu0 %v37481_v49  ;;  %v34244_v63 = vpop.f32.mrf.mxu1  ;;  %34732 = vmatprep.mubr.msk.f32.mxu1 %vm36105_vm0, %v39639_v45  ;;  %v34259_v10 = vpop.f32.mrf.mxu0  ;;  %v37787_v32 = vand.u32 4294901760, %v15256_v41  ;;  %v39677_v41 = vld [vmem:[#allocation29_spill] sm:$0xff] }
 0x227   : > { %34740 = vmatprep.subr.mxu1 %v39639_v45  ;;  %34747 = vmatprep.mubr.msk.f32.mxu0 %vm36105_vm0, %v39639_v45  ;;  %v6802_v10 = vadd.f32 %v37651_v20, %v6728_v30  ;;  %v7261_v30 = vadd.f32 %v37699_v26, %v7187_v6  ;;  %v37790_v19 = vsub.f32 %v15595_v33, %v37772_v13 }
 0x228   : > { %v7637_v60 = vpop.f32.mrf.mxu1  ;;  %34733 = vmatmul.mubr.f32.vlgmr.msra.gmra.mxu1 %v36469_v52  ;;  %34755 = vmatprep.subr.mxu0 %v39639_v45  ;;  %v7859_v63 = vpop.f32.mrf.mxu0  ;;  %39676 = vst [vmem:[#allocation34_spill] sm:$0xff] %v37787_v32 }
 0x229   : > { %v7638_v59 = vadd.f32 %v7637_v60, %v7561_v50  ;;  %34741 = vmatpush3.msra.mxu1 %v37462_v58  ;;  %34748 = vmatmul.mubr.f32.vlgmr.msra.gmra.mxu0 %v36469_v52  ;;  %v6876_v60 = vadd.f32 %v37677_v40, %v6802_v10 }
 0x22a   : > { %v34254_v5 = vpop.f32.mrf.mxu1  ;;  %34742 = vmatprep.mubr.msk.f32.mxu1 %vm36105_vm0, %v39639_v45  ;;  %34750 = vmatprep.subr.mxu1 %v39639_v45  ;;  %v34269_v16 = vpop.f32.mrf.mxu0 }
 0x22b   : > { %34756 = vmatpush3.msra.mxu0 %v37717_v27  ;;  %34757 = vmatprep.mubr.msk.f32.mxu0 %vm36105_vm0, %v39639_v45  ;;  %v7712_v5 = vadd.f32 %v7711_v57, %v7638_v59  ;;  %v6503_v16 = vadd.f32 %v37621_v25, %v6429_v36  ;;  %v7335_v59 = vadd.f32 %v37727_v11, %v7261_v30  ;;  %v37806_v25 = vand.u32 4294901760, %v37790_v19 }
 0x22c   : > { %v7785_v50 = vpop.f32.mrf.mxu1  ;;  %34743 = vmatmul.mubr.f32.vlgmr.msra.gmra.mxu1 %v36510_v1  ;;  %34765 = vmatprep.subr.mxu0 %v39639_v45  ;;  %v8012_v20 = vpop.f32.mrf.mxu0  ;;  %v6950_v57 = vadd.f32 %v37665_v34, %v6876_v60 }
 0x22d   : > { %34751 = vmatpush3.msra.mxu1 %v37462_v58  ;;  %34758 = vmatmul.mubr.f32.vlgmr.msra.gmra.mxu0 %v36601_v31  ;;  %v7786_v10 = vadd.f32 %v7785_v50, %v7712_v5  ;;  %v6575_v30 = vadd.f32 %v37649_v37, %v6503_v16  ;;  %v7409_v34 = vadd.f32 %v37715_v2, %v7335_v59 }
 0x22e   : > { %v34264_v26 = vpop.f32.mrf.mxu1  ;;  %34752 = vmatprep.mubr.msk.f32.mxu1 %vm36105_vm0, %v39639_v45  ;;  %34766 = vmatpush3.msra.mxu0 %v37732_v0  ;;  %v34279_v6 = vpop.f32.mrf.mxu0  ;;  %v7022_v5 = vadd.f32 %v37694_v62, %v6950_v57  ;;  %v15707_v16 = vsub.f32 %v37790_v19, %v37806_v25 }
 0x22f   : > { %34767 = vmatprep.mubr.msk.f32.mxu0 %vm36105_vm0, %v39639_v45  ;;  %34760 = vmatprep.subr.mxu1 %v39639_v45  ;;  %v7860_v26 = vadd.f32 %v7859_v63, %v7786_v10  ;;  %v6578_v59 = vadd.f32 %v6575_v30, %v37612_v51  ;;  %v39678_v63 = vld [vmem:[#allocation30_spill] sm:$0xff] }
 0x230   : > { %v7931_v40 = vpop.f32.mrf.mxu1  ;;  %34753 = vmatmul.mubr.f32.vlgmr.msra.gmra.mxu1 %v36469_v52  ;;  %34775 = vmatprep.subr.mxu0 %v39639_v45  ;;  %v8162_v33 = vpop.f32.mrf.mxu0 }
 0x231   : > { %34768 = vmatmul.mubr.f32.vlgmr.msra.gmra.mxu0 %v36549_v12  ;;  %34761 = vmatpush3.msra.mxu1 %v37787_v32  ;;  %v7025_v51 = vadd.f32 %v7022_v5, %v6578_v59  ;;  %v7932_v30 = vadd.f32 %v7931_v40, %v7860_v26  ;;  %v39679_v5 = vld [vmem:[#allocation31_spill] sm:$0xff]  ;;  %v37845_v40 = vand.u32 4294901760, %v15707_v16 }
 0x232   : > { %v34274_v11 = vpop.f32.mrf.mxu1  ;;  %20098 = vrot.lane.b32.xlu1 %v39677_v41, %s36107_s20  ;;  %34762 = vmatprep.mubr.msk.f32.mxu1 %vm36105_vm0, %v39639_v45  ;;  %v34289_v36 = vpop.f32.mrf.mxu0 }
 0x233   : > { %34776 = vmatpush3.msra.mxu0 %v37753_v3  ;;  %34777 = vmatprep.mubr.msk.f32.mxu0 %vm36105_vm0, %v39639_v45  ;;  %v7481_v11 = vadd.f32 %v37745_v18, %v7409_v34 }
 0x234   : > { %v8088_v50 = vpop.f32.mrf.mxu1  ;;  %34763 = vmatmul.mubr.f32.vlgmr.msra.gmra.mxu1 %v39653_v15  ;;  %34770 = vmatprep.subr.mxu1 %v39639_v45  ;;  %v8310_v60 = vpop.f32.mrf.mxu0 }
 0x235   : > { %v8089_v6 = vadd.f32 %v8088_v50, %v8012_v20  ;;  %34778 = vmatmul.mubr.f32.vlgmr.msra.gmra.mxu0 %v39653_v15  ;;  %34785 = vmatprep.subr.mxu0 %v39639_v45 }
 0x236   : > { %34771 = vmatpush3.msra.mxu1 %v37717_v27  ;;  %34786 = vmatpush3.msra.mxu0 %v37772_v13  ;;  %v34284_v37 = vpop.f32.mrf.mxu1  ;;  %v34299_v2 = vpop.f32.mrf.mxu0 }
 0x237   : > { %v8163_v62 = vadd.f32 %v8162_v33, %v8089_v6  ;;  %24152 = vrot.lane.b32.xlu1 %v39678_v63, %s36107_s20  ;;  %34772 = vmatprep.mubr.msk.f32.mxu1 %vm36105_vm0, %v39639_v45  ;;  %v16045_v20 = vpop.permute.xlu1 %16044  ;;  %v7484_v6 = vadd.f32 %v7481_v11, %v7025_v51 }
 0x238   : > { %34787 = vmatprep.mubr.msk.f32.mxu0 %vm36105_vm0, %v39639_v45  ;;  %34795 = vmatprep.subr.mxu0 %v39639_v45  ;;  %v8236_v57 = vpop.f32.mrf.mxu1  ;;  %v16046_v10 = vsel %vm243_vm5, %v16045_v20, 0  ;;  %v8472_v36 = vpop.f32.mrf.mxu0 }
 0x239   : > { %v8237_v18 = vadd.f32 %v8236_v57, %v8163_v62  ;;  %34773 = vmatmul.mubr.f32.vlgmr.msra.gmra.mxu1 %v39654_v14  ;;  %34780 = vmatprep.subr.mxu1 %v39639_v45  ;;  %v37838_v33 = vand.u32 4294901760, %v16046_v10  ;;  %v7935_v62 = vadd.f32 %v7932_v30, %v7484_v6 }
 0x23a   : > { %34788 = vmatmul.mubr.f32.vlgmr.msra.gmra.mxu0 %v39656_v23  ;;  %34781 = vmatpush3.msra.mxu1 %v37717_v27  ;;  %v34294_v34 = vpop.f32.mrf.mxu1  ;;  %v34309_v50 = vpop.f32.mrf.mxu0 }
 0x23b   : > { %34796 = vmatpush3.msra.mxu0 %v37790_v19  ;;  %v8311_v37 = vadd.f32 %v8310_v60, %v8237_v18  ;;  %28206 = vrot.lane.b32.xlu1 %v39679_v5, %s36107_s20  ;;  %v37848_v26 = vsub.f32 %v16046_v10, %v37838_v33  ;;  %v39680_v10 = vld [vmem:[#allocation33_spill] sm:$0xff] }
 0x23c   : > { %34782 = vmatprep.mubr.msk.f32.mxu1 %vm36105_vm0, %v39639_v45  ;;  %34790 = vmatprep.subr.mxu1 %v39639_v45  ;;  %v8382_v2 = vpop.f32.mrf.mxu1  ;;  %v8622_v59 = vpop.f32.mrf.mxu0  ;;  %v39689_v5 = vld [vmem:[#allocation13_spill] sm:$0xff] }
 0x23d   : > { %34797 = vmatprep.mubr.msk.f32.mxu0 %vm36105_vm0, %v39639_v45  ;;  %34805 = vmatprep.subr.mxu0 %v39639_v45  ;;  %v8383_v60 = vadd.f32 %v8382_v2, %v8311_v37  ;;  %v37861_v57 = vand.u32 4294901760, %v37848_v26 }
 0x23e   : > { %34783 = vmatmul.mubr.f32.vlgmr.msra.gmra.mxu1 %v39653_v15  ;;  %34798 = vmatmul.mubr.f32.vlgmr.msra.gmra.mxu0 %v39658_v42  ;;  %v34304_v16 = vpop.f32.mrf.mxu1  ;;  %v34319_v11 = vpop.f32.mrf.mxu0 }
 0x23f   : > { %v8386_v20 = vadd.f32 %v8383_v60, %v7935_v62  ;;  %34791 = vmatpush3.msra.mxu1 %v37845_v40  ;;  %34806 = vmatpush3.msra.mxu0 %v37806_v25 }
 0x240   : > { %32260 = vrot.lane.b32.xlu1 %v39680_v10, %s36107_s20  ;;  %34792 = vmatprep.mubr.msk.f32.mxu1 %vm36105_vm0, %v39639_v45  ;;  %v8548_v51 = vpop.f32.mrf.mxu1  ;;  %v8770_v30 = vpop.f32.mrf.mxu0  ;;  %s36109_s20 = smov 16  }
 0x241   : > { %34800 = vmatprep.subr.mxu1 %v39639_v45  ;;  %34807 = vmatprep.mubr.msk.f32.mxu0 %vm36105_vm0, %v39639_v45  ;;  %v8549_v18 = vadd.f32 %v8548_v51, %v8472_v36  ;;  %v8387_v50 = vadd.f32 %v8386_v20, %v37488_v38  ;;  %v16158_v36 = vsub.f32 %v37848_v26, %v37861_v57 }
 0x242   : > { %34793 = vmatmul.mubr.f32.vlgmr.msra.gmra.mxu1 %v36588_v28  ;;  %34808 = vmatmul.mubr.f32.vlgmr.msra.gmra.mxu0 %v36588_v28  ;;  %v34314_v34 = vpop.f32.mrf.mxu1  ;;  %v34329_v6 = vpop.f32.mrf.mxu0 }
 0x243   : > { %34801 = vmatpush3.msra.mxu1 %v37772_v13  ;;  %34815 = vmatprep.subr.mxu0 %v39639_v45  ;;  %v8623_v37 = vadd.f32 %v8622_v59, %v8549_v18  ;;  %v37888_v51 = vand.u32 4294901760, %v16158_v36 }
 0x244   : > { %34816 = vmatpush3.msra.mxu0 %v37838_v33  ;;  %34802 = vmatprep.mubr.msk.f32.mxu1 %vm36105_vm0, %v39639_v45  ;;  %v8696_v2 = vpop.f32.mrf.mxu1  ;;  %v8918_v62 = vpop.f32.mrf.mxu0 }
 0x245   : > { %34810 = vmatprep.subr.mxu1 %v39639_v45  ;;  %34817 = vmatprep.mubr.msk.f32.mxu0 %vm36105_vm0, %v39639_v45  ;;  %v8697_v60 = vadd.f32 %v8696_v2, %v8623_v37 }
 0x246   : > { %34825 = vmatprep.subr.mxu0 %v39639_v45  ;;  %8389 = vrot.lane.b32.xlu1 %v8387_v50, %s36109_s20  ;;  %v34324_v59 = vpop.f32.mrf.mxu1  ;;  %v34339_v16 = vpop.f32.mrf.mxu0 }
 0x247   : > { %34803 = vmatmul.mubr.f32.vlgmr.msra.gmra.mxu1 %v36629_v54  ;;  %34818 = vmatmul.mubr.f32.vlgmr.msra.gmra.mxu0 %v36712_v4  ;;  %v8771_v11 = vadd.f32 %v8770_v30, %v8697_v60 }
 0x248   : > { %34811 = vmatpush3.msra.mxu1 %v37772_v13  ;;  %34826 = vmatpush3.msra.mxu0 %v37848_v26  ;;  %v8842_v20 = vpop.f32.mrf.mxu1  ;;  %v9068_v18 = vpop.f32.mrf.mxu0 }
 0x249   : > { %34812 = vmatprep.mubr.msk.f32.mxu1 %vm36105_vm0, %v39639_v45  ;;  %34820 = vmatprep.subr.mxu1 %v39639_v45  ;;  %v8843_v34 = vadd.f32 %v8842_v20, %v8771_v11 }
 0x24a   : > { %34827 = vmatprep.mubr.msk.f32.mxu0 %vm36105_vm0, %v39639_v45  ;;  %34835 = vmatprep.subr.mxu0 %v39639_v45  ;;  %v34334_v30 = vpop.f32.mrf.mxu1  ;;  %v34349_v50 = vpop.f32.mrf.mxu0 }
 0x24b   : > { %34813 = vmatmul.mubr.f32.vlgmr.msra.gmra.mxu1 %v36588_v28  ;;  %34828 = vmatmul.mubr.f32.vlgmr.msra.gmra.mxu0 %v36667_v24  ;;  %v8919_v6 = vadd.f32 %v8918_v62, %v8843_v34 }
 0x24c   : > { %34821 = vmatpush3.msra.mxu1 %v37888_v51  ;;  %34836 = vmatpush3.msra.mxu0 %v37861_v57  ;;  %v8994_v37 = vpop.f32.mrf.mxu1  ;;  %v9216_v2 = vpop.f32.mrf.mxu0 }
 0x24d   : > { %34822 = vmatprep.mubr.msk.f32.mxu1 %vm36105_vm0, %v39639_v45  ;;  %34830 = vmatprep.subr.mxu1 %v39639_v45  ;;  %v8995_v36 = vadd.f32 %v8994_v37, %v8919_v6 }
 0x24e   : > { %34837 = vmatprep.mubr.msk.f32.mxu0 %vm36105_vm0, %v39639_v45  ;;  %34845 = vmatprep.subr.mxu0 %v39639_v45  ;;  %v34344_v60 = vpop.f32.mrf.mxu1  ;;  %v34359_v59 = vpop.f32.mrf.mxu0 }
 0x24f   : > { %34823 = vmatmul.mubr.f32.vlgmr.msra.gmra.mxu1 %v36647_v8  ;;  %34838 = vmatmul.mubr.f32.vlgmr.msra.gmra.mxu0 %v36647_v8  ;;  %v9069_v62 = vadd.f32 %v9068_v18, %v8995_v36 }
 0x250   : > { %34831 = vmatpush3.msra.mxu1 %v37838_v33  ;;  %34846 = vmatpush3.msra.mxu0 %v37388_v55  ;;  %v9142_v16 = vpop.f32.mrf.mxu1  ;;  %v9364_v11 = vpop.f32.mrf.mxu0 }
 0x251   : > { %34832 = vmatprep.mubr.msk.f32.mxu1 %vm36105_vm0, %v39639_v45  ;;  %34840 = vmatprep.subr.mxu1 %v39639_v45  ;;  %v9143_v20 = vadd.f32 %v9142_v16, %v9069_v62 }
 0x252   : > { %34847 = vmatprep.mubr.msk.f32.mxu0 %vm36105_vm0, %v39639_v45  ;;  %34855 = vmatprep.subr.mxu0 %v39639_v45  ;;  %v34354_v34 = vpop.f32.mrf.mxu1  ;;  %v34369_v30 = vpop.f32.mrf.mxu0 }
 0x253   : > { %34833 = vmatmul.mubr.f32.vlgmr.msra.gmra.mxu1 %v36685_v47  ;;  %34848 = vmatmul.mubr.f32.vlgmr.msra.gmra.mxu0 %v36292_v53  ;;  %v9217_v18 = vadd.f32 %v9216_v2, %v9143_v20 }
 0x254   : > { %34841 = vmatpush3.msra.mxu1 %v37838_v33  ;;  %34856 = vmatpush3.msra.mxu0 %v37409_v29  ;;  %v9288_v50 = vpop.f32.mrf.mxu1  ;;  %v9514_v6 = vpop.f32.mrf.mxu0 }
 0x255   : > { %34842 = vmatprep.mubr.msk.f32.mxu1 %vm36105_vm0, %v39639_v45  ;;  %34850 = vmatprep.subr.mxu1 %v39639_v45  ;;  %v9289_v37 = vadd.f32 %v9288_v50, %v9217_v18 }
 0x256   : > { %34857 = vmatprep.mubr.msk.f32.mxu0 %vm36105_vm0, %v39639_v45  ;;  %34865 = vmatprep.subr.mxu0 %v39639_v45  ;;  %v34364_v36 = vpop.f32.mrf.mxu1  ;;  %v34379_v60 = vpop.f32.mrf.mxu0 }
 0x257   : > { %34843 = vmatmul.mubr.f32.vlgmr.msra.gmra.mxu1 %v36647_v8  ;;  %34858 = vmatmul.mubr.f32.vlgmr.msra.gmra.mxu0 %v36277_v44 }
 0x258   : > { %34851 = vmatpush3.msra.mxu1 %v37465_v17  ;;  %34866 = vmatpush3.msra.mxu0 %v37428_v39  ;;  %v9440_v29 = vpop.f32.mrf.mxu1  ;;  %v9662_v2 = vpop.f32.mrf.mxu0 }
 0x259   : > { %34852 = vmatprep.mubr.msk.f32.mxu1 %vm36105_vm0, %v39639_v45  ;;  %34860 = vmatprep.subr.mxu1 %v39639_v45  ;;  %v9441_v59 = vadd.f32 %v9440_v29, %v9364_v11 }
 0x25a   : > { %34867 = vmatprep.mubr.msk.f32.mxu0 %vm36105_vm0, %v39639_v45  ;;  %v34374_v62 = vpop.f32.mrf.mxu1  ;;  %34875 = vmatprep.subr.mxu0 %v39639_v45  ;;  %v34389_v16 = vpop.f32.mrf.mxu0 }
 0x25b   : > { %34853 = vmatmul.mubr.f32.vlgmr.msra.gmra.mxu1 %v36274_v43  ;;  %34868 = vmatmul.mubr.f32.vlgmr.msra.gmra.mxu0 %v36274_v43  ;;  %v9515_v39 = vadd.f32 %v9514_v6, %v9441_v59 }
 0x25c   : > { %34861 = vmatpush3.msra.mxu1 %v37388_v55  ;;  %34862 = vmatprep.mubr.msk.f32.mxu1 %vm36105_vm0, %v39639_v45  ;;  %v9588_v17 = vpop.f32.mrf.mxu1  ;;  %v37941_v20 = vpop.f32.mrf.mxu0 }
 0x25d   : > { %34870 = vmatprep.subr.mxu1 %v39639_v45  ;;  %34876 = vmatpush3.msra.mxu0 %v37328_v22  ;;  %v9589_v11 = vadd.f32 %v9588_v17, %v9515_v39  ;;  %v39681_v39 = vld [vmem:[#allocation8_spill] sm:$0xff]  ;;  %v39682_v17 = vld [vmem:[#allocation14_spill] sm:$0xff] }
 0x25e   : > { %34877 = vmatprep.mubr.msk.f32.mxu0 %vm36105_vm0, %v39639_v45  ;;  %v34384_v34 = vpop.f32.mrf.mxu1  ;;  %34885 = vmatprep.subr.mxu0 %v39639_v45  ;;  %v34399_v30 = vpop.f32.mrf.mxu0 }
 0x25f   : > { %34863 = vmatmul.mubr.f32.vlgmr.msra.gmra.mxu1 %v36283_v46  ;;  %34878 = vmatmul.mubr.f32.vlgmr.msra.gmra.mxu0 %v36324_v7  ;;  %v9663_v18 = vadd.f32 %v9662_v2, %v9589_v11  ;;  %v39683_v11 = vld [vmem:[#allocation25_spill] sm:$0xff] }
 0x260   : > { %34871 = vmatpush3.msra.mxu1 %v37388_v55  ;;  %34872 = vmatprep.mubr.msk.f32.mxu1 %vm36105_vm0, %v39639_v45  ;;  %v9734_v50 = vpop.f32.mrf.mxu1  ;;  %v37953_v6 = vpop.f32.mrf.mxu0 }
 0x261   : > { %34886 = vmatpush3.msra.mxu0 %v37348_v61  ;;  %34887 = vmatprep.mubr.msk.f32.mxu0 %vm36105_vm0, %v39639_v45  ;;  %v9735_v36 = vadd.f32 %v9734_v50, %v9663_v18 }
 0x262   : > { %34880 = vmatprep.subr.mxu1 %v39639_v45  ;;  %34895 = vmatprep.subr.mxu0 %v39639_v45  ;;  %v34394_v60 = vpop.f32.mrf.mxu1  ;;  %v34409_v29 = vpop.f32.mrf.mxu0 }
 0x263   : > { %v37960_v2 = vadd.f32 %v9735_v36, %v9289_v37  ;;  %34873 = vmatmul.mubr.f32.vlgmr.msra.gmra.mxu1 %v36274_v43  ;;  %34888 = vmatmul.mubr.f32.vlgmr.msra.gmra.mxu0 %v36297_v56  ;;  %v39684_v36 = vld [vmem:[#allocation11_spill] sm:$0xff] }
 0x264   : > { %34881 = vmatpush3.msra.mxu1 %v37414_v48  ;;  %34896 = vmatpush3.msra.mxu0 %v37371_v9  ;;  %v37966_v61 = vpop.f32.mrf.mxu1  ;;  %v37968_v55 = vpop.f32.mrf.mxu0 }
 0x265   : > { %34882 = vmatprep.mubr.msk.f32.mxu1 %vm36105_vm0, %v39639_v45  ;;  %34897 = vmatprep.mubr.msk.f32.mxu0 %vm36105_vm0, %v39639_v45 }
 0x266   : > { %34905 = vmatprep.subr.mxu0 %v39639_v45  ;;  %34890 = vmatprep.subr.mxu1 %v39639_v45  ;;  %v34404_v37 = vpop.f32.mrf.mxu1  ;;  %v34419_v59 = vpop.f32.mrf.mxu0 }
 0x267   : > { %34883 = vmatmul.mubr.f32.vlgmr.msra.gmra.mxu1 %v39661_v21  ;;  %34898 = vmatmul.mubr.f32.vlgmr.msra.gmra.mxu0 %v39661_v21  ;;  %v39685_v59 = vld [vmem:[#allocation9_spill] sm:$0xff] }
 0x268   : > { %34906 = vmatpush3.msra.mxu0 %v37462_v58  ;;  %34891 = vmatpush3.msra.mxu1 %v37328_v22  ;;  %v37980_v9 = vpop.f32.mrf.mxu1  ;;  %v37982_v48 = vpop.f32.mrf.mxu0 }
 0x269   : > { %34892 = vmatprep.mubr.msk.f32.mxu1 %vm36105_vm0, %v39639_v45  ;;  %34907 = vmatprep.mubr.msk.f32.mxu0 %vm36105_vm0, %v39639_v45 }
 0x26a   : > { %34915 = vmatprep.subr.mxu0 %v39639_v45  ;;  %34900 = vmatprep.subr.mxu1 %v39639_v45  ;;  %v34414_v62 = vpop.f32.mrf.mxu1  ;;  %v34429_v16 = vpop.f32.mrf.mxu0 }
 0x26b   : > { %34893 = vmatmul.mubr.f32.vlgmr.msra.gmra.mxu1 %v39681_v39  ;;  %34908 = vmatmul.mubr.f32.vlgmr.msra.gmra.mxu0 %v39682_v17  ;;  %v19198_v39 = vsel %vm243_vm5, %v39677_v41, 0  ;;  %v9888_v41 = vadd.f32 %v37966_v61, %v37941_v20  ;;  %v39694_v61 = vld [vmem:[#allocation20_spill] sm:$0xff] }
 0x26c   : > { %34916 = vmatpush3.msra.mxu0 %v39683_v11  ;;  %34901 = vmatpush3.msra.mxu1 %v37328_v22  ;;  %v37994_v34 = vpop.f32.mrf.mxu1  ;;  %v37996_v30 = vpop.f32.mrf.mxu0  ;;  %v39686_v11 = vld [vmem:[#allocation12_spill] sm:$0xff] }
 0x26d   : > { %34902 = vmatprep.mubr.msk.f32.mxu1 %vm36105_vm0, %v39639_v45  ;;  %34910 = vmatprep.subr.mxu1 %v39639_v45 }
 0x26e   : > { %34917 = vmatprep.mubr.msk.f32.mxu0 %vm36105_vm0, %v39639_v45  ;;  %34925 = vmatprep.subr.mxu0 %v39639_v45  ;;  %v34424_v18 = vpop.f32.mrf.mxu1  ;;  %v34439_v50 = vpop.f32.mrf.mxu0 }
 0x26f   : > { %34903 = vmatmul.mubr.f32.vlgmr.msra.gmra.mxu1 %v39661_v21  ;;  %34918 = vmatmul.mubr.f32.vlgmr.msra.gmra.mxu0 %v39684_v36  ;;  %v39687_v18 = vld [vmem:[#allocation18_spill] sm:$0xff] }
 0x270   : > { %34911 = vmatpush3.msra.mxu1 %v37513_v35  ;;  %34926 = vmatpush3.msra.mxu0 %v37481_v49  ;;  %v38008_v22 = vpop.f32.mrf.mxu1  ;;  %v38010_v60 = vpop.f32.mrf.mxu0 }
 0x271   : > { %34912 = vmatprep.mubr.msk.f32.mxu1 %vm36105_vm0, %v39639_v45  ;;  %34920 = vmatprep.subr.mxu1 %v39639_v45  ;;  %v10335_v20 = vadd.f32 %v38008_v22, %v37982_v48  ;;  %v39697_v22 = vld [vmem:[#allocation22_spill] sm:$0xff] }
 0x272   : > { %34927 = vmatprep.mubr.msk.f32.mxu0 %vm36105_vm0, %v39639_v45  ;;  %v34434_v29 = vpop.f32.mrf.mxu1  ;;  %34935 = vmatprep.subr.mxu0 %v39639_v45  ;;  %v34449_v37 = vpop.f32.mrf.mxu0 }
 0x273   : > { %34913 = vmatmul.mubr.f32.vlgmr.msra.gmra.mxu1 %v39685_v59  ;;  %34928 = vmatmul.mubr.f32.vlgmr.msra.gmra.mxu0 %v39685_v59  ;;  %v10409_v48 = vadd.f32 %v37996_v30, %v10335_v20 }
 0x274   : > { %34921 = vmatpush3.msra.mxu1 %v37462_v58  ;;  %34922 = vmatprep.mubr.msk.f32.mxu1 %vm36105_vm0, %v39639_v45  ;;  %v38023_v49 = vpop.f32.mrf.mxu1  ;;  %v38025_v35 = vpop.f32.mrf.mxu0 }
 0x275   : > { %34930 = vmatprep.subr.mxu1 %v39639_v45  ;;  %34936 = vmatpush3.msra.mxu0 %v37717_v27 }
 0x276   : > { %34937 = vmatprep.mubr.msk.f32.mxu0 %vm36105_vm0, %v39639_v45  ;;  %v34444_v62 = vpop.f32.mrf.mxu1  ;;  %34945 = vmatprep.subr.mxu0 %v39639_v45  ;;  %v34459_v16 = vpop.f32.mrf.mxu0 }
 0x277   : > { %34923 = vmatmul.mubr.f32.vlgmr.msra.gmra.mxu1 %v39686_v11  ;;  %34938 = vmatmul.mubr.f32.vlgmr.msra.gmra.mxu0 %v39687_v18  ;;  %v39690_v18 = vld [vmem:[#allocation16_spill] sm:$0xff]  ;;  %v39691_v11 = vld [vmem:[#allocation21_spill] sm:$0xff] }
 0x278   : > { %34931 = vmatpush3.msra.mxu1 %v37462_v58  ;;  %34932 = vmatprep.mubr.msk.f32.mxu1 %vm36105_vm0, %v39639_v45  ;;  %v38037_v50 = vpop.f32.mrf.mxu1  ;;  %v38039_v29 = vpop.f32.mrf.mxu0  ;;  %v39688_v58 = vld [vmem:[#allocation15_spill] sm:$0xff] }
 0x279   : > { %34946 = vmatpush3.msra.mxu0 %v37732_v0  ;;  %34947 = vmatprep.mubr.msk.f32.mxu0 %vm36105_vm0, %v39639_v45  ;;  %v9962_v0 = vadd.f32 %v37953_v6, %v9888_v41 }
 0x27a   : > { %34940 = vmatprep.subr.mxu1 %v39639_v45  ;;  %34955 = vmatprep.subr.mxu0 %v39639_v45  ;;  %v34454_v37 = vpop.f32.mrf.mxu1  ;;  %v34469_v62 = vpop.f32.mrf.mxu0 }
 0x27b   : > { %34933 = vmatmul.mubr.f32.vlgmr.msra.gmra.mxu1 %v39685_v59  ;;  %34948 = vmatmul.mubr.f32.vlgmr.msra.gmra.mxu0 %v39688_v58 }
 0x27c   : > { %34941 = vmatpush3.msra.mxu1 %v37787_v32  ;;  %34956 = vmatpush3.msra.mxu0 %v37753_v3  ;;  %v38050_v16 = vpop.f32.mrf.mxu1  ;;  %v38052_v10 = vpop.f32.mrf.mxu0  ;;  %v39695_v3 = vld [vmem:[#allocation24_spill] sm:$0xff] }
 0x27d   : > { %34942 = vmatprep.mubr.msk.f32.mxu1 %vm36105_vm0, %v39639_v45  ;;  %34957 = vmatprep.mubr.msk.f32.mxu0 %vm36105_vm0, %v39639_v45 }
 0x27e   : > { %34965 = vmatprep.subr.mxu0 %v39639_v45  ;;  %34950 = vmatprep.subr.mxu1 %v39639_v45  ;;  %v34464_v37 = vpop.f32.mrf.mxu1  ;;  %v34479_v62 = vpop.f32.mrf.mxu0 }
 0x27f   : > { %34943 = vmatmul.mubr.f32.vlgmr.msra.gmra.mxu1 %v39689_v5  ;;  %34958 = vmatmul.mubr.f32.vlgmr.msra.gmra.mxu0 %v39689_v5 }
 0x280   : > { %34966 = vmatpush3.msra.mxu0 %v37772_v13  ;;  %34951 = vmatpush3.msra.mxu1 %v37717_v27  ;;  %v38064_v63 = vpop.f32.mrf.mxu1  ;;  %v11164_v58 = vpop.f32.mrf.mxu0 }
 0x281   : > { %34952 = vmatprep.mubr.msk.f32.mxu1 %vm36105_vm0, %v39639_v45  ;;  %34967 = vmatprep.mubr.msk.f32.mxu0 %vm36105_vm0, %v39639_v45 }
 0x282   : > { %34975 = vmatprep.subr.mxu0 %v39639_v45  ;;  %34960 = vmatprep.subr.mxu1 %v39639_v45  ;;  %v34474_v37 = vpop.f32.mrf.mxu1  ;;  %v34489_v62 = vpop.f32.mrf.mxu0 }
 0x283   : > { %34953 = vmatmul.mubr.f32.vlgmr.msra.gmra.mxu1 %v39690_v18  ;;  %34968 = vmatmul.mubr.f32.vlgmr.msra.gmra.mxu0 %v39691_v11  ;;  %v39692_v11 = vld [vmem:[#allocation19_spill] sm:$0xff] }
 0x284   : > { %34976 = vmatpush3.msra.mxu0 %v37790_v19  ;;  %34961 = vmatpush3.msra.mxu1 %v37717_v27  ;;  %v38076_v59 = vpop.f32.mrf.mxu1  ;;  %v38078_v36 = vpop.f32.mrf.mxu0 }
 0x285   : > { %34962 = vmatprep.mubr.msk.f32.mxu1 %vm36105_vm0, %v39639_v45  ;;  %34970 = vmatprep.subr.mxu1 %v39639_v45 }
 0x286   : > { %34977 = vmatprep.mubr.msk.f32.mxu0 %vm36105_vm0, %v39639_v45  ;;  %34985 = vmatprep.subr.mxu0 %v39639_v45  ;;  %v34484_v37 = vpop.f32.mrf.mxu1  ;;  %v34499_v62 = vpop.f32.mrf.mxu0 }
 0x287   : > { %34963 = vmatmul.mubr.f32.vlgmr.msra.gmra.mxu1 %v39689_v5  ;;  %34978 = vmatmul.mubr.f32.vlgmr.msra.gmra.mxu0 %v39692_v11  ;;  %v39693_v11 = vld [vmem:[#allocation17_spill] sm:$0xff]  ;;  %v38102_v5 = vand.u32 4294901760, %v19198_v39 }
 0x288   : > { %34971 = vmatpush3.msra.mxu1 %v37845_v40  ;;  %34986 = vmatpush3.msra.mxu0 %v37806_v25  ;;  %v11240_v18 = vpop.f32.mrf.mxu1  ;;  %v38090_v17 = vpop.f32.mrf.mxu0 }
 0x289   : > { %34972 = vmatprep.mubr.msk.f32.mxu1 %vm36105_vm0, %v39639_v45  ;;  %34980 = vmatprep.subr.mxu1 %v39639_v45  ;;  %v38119_v56 = vsub.f32 %v19198_v39, %v38102_v5  ;;  %v11241_v39 = vadd.f32 %v11240_v18, %v11164_v58  ;;  %v10483_v58 = vadd.f32 %v38023_v49, %v10409_v48 }
 0x28a   : > { %34987 = vmatprep.mubr.msk.f32.mxu0 %vm36105_vm0, %v39639_v45  ;;  %34995 = vmatprep.subr.mxu0 %v39639_v45  ;;  %v34494_v37 = vpop.f32.mrf.mxu1  ;;  %v34509_v62 = vpop.f32.mrf.mxu0 }
 0x28b   : > { %34973 = vmatmul.mubr.f32.vlgmr.msra.gmra.mxu1 %v39693_v11  ;;  %34988 = vmatmul.mubr.f32.vlgmr.msra.gmra.mxu0 %v39693_v11  ;;  %39696 = vst [vmem:[#allocation32_spill] sm:$0xff] %v38119_v56  ;;  %v11315_v20 = vadd.f32 %v38078_v36, %v11241_v39 }
 0x28c   : > { %34981 = vmatpush3.msra.mxu1 %v37772_v13  ;;  %34996 = vmatpush3.msra.mxu0 %v37838_v33  ;;  %v11388_v21 = vpop.f32.mrf.mxu1 }
 0x28d   : > { %34982 = vmatprep.mubr.msk.f32.mxu1 %vm36105_vm0, %v39639_v45  ;;  %34990 = vmatprep.subr.mxu1 %v39639_v45  ;;  %v11615_v37 = vpop.f32.mrf.mxu0 }
 0x28e   : > { %34997 = vmatprep.mubr.msk.f32.mxu0 %vm36105_vm0, %v39639_v45  ;;  %35005 = vmatprep.subr.mxu0 %v39639_v45  ;;  %v34504_v62 = vpop.f32.mrf.mxu1 }
 0x28f   : > { %34983 = vmatmul.mubr.f32.vlgmr.msra.gmra.mxu1 %v39694_v61  ;;  %34998 = vmatmul.mubr.f32.vlgmr.msra.gmra.mxu0 %v39695_v3  ;;  %v34519_v32 = vpop.f32.mrf.mxu0  ;;  %v10782_v62 = vadd.f32 %v38050_v16, %v38025_v35  ;;  %v10036_v16 = vadd.f32 %v37980_v9, %v9962_v0  ;;  %v38141_v3 = vand.u32 4294901760, %v38119_v56  ;;  %v39699_v61 = vld [vmem:[#allocation36_spill] sm:$0xff] }
 0x290   : > { %34991 = vmatpush3.msra.mxu1 %v37772_v13  ;;  %35006 = vmatpush3.msra.mxu0 %v37848_v26  ;;  %v38124_v7 = vpop.f32.mrf.mxu1 }
 0x291   : > { %34992 = vmatprep.mubr.msk.f32.mxu1 %vm36105_vm0, %v39639_v45  ;;  %35000 = vmatprep.subr.mxu1 %v39639_v45  ;;  %v11765_v32 = vpop.f32.mrf.mxu0  ;;  %39698 = vst [vmem:[#allocation35_spill] sm:$0xff] %v38141_v3  ;;  %v10856_v30 = vadd.f32 %v38039_v29, %v10782_v62  ;;  %v19310_v49 = vsub.f32 %v38119_v56, %v38141_v3 }
 0x292   : > { %35007 = vmatprep.mubr.msk.f32.mxu0 %vm36105_vm0, %v39639_v45  ;;  %35015 = vmatprep.subr.mxu0 %v39639_v45  ;;  %v34514_v6 = vpop.f32.mrf.mxu1 }
 0x293   : > { %34993 = vmatmul.mubr.f32.vlgmr.msra.gmra.mxu1 %v39693_v11  ;;  %35008 = vmatmul.mubr.f32.vlgmr.msra.gmra.mxu0 %v39697_v22  ;;  %v34529_v35 = vpop.f32.mrf.mxu0  ;;  %v19649_v6 = vsel %vm243_vm5, %v39699_v61, 0  ;;  %v10930_v36 = vadd.f32 %v38064_v63, %v10856_v30 }
 0x294   : > { %35001 = vmatpush3.msra.mxu1 %v37888_v51  ;;  %35016 = vmatpush3.msra.mxu0 %v37861_v57  ;;  %v11691_v41 = vpop.f32.mrf.mxu1  ;;  %v38156_v61 = vand.u32 4294901760, %v19649_v6  ;;  %v10557_v35 = vadd.f32 %v38010_v60, %v10483_v58 }
 0x295   : > { %35002 = vmatprep.mubr.msk.f32.mxu1 %vm36105_vm0, %v39639_v45  ;;  %35010 = vmatprep.subr.mxu1 %v39639_v45  ;;  %v11692_v18 = vadd.f32 %v11691_v41, %v11615_v37  ;;  %v11913_v0 = vpop.f32.mrf.mxu0  ;;  %v10110_v37 = vadd.f32 %v37968_v55, %v10036_v16  ;;  %v11389_v16 = vadd.f32 %v11388_v21, %v11315_v20 }
 0x296   : > { %35017 = vmatprep.mubr.msk.f32.mxu0 %vm36105_vm0, %v39639_v45  ;;  %v34524_v9 = vpop.f32.mrf.mxu1  ;;  %35025 = vmatprep.subr.mxu0 %v39639_v45  ;;  %v11004_v21 = vadd.f32 %v38052_v10, %v10930_v36 }
 0x297   : > { %35003 = vmatmul.mubr.f32.vlgmr.msra.gmra.mxu1 %v36469_v52  ;;  %35018 = vmatmul.mubr.f32.vlgmr.msra.gmra.mxu0 %v36469_v52  ;;  %v34539_v29 = vpop.f32.mrf.mxu0  ;;  %v11766_v48 = vadd.f32 %v11765_v32, %v11692_v18  ;;  %v38174_v32 = vsub.f32 %v19649_v6, %v38156_v61  ;;  %v10182_v41 = vadd.f32 %v37994_v34, %v10110_v37  ;;  %v38180_v18 = vand.u32 4294901760, %v19310_v49 }
 0x298   : > { %35011 = vmatpush3.msra.mxu1 %v37838_v33  ;;  %35012 = vmatprep.mubr.msk.f32.mxu1 %vm36105_vm0, %v39639_v45  ;;  %v11839_v62 = vpop.f32.mrf.mxu1  ;;  %v10629_v9 = vadd.f32 %v38037_v50, %v10557_v35  ;;  %v11463_v58 = vadd.f32 %v38090_v17, %v11389_v16  ;;  %v11076_v50 = vadd.f32 %v38076_v59, %v11004_v21 }
 0x299   : > { %35020 = vmatprep.subr.mxu1 %v39639_v45  ;;  %35026 = vmatpush3.msra.mxu0 %v38102_v5  ;;  %v12066_v39 = vpop.f32.mrf.mxu0  ;;  %39700 = vst [vmem:[#allocation29_spill] sm:$0xff] %v38180_v18  ;;  %v11840_v60 = vadd.f32 %v11839_v62, %v11766_v48  ;;  %v38193_v20 = vand.u32 4294901760, %v38174_v32  ;;  %v10185_v29 = vadd.f32 %v10182_v41, %v37960_v2 }
 0x29a   : > { %35027 = vmatprep.mubr.msk.f32.mxu0 %vm36105_vm0, %v39639_v45  ;;  %v34534_v55 = vpop.f32.mrf.mxu1  ;;  %35035 = vmatprep.subr.mxu0 %v39639_v45  ;;  %v11535_v48 = vadd.f32 %v38124_v7, %v11463_v58 }
 0x29b   : > { %35013 = vmatmul.mubr.f32.vlgmr.msra.gmra.mxu1 %v36510_v1  ;;  %35028 = vmatmul.mubr.f32.vlgmr.msra.gmra.mxu0 %v36601_v31  ;;  %v34549_v63 = vpop.f32.mrf.mxu0  ;;  %v11914_v62 = vadd.f32 %v11913_v0, %v11840_v60  ;;  %v10632_v36 = vadd.f32 %v10629_v9, %v10185_v29  ;;  %v19761_v35 = vsub.f32 %v38174_v32, %v38193_v20 }
 0x29c   : > { %35021 = vmatpush3.msra.mxu1 %v37838_v33  ;;  %35022 = vmatprep.mubr.msk.f32.mxu1 %vm36105_vm0, %v39639_v45  ;;  %v11985_v30 = vpop.f32.mrf.mxu1 }
 0x29d   : > { %35036 = vmatpush3.msra.mxu0 %v38119_v56  ;;  %35037 = vmatprep.mubr.msk.f32.mxu0 %vm36105_vm0, %v39639_v45  ;;  %v12216_v6 = vpop.f32.mrf.mxu0  ;;  %v11079_v16 = vadd.f32 %v11076_v50, %v10632_v36  ;;  %v11986_v63 = vadd.f32 %v11985_v30, %v11914_v62  ;;  %v38228_v29 = vand.u32 4294901760, %v19761_v35 }
 0x29e   : > { %35030 = vmatprep.subr.mxu1 %v39639_v45  ;;  %v34544_v34 = vpop.f32.mrf.mxu1  ;;  %35045 = vmatprep.subr.mxu0 %v39639_v45 }
 0x29f   : > { %35023 = vmatmul.mubr.f32.vlgmr.msra.gmra.mxu1 %v36469_v52  ;;  %35038 = vmatmul.mubr.f32.vlgmr.msra.gmra.mxu0 %v36549_v12  ;;  %v34559_v10 = vpop.f32.mrf.mxu0  ;;  %v11538_v34 = vadd.f32 %v11535_v48, %v11079_v16 }
 0x2a0   : > { %35031 = vmatpush3.msra.mxu1 %v38180_v18  ;;  %35032 = vmatprep.mubr.msk.f32.mxu1 %vm36105_vm0, %v39639_v45  ;;  %v12142_v37 = vpop.f32.mrf.mxu1 }
 0x2a1   : > { %35046 = vmatpush3.msra.mxu0 %v38141_v3  ;;  %35047 = vmatprep.mubr.msk.f32.mxu0 %vm36105_vm0, %v39639_v45  ;;  %v12143_v17 = vadd.f32 %v12142_v37, %v12066_v39  ;;  %v12364_v49 = vpop.f32.mrf.mxu0  ;;  %v11989_v37 = vadd.f32 %v11986_v63, %v11538_v34 }
 0x2a2   : > { %35040 = vmatprep.subr.mxu1 %v39639_v45  ;;  %35055 = vmatprep.subr.mxu0 %v39639_v45  ;;  %v34554_v2 = vpop.f32.mrf.mxu1 }
 0x2a3   : > { %35033 = vmatmul.mubr.f32.vlgmr.msra.gmra.mxu1 %v39653_v15  ;;  %35048 = vmatmul.mubr.f32.vlgmr.msra.gmra.mxu0 %v39653_v15  ;;  %v12217_v59 = vadd.f32 %v12216_v6, %v12143_v17  ;;  %v34569_v0 = vpop.f32.mrf.mxu0 }
 0x2a4   : > { %35041 = vmatpush3.msra.mxu1 %v38102_v5  ;;  %35056 = vmatpush3.msra.mxu0 %v38156_v61  ;;  %v12290_v39 = vpop.f32.mrf.mxu1  ;;  %v20099_v55 = vpop.permute.xlu1 %20098 }
 0x2a5   : > { %35042 = vmatprep.mubr.msk.f32.mxu1 %vm36105_vm0, %v39639_v45  ;;  %35057 = vmatprep.mubr.msk.f32.mxu0 %vm36105_vm0, %v39639_v45  ;;  %v12291_v7 = vadd.f32 %v12290_v39, %v12217_v59  ;;  %v20100_v41 = vsel %vm243_vm5, %v20099_v55, 0  ;;  %v12526_v21 = vpop.f32.mrf.mxu0 }
 0x2a6   : > { %35065 = vmatprep.subr.mxu0 %v39639_v45  ;;  %35050 = vmatprep.subr.mxu1 %v39639_v45  ;;  %v38219_v60 = vand.u32 4294901760, %v20100_v41  ;;  %v34564_v6 = vpop.f32.mrf.mxu1 }
 0x2a7   : > { %35043 = vmatmul.mubr.f32.vlgmr.msra.gmra.mxu1 %v39654_v14  ;;  %35058 = vmatmul.mubr.f32.vlgmr.msra.gmra.mxu0 %v39656_v23  ;;  %v12365_v30 = vadd.f32 %v12364_v49, %v12291_v7  ;;  %v34579_v9 = vpop.f32.mrf.mxu0 }
 0x2a8   : > { %35066 = vmatpush3.msra.mxu0 %v38174_v32  ;;  %v38225_v58 = vsub.f32 %v20100_v41, %v38219_v60  ;;  %35051 = vmatpush3.msra.mxu1 %v38102_v5  ;;  %v12436_v10 = vpop.f32.mrf.mxu1 }
 0x2a9   : > { %35052 = vmatprep.mubr.msk.f32.mxu1 %vm36105_vm0, %v39639_v45  ;;  %35060 = vmatprep.subr.mxu1 %v39639_v45  ;;  %v12437_v50 = vadd.f32 %v12436_v10, %v12365_v30  ;;  %v38233_v62 = vpop.permute.xlu1 %24152  ;;  %v12676_v17 = vpop.f32.mrf.mxu0 }
 0x2aa   : > { %39701 = vst [vmem:[#allocation25_spill] sm:$0xff] %v38225_v58  ;;  %35067 = vmatprep.mubr.msk.f32.mxu0 %vm36105_vm0, %v39639_v45  ;;  %35075 = vmatprep.subr.mxu0 %v39639_v45  ;;  %v34574_v49 = vpop.f32.mrf.mxu1  ;;  %v38241_v48 = vand.u32 4294901760, %v38225_v58 }
 0x2ab   : > { %v12440_v2 = vadd.f32 %v12437_v50, %v11989_v37  ;;  %35053 = vmatmul.mubr.f32.vlgmr.msra.gmra.mxu1 %v39653_v15  ;;  %35068 = vmatmul.mubr.f32.vlgmr.msra.gmra.mxu0 %v39658_v42  ;;  %v34589_v36 = vpop.f32.mrf.mxu0 }
 0x2ac   : > { %35061 = vmatpush3.msra.mxu1 %v38228_v29  ;;  %35076 = vmatpush3.msra.mxu0 %v38193_v20  ;;  %v12602_v59 = vpop.f32.mrf.mxu1 }
 0x2ad   : > { %35062 = vmatprep.mubr.msk.f32.mxu1 %vm36105_vm0, %v39639_v45  ;;  %35070 = vmatprep.subr.mxu1 %v39639_v45  ;;  %v12603_v0 = vadd.f32 %v12602_v59, %v12526_v21  ;;  %v38248_v39 = vpop.permute.xlu1 %28206  ;;  %v12824_v55 = vpop.f32.mrf.mxu0  ;;  %v12441_v63 = vadd.f32 %v12440_v2, %v37488_v38  ;;  %v20212_v21 = vsub.f32 %v38225_v58, %v38241_v48 }
 0x2ae   : > { %39702 = vst [vmem:[#allocation17_spill] sm:$0xff] %v38248_v39  ;;  %35077 = vmatprep.mubr.msk.f32.mxu0 %vm36105_vm0, %v39639_v45  ;;  %35085 = vmatprep.subr.mxu0 %v39639_v45  ;;  %v34584_v35 = vpop.f32.mrf.mxu1 }
 0x2af   : > { %35063 = vmatmul.mubr.f32.vlgmr.msra.gmra.mxu1 %v36588_v28  ;;  %35078 = vmatmul.mubr.f32.vlgmr.msra.gmra.mxu0 %v36588_v28  ;;  %v12677_v16 = vadd.f32 %v12676_v17, %v12603_v0  ;;  %v34599_v7 = vpop.f32.mrf.mxu0  ;;  %v38271_v17 = vand.u32 4294901760, %v20212_v21 }
 0x2b0   : > { %35071 = vmatpush3.msra.mxu1 %v38156_v61  ;;  %35086 = vmatpush3.msra.mxu0 %v38219_v60  ;;  %v12750_v41 = vpop.f32.mrf.mxu1 }
 0x2b1   : > { %35072 = vmatprep.mubr.msk.f32.mxu1 %vm36105_vm0, %v39639_v45  ;;  %35080 = vmatprep.subr.mxu1 %v39639_v45  ;;  %v12751_v6 = vadd.f32 %v12750_v41, %v12677_v16  ;;  %v12972_v34 = vpop.f32.mrf.mxu0 }
 0x2b2   : > { %35087 = vmatprep.mubr.msk.f32.mxu0 %vm36105_vm0, %v39639_v45  ;;  %35095 = vmatprep.subr.mxu0 %v39639_v45  ;;  %v38266_v30 = vpop.permute.xlu1 %32260  ;;  %v34594_v9 = vpop.f32.mrf.mxu1 }
 0x2b3   : > { %39703 = vst [vmem:[#allocation36_spill] sm:$0xff] %v38266_v30  ;;  %12443 = vrot.lane.b32.xlu1 %v12441_v63, %s36110_s9  ;;  %35073 = vmatmul.mubr.f32.vlgmr.msra.gmra.mxu1 %v36629_v54  ;;  %v12825_v10 = vadd.f32 %v12824_v55, %v12751_v6  ;;  %v34609_v37 = vpop.f32.mrf.mxu0  ;;  %s39474_s9 = scalar_lea.hbm %s39526_s3, %s32898_s10 }
 0x2b4   : > { %35081 = vmatpush3.msra.mxu1 %v38156_v61  ;;  %35088 = vmatmul.mubr.f32.vlgmr.msra.gmra.mxu0 %v36712_v4  ;;  %v12896_v50 = vpop.f32.mrf.mxu1 }
 0x2b5   : > { %35096 = vmatpush3.msra.mxu0 %v38225_v58  ;;  %35082 = vmatprep.mubr.msk.f32.mxu1 %vm36105_vm0, %v39639_v45  ;;  %v12897_v49 = vadd.f32 %v12896_v50, %v12825_v10  ;;  %v13122_v2 = vpop.f32.mrf.mxu0 }
 0x2b6   : > { %35090 = vmatprep.subr.mxu1 %v39639_v45  ;;  %35097 = vmatprep.mubr.msk.f32.mxu0 %vm36105_vm0, %v39639_v45  ;;  %v34604_v36 = vpop.f32.mrf.mxu1 }
 0x2b7   : > { %35105 = vmatprep.subr.mxu0 %v39639_v45  ;;  %35083 = vmatmul.mubr.f32.vlgmr.msra.gmra.mxu1 %v36588_v28  ;;  %v12973_v59 = vadd.f32 %v12972_v34, %v12897_v49  ;;  %v34619_v0 = vpop.f32.mrf.mxu0 }
 0x2b8   : > { %35091 = vmatpush3.msra.mxu1 %v38271_v17  ;;  %35098 = vmatmul.mubr.f32.vlgmr.msra.gmra.mxu0 %v36667_v24  ;;  %v8390_v55 = vpop.permute.xlu1 %8389  ;;  %v13048_v35 = vpop.f32.mrf.mxu1 }
 0x2b9   : > { %35106 = vmatpush3.msra.mxu0 %v38241_v48  ;;  %8393 = vst.msk [vmem:[%s37500_s8] sm:$0xff] %vm8392_vm7, %v8390_v55  ;;  %35092 = vmatprep.mubr.msk.f32.mxu1 %vm36105_vm0, %v39639_v45  ;;  %v13049_v16 = vadd.f32 %v13048_v35, %v12973_v59  ;;  %v13270_v63 = vpop.f32.mrf.mxu0 }
 0x2ba   : > { %35100 = vmatprep.subr.mxu1 %v39639_v45  ;;  %35107 = vmatprep.mubr.msk.f32.mxu0 %vm36105_vm0, %v39639_v45  ;;  %v34614_v7 = vpop.f32.mrf.mxu1 }
 0x2bb   : > { %35115 = vmatprep.subr.mxu0 %v39639_v45  ;;  %35093 = vmatmul.mubr.f32.vlgmr.msra.gmra.mxu1 %v36647_v8  ;;  %v13123_v41 = vadd.f32 %v13122_v2, %v13049_v16  ;;  %v34629_v21 = vpop.f32.mrf.mxu0 }
 0x2bc   : > { %35101 = vmatpush3.msra.mxu1 %v38219_v60  ;;  %35108 = vmatmul.mubr.f32.vlgmr.msra.gmra.mxu0 %v36647_v8  ;;  %v13196_v6 = vpop.f32.mrf.mxu1 }
 0x2bd   : > { %35116 = vmatpush3.msra.mxu0 %v37772_v13  ;;  %35102 = vmatprep.mubr.msk.f32.mxu1 %vm36105_vm0, %v39639_v45  ;;  %v13197_v34 = vadd.f32 %v13196_v6, %v13123_v41  ;;  %v13418_v9 = vpop.f32.mrf.mxu0 }
 0x2be   : > { %35110 = vmatprep.subr.mxu1 %v39639_v45  ;;  %35117 = vmatprep.mubr.msk.f32.mxu0 %vm36105_vm0, %v39639_v45  ;;  %v34624_v10 = vpop.f32.mrf.mxu1 }
 0x2bf   : > { %35125 = vmatprep.subr.mxu0 %v39639_v45  ;;  %35103 = vmatmul.mubr.f32.vlgmr.msra.gmra.mxu1 %v36685_v47  ;;  %v13271_v37 = vadd.f32 %v13270_v63, %v13197_v34  ;;  %v34639_v50 = vpop.f32.mrf.mxu0 }
 0x2c0   : > { %35111 = vmatpush3.msra.mxu1 %v38219_v60  ;;  %35118 = vmatmul.mubr.f32.vlgmr.msra.gmra.mxu0 %v36292_v53  ;;  %v13342_v49 = vpop.f32.mrf.mxu1 }
 0x2c1   : > { %35126 = vmatpush3.msra.mxu0 %v37790_v19  ;;  %35112 = vmatprep.mubr.msk.f32.mxu1 %vm36105_vm0, %v39639_v45  ;;  %v13343_v2 = vadd.f32 %v13342_v49, %v13271_v37  ;;  %v13568_v36 = vpop.f32.mrf.mxu0  ;;  %v39705_v37 = vld [vmem:[#allocation27_spill] sm:$0xff] }
 0x2c2   : > { %35120 = vmatprep.subr.mxu1 %v39639_v45  ;;  %35127 = vmatprep.mubr.msk.f32.mxu0 %vm36105_vm0, %v39639_v45  ;;  %v34634_v59 = vpop.f32.mrf.mxu1 }
 0x2c3   : > { %35135 = vmatprep.subr.mxu0 %v39639_v45  ;;  %35113 = vmatmul.mubr.f32.vlgmr.msra.gmra.mxu1 %v36647_v8  ;;  %v34649_v0 = vpop.f32.mrf.mxu0 }
 0x2c4   : > { %35121 = vmatpush3.msra.mxu1 %v37845_v40  ;;  %35128 = vmatmul.mubr.f32.vlgmr.msra.gmra.mxu0 %v36277_v44  ;;  %v13494_v19 = vpop.f32.mrf.mxu1  ;;  %v39706_v0 = vld [vmem:[#allocation7_spill] sm:$0xff] }
 0x2c5   : > { %35136 = vmatpush3.msra.mxu0 %v37806_v25  ;;  %35122 = vmatprep.mubr.msk.f32.mxu1 %vm36105_vm0, %v39639_v45  ;;  %v13495_v55 = vadd.f32 %v13494_v19, %v13418_v9  ;;  %v13716_v35 = vpop.f32.mrf.mxu0  ;;  %v39704_v9 = vld [vmem:[#allocation10_spill] sm:$0xff] }
 0x2c6   : > { %35130 = vmatprep.subr.mxu1 %v39639_v45  ;;  %35137 = vmatprep.mubr.msk.f32.mxu0 %vm36105_vm0, %v39639_v45  ;;  %v34644_v16 = vpop.f32.mrf.mxu1  ;;  %v39707_v19 = vld [vmem:[#allocation34_spill] sm:$0xff] }
 0x2c7   : > { %35123 = vmatmul.mubr.f32.vlgmr.msra.gmra.mxu1 %v36274_v43  ;;  %v13569_v63 = vadd.f32 %v13568_v36, %v13495_v55  ;;  %35145 = vmatprep.subr.mxu0 %v39639_v45  ;;  %v34659_v40 = vpop.f32.mrf.mxu0 }
 0x2c8   : > { %35131 = vmatpush3.msra.mxu1 %v37772_v13  ;;  %35138 = vmatmul.mubr.f32.vlgmr.msra.gmra.mxu0 %v36274_v43  ;;  %v13642_v25 = vpop.f32.mrf.mxu1 }
 0x2c9   : > { %35132 = vmatprep.mubr.msk.f32.mxu1 %vm36105_vm0, %v39639_v45  ;;  %35140 = vmatprep.subr.mxu1 %v39639_v45  ;;  %v13643_v7 = vadd.f32 %v13642_v25, %v13569_v63  ;;  %v38327_v41 = vpop.f32.mrf.mxu0  ;;  %v39709_v63 = vld [vmem:[#allocation6_spill] sm:$0xff] }
 0x2ca   : > { %35146 = vmatpush3.msra.mxu0 %v37717_v27  ;;  %35147 = vmatprep.mubr.msk.f32.mxu0 %vm36105_vm0, %v39639_v45  ;;  %v34654_v21 = vpop.f32.mrf.mxu1 }
 0x2cb   : > { %35133 = vmatmul.mubr.f32.vlgmr.msra.gmra.mxu1 %v36283_v46  ;;  %v13717_v6 = vadd.f32 %v13716_v35, %v13643_v7  ;;  %35155 = vmatprep.subr.mxu0 %v39639_v45  ;;  %v34669_v34 = vpop.f32.mrf.mxu0  ;;  %v39708_v35 = vld [vmem:[#allocation26_spill] sm:$0xff] }
 0x2cc   : > { %35141 = vmatpush3.msra.mxu1 %v37772_v13  ;;  %35148 = vmatmul.mubr.f32.vlgmr.msra.gmra.mxu0 %v39704_v9  ;;  %v13788_v10 = vpop.f32.mrf.mxu1  ;;  %v39724_v9 = vld [vmem:[#allocation24_spill] sm:$0xff] }
 0x2cd   : > { %35142 = vmatprep.mubr.msk.f32.mxu1 %vm36105_vm0, %v39639_v45  ;;  %35156 = vmatpush3.msra.mxu0 %v39705_v37  ;;  %v13789_v50 = vadd.f32 %v13788_v10, %v13717_v6  ;;  %v38339_v49 = vpop.f32.mrf.mxu0  ;;  %v39710_v6 = vld [vmem:[#allocation8_spill] sm:$0xff]  ;;  %v39711_v10 = vld [vmem:[#allocation14_spill] sm:$0xff] }
 0x2ce   : > { %35157 = vmatprep.mubr.msk.f32.mxu0 %vm36105_vm0, %v39639_v45  ;;  %35150 = vmatprep.subr.mxu1 %v39639_v45  ;;  %v34664_v36 = vpop.f32.mrf.mxu1 }
 0x2cf   : > { %v38344_v59 = vadd.f32 %v13789_v50, %v13343_v2  ;;  %35143 = vmatmul.mubr.f32.vlgmr.msra.gmra.mxu1 %v36274_v43  ;;  %35165 = vmatprep.subr.mxu0 %v39639_v45  ;;  %v34679_v13 = vpop.f32.mrf.mxu0 }
 0x2d0   : > { %35158 = vmatmul.mubr.f32.vlgmr.msra.gmra.mxu0 %v39706_v0  ;;  %35151 = vmatpush3.msra.mxu1 %v39707_v19  ;;  %v38350_v55 = vpop.f32.mrf.mxu1  ;;  %v39712_v13 = vld [vmem:[#allocation11_spill] sm:$0xff] }
 0x2d1   : > { %35166 = vmatpush3.msra.mxu0 %v39708_v35  ;;  %35152 = vmatprep.mubr.msk.f32.mxu1 %vm36105_vm0, %v39639_v45  ;;  %v38355_v16 = vpop.f32.mrf.mxu0 }
 0x2d2   : > { %35167 = vmatprep.mubr.msk.f32.mxu0 %vm36105_vm0, %v39639_v45  ;;  %35175 = vmatprep.subr.mxu0 %v39639_v45  ;;  %v34674_v2 = vpop.f32.mrf.mxu1 }
 0x2d3   : > { %35153 = vmatmul.mubr.f32.vlgmr.msra.gmra.mxu1 %v39709_v63  ;;  %35160 = vmatprep.subr.mxu1 %v39639_v45  ;;  %v34689_v40 = vpop.f32.mrf.mxu0  ;;  %v39713_v2 = vld [vmem:[#allocation9_spill] sm:$0xff] }
 0x2d4   : > { %35168 = vmatmul.mubr.f32.vlgmr.msra.gmra.mxu0 %v39709_v63  ;;  %35161 = vmatpush3.msra.mxu1 %v37717_v27  ;;  %v38364_v25 = vpop.f32.mrf.mxu1 }
 0x2d5   : > { %35176 = vmatpush3.msra.mxu0 %v37838_v33  ;;  %35162 = vmatprep.mubr.msk.f32.mxu1 %vm36105_vm0, %v39639_v45  ;;  %v38369_v7 = vpop.f32.mrf.mxu0 }
 0x2d6   : > { %35177 = vmatprep.mubr.msk.f32.mxu0 %vm36105_vm0, %v39639_v45  ;;  %35185 = vmatprep.subr.mxu0 %v39639_v45  ;;  %v34684_v21 = vpop.f32.mrf.mxu1 }
 0x2d7   : > { %35163 = vmatmul.mubr.f32.vlgmr.msra.gmra.mxu1 %v39710_v6  ;;  %35170 = vmatprep.subr.mxu1 %v39639_v45  ;;  %v34699_v34 = vpop.f32.mrf.mxu0 }
 0x2d8   : > { %35178 = vmatmul.mubr.f32.vlgmr.msra.gmra.mxu0 %v39711_v10  ;;  %35171 = vmatpush3.msra.mxu1 %v37717_v27  ;;  %v38378_v37 = vpop.f32.mrf.mxu1  ;;  %v39714_v34 = vld [vmem:[#allocation12_spill] sm:$0xff] }
 0x2d9   : > { %35186 = vmatpush3.msra.mxu0 %v37848_v26  ;;  %35172 = vmatprep.mubr.msk.f32.mxu1 %vm36105_vm0, %v39639_v45  ;;  %v38383_v50 = vpop.f32.mrf.mxu0 }
 0x2da   : > { %35180 = vmatprep.subr.mxu1 %v39639_v45  ;;  %35187 = vmatprep.mubr.msk.f32.mxu0 %vm36105_vm0, %v39639_v45  ;;  %v34694_v36 = vpop.f32.mrf.mxu1 }
 0x2db   : > { %35195 = vmatprep.subr.mxu0 %v39639_v45  ;;  %35173 = vmatmul.mubr.f32.vlgmr.msra.gmra.mxu1 %v39709_v63  ;;  %v34709_v27 = vpop.f32.mrf.mxu0  ;;  %v39721_v63 = vld [vmem:[#allocation30_spill] sm:$0xff] }
 0x2dc   : > { %35181 = vmatpush3.msra.mxu1 %v37888_v51  ;;  %35188 = vmatmul.mubr.f32.vlgmr.msra.gmra.mxu0 %v39712_v13  ;;  %v38392_v26 = vpop.f32.mrf.mxu1  ;;  %v39715_v27 = vld [vmem:[#allocation18_spill] sm:$0xff]  ;;  %v39719_v13 = vld [vmem:[#allocation21_spill] sm:$0xff] }
 0x2dd   : > { %35196 = vmatpush3.msra.mxu0 %v37861_v57  ;;  %35182 = vmatprep.mubr.msk.f32.mxu1 %vm36105_vm0, %v39639_v45  ;;  %v38397_v19 = vpop.f32.mrf.mxu0 }
 0x2de   : > { %35190 = vmatprep.subr.mxu1 %v39639_v45  ;;  %35197 = vmatprep.mubr.msk.f32.mxu0 %vm36105_vm0, %v39639_v45  ;;  %v34704_v35 = vpop.f32.mrf.mxu1 }
 0x2df   : > { %35183 = vmatmul.mubr.f32.vlgmr.msra.gmra.mxu1 %v39713_v2  ;;  %35205 = vmatprep.subr.mxu0 %v39639_v45  ;;  %v34719_v51 = vpop.f32.mrf.mxu0 }
 0x2e0   : > { %35191 = vmatpush3.msra.mxu1 %v37838_v33  ;;  %35198 = vmatmul.mubr.f32.vlgmr.msra.gmra.mxu0 %v39713_v2  ;;  %v38406_v57 = vpop.f32.mrf.mxu1 }
 0x2e1   : > { %35192 = vmatprep.mubr.msk.f32.mxu1 %vm36105_vm0, %v39639_v45  ;;  %35200 = vmatprep.subr.mxu1 %v39639_v45  ;;  %v38411_v40 = vpop.f32.mrf.mxu0 }
 0x2e2   : > { %35206 = vmatpush3.msra.mxu0 %v38102_v5  ;;  %35207 = vmatprep.mubr.msk.f32.mxu0 %vm36105_vm0, %v39639_v45  ;;  %v34714_v21 = vpop.f32.mrf.mxu1 }
 0x2e3   : > { %35193 = vmatmul.mubr.f32.vlgmr.msra.gmra.mxu1 %v39714_v34  ;;  %35215 = vmatprep.subr.mxu0 %v39639_v45  ;;  %v34729_v36 = vpop.f32.mrf.mxu0 }
 0x2e4   : > { %35201 = vmatpush3.msra.mxu1 %v37838_v33  ;;  %35208 = vmatmul.mubr.f32.vlgmr.msra.gmra.mxu0 %v39715_v27  ;;  %v38420_v35 = vpop.f32.mrf.mxu1  ;;  %v39716_v36 = vld [vmem:[#allocation15_spill] sm:$0xff] }
 0x2e5   : > { %35202 = vmatprep.mubr.msk.f32.mxu1 %vm36105_vm0, %v39639_v45  ;;  %35216 = vmatpush3.msra.mxu0 %v38119_v56  ;;  %v38425_v51 = vpop.f32.mrf.mxu0 }
 0x2e6   : > { %35217 = vmatprep.mubr.msk.f32.mxu0 %vm36105_vm0, %v39639_v45  ;;  %35210 = vmatprep.subr.mxu1 %v39639_v45  ;;  %v34724_v21 = vpop.f32.mrf.mxu1 }
 0x2e7   : > { %35203 = vmatmul.mubr.f32.vlgmr.msra.gmra.mxu1 %v39713_v2  ;;  %35225 = vmatprep.subr.mxu0 %v39639_v45  ;;  %v34739_v33 = vpop.f32.mrf.mxu0 }
 0x2e8   : > { %35218 = vmatmul.mubr.f32.vlgmr.msra.gmra.mxu0 %v39716_v36  ;;  %35211 = vmatpush3.msra.mxu1 %v38180_v18  ;;  %v38434_v30 = vpop.f32.mrf.mxu1  ;;  %v39717_v33 = vld [vmem:[#allocation13_spill] sm:$0xff] }
 0x2e9   : > { %35226 = vmatpush3.msra.mxu0 %v38141_v3  ;;  %35212 = vmatprep.mubr.msk.f32.mxu1 %vm36105_vm0, %v39639_v45  ;;  %v38439_v39 = vpop.f32.mrf.mxu0  ;;  %v23252_v3 = vsel %vm243_vm5, %v39721_v63, 0 }
 0x2ea   : > { %35227 = vmatprep.mubr.msk.f32.mxu0 %vm36105_vm0, %v39639_v45  ;;  %35235 = vmatprep.subr.mxu0 %v39639_v45  ;;  %v34734_v21 = vpop.f32.mrf.mxu1 }
 0x2eb   : > { %35213 = vmatmul.mubr.f32.vlgmr.msra.gmra.mxu1 %v39717_v33  ;;  %35220 = vmatprep.subr.mxu1 %v39639_v45  ;;  %v34749_v36 = vpop.f32.mrf.mxu0 }
 0x2ec   : > { %35228 = vmatmul.mubr.f32.vlgmr.msra.gmra.mxu0 %v39717_v33  ;;  %35221 = vmatpush3.msra.mxu1 %v38102_v5  ;;  %v38448_v27 = vpop.f32.mrf.mxu1  ;;  %v39718_v36 = vld [vmem:[#allocation16_spill] sm:$0xff] }
 0x2ed   : > { %35236 = vmatpush3.msra.mxu0 %v38156_v61  ;;  %35222 = vmatprep.mubr.msk.f32.mxu1 %vm36105_vm0, %v39639_v45  ;;  %v38453_v34 = vpop.f32.mrf.mxu0 }
 0x2ee   : > { %35237 = vmatprep.mubr.msk.f32.mxu0 %vm36105_vm0, %v39639_v45  ;;  %35245 = vmatprep.subr.mxu0 %v39639_v45  ;;  %v34744_v21 = vpop.f32.mrf.mxu1 }
 0x2ef   : > { %35223 = vmatmul.mubr.f32.vlgmr.msra.gmra.mxu1 %v39718_v36  ;;  %35230 = vmatprep.subr.mxu1 %v39639_v45  ;;  %v34759_v2 = vpop.f32.mrf.mxu0 }
 0x2f0   : > { %35238 = vmatmul.mubr.f32.vlgmr.msra.gmra.mxu0 %v39719_v13  ;;  %35231 = vmatpush3.msra.mxu1 %v38102_v5  ;;  %v38462_v10 = vpop.f32.mrf.mxu1  ;;  %v39720_v13 = vld [vmem:[#allocation19_spill] sm:$0xff] }
 0x2f1   : > { %35246 = vmatpush3.msra.mxu0 %v38174_v32  ;;  %35232 = vmatprep.mubr.msk.f32.mxu1 %vm36105_vm0, %v39639_v45  ;;  %v38467_v6 = vpop.f32.mrf.mxu0 }
 0x2f2   : > { %35240 = vmatprep.subr.mxu1 %v39639_v45  ;;  %35247 = vmatprep.mubr.msk.f32.mxu0 %vm36105_vm0, %v39639_v45  ;;  %v34754_v21 = vpop.f32.mrf.mxu1 }
 0x2f3   : > { %35255 = vmatprep.subr.mxu0 %v39639_v45  ;;  %35233 = vmatmul.mubr.f32.vlgmr.msra.gmra.mxu1 %v39717_v33  ;;  %v34769_v2 = vpop.f32.mrf.mxu0  ;;  %v39722_v33 = vld [vmem:[#allocation20_spill] sm:$0xff] }
 0x2f4   : > { %35241 = vmatpush3.msra.mxu1 %v38228_v29  ;;  %35248 = vmatmul.mubr.f32.vlgmr.msra.gmra.mxu0 %v39720_v13  ;;  %v15294_v36 = vpop.f32.mrf.mxu1  ;;  %v38488_v13 = vand.u32 4294901760, %v23252_v3 }
 0x2f5   : > { %35256 = vmatpush3.msra.mxu0 %v38193_v20  ;;  %35242 = vmatprep.mubr.msk.f32.mxu1 %vm36105_vm0, %v39639_v45  ;;  %v38481_v18 = vpop.f32.mrf.mxu0 }
 0x2f6   : > { %35250 = vmatprep.subr.mxu1 %v39639_v45  ;;  %35257 = vmatprep.mubr.msk.f32.mxu0 %vm36105_vm0, %v39639_v45  ;;  %v34764_v21 = vpop.f32.mrf.mxu1  ;;  %v38505_v56 = vsub.f32 %v23252_v3, %v38488_v13 }
 0x2f7   : > { %35265 = vmatprep.subr.mxu0 %v39639_v45  ;;  %35243 = vmatmul.mubr.f32.vlgmr.msra.gmra.mxu1 %v39693_v11  ;;  %v34779_v2 = vpop.f32.mrf.mxu0 }
 0x2f8   : > { %35251 = vmatpush3.msra.mxu1 %v38156_v61  ;;  %35258 = vmatmul.mubr.f32.vlgmr.msra.gmra.mxu0 %v39693_v11  ;;  %v13942_v2 = vadd.f32 %v38350_v55, %v38327_v41  ;;  %39723 = vst [vmem:[#allocation27_spill] sm:$0xff] %v38505_v56  ;;  %v14389_v41 = vadd.f32 %v38392_v26, %v38369_v7 }
 0x2f9   : > { %35266 = vmatpush3.msra.mxu0 %v38219_v60  ;;  %35252 = vmatprep.mubr.msk.f32.mxu1 %vm36105_vm0, %v39639_v45  ;;  %v38495_v63 = vpop.f32.mrf.mxu1  ;;  %v14836_v7 = vadd.f32 %v38434_v30, %v38411_v40 }
 0x2fa   : > { %35260 = vmatprep.subr.mxu1 %v39639_v45  ;;  %35267 = vmatprep.mubr.msk.f32.mxu0 %vm36105_vm0, %v39639_v45  ;;  %v15669_v21 = vpop.f32.mrf.mxu0  ;;  %v14016_v55 = vadd.f32 %v38339_v49, %v13942_v2  ;;  %v14463_v49 = vadd.f32 %v38383_v50, %v14389_v41  ;;  %v15295_v2 = vadd.f32 %v15294_v36, %v38453_v34 }
 0x2fb   : > { %35275 = vmatprep.subr.mxu0 %v39639_v45  ;;  %35253 = vmatmul.mubr.f32.vlgmr.msra.gmra.mxu1 %v39722_v33  ;;  %v34774_v0 = vpop.f32.mrf.mxu1  ;;  %v14910_v50 = vadd.f32 %v38425_v51, %v14836_v7 }
 0x2fc   : > { %35261 = vmatpush3.msra.mxu1 %v38156_v61  ;;  %35268 = vmatmul.mubr.f32.vlgmr.msra.gmra.mxu0 %v39724_v9  ;;  %v34789_v46 = vpop.f32.mrf.mxu0 }
 0x2fd   : > { %35276 = vmatpush3.msra.mxu0 %v38225_v58  ;;  %35262 = vmatprep.mubr.msk.f32.mxu1 %vm36105_vm0, %v39639_v45  ;;  %v39725_v46 = vld [vmem:[#allocation37_spill] sm:$0xff]  ;;  %v38529_v58 = vand.u32 4294901760, %v38505_v56 }
 0x2fe   : > { %35270 = vmatprep.subr.mxu1 %v39639_v45  ;;  %35277 = vmatprep.mubr.msk.f32.mxu0 %vm36105_vm0, %v39639_v45  ;;  %v38517_v3 = vpop.f32.mrf.mxu1  ;;  %v15819_v0 = vpop.f32.mrf.mxu0  ;;  %v23703_v9 = vsel %vm243_vm5, %v39725_v46, 0  ;;  %v14090_v46 = vadd.f32 %v38364_v25, %v14016_v55  ;;  %v14537_v25 = vadd.f32 %v38406_v57, %v14463_v49  ;;  %v15369_v55 = vadd.f32 %v38467_v6, %v15295_v2 }
 0x2ff   : > { %35285 = vmatprep.subr.mxu0 %v39639_v45  ;;  %35263 = vmatmul.mubr.f32.vlgmr.msra.gmra.mxu1 %v39693_v11  ;;  %39726 = vst [vmem:[#allocation34_spill] sm:$0xff] %v38529_v58  ;;  %v14984_v57 = vadd.f32 %v38448_v27, %v14910_v50 }
 0x300   : > { %35271 = vmatpush3.msra.mxu1 %v38271_v17  ;;  %35278 = vmatmul.mubr.f32.vlgmr.msra.gmra.mxu0 %v39697_v22  ;;  %v34784_v26 = vpop.f32.mrf.mxu1  ;;  %v34799_v33 = vpop.f32.mrf.mxu0 }
 0x301   : > { %35286 = vmatpush3.msra.mxu0 %v38241_v48  ;;  %35272 = vmatprep.mubr.msk.f32.mxu1 %vm36105_vm0, %v39639_v45  ;;  %v38541_v33 = vand.u32 4294901760, %v23703_v9  ;;  %v23364_v26 = vsub.f32 %v38505_v56, %v38529_v58 }
 0x302   : > { %35280 = vmatprep.subr.mxu1 %v39639_v45  ;;  %35287 = vmatprep.mubr.msk.f32.mxu0 %vm36105_vm0, %v39639_v45  ;;  %v15745_v30 = vpop.f32.mrf.mxu1  ;;  %v38539_v40 = vpop.f32.mrf.mxu0 }
 0x303   : > { %35273 = vmatmul.mubr.f32.vlgmr.msra.gmra.mxu1 %v36469_v52  ;;  %35295 = vmatprep.subr.mxu0 %v39639_v45  ;;  %v15746_v41 = vadd.f32 %v15745_v30, %v15669_v21  ;;  %v38560_v51 = vsub.f32 %v23703_v9, %v38541_v33  ;;  %v14164_v21 = vadd.f32 %v38355_v16, %v14090_v46  ;;  %v38568_v6 = vand.u32 4294901760, %v23364_v26 }
 0x304   : > { %35281 = vmatpush3.msra.mxu1 %v38219_v60  ;;  %35288 = vmatmul.mubr.f32.vlgmr.msra.gmra.mxu0 %v36469_v52  ;;  %v34794_v34 = vpop.f32.mrf.mxu1  ;;  %v34809_v36 = vpop.f32.mrf.mxu0  ;;  %v14611_v16 = vadd.f32 %v38397_v19, %v14537_v25  ;;  %v15443_v46 = vadd.f32 %v38495_v63, %v15369_v55  ;;  %v15058_v19 = vadd.f32 %v38439_v39, %v14984_v57 }
 0x305   : > { %35282 = vmatprep.mubr.msk.f32.mxu1 %vm36105_vm0, %v39639_v45  ;;  %35290 = vmatprep.subr.mxu1 %v39639_v45  ;;  %v15820_v49 = vadd.f32 %v15819_v0, %v15746_v41  ;;  %39727 = vst [vmem:[#allocation26_spill] sm:$0xff] %v38568_v6  ;;  %v38579_v27 = vand.u32 4294901760, %v38560_v51  ;;  %v14236_v0 = vadd.f32 %v38378_v37, %v14164_v21  ;;  %v24154_v36 = vsel %vm243_vm5, %v38233_v62, 0 }
 0x306   : > { %35296 = vmatpush3.msra.mxu0 %v38488_v13  ;;  %35297 = vmatprep.mubr.msk.f32.mxu0 %vm36105_vm0, %v39639_v45  ;;  %v14683_v26 = vadd.f32 %v38420_v35, %v14611_v16  ;;  %v15517_v25 = vadd.f32 %v38481_v18, %v15443_v46  ;;  %v15130_v35 = vadd.f32 %v38462_v10, %v15058_v19  ;;  %v38606_v57 = vand.u32 4294901760, %v24154_v36 }
 0x307   : > { %v15893_v7 = vpop.f32.mrf.mxu1  ;;  %35283 = vmatmul.mubr.f32.vlgmr.msra.gmra.mxu1 %v36510_v1  ;;  %35305 = vmatprep.subr.mxu0 %v39639_v45  ;;  %v16120_v30 = vpop.f32.mrf.mxu0  ;;  %v14239_v39 = vadd.f32 %v14236_v0, %v38344_v59  ;;  %v23815_v62 = vsub.f32 %v38560_v51, %v38579_v27 }
 0x308   : > { %35291 = vmatpush3.msra.mxu1 %v38219_v60  ;;  %35298 = vmatmul.mubr.f32.vlgmr.msra.gmra.mxu0 %v36601_v31  ;;  %v15894_v34 = vadd.f32 %v15893_v7, %v15820_v49 }
 0x309   : > { %v34804_v2 = vpop.f32.mrf.mxu1  ;;  %35292 = vmatprep.mubr.msk.f32.mxu1 %vm36105_vm0, %v39639_v45  ;;  %35306 = vmatpush3.msra.mxu0 %v38505_v56  ;;  %v34819_v9 = vpop.f32.mrf.mxu0 }
 0x30a   : > { %35307 = vmatprep.mubr.msk.f32.mxu0 %vm36105_vm0, %v39639_v45  ;;  %35300 = vmatprep.subr.mxu1 %v39639_v45  ;;  %v15968_v18 = vadd.f32 %v38539_v40, %v15894_v34  ;;  %v14686_v2 = vadd.f32 %v14683_v26, %v14239_v39  ;;  %v15589_v9 = vadd.f32 %v38517_v3, %v15517_v25  ;;  %v38619_v3 = vand.u32 4294901760, %v23815_v62 }
 0x30b   : > { %v16039_v50 = vpop.f32.mrf.mxu1  ;;  %35293 = vmatmul.mubr.f32.vlgmr.msra.gmra.mxu1 %v36469_v52  ;;  %35315 = vmatprep.subr.mxu0 %v39639_v45  ;;  %v16270_v41 = vpop.f32.mrf.mxu0 }
 0x30c   : > { %35308 = vmatmul.mubr.f32.vlgmr.msra.gmra.mxu0 %v36549_v12  ;;  %35301 = vmatpush3.msra.mxu1 %v38568_v6  ;;  %v15133_v16 = vadd.f32 %v15130_v35, %v14686_v2  ;;  %v16040_v46 = vadd.f32 %v16039_v50, %v15968_v18 }
 0x30d   : > { %v34814_v63 = vpop.f32.mrf.mxu1  ;;  %35302 = vmatprep.mubr.msk.f32.mxu1 %vm36105_vm0, %v39639_v45  ;;  %35316 = vmatpush3.msra.mxu0 %v38529_v58  ;;  %v34829_v37 = vpop.f32.mrf.mxu0 }
 0x30e   : > { %35317 = vmatprep.mubr.msk.f32.mxu0 %vm36105_vm0, %v39639_v45  ;;  %35310 = vmatprep.subr.mxu1 %v39639_v45  ;;  %v15592_v63 = vadd.f32 %v15589_v9, %v15133_v16 }
 0x30f   : > { %v16196_v55 = vpop.f32.mrf.mxu1  ;;  %35303 = vmatmul.mubr.f32.vlgmr.msra.gmra.mxu1 %v39653_v15  ;;  %35325 = vmatprep.subr.mxu0 %v39639_v45  ;;  %v16418_v21 = vpop.f32.mrf.mxu0 }
 0x310   : > { %v16197_v7 = vadd.f32 %v16196_v55, %v16120_v30  ;;  %35318 = vmatmul.mubr.f32.vlgmr.msra.gmra.mxu0 %v39653_v15  ;;  %35311 = vmatpush3.msra.mxu1 %v38488_v13  ;;  %v16043_v26 = vadd.f32 %v16040_v46, %v15592_v63 }
 0x311   : > { %35326 = vmatpush3.msra.mxu0 %v38541_v33  ;;  %v34824_v59 = vpop.f32.mrf.mxu1  ;;  %35312 = vmatprep.mubr.msk.f32.mxu1 %vm36105_vm0, %v39639_v45  ;;  %v34839_v49 = vpop.f32.mrf.mxu0 }
 0x312   : > { %v16271_v10 = vadd.f32 %v16270_v41, %v16197_v7  ;;  %35327 = vmatprep.mubr.msk.f32.mxu0 %vm36105_vm0, %v39639_v45  ;;  %35335 = vmatprep.subr.mxu0 %v39639_v45  ;;  %v38622_v41 = vsub.f32 %v24154_v36, %v38606_v57 }
 0x313   : > { %v16344_v40 = vpop.f32.mrf.mxu1  ;;  %35313 = vmatmul.mubr.f32.vlgmr.msra.gmra.mxu1 %v39654_v14  ;;  %35320 = vmatprep.subr.mxu1 %v39639_v45  ;;  %v16580_v30 = vpop.f32.mrf.mxu0 }
 0x314   : > { %v16345_v0 = vadd.f32 %v16344_v40, %v16271_v10  ;;  %35328 = vmatmul.mubr.f32.vlgmr.msra.gmra.mxu0 %v39656_v23  ;;  %35321 = vmatpush3.msra.mxu1 %v38488_v13  ;;  %39728 = vst [vmem:[#allocation30_spill] sm:$0xff] %v38622_v41  ;;  %v38635_v39 = vand.u32 4294901760, %v38622_v41 }
 0x315   : > { %35336 = vmatpush3.msra.mxu0 %v38560_v51  ;;  %v34834_v19 = vpop.f32.mrf.mxu1  ;;  %35322 = vmatprep.mubr.msk.f32.mxu1 %vm36105_vm0, %v39639_v45  ;;  %v34849_v34 = vpop.f32.mrf.mxu0 }
 0x316   : > { %v16419_v37 = vadd.f32 %v16418_v21, %v16345_v0  ;;  %35330 = vmatprep.subr.mxu1 %v39639_v45  ;;  %35337 = vmatprep.mubr.msk.f32.mxu0 %vm36105_vm0, %v39639_v45  ;;  %v24266_v9 = vsub.f32 %v38622_v41, %v38635_v39 }
 0x317   : > { %35345 = vmatprep.subr.mxu0 %v39639_v45  ;;  %v16490_v50 = vpop.f32.mrf.mxu1  ;;  %35323 = vmatmul.mubr.f32.vlgmr.msra.gmra.mxu1 %v39653_v15  ;;  %v16730_v36 = vpop.f32.mrf.mxu0 }
 0x318   : > { %v16491_v25 = vadd.f32 %v16490_v50, %v16419_v37  ;;  %35331 = vmatpush3.msra.mxu1 %v38619_v3  ;;  %35338 = vmatmul.mubr.f32.vlgmr.msra.gmra.mxu0 %v39658_v42  ;;  %v38661_v0 = vand.u32 4294901760, %v24266_v9 }
 0x319   : > { %35346 = vmatpush3.msra.mxu0 %v38579_v27  ;;  %v34844_v55 = vpop.f32.mrf.mxu1  ;;  %35332 = vmatprep.mubr.msk.f32.mxu1 %vm36105_vm0, %v39639_v45  ;;  %v34859_v21 = vpop.f32.mrf.mxu0 }
 0x31a   : > { %v16494_v62 = vadd.f32 %v16491_v25, %v16043_v26  ;;  %35340 = vmatprep.subr.mxu1 %v39639_v45  ;;  %35347 = vmatprep.mubr.msk.f32.mxu0 %vm36105_vm0, %v39639_v45 }
 0x31b   : > { %v16656_v35 = vpop.f32.mrf.mxu1  ;;  %35333 = vmatmul.mubr.f32.vlgmr.msra.gmra.mxu1 %v36588_v28  ;;  %35355 = vmatprep.subr.mxu0 %v39639_v45  ;;  %v16878_v18 = vpop.f32.mrf.mxu0 }
 0x31c   : > { %v16657_v7 = vadd.f32 %v16656_v35, %v16580_v30  ;;  %35341 = vmatpush3.msra.mxu1 %v38541_v33  ;;  %35348 = vmatmul.mubr.f32.vlgmr.msra.gmra.mxu0 %v36588_v28  ;;  %v16495_v59 = vadd.f32 %v16494_v62, %v37488_v38 }
 0x31d   : > { %35356 = vmatpush3.msra.mxu0 %v38606_v57  ;;  %v34854_v49 = vpop.f32.mrf.mxu1  ;;  %35342 = vmatprep.mubr.msk.f32.mxu1 %vm36105_vm0, %v39639_v45  ;;  %v34869_v2 = vpop.f32.mrf.mxu0 }
 0x31e   : > { %v16731_v10 = vadd.f32 %v16730_v36, %v16657_v7  ;;  %35350 = vmatprep.subr.mxu1 %v39639_v45  ;;  %35357 = vmatprep.mubr.msk.f32.mxu0 %vm36105_vm0, %v39639_v45 }
 0x31f   : > { %35365 = vmatprep.subr.mxu0 %v39639_v45  ;;  %16497 = vrot.lane.b32.xlu0 %v16495_v59, %s36111_s21  ;;  %v16804_v40 = vpop.f32.mrf.mxu1  ;;  %v17026_v30 = vpop.f32.mrf.mxu0  ;;  %s32719_s21 = scalar_lea.sflag [#allocation3], %s175_s11 }
 0x320   : > { %v16805_v16 = vadd.f32 %v16804_v40, %v16731_v10  ;;  %35343 = vmatmul.mubr.f32.vlgmr.msra.gmra.mxu1 %v36629_v54  ;;  %35358 = vmatmul.mubr.f32.vlgmr.msra.gmra.mxu0 %v36712_v4 }
 0x321   : > { %35351 = vmatpush3.msra.mxu1 %v38541_v33  ;;  %35366 = vmatpush3.msra.mxu0 %v38622_v41  ;;  %v34864_v46 = vpop.f32.mrf.mxu1  ;;  %v34879_v19 = vpop.f32.mrf.mxu0 }
 0x322   : > { %v16879_v34 = vadd.f32 %v16878_v18, %v16805_v16  ;;  %35352 = vmatprep.mubr.msk.f32.mxu1 %vm36105_vm0, %v39639_v45  ;;  %35360 = vmatprep.subr.mxu1 %v39639_v45 }
 0x323   : > { %35367 = vmatprep.mubr.msk.f32.mxu0 %vm36105_vm0, %v39639_v45  ;;  %35375 = vmatprep.subr.mxu0 %v39639_v45  ;;  %v16950_v63 = vpop.f32.mrf.mxu1  ;;  %v17176_v37 = vpop.f32.mrf.mxu0 }
 0x324   : > { %v16951_v50 = vadd.f32 %v16950_v63, %v16879_v34  ;;  %35353 = vmatmul.mubr.f32.vlgmr.msra.gmra.mxu1 %v36588_v28  ;;  %35368 = vmatmul.mubr.f32.vlgmr.msra.gmra.mxu0 %v36667_v24 }
 0x325   : > { %35361 = vmatpush3.msra.mxu1 %v38661_v0  ;;  %35376 = vmatpush3.msra.mxu0 %v38635_v39  ;;  %v12444_v36 = vpop.permute.xlu1 %12443  ;;  %v34874_v26 = vpop.f32.mrf.mxu1 }
 0x326   : > { %12447 = vst.msk [vmem:[%s37500_s8] sm:$0xff] %vm12446_vm8, %v12444_v36  ;;  %v17027_v25 = vadd.f32 %v17026_v30, %v16951_v50  ;;  %35362 = vmatprep.mubr.msk.f32.mxu1 %vm36105_vm0, %v39639_v45  ;;  %35370 = vmatprep.subr.mxu1 %v39639_v45  ;;  %v34889_v55 = vpop.f32.mrf.mxu0 }
 0x327   : > { %35377 = vmatprep.mubr.msk.f32.mxu0 %vm36105_vm0, %v39639_v45  ;;  %35385 = vmatprep.subr.mxu0 %v39639_v45  ;;  %v17102_v21 = vpop.f32.mrf.mxu1  ;;  %v39729_v55 = vld [vmem:[#allocation5_spill] sm:$0xff] }
 0x328   : > { %v17103_v62 = vadd.f32 %v17102_v21, %v17027_v25  ;;  %35363 = vmatmul.mubr.f32.vlgmr.msra.gmra.mxu1 %v36647_v8  ;;  %35378 = vmatmul.mubr.f32.vlgmr.msra.gmra.mxu0 %v36647_v8  ;;  %v17324_v35 = vpop.f32.mrf.mxu0  ;;  %v39730_v21 = vld [vmem:[#allocation10_spill] sm:$0xff] }
 0x329   : > { %35371 = vmatpush3.msra.mxu1 %v38606_v57  ;;  %35386 = vmatpush3.msra.mxu0 %v38156_v61  ;;  %v34884_v18 = vpop.f32.mrf.mxu1 }
 0x32a   : > { %v17177_v7 = vadd.f32 %v17176_v37, %v17103_v62  ;;  %35372 = vmatprep.mubr.msk.f32.mxu1 %vm36105_vm0, %v39639_v45  ;;  %35380 = vmatprep.subr.mxu1 %v39639_v45  ;;  %v34899_v59 = vpop.f32.mrf.mxu0 }
 0x32b   : > { %35387 = vmatprep.mubr.msk.f32.mxu0 %vm36105_vm0, %v39639_v45  ;;  %35395 = vmatprep.subr.mxu0 %v39639_v45  ;;  %v17250_v49 = vpop.f32.mrf.mxu1 }
 0x32c   : > { %v17251_v2 = vadd.f32 %v17250_v49, %v17177_v7  ;;  %35373 = vmatmul.mubr.f32.vlgmr.msra.gmra.mxu1 %v36685_v47  ;;  %35388 = vmatmul.mubr.f32.vlgmr.msra.gmra.mxu0 %v36292_v53  ;;  %v17472_v9 = vpop.f32.mrf.mxu0  ;;  %v39731_v7 = vld [vmem:[#allocation32_spill] sm:$0xff] }
 0x32d   : > { %35381 = vmatpush3.msra.mxu1 %v38606_v57  ;;  %35396 = vmatpush3.msra.mxu0 %v38174_v32  ;;  %v34894_v10 = vpop.f32.mrf.mxu1 }
 0x32e   : > { %v17325_v40 = vadd.f32 %v17324_v35, %v17251_v2  ;;  %35382 = vmatprep.mubr.msk.f32.mxu1 %vm36105_vm0, %v39639_v45  ;;  %35390 = vmatprep.subr.mxu1 %v39639_v45  ;;  %v34909_v30 = vpop.f32.mrf.mxu0  ;;  %v39733_v10 = vld [vmem:[#allocation29_spill] sm:$0xff] }
 0x32f   : > { %35397 = vmatprep.mubr.msk.f32.mxu0 %vm36105_vm0, %v39639_v45  ;;  %35405 = vmatprep.subr.mxu0 %v39639_v45  ;;  %v17396_v16 = vpop.f32.mrf.mxu1  ;;  %v39734_v30 = vld [vmem:[#allocation35_spill] sm:$0xff] }
 0x330   : > { %v17397_v46 = vadd.f32 %v17396_v16, %v17325_v40  ;;  %35383 = vmatmul.mubr.f32.vlgmr.msra.gmra.mxu1 %v36647_v8  ;;  %35398 = vmatmul.mubr.f32.vlgmr.msra.gmra.mxu0 %v36277_v44  ;;  %v17622_v32 = vpop.f32.mrf.mxu0 }
 0x331   : > { %35391 = vmatpush3.msra.mxu1 %v38228_v29  ;;  %35406 = vmatpush3.msra.mxu0 %v38193_v20  ;;  %v34904_v19 = vpop.f32.mrf.mxu1 }
 0x332   : > { %35392 = vmatprep.mubr.msk.f32.mxu1 %vm36105_vm0, %v39639_v45  ;;  %35400 = vmatprep.subr.mxu1 %v39639_v45  ;;  %v34919_v34 = vpop.f32.mrf.mxu0 }
 0x333   : > { %35407 = vmatprep.mubr.msk.f32.mxu0 %vm36105_vm0, %v39639_v45  ;;  %v17548_v63 = vpop.f32.mrf.mxu1  ;;  %35415 = vmatprep.subr.mxu0 %v39639_v45  ;;  %v39735_v34 = vld [vmem:[#allocation6_spill] sm:$0xff] }
 0x334   : > { %v17549_v37 = vadd.f32 %v17548_v63, %v17472_v9  ;;  %35393 = vmatmul.mubr.f32.vlgmr.msra.gmra.mxu1 %v36274_v43  ;;  %35408 = vmatmul.mubr.f32.vlgmr.msra.gmra.mxu0 %v36274_v43  ;;  %v17770_v29 = vpop.f32.mrf.mxu0 }
 0x335   : > { %35401 = vmatpush3.msra.mxu1 %v38156_v61  ;;  %v34914_v20 = vpop.f32.mrf.mxu1  ;;  %35402 = vmatprep.mubr.msk.f32.mxu1 %vm36105_vm0, %v39639_v45 }
 0x336   : > { %v17623_v50 = vadd.f32 %v17622_v32, %v17549_v37  ;;  %35410 = vmatprep.subr.mxu1 %v39639_v45  ;;  %35416 = vmatpush3.msra.mxu0 %v38102_v5  ;;  %v34929_v36 = vpop.f32.mrf.mxu0  ;;  %v39736_v20 = vld [vmem:[#allocation8_spill] sm:$0xff] }
 0x337   : > { %35417 = vmatprep.mubr.msk.f32.mxu0 %vm36105_vm0, %v39639_v45  ;;  %v17696_v26 = vpop.f32.mrf.mxu1  ;;  %35425 = vmatprep.subr.mxu0 %v39639_v45 }
 0x338   : > { %v17697_v25 = vadd.f32 %v17696_v26, %v17623_v50  ;;  %35403 = vmatmul.mubr.f32.vlgmr.msra.gmra.mxu1 %v39729_v55  ;;  %35418 = vmatmul.mubr.f32.vlgmr.msra.gmra.mxu0 %v39730_v21  ;;  %v38722_v62 = vpop.f32.mrf.mxu0  ;;  %v39737_v50 = vld [vmem:[#allocation14_spill] sm:$0xff]  ;;  %v39738_v26 = vld [vmem:[#allocation25_spill] sm:$0xff] }
 0x339   : > { %35411 = vmatpush3.msra.mxu1 %v38156_v61  ;;  %v34924_v35 = vpop.f32.mrf.mxu1  ;;  %35412 = vmatprep.mubr.msk.f32.mxu1 %vm36105_vm0, %v39639_v45  ;;  %v39732_v61 = vld [vmem:[#allocation7_spill] sm:$0xff] }
 0x33a   : > { %v17771_v18 = vadd.f32 %v17770_v29, %v17697_v25  ;;  %35426 = vmatpush3.msra.mxu0 %v39731_v7  ;;  %35427 = vmatprep.mubr.msk.f32.mxu0 %vm36105_vm0, %v39639_v45  ;;  %v34939_v59 = vpop.f32.mrf.mxu0  ;;  %v39739_v7 = vld [vmem:[#allocation11_spill] sm:$0xff] }
 0x33b   : > { %v17842_v49 = vpop.f32.mrf.mxu1  ;;  %35420 = vmatprep.subr.mxu1 %v39639_v45  ;;  %35435 = vmatprep.subr.mxu0 %v39639_v45 }
 0x33c   : > { %v17843_v2 = vadd.f32 %v17842_v49, %v17771_v18  ;;  %35413 = vmatmul.mubr.f32.vlgmr.msra.gmra.mxu1 %v36274_v43  ;;  %35428 = vmatmul.mubr.f32.vlgmr.msra.gmra.mxu0 %v39732_v61  ;;  %v38734_v9 = vpop.f32.mrf.mxu0  ;;  %v39750_v61 = vld [vmem:[#allocation24_spill] sm:$0xff] }
 0x33d   : > { %35421 = vmatpush3.msra.mxu1 %v39733_v10  ;;  %v34934_v40 = vpop.f32.mrf.mxu1  ;;  %35436 = vmatpush3.msra.mxu0 %v39734_v30  ;;  %v39740_v10 = vld [vmem:[#allocation9_spill] sm:$0xff] }
 0x33e   : > { %v38738_v16 = vadd.f32 %v17843_v2, %v17397_v46  ;;  %35422 = vmatprep.mubr.msk.f32.mxu1 %vm36105_vm0, %v39639_v45  ;;  %35437 = vmatprep.mubr.msk.f32.mxu0 %vm36105_vm0, %v39639_v45  ;;  %v34949_v32 = vpop.f32.mrf.mxu0 }
 0x33f   : > { %35445 = vmatprep.subr.mxu0 %v39639_v45  ;;  %v38745_v19 = vpop.f32.mrf.mxu1  ;;  %35430 = vmatprep.subr.mxu1 %v39639_v45  ;;  %v39741_v32 = vld [vmem:[#allocation12_spill] sm:$0xff] }
 0x340   : > { %35423 = vmatmul.mubr.f32.vlgmr.msra.gmra.mxu1 %v39735_v34  ;;  %35438 = vmatmul.mubr.f32.vlgmr.msra.gmra.mxu0 %v39735_v34  ;;  %v38750_v63 = vpop.f32.mrf.mxu0 }
 0x341   : > { %35446 = vmatpush3.msra.mxu0 %v38219_v60  ;;  %35431 = vmatpush3.msra.mxu1 %v38102_v5  ;;  %v34944_v46 = vpop.f32.mrf.mxu1 }
 0x342   : > { %35432 = vmatprep.mubr.msk.f32.mxu1 %vm36105_vm0, %v39639_v45  ;;  %35447 = vmatprep.mubr.msk.f32.mxu0 %vm36105_vm0, %v39639_v45  ;;  %v34959_v37 = vpop.f32.mrf.mxu0  ;;  %v39742_v46 = vld [vmem:[#allocation18_spill] sm:$0xff] }
 0x343   : > { %35455 = vmatprep.subr.mxu0 %v39639_v45  ;;  %v38759_v29 = vpop.f32.mrf.mxu1  ;;  %35440 = vmatprep.subr.mxu1 %v39639_v45 }
 0x344   : > { %35433 = vmatmul.mubr.f32.vlgmr.msra.gmra.mxu1 %v39736_v20  ;;  %35448 = vmatmul.mubr.f32.vlgmr.msra.gmra.mxu0 %v39737_v50  ;;  %v38764_v36 = vpop.f32.mrf.mxu0  ;;  %v39748_v50 = vld [vmem:[#allocation31_spill] sm:$0xff] }
 0x345   : > { %35456 = vmatpush3.msra.mxu0 %v39738_v26  ;;  %35441 = vmatpush3.msra.mxu1 %v38102_v5  ;;  %v34954_v25 = vpop.f32.mrf.mxu1 }
 0x346   : > { %35442 = vmatprep.mubr.msk.f32.mxu1 %vm36105_vm0, %v39639_v45  ;;  %35450 = vmatprep.subr.mxu1 %v39639_v45  ;;  %v34969_v35 = vpop.f32.mrf.mxu0 }
 0x347   : > { %35457 = vmatprep.mubr.msk.f32.mxu0 %vm36105_vm0, %v39639_v45  ;;  %35465 = vmatprep.subr.mxu0 %v39639_v45  ;;  %v38774_v18 = vpop.f32.mrf.mxu1 }
 0x348   : > { %35443 = vmatmul.mubr.f32.vlgmr.msra.gmra.mxu1 %v39735_v34  ;;  %35458 = vmatmul.mubr.f32.vlgmr.msra.gmra.mxu0 %v39739_v7  ;;  %v38778_v59 = vpop.f32.mrf.mxu0  ;;  %v17996_v34 = vadd.f32 %v38745_v19, %v38722_v62 }
 0x349   : > { %35451 = vmatpush3.msra.mxu1 %v38271_v17  ;;  %35466 = vmatpush3.msra.mxu0 %v38241_v48  ;;  %v34964_v5 = vpop.f32.mrf.mxu1 }
 0x34a   : > { %35452 = vmatprep.mubr.msk.f32.mxu1 %vm36105_vm0, %v39639_v45  ;;  %35460 = vmatprep.subr.mxu1 %v39639_v45  ;;  %v34979_v49 = vpop.f32.mrf.mxu0  ;;  %v39743_v5 = vld [vmem:[#allocation15_spill] sm:$0xff] }
 0x34b   : > { %35467 = vmatprep.mubr.msk.f32.mxu0 %vm36105_vm0, %v39639_v45  ;;  %v38787_v2 = vpop.f32.mrf.mxu1  ;;  %35475 = vmatprep.subr.mxu0 %v39639_v45 }
 0x34c   : > { %35453 = vmatmul.mubr.f32.vlgmr.msra.gmra.mxu1 %v39740_v10  ;;  %35468 = vmatmul.mubr.f32.vlgmr.msra.gmra.mxu0 %v39740_v10  ;;  %v38792_v17 = vpop.f32.mrf.mxu0  ;;  %v18443_v19 = vadd.f32 %v38787_v2, %v38764_v36  ;;  %v39751_v2 = vld [vmem:[#allocation28_spill] sm:$0xff] }
 0x34d   : > { %35461 = vmatpush3.msra.mxu1 %v38219_v60  ;;  %v34974_v48 = vpop.f32.mrf.mxu1  ;;  %35462 = vmatprep.mubr.msk.f32.mxu1 %vm36105_vm0, %v39639_v45 }
 0x34e   : > { %35470 = vmatprep.subr.mxu1 %v39639_v45  ;;  %35476 = vmatpush3.msra.mxu0 %v38488_v13  ;;  %v34989_v40 = vpop.f32.mrf.mxu0 }
 0x34f   : > { %35477 = vmatprep.mubr.msk.f32.mxu0 %vm36105_vm0, %v39639_v45  ;;  %v38801_v30 = vpop.f32.mrf.mxu1  ;;  %35485 = vmatprep.subr.mxu0 %v39639_v45 }
 0x350   : > { %35463 = vmatmul.mubr.f32.vlgmr.msra.gmra.mxu1 %v39741_v32  ;;  %35478 = vmatmul.mubr.f32.vlgmr.msra.gmra.mxu0 %v39742_v46  ;;  %v38806_v37 = vpop.f32.mrf.mxu0  ;;  %v39745_v46 = vld [vmem:[#allocation16_spill] sm:$0xff]  ;;  %v39746_v32 = vld [vmem:[#allocation21_spill] sm:$0xff] }
 0x351   : > { %35471 = vmatpush3.msra.mxu1 %v38219_v60  ;;  %v34984_v26 = vpop.f32.mrf.mxu1  ;;  %35472 = vmatprep.mubr.msk.f32.mxu1 %vm36105_vm0, %v39639_v45 }
 0x352   : > { %35486 = vmatpush3.msra.mxu0 %v38505_v56  ;;  %35487 = vmatprep.mubr.msk.f32.mxu0 %vm36105_vm0, %v39639_v45  ;;  %v34999_v25 = vpop.f32.mrf.mxu0  ;;  %v39744_v26 = vld [vmem:[#allocation13_spill] sm:$0xff] }
 0x353   : > { %v38814_v35 = vpop.f32.mrf.mxu1  ;;  %35480 = vmatprep.subr.mxu1 %v39639_v45  ;;  %35495 = vmatprep.subr.mxu0 %v39639_v45 }
 0x354   : > { %35473 = vmatmul.mubr.f32.vlgmr.msra.gmra.mxu1 %v39740_v10  ;;  %35488 = vmatmul.mubr.f32.vlgmr.msra.gmra.mxu0 %v39743_v5  ;;  %v38820_v60 = vpop.f32.mrf.mxu0 }
 0x355   : > { %35481 = vmatpush3.msra.mxu1 %v38568_v6  ;;  %v34994_v49 = vpop.f32.mrf.mxu1  ;;  %35496 = vmatpush3.msra.mxu0 %v38529_v58  ;;  %v39749_v6 = vld [vmem:[#allocation20_spill] sm:$0xff] }
 0x356   : > { %35482 = vmatprep.mubr.msk.f32.mxu1 %vm36105_vm0, %v39639_v45  ;;  %35497 = vmatprep.mubr.msk.f32.mxu0 %vm36105_vm0, %v39639_v45  ;;  %v35009_v48 = vpop.f32.mrf.mxu0 }
 0x357   : > { %35505 = vmatprep.subr.mxu0 %v39639_v45  ;;  %v38829_v40 = vpop.f32.mrf.mxu1  ;;  %35490 = vmatprep.subr.mxu1 %v39639_v45 }
 0x358   : > { %35483 = vmatmul.mubr.f32.vlgmr.msra.gmra.mxu1 %v39744_v26  ;;  %35498 = vmatmul.mubr.f32.vlgmr.msra.gmra.mxu0 %v39744_v26  ;;  %v38834_v25 = vpop.f32.mrf.mxu0 }
 0x359   : > { %35506 = vmatpush3.msra.mxu0 %v38541_v33  ;;  %35491 = vmatpush3.msra.mxu1 %v38488_v13  ;;  %v35004_v49 = vpop.f32.mrf.mxu1 }
 0x35a   : > { %35492 = vmatprep.mubr.msk.f32.mxu1 %vm36105_vm0, %v39639_v45  ;;  %35507 = vmatprep.mubr.msk.f32.mxu0 %vm36105_vm0, %v39639_v45  ;;  %v35019_v48 = vpop.f32.mrf.mxu0 }
 0x35b   : > { %35515 = vmatprep.subr.mxu0 %v39639_v45  ;;  %v38843_v5 = vpop.f32.mrf.mxu1  ;;  %35500 = vmatprep.subr.mxu1 %v39639_v45 }
 0x35c   : > { %35493 = vmatmul.mubr.f32.vlgmr.msra.gmra.mxu1 %v39745_v46  ;;  %35508 = vmatmul.mubr.f32.vlgmr.msra.gmra.mxu0 %v39746_v32  ;;  %v19272_v10 = vpop.f32.mrf.mxu0  ;;  %v39747_v32 = vld [vmem:[#allocation19_spill] sm:$0xff] }
 0x35d   : > { %35516 = vmatpush3.msra.mxu0 %v38560_v51  ;;  %35501 = vmatpush3.msra.mxu1 %v38488_v13  ;;  %v35014_v49 = vpop.f32.mrf.mxu1 }
 0x35e   : > { %35502 = vmatprep.mubr.msk.f32.mxu1 %vm36105_vm0, %v39639_v45  ;;  %35510 = vmatprep.subr.mxu1 %v39639_v45  ;;  %v35029_v48 = vpop.f32.mrf.mxu0 }
 0x35f   : > { %35517 = vmatprep.mubr.msk.f32.mxu0 %vm36105_vm0, %v39639_v45  ;;  %35525 = vmatprep.subr.mxu0 %v39639_v45  ;;  %v38856_v46 = vpop.f32.mrf.mxu1  ;;  %v27306_v48 = vsel %vm243_vm5, %v39748_v50, 0 }
 0x360   : > { %35503 = vmatmul.mubr.f32.vlgmr.msra.gmra.mxu1 %v39744_v26  ;;  %35518 = vmatmul.mubr.f32.vlgmr.msra.gmra.mxu0 %v39747_v32  ;;  %v38860_v7 = vpop.f32.mrf.mxu0  ;;  %v38876_v26 = vand.u32 4294901760, %v27306_v48 }
 0x361   : > { %35511 = vmatpush3.msra.mxu1 %v38619_v3  ;;  %35526 = vmatpush3.msra.mxu0 %v38579_v27  ;;  %v35024_v49 = vpop.f32.mrf.mxu1 }
 0x362   : > { %35512 = vmatprep.mubr.msk.f32.mxu1 %vm36105_vm0, %v39639_v45  ;;  %35520 = vmatprep.subr.mxu1 %v39639_v45  ;;  %v35039_v20 = vpop.f32.mrf.mxu0  ;;  %v38893_v56 = vsub.f32 %v27306_v48, %v38876_v26 }
 0x363   : > { %35527 = vmatprep.mubr.msk.f32.mxu0 %vm36105_vm0, %v39639_v45  ;;  %35535 = vmatprep.subr.mxu0 %v39639_v45  ;;  %v19348_v32 = vpop.f32.mrf.mxu1 }
 0x364   : > { %35513 = vmatmul.mubr.f32.vlgmr.msra.gmra.mxu1 %v39693_v11  ;;  %35528 = vmatmul.mubr.f32.vlgmr.msra.gmra.mxu0 %v39693_v11  ;;  %v38874_v49 = vpop.f32.mrf.mxu0 }
 0x365   : > { %35521 = vmatpush3.msra.mxu1 %v38541_v33  ;;  %35536 = vmatpush3.msra.mxu0 %v38606_v57  ;;  %v35034_v50 = vpop.f32.mrf.mxu1 }
 0x366   : > { %35522 = vmatprep.mubr.msk.f32.mxu1 %vm36105_vm0, %v39639_v45  ;;  %35530 = vmatprep.subr.mxu1 %v39639_v45  ;;  %v35049_v20 = vpop.f32.mrf.mxu0 }
 0x367   : > { %35537 = vmatprep.mubr.msk.f32.mxu0 %vm36105_vm0, %v39639_v45  ;;  %35545 = vmatprep.subr.mxu0 %v39639_v45  ;;  %v38888_v58 = vpop.f32.mrf.mxu1 }
 0x368   : > { %35523 = vmatmul.mubr.f32.vlgmr.msra.gmra.mxu1 %v39749_v6  ;;  %35538 = vmatmul.mubr.f32.vlgmr.msra.gmra.mxu0 %v39750_v61  ;;  %v19723_v50 = vpop.f32.mrf.mxu0  ;;  %v18070_v61 = vadd.f32 %v38734_v9, %v17996_v34  ;;  %v38915_v34 = vand.u32 4294901760, %v38893_v56  ;;  %v18517_v6 = vadd.f32 %v38778_v59, %v18443_v19 }
 0x369   : > { %35531 = vmatpush3.msra.mxu1 %v38541_v33  ;;  %35546 = vmatpush3.msra.mxu0 %v38622_v41  ;;  %v35044_v62 = vpop.f32.mrf.mxu1  ;;  %v19349_v41 = vadd.f32 %v19348_v32, %v19272_v10 }
 0x36a   : > { %35532 = vmatprep.mubr.msk.f32.mxu1 %vm36105_vm0, %v39639_v45  ;;  %35540 = vmatprep.subr.mxu1 %v39639_v45  ;;  %v35059_v20 = vpop.f32.mrf.mxu0  ;;  %v18890_v62 = vadd.f32 %v38829_v40, %v38806_v37  ;;  %v18144_v40 = vadd.f32 %v38759_v29, %v18070_v61  ;;  %v27418_v61 = vsub.f32 %v38893_v56, %v38915_v34 }
 0x36b   : > { %35547 = vmatprep.mubr.msk.f32.mxu0 %vm36105_vm0, %v39639_v45  ;;  %35555 = vmatprep.subr.mxu0 %v39639_v45  ;;  %v38906_v48 = vpop.f32.mrf.mxu1  ;;  %v27757_v20 = vsel %vm243_vm5, %v39751_v2, 0  ;;  %v18591_v29 = vadd.f32 %v38801_v30, %v18517_v6 }
 0x36c   : > { %35533 = vmatmul.mubr.f32.vlgmr.msra.gmra.mxu1 %v39693_v11  ;;  %35548 = vmatmul.mubr.f32.vlgmr.msra.gmra.mxu0 %v39697_v22  ;;  %v19873_v36 = vpop.f32.mrf.mxu0  ;;  %v18964_v22 = vadd.f32 %v38820_v60, %v18890_v62  ;;  %v38930_v10 = vand.u32 4294901760, %v27757_v20  ;;  %v19423_v60 = vadd.f32 %v38860_v7, %v19349_v41  ;;  %v18218_v19 = vadd.f32 %v38750_v63, %v18144_v40 }
 0x36d   : > { %35541 = vmatpush3.msra.mxu1 %v38661_v0  ;;  %35556 = vmatpush3.msra.mxu0 %v38635_v39  ;;  %v35054_v9 = vpop.f32.mrf.mxu1  ;;  %v38954_v7 = vand.u32 4294901760, %v27418_v61  ;;  %v18665_v30 = vadd.f32 %v38792_v17, %v18591_v29 }
 0x36e   : > { %35542 = vmatprep.mubr.msk.f32.mxu1 %vm36105_vm0, %v39639_v45  ;;  %35550 = vmatprep.subr.mxu1 %v39639_v45  ;;  %v35069_v37 = vpop.f32.mrf.mxu0  ;;  %v38949_v41 = vsub.f32 %v27757_v20, %v38930_v10 }
 0x36f   : > { %35557 = vmatprep.mubr.msk.f32.mxu0 %vm36105_vm0, %v39639_v45  ;;  %v19799_v9 = vpop.f32.mrf.mxu1  ;;  %35565 = vmatprep.subr.mxu0 %v39639_v45  ;;  %v19038_v37 = vadd.f32 %v38843_v5, %v18964_v22  ;;  %v19497_v22 = vadd.f32 %v38888_v58, %v19423_v60 }
 0x370   : > { %v19800_v2 = vadd.f32 %v19799_v9, %v19723_v50  ;;  %35543 = vmatmul.mubr.f32.vlgmr.msra.gmra.mxu1 %v36469_v52  ;;  %35558 = vmatmul.mubr.f32.vlgmr.msra.gmra.mxu0 %v36469_v52  ;;  %v20021_v59 = vpop.f32.mrf.mxu0  ;;  %v38968_v17 = vand.u32 4294901760, %v38949_v41 }
 0x371   : > { %35551 = vmatpush3.msra.mxu1 %v38606_v57  ;;  %v35064_v32 = vpop.f32.mrf.mxu1  ;;  %35552 = vmatprep.mubr.msk.f32.mxu1 %vm36105_vm0, %v39639_v45  ;;  %v19112_v40 = vadd.f32 %v38834_v25, %v19038_v37  ;;  %v18737_v25 = vadd.f32 %v38814_v35, %v18665_v30  ;;  %v19571_v29 = vadd.f32 %v38874_v49, %v19497_v22 }
 0x372   : > { %35560 = vmatprep.subr.mxu1 %v39639_v45  ;;  %35566 = vmatpush3.msra.mxu0 %v38876_v26  ;;  %v35079_v50 = vpop.f32.mrf.mxu0  ;;  %v19874_v9 = vadd.f32 %v19873_v36, %v19800_v2  ;;  %v18290_v36 = vadd.f32 %v38774_v18, %v18218_v19  ;;  %v39752_v18 = vld [vmem:[#allocation17_spill] sm:$0xff] }
 0x373   : > { %35567 = vmatprep.mubr.msk.f32.mxu0 %vm36105_vm0, %v39639_v45  ;;  %v19947_v62 = vpop.f32.mrf.mxu1  ;;  %35575 = vmatprep.subr.mxu0 %v39639_v45  ;;  %v28208_v61 = vsel %vm243_vm5, %v39752_v18, 0 }
 0x374   : > { %35553 = vmatmul.mubr.f32.vlgmr.msra.gmra.mxu1 %v36510_v1  ;;  %35568 = vmatmul.mubr.f32.vlgmr.msra.gmra.mxu0 %v36601_v31  ;;  %v20174_v6 = vpop.f32.mrf.mxu0  ;;  %v19948_v2 = vadd.f32 %v19947_v62, %v19874_v9  ;;  %v18293_v50 = vadd.f32 %v18290_v36, %v38738_v16  ;;  %v19184_v62 = vadd.f32 %v38856_v46, %v19112_v40  ;;  %v38986_v49 = vand.u32 4294901760, %v28208_v61 }
 0x375   : > { %35561 = vmatpush3.msra.mxu1 %v38606_v57  ;;  %v35074_v63 = vpop.f32.mrf.mxu1  ;;  %35562 = vmatprep.mubr.msk.f32.mxu1 %vm36105_vm0, %v39639_v45  ;;  %v19643_v46 = vadd.f32 %v38906_v48, %v19571_v29 }
 0x376   : > { %35576 = vmatpush3.msra.mxu0 %v38893_v56  ;;  %35577 = vmatprep.mubr.msk.f32.mxu0 %vm36105_vm0, %v39639_v45  ;;  %v35089_v5 = vpop.f32.mrf.mxu0  ;;  %v20022_v37 = vadd.f32 %v20021_v59, %v19948_v2  ;;  %v27869_v63 = vsub.f32 %v38949_v41, %v38968_v17  ;;  %v18740_v30 = vadd.f32 %v18737_v25, %v18293_v50 }
 0x377   : > { %v20093_v20 = vpop.f32.mrf.mxu1  ;;  %35570 = vmatprep.subr.mxu1 %v39639_v45  ;;  %35585 = vmatprep.subr.mxu0 %v39639_v45  ;;  %v39002_v2 = vsub.f32 %v28208_v61, %v38986_v49 }
 0x378   : > { %35563 = vmatmul.mubr.f32.vlgmr.msra.gmra.mxu1 %v36469_v52  ;;  %35578 = vmatmul.mubr.f32.vlgmr.msra.gmra.mxu0 %v36549_v12  ;;  %v20324_v58 = vpop.f32.mrf.mxu0  ;;  %v19187_v5 = vadd.f32 %v19184_v62, %v18740_v30  ;;  %v20094_v36 = vadd.f32 %v20093_v20, %v20022_v37 }
 0x379   : > { %35571 = vmatpush3.msra.mxu1 %v38954_v7  ;;  %v35084_v32 = vpop.f32.mrf.mxu1  ;;  %35572 = vmatprep.mubr.msk.f32.mxu1 %vm36105_vm0, %v39639_v45 }
 0x37a   : > { %35586 = vmatpush3.msra.mxu0 %v38915_v34  ;;  %35587 = vmatprep.mubr.msk.f32.mxu0 %vm36105_vm0, %v39639_v45  ;;  %v35099_v60 = vpop.f32.mrf.mxu0  ;;  %v39006_v32 = vand.u32 4294901760, %v27869_v63  ;;  %v19646_v18 = vadd.f32 %v19643_v46, %v19187_v5 }
 0x37b   : > { %v20250_v19 = vpop.f32.mrf.mxu1  ;;  %35580 = vmatprep.subr.mxu1 %v39639_v45  ;;  %35595 = vmatprep.subr.mxu0 %v39639_v45 }
 0x37c   : > { %v20251_v9 = vadd.f32 %v20250_v19, %v20174_v6  ;;  %35573 = vmatmul.mubr.f32.vlgmr.msra.gmra.mxu1 %v39653_v15  ;;  %35588 = vmatmul.mubr.f32.vlgmr.msra.gmra.mxu0 %v39653_v15  ;;  %v20472_v35 = vpop.f32.mrf.mxu0  ;;  %v20097_v29 = vadd.f32 %v20094_v36, %v19646_v18  ;;  %v39017_v19 = vand.u32 4294901760, %v39002_v2 }
 0x37d   : > { %35581 = vmatpush3.msra.mxu1 %v38876_v26  ;;  %35596 = vmatpush3.msra.mxu0 %v38930_v10  ;;  %v35094_v16 = vpop.f32.mrf.mxu1 }
 0x37e   : > { %v20325_v59 = vadd.f32 %v20324_v58, %v20251_v9  ;;  %35582 = vmatprep.mubr.msk.f32.mxu1 %vm36105_vm0, %v39639_v45  ;;  %35597 = vmatprep.mubr.msk.f32.mxu0 %vm36105_vm0, %v39639_v45  ;;  %v35109_v6 = vpop.f32.mrf.mxu0 }
 0x37f   : > { %35605 = vmatprep.subr.mxu0 %v39639_v45  ;;  %v20398_v22 = vpop.f32.mrf.mxu1  ;;  %35590 = vmatprep.subr.mxu1 %v39639_v45 }
 0x380   : > { %v20399_v40 = vadd.f32 %v20398_v22, %v20325_v59  ;;  %35583 = vmatmul.mubr.f32.vlgmr.msra.gmra.mxu1 %v39654_v14  ;;  %35598 = vmatmul.mubr.f32.vlgmr.msra.gmra.mxu0 %v39656_v23  ;;  %v20634_v48 = vpop.f32.mrf.mxu0  ;;  %v28320_v59 = vsub.f32 %v39002_v2, %v39017_v19 }
 0x381   : > { %35606 = vmatpush3.msra.mxu0 %v38949_v41  ;;  %35591 = vmatpush3.msra.mxu1 %v38876_v26  ;;  %v35104_v58 = vpop.f32.mrf.mxu1 }
 0x382   : > { %v20473_v25 = vadd.f32 %v20472_v35, %v20399_v40  ;;  %35592 = vmatprep.mubr.msk.f32.mxu1 %vm36105_vm0, %v39639_v45  ;;  %35600 = vmatprep.subr.mxu1 %v39639_v45  ;;  %v35119_v20 = vpop.f32.mrf.mxu0  ;;  %v39043_v58 = vand.u32 4294901760, %v28320_v59 }
 0x383   : > { %35607 = vmatprep.mubr.msk.f32.mxu0 %vm36105_vm0, %v39639_v45  ;;  %35615 = vmatprep.subr.mxu0 %v39639_v45  ;;  %v20544_v61 = vpop.f32.mrf.mxu1 }
 0x384   : > { %v20545_v60 = vadd.f32 %v20544_v61, %v20473_v25  ;;  %35593 = vmatmul.mubr.f32.vlgmr.msra.gmra.mxu1 %v39653_v15  ;;  %35608 = vmatmul.mubr.f32.vlgmr.msra.gmra.mxu0 %v39658_v42  ;;  %v20784_v50 = vpop.f32.mrf.mxu0 }
 0x385   : > { %35601 = vmatpush3.msra.mxu1 %v39006_v32  ;;  %35616 = vmatpush3.msra.mxu0 %v38968_v17  ;;  %v35114_v62 = vpop.f32.mrf.mxu1 }
 0x386   : > { %v20548_v37 = vadd.f32 %v20545_v60, %v20097_v29  ;;  %35602 = vmatprep.mubr.msk.f32.mxu1 %vm36105_vm0, %v39639_v45  ;;  %35610 = vmatprep.subr.mxu1 %v39639_v45  ;;  %v35129_v9 = vpop.f32.mrf.mxu0 }
 0x387   : > { %35617 = vmatprep.mubr.msk.f32.mxu0 %vm36105_vm0, %v39639_v45  ;;  %v20710_v35 = vpop.f32.mrf.mxu1  ;;  %35625 = vmatprep.subr.mxu0 %v39639_v45 }
 0x388   : > { %v20711_v16 = vadd.f32 %v20710_v35, %v20634_v48  ;;  %35603 = vmatmul.mubr.f32.vlgmr.msra.gmra.mxu1 %v36588_v28  ;;  %35618 = vmatmul.mubr.f32.vlgmr.msra.gmra.mxu0 %v36588_v28  ;;  %v20549_v63 = vadd.f32 %v20548_v37, %v37488_v38  ;;  %v20932_v30 = vpop.f32.mrf.mxu0 }
 0x389   : > { %35611 = vmatpush3.msra.mxu1 %v38930_v10  ;;  %35626 = vmatpush3.msra.mxu0 %v38986_v49  ;;  %v35124_v46 = vpop.f32.mrf.mxu1 }
 0x38a   : > { %v20785_v6 = vadd.f32 %v20784_v50, %v20711_v16  ;;  %35612 = vmatprep.mubr.msk.f32.mxu1 %vm36105_vm0, %v39639_v45  ;;  %35620 = vmatprep.subr.mxu1 %v39639_v45  ;;  %v35139_v22 = vpop.f32.mrf.mxu0 }
 0x38b   : > { %35627 = vmatprep.mubr.msk.f32.mxu0 %vm36105_vm0, %v39639_v45  ;;  %35635 = vmatprep.subr.mxu0 %v39639_v45  ;;  %v20858_v5 = vpop.f32.mrf.mxu1 }
 0x38c   : > { %20551 = vrot.lane.b32.xlu1 %v20549_v63, %s36112_s24  ;;  %v20859_v36 = vadd.f32 %v20858_v5, %v20785_v6  ;;  %35613 = vmatmul.mubr.f32.vlgmr.msra.gmra.mxu1 %v36629_v54  ;;  %v21080_v40 = vpop.f32.mrf.mxu0  ;;  %s36010_s24 = scalar_lea.vmem %s32735_s6, 128 }
 0x38d   : > { %35621 = vmatpush3.msra.mxu1 %v38930_v10  ;;  %35628 = vmatmul.mubr.f32.vlgmr.msra.gmra.mxu0 %v36712_v4  ;;  %v35134_v48 = vpop.f32.mrf.mxu1  ;;  %p36011_p13 = scmp.ne.s32.totalorder %s32735_s6, %s36010_s24 }
 0x38e   : > { %35636 = vmatpush3.msra.mxu0 %v39002_v2  ;;  %v20933_v18 = vadd.f32 %v20932_v30, %v20859_v36  ;;  %35622 = vmatprep.mubr.msk.f32.mxu1 %vm36105_vm0, %v39639_v45  ;;  %v35149_v25 = vpop.f32.mrf.mxu0 }
 0x38f   : > { %35630 = vmatprep.subr.mxu1 %v39639_v45  ;;  %35637 = vmatprep.mubr.msk.f32.mxu0 %vm36105_vm0, %v39639_v45  ;;  %v21004_v20 = vpop.f32.mrf.mxu1  ;;  %p36012_p0 = pnand %p36011_p13, %p36188_p3 }
 0x390   : > { %35645 = vmatprep.subr.mxu0 %v39639_v45  ;;  %v21005_v61 = vadd.f32 %v21004_v20, %v20933_v18  ;;  %35623 = vmatmul.mubr.f32.vlgmr.msra.gmra.mxu1 %v36588_v28  ;;  %v21230_v29 = vpop.f32.mrf.mxu0 }
 0x391   : > { %35631 = vmatpush3.msra.mxu1 %v39043_v58  ;;  %35638 = vmatmul.mubr.f32.vlgmr.msra.gmra.mxu0 %v36667_v24  ;;  %v16498_v60 = vpop.permute.xlu0 %16497  ;;  %v35144_v50 = vpop.f32.mrf.mxu1  ;;  %p36013_p1 = pneg %p36012_p0 }
 0x392   : > { %35646 = vmatpush3.msra.mxu0 %v39017_v19  ;;  %16501 = vst.msk [vmem:[%s37500_s8] sm:$0xff] %vm16500_vm9, %v16498_v60  ;;  %v21081_v62 = vadd.f32 %v21080_v40, %v21005_v61  ;;  %35632 = vmatprep.mubr.msk.f32.mxu1 %vm36105_vm0, %v39639_v45  ;;  %v35159_v37 = vpop.f32.mrf.mxu0 }
 0x393   : > { %35640 = vmatprep.subr.mxu1 %v39639_v45  ;;  %35647 = vmatprep.mubr.msk.f32.mxu0 %vm36105_vm0, %v39639_v45  ;;  %v21156_v9 = vpop.f32.mrf.mxu1 }
 0x394   : > { %35655 = vmatprep.subr.mxu0 %v39639_v45  ;;  %v21157_v35 = vadd.f32 %v21156_v9, %v21081_v62  ;;  %35633 = vmatmul.mubr.f32.vlgmr.msra.gmra.mxu1 %v36647_v8  ;;  %v21378_v16 = vpop.f32.mrf.mxu0 }
 0x395   : > { %35641 = vmatpush3.msra.mxu1 %v38986_v49  ;;  %35648 = vmatmul.mubr.f32.vlgmr.msra.gmra.mxu0 %v36647_v8  ;;  %v35154_v63 = vpop.f32.mrf.mxu1 }
 0x396   : > { %35656 = vmatpush3.msra.mxu0 %v38541_v33  ;;  %v21231_v30 = vadd.f32 %v21230_v29, %v21157_v35  ;;  %35642 = vmatprep.mubr.msk.f32.mxu1 %vm36105_vm0, %v39639_v45  ;;  %v35169_v46 = vpop.f32.mrf.mxu0  ;;  %v39753_v35 = vld [vmem:[#allocation27_spill] sm:$0xff] }
 0x397   : > { %35650 = vmatprep.subr.mxu1 %v39639_v45  ;;  %35657 = vmatprep.mubr.msk.f32.mxu0 %vm36105_vm0, %v39639_v45  ;;  %v21304_v59 = vpop.f32.mrf.mxu1 }
 0x398   : > { %35665 = vmatprep.subr.mxu0 %v39639_v45  ;;  %v21305_v6 = vadd.f32 %v21304_v59, %v21231_v30  ;;  %35643 = vmatmul.mubr.f32.vlgmr.msra.gmra.mxu1 %v36685_v47  ;;  %v21526_v22 = vpop.f32.mrf.mxu0  ;;  %v39755_v30 = vld [vmem:[#allocation26_spill] sm:$0xff] }
 0x399   : > { %35651 = vmatpush3.msra.mxu1 %v38986_v49  ;;  %35658 = vmatmul.mubr.f32.vlgmr.msra.gmra.mxu0 %v36292_v53  ;;  %v35164_v5 = vpop.f32.mrf.mxu1 }
 0x39a   : > { %35666 = vmatpush3.msra.mxu0 %v38560_v51  ;;  %v21379_v36 = vadd.f32 %v21378_v16, %v21305_v6  ;;  %35652 = vmatprep.mubr.msk.f32.mxu1 %vm36105_vm0, %v39639_v45  ;;  %v35179_v40 = vpop.f32.mrf.mxu0  ;;  %v39756_v6 = vld [vmem:[#allocation34_spill] sm:$0xff] }
 0x39b   : > { %35660 = vmatprep.subr.mxu1 %v39639_v45  ;;  %35667 = vmatprep.mubr.msk.f32.mxu0 %vm36105_vm0, %v39639_v45  ;;  %v21450_v48 = vpop.f32.mrf.mxu1  ;;  %v39757_v5 = vld [vmem:[#allocation6_spill] sm:$0xff] }
 0x39c   : > { %35675 = vmatprep.subr.mxu0 %v39639_v45  ;;  %v21451_v18 = vadd.f32 %v21450_v48, %v21379_v36  ;;  %35653 = vmatmul.mubr.f32.vlgmr.msra.gmra.mxu1 %v36647_v8  ;;  %v21676_v53 = vpop.f32.mrf.mxu0 }
 0x39d   : > { %35661 = vmatpush3.msra.mxu1 %v38619_v3  ;;  %35668 = vmatmul.mubr.f32.vlgmr.msra.gmra.mxu0 %v36277_v44  ;;  %v35174_v51 = vpop.f32.mrf.mxu1 }
 0x39e   : > { %35676 = vmatpush3.msra.mxu0 %v38579_v27  ;;  %35662 = vmatprep.mubr.msk.f32.mxu1 %vm36105_vm0, %v39639_v45  ;;  %v35189_v25 = vpop.f32.mrf.mxu0 }
 0x39f   : > { %35670 = vmatprep.subr.mxu1 %v39639_v45  ;;  %35677 = vmatprep.mubr.msk.f32.mxu0 %vm36105_vm0, %v39639_v45  ;;  %v21602_v20 = vpop.f32.mrf.mxu1  ;;  %v39759_v25 = vld [vmem:[#allocation14_spill] sm:$0xff] }
 0x3a0   : > { %v21603_v61 = vadd.f32 %v21602_v20, %v21526_v22  ;;  %35663 = vmatmul.mubr.f32.vlgmr.msra.gmra.mxu1 %v36274_v43  ;;  %35685 = vmatprep.subr.mxu0 %v39639_v45  ;;  %v21824_v3 = vpop.f32.mrf.mxu0 }
 0x3a1   : > { %35671 = vmatpush3.msra.mxu1 %v38541_v33  ;;  %35678 = vmatmul.mubr.f32.vlgmr.msra.gmra.mxu0 %v36274_v43  ;;  %v35184_v44 = vpop.f32.mrf.mxu1 }
 0x3a2   : > { %v21677_v27 = vadd.f32 %v21676_v53, %v21603_v61  ;;  %35672 = vmatprep.mubr.msk.f32.mxu1 %vm36105_vm0, %v39639_v45  ;;  %35680 = vmatprep.subr.mxu1 %v39639_v45  ;;  %v35199_v29 = vpop.f32.mrf.mxu0  ;;  %v39758_v53 = vld [vmem:[#allocation8_spill] sm:$0xff]  ;;  %v39760_v61 = vld [vmem:[#allocation30_spill] sm:$0xff] }
 0x3a3   : > { %35686 = vmatpush3.msra.mxu0 %v38488_v13  ;;  %35687 = vmatprep.mubr.msk.f32.mxu0 %vm36105_vm0, %v39639_v45  ;;  %v21750_v60 = vpop.f32.mrf.mxu1 }
 0x3a4   : > { %v21751_v50 = vadd.f32 %v21750_v60, %v21677_v27  ;;  %35673 = vmatmul.mubr.f32.vlgmr.msra.gmra.mxu1 %v39729_v55  ;;  %35695 = vmatprep.subr.mxu0 %v39639_v45  ;;  %v39104_v62 = vpop.f32.mrf.mxu0 }
 0x3a5   : > { %35681 = vmatpush3.msra.mxu1 %v38541_v33  ;;  %35688 = vmatmul.mubr.f32.vlgmr.msra.gmra.mxu0 %v39730_v21  ;;  %v35194_v37 = vpop.f32.mrf.mxu1  ;;  %v39754_v21 = vld [vmem:[#allocation7_spill] sm:$0xff] }
 0x3a6   : > { %v21825_v9 = vadd.f32 %v21824_v3, %v21751_v50  ;;  %35682 = vmatprep.mubr.msk.f32.mxu1 %vm36105_vm0, %v39639_v45  ;;  %35696 = vmatpush3.msra.mxu0 %v39753_v35  ;;  %v35209_v16 = vpop.f32.mrf.mxu0  ;;  %v39762_v37 = vld [vmem:[#allocation9_spill] sm:$0xff] }
 0x3a7   : > { %35697 = vmatprep.mubr.msk.f32.mxu0 %vm36105_vm0, %v39639_v45  ;;  %v21896_v55 = vpop.f32.mrf.mxu1  ;;  %35690 = vmatprep.subr.mxu1 %v39639_v45  ;;  %v39763_v16 = vld [vmem:[#allocation12_spill] sm:$0xff] }
 0x3a8   : > { %v21897_v63 = vadd.f32 %v21896_v55, %v21825_v9  ;;  %35683 = vmatmul.mubr.f32.vlgmr.msra.gmra.mxu1 %v36274_v43  ;;  %35705 = vmatprep.subr.mxu0 %v39639_v45  ;;  %v39116_v33 = vpop.f32.mrf.mxu0 }
 0x3a9   : > { %35698 = vmatmul.mubr.f32.vlgmr.msra.gmra.mxu0 %v39754_v21  ;;  %35691 = vmatpush3.msra.mxu1 %v39755_v30  ;;  %v35204_v46 = vpop.f32.mrf.mxu1 }
 0x3aa   : > { %v39120_v59 = vadd.f32 %v21897_v63, %v21451_v18  ;;  %35706 = vmatpush3.msra.mxu0 %v39756_v6  ;;  %35692 = vmatprep.mubr.msk.f32.mxu1 %vm36105_vm0, %v39639_v45  ;;  %v35219_v22 = vpop.f32.mrf.mxu0  ;;  %v39764_v63 = vld [vmem:[#allocation18_spill] sm:$0xff]  ;;  %v39765_v6 = vld [vmem:[#allocation15_spill] sm:$0xff] }
 0x3ab   : > { %35707 = vmatprep.mubr.msk.f32.mxu0 %vm36105_vm0, %v39639_v45  ;;  %35715 = vmatprep.subr.mxu0 %v39639_v45  ;;  %v39128_v43 = vpop.f32.mrf.mxu1 }
 0x3ac   : > { %35693 = vmatmul.mubr.f32.vlgmr.msra.gmra.mxu1 %v39757_v5  ;;  %35700 = vmatprep.subr.mxu1 %v39639_v45  ;;  %v39132_v36 = vpop.f32.mrf.mxu0 }
 0x3ad   : > { %35708 = vmatmul.mubr.f32.vlgmr.msra.gmra.mxu0 %v39757_v5  ;;  %35701 = vmatpush3.msra.mxu1 %v38488_v13  ;;  %v35214_v40 = vpop.f32.mrf.mxu1 }
 0x3ae   : > { %35716 = vmatpush3.msra.mxu0 %v38606_v57  ;;  %35702 = vmatprep.mubr.msk.f32.mxu1 %vm36105_vm0, %v39639_v45  ;;  %v35229_v48 = vpop.f32.mrf.mxu0  ;;  %v39766_v40 = vld [vmem:[#allocation13_spill] sm:$0xff] }
 0x3af   : > { %35717 = vmatprep.mubr.msk.f32.mxu0 %vm36105_vm0, %v39639_v45  ;;  %35725 = vmatprep.subr.mxu0 %v39639_v45  ;;  %v39142_v18 = vpop.f32.mrf.mxu1 }
 0x3b0   : > { %35703 = vmatmul.mubr.f32.vlgmr.msra.gmra.mxu1 %v39758_v53  ;;  %35710 = vmatprep.subr.mxu1 %v39639_v45  ;;  %v39146_v51 = vpop.f32.mrf.mxu0 }
 0x3b1   : > { %35718 = vmatmul.mubr.f32.vlgmr.msra.gmra.mxu0 %v39759_v25  ;;  %35711 = vmatpush3.msra.mxu1 %v38488_v13  ;;  %v35224_v20 = vpop.f32.mrf.mxu1  ;;  %v39761_v13 = vld [vmem:[#allocation11_spill] sm:$0xff]  ;;  %v39767_v25 = vld [vmem:[#allocation16_spill] sm:$0xff] }
 0x3b2   : > { %35726 = vmatpush3.msra.mxu0 %v39760_v61  ;;  %35712 = vmatprep.mubr.msk.f32.mxu1 %vm36105_vm0, %v39639_v45  ;;  %v35239_v3 = vpop.f32.mrf.mxu0  ;;  %v39768_v61 = vld [vmem:[#allocation21_spill] sm:$0xff] }
 0x3b3   : > { %35720 = vmatprep.subr.mxu1 %v39639_v45  ;;  %35727 = vmatprep.mubr.msk.f32.mxu0 %vm36105_vm0, %v39639_v45  ;;  %v39156_v44 = vpop.f32.mrf.mxu1 }
 0x3b4   : > { %35735 = vmatprep.subr.mxu0 %v39639_v45  ;;  %35713 = vmatmul.mubr.f32.vlgmr.msra.gmra.mxu1 %v39757_v5  ;;  %v39160_v27 = vpop.f32.mrf.mxu0 }
 0x3b5   : > { %35721 = vmatpush3.msra.mxu1 %v38661_v0  ;;  %35728 = vmatmul.mubr.f32.vlgmr.msra.gmra.mxu0 %v39761_v13  ;;  %v35234_v29 = vpop.f32.mrf.mxu1 }
 0x3b6   : > { %35736 = vmatpush3.msra.mxu0 %v38635_v39  ;;  %35722 = vmatprep.mubr.msk.f32.mxu1 %vm36105_vm0, %v39639_v45  ;;  %v35249_v60 = vpop.f32.mrf.mxu0 }
 0x3b7   : > { %35730 = vmatprep.subr.mxu1 %v39639_v45  ;;  %35737 = vmatprep.mubr.msk.f32.mxu0 %vm36105_vm0, %v39639_v45  ;;  %v39170_v50 = vpop.f32.mrf.mxu1 }
 0x3b8   : > { %35723 = vmatmul.mubr.f32.vlgmr.msra.gmra.mxu1 %v39762_v37  ;;  %35745 = vmatprep.subr.mxu0 %v39639_v45  ;;  %v39174_v0 = vpop.f32.mrf.mxu0 }
 0x3b9   : > { %35731 = vmatpush3.msra.mxu1 %v38606_v57  ;;  %35738 = vmatmul.mubr.f32.vlgmr.msra.gmra.mxu0 %v39762_v37  ;;  %v35244_v39 = vpop.f32.mrf.mxu1 }
 0x3ba   : > { %35732 = vmatprep.mubr.msk.f32.mxu1 %vm36105_vm0, %v39639_v45  ;;  %35740 = vmatprep.subr.mxu1 %v39639_v45  ;;  %v35259_v9 = vpop.f32.mrf.mxu0 }
 0x3bb   : > { %35746 = vmatpush3.msra.mxu0 %v38876_v26  ;;  %35747 = vmatprep.mubr.msk.f32.mxu0 %vm36105_vm0, %v39639_v45  ;;  %v39184_v35 = vpop.f32.mrf.mxu1 }
 0x3bc   : > { %35733 = vmatmul.mubr.f32.vlgmr.msra.gmra.mxu1 %v39763_v16  ;;  %35755 = vmatprep.subr.mxu0 %v39639_v45  ;;  %v39188_v55 = vpop.f32.mrf.mxu0 }
 0x3bd   : > { %35741 = vmatpush3.msra.mxu1 %v38606_v57  ;;  %35748 = vmatmul.mubr.f32.vlgmr.msra.gmra.mxu0 %v39764_v63  ;;  %v35254_v21 = vpop.f32.mrf.mxu1 }
 0x3be   : > { %35742 = vmatprep.mubr.msk.f32.mxu1 %vm36105_vm0, %v39639_v45  ;;  %35756 = vmatpush3.msra.mxu0 %v38893_v56  ;;  %v35269_v30 = vpop.f32.mrf.mxu0 }
 0x3bf   : > { %35757 = vmatprep.mubr.msk.f32.mxu0 %vm36105_vm0, %v39639_v45  ;;  %v39197_v46 = vpop.f32.mrf.mxu1  ;;  %35750 = vmatprep.subr.mxu1 %v39639_v45 }
 0x3c0   : > { %35743 = vmatmul.mubr.f32.vlgmr.msra.gmra.mxu1 %v39762_v37  ;;  %35765 = vmatprep.subr.mxu0 %v39639_v45  ;;  %v39202_v57 = vpop.f32.mrf.mxu0  ;;  %v39770_v37 = vld [vmem:[#allocation33_spill] sm:$0xff] }
 0x3c1   : > { %35758 = vmatmul.mubr.f32.vlgmr.msra.gmra.mxu0 %v39765_v6  ;;  %35751 = vmatpush3.msra.mxu1 %v38954_v7  ;;  %v35264_v22 = vpop.f32.mrf.mxu1  ;;  %v31360_v39 = vsel %vm243_vm5, %v39770_v37, 0  ;;  %v22050_v6 = vadd.f32 %v39128_v43, %v39104_v62  ;;  %v22497_v62 = vadd.f32 %v39170_v50, %v39146_v51  ;;  %v39774_v50 = vld [vmem:[#allocation22_spill] sm:$0xff] }
 0x3c2   : > { %35766 = vmatpush3.msra.mxu0 %v38915_v34  ;;  %35752 = vmatprep.mubr.msk.f32.mxu1 %vm36105_vm0, %v39639_v45  ;;  %v35279_v56 = vpop.f32.mrf.mxu0  ;;  %v39260_v63 = vand.u32 4294901760, %v31360_v39  ;;  %v39771_v22 = vld [vmem:[#allocation20_spill] sm:$0xff] }
 0x3c3   : > { %35767 = vmatprep.mubr.msk.f32.mxu0 %vm36105_vm0, %v39639_v45  ;;  %35775 = vmatprep.subr.mxu0 %v39639_v45  ;;  %v39212_v5 = vpop.f32.mrf.mxu1 }
 0x3c4   : > { %35753 = vmatmul.mubr.f32.vlgmr.msra.gmra.mxu1 %v39766_v40  ;;  %35760 = vmatprep.subr.mxu1 %v39639_v45  ;;  %v39216_v48 = vpop.f32.mrf.mxu0  ;;  %v22944_v51 = vadd.f32 %v39212_v5, %v39188_v55 }
 0x3c5   : > { %35768 = vmatmul.mubr.f32.vlgmr.msra.gmra.mxu0 %v39766_v40  ;;  %35761 = vmatpush3.msra.mxu1 %v38876_v26  ;;  %v35274_v34 = vpop.f32.mrf.mxu1 }
 0x3c6   : > { %35776 = vmatpush3.msra.mxu0 %v38930_v10  ;;  %35762 = vmatprep.mubr.msk.f32.mxu1 %vm36105_vm0, %v39639_v45  ;;  %v35289_v7 = vpop.f32.mrf.mxu0  ;;  %v39772_v34 = vld [vmem:[#allocation24_spill] sm:$0xff]  ;;  %v23018_v37 = vadd.f32 %v39202_v57, %v22944_v51 }
 0x3c7   : > { %35777 = vmatprep.mubr.msk.f32.mxu0 %vm36105_vm0, %v39639_v45  ;;  %35785 = vmatprep.subr.mxu0 %v39639_v45  ;;  %v39226_v53 = vpop.f32.mrf.mxu1 }
 0x3c8   : > { %35763 = vmatmul.mubr.f32.vlgmr.msra.gmra.mxu1 %v39767_v25  ;;  %35770 = vmatprep.subr.mxu1 %v39639_v45  ;;  %v39230_v20 = vpop.f32.mrf.mxu0 }
 0x3c9   : > { %35778 = vmatmul.mubr.f32.vlgmr.msra.gmra.mxu0 %v39768_v61  ;;  %35771 = vmatpush3.msra.mxu1 %v38876_v26  ;;  %v35284_v3 = vpop.f32.mrf.mxu1  ;;  %v39769_v26 = vld [vmem:[#allocation19_spill] sm:$0xff] }
 0x3ca   : > { %35786 = vmatpush3.msra.mxu0 %v38949_v41  ;;  %35772 = vmatprep.mubr.msk.f32.mxu1 %vm36105_vm0, %v39639_v45  ;;  %v35299_v13 = vpop.f32.mrf.mxu0  ;;  %v39773_v3 = vld [vmem:[#allocation23_spill] sm:$0xff] }
 0x3cb   : > { %35780 = vmatprep.subr.mxu1 %v39639_v45  ;;  %35787 = vmatprep.mubr.msk.f32.mxu0 %vm36105_vm0, %v39639_v45  ;;  %v39240_v29 = vpop.f32.mrf.mxu1  ;;  %v31811_v13 = vsel %vm243_vm5, %v39773_v3, 0 }
 0x3cc   : > { %35795 = vmatprep.subr.mxu0 %v39639_v45  ;;  %35773 = vmatmul.mubr.f32.vlgmr.msra.gmra.mxu1 %v39766_v40  ;;  %v39244_v60 = vpop.f32.mrf.mxu0  ;;  %v39277_v40 = vsub.f32 %v31360_v39, %v39260_v63 }
 0x3cd   : > { %35781 = vmatpush3.msra.mxu1 %v39006_v32  ;;  %35788 = vmatmul.mubr.f32.vlgmr.msra.gmra.mxu0 %v39769_v26  ;;  %v35294_v41 = vpop.f32.mrf.mxu1 }
 0x3ce   : > { %35796 = vmatpush3.msra.mxu0 %v38968_v17  ;;  %35782 = vmatprep.mubr.msk.f32.mxu1 %vm36105_vm0, %v39639_v45  ;;  %v35309_v9 = vpop.f32.mrf.mxu0  ;;  %v31471_v61 = vand.u32 4294901760, %v39277_v40 }
 0x3cf   : > { %35790 = vmatprep.subr.mxu1 %v39639_v45  ;;  %35797 = vmatprep.mubr.msk.f32.mxu0 %vm36105_vm0, %v39639_v45  ;;  %v23402_v16 = vpop.f32.mrf.mxu1 }
 0x3d0   : > { %35805 = vmatprep.subr.mxu0 %v39639_v45  ;;  %35783 = vmatmul.mubr.f32.vlgmr.msra.gmra.mxu1 %v39693_v11  ;;  %v39258_v32 = vpop.f32.mrf.mxu0  ;;  %v23403_v41 = vadd.f32 %v23402_v16, %v39230_v20  ;;  %v31472_v39 = vsub.f32 %v39277_v40, %v31471_v61 }
 0x3d1   : > { %35791 = vmatpush3.msra.mxu1 %v38930_v10  ;;  %35798 = vmatmul.mubr.f32.vlgmr.msra.gmra.mxu0 %v39693_v11  ;;  %v35304_v17 = vpop.f32.mrf.mxu1 }
 0x3d2   : > { %35806 = vmatpush3.msra.mxu0 %v38986_v49  ;;  %35792 = vmatprep.mubr.msk.f32.mxu1 %vm36105_vm0, %v39639_v45  ;;  %v35319_v21 = vpop.f32.mrf.mxu0  ;;  %v23477_v57 = vadd.f32 %v39244_v60, %v23403_v41  ;;  %v31473_v60 = vand.u32 4294901760, %v31472_v39 }
 0x3d3   : > { %35800 = vmatprep.subr.mxu1 %v39639_v45  ;;  %35807 = vmatprep.mubr.msk.f32.mxu0 %vm36105_vm0, %v39639_v45  ;;  %v39270_v30 = vpop.f32.mrf.mxu1 }
 0x3d4   : > { %35815 = vmatprep.subr.mxu0 %v39639_v45  ;;  %35793 = vmatmul.mubr.f32.vlgmr.msra.gmra.mxu1 %v39771_v22  ;;  %v23777_v56 = vpop.f32.mrf.mxu0 }
 0x3d5   : > { %35801 = vmatpush3.msra.mxu1 %v38930_v10  ;;  %35808 = vmatmul.mubr.f32.vlgmr.msra.gmra.mxu0 %v39772_v34  ;;  %v35314_v7 = vpop.f32.mrf.mxu1  ;;  %v22124_v10 = vadd.f32 %v39116_v33, %v22050_v6  ;;  %v22571_v33 = vadd.f32 %v39160_v27, %v22497_v62  ;;  %v23551_v34 = vadd.f32 %v39270_v30, %v23477_v57  ;;  %v39775_v62 = vld [vmem:[#allocation36_spill] sm:$0xff] }
 0x3d6   : > { %35816 = vmatpush3.msra.mxu0 %v39002_v2  ;;  %35802 = vmatprep.mubr.msk.f32.mxu1 %vm36105_vm0, %v39639_v45  ;;  %v35329_v25 = vpop.f32.mrf.mxu0 }
 0x3d7   : > { %35810 = vmatprep.subr.mxu1 %v39639_v45  ;;  %35817 = vmatprep.mubr.msk.f32.mxu0 %vm36105_vm0, %v39639_v45  ;;  %v39289_v43 = vpop.f32.mrf.mxu1  ;;  %v22198_v5 = vadd.f32 %v39142_v18, %v22124_v10  ;;  %v22645_v9 = vadd.f32 %v39184_v35, %v22571_v33  ;;  %v23092_v35 = vadd.f32 %v39226_v53, %v23018_v37 }
 0x3d8   : > { %35825 = vmatprep.subr.mxu0 %v39639_v45  ;;  %35803 = vmatmul.mubr.f32.vlgmr.msra.gmra.mxu1 %v39693_v11  ;;  %v23927_v2 = vpop.f32.mrf.mxu0 }
 0x3d9   : > { %35811 = vmatpush3.msra.mxu1 %v39043_v58  ;;  %35818 = vmatmul.mubr.f32.vlgmr.msra.gmra.mxu0 %v39774_v50  ;;  %v35324_v26 = vpop.f32.mrf.mxu1  ;;  %v39309_v58 = vand.u32 4294901760, %v31811_v13  ;;  %v22272_v17 = vadd.f32 %v39132_v36, %v22198_v5  ;;  %v23166_v25 = vadd.f32 %v39216_v48, %v23092_v35 }
 0x3da   : > { %35826 = vmatpush3.msra.mxu0 %v39017_v19  ;;  %35812 = vmatprep.mubr.msk.f32.mxu1 %vm36105_vm0, %v39639_v45  ;;  %v35339_v11 = vpop.f32.mrf.mxu0 }
 0x3db   : > { %35820 = vmatprep.subr.mxu1 %v39639_v45  ;;  %35827 = vmatprep.mubr.msk.f32.mxu0 %vm36105_vm0, %v39639_v45  ;;  %v23853_v55 = vpop.f32.mrf.mxu1  ;;  %v39329_v16 = vsub.f32 %v31811_v13, %v39309_v58 }
 0x3dc   : > { %35813 = vmatmul.mubr.f32.vlgmr.msra.gmra.mxu1 %v36469_v52  ;;  %35835 = vmatprep.subr.mxu0 %v39639_v45  ;;  %v24075_v19 = vpop.f32.mrf.mxu0  ;;  %v23854_v27 = vadd.f32 %v23853_v55, %v23777_v56 }
 0x3dd   : > { %35821 = vmatpush3.msra.mxu1 %v38986_v49  ;;  %35828 = vmatmul.mubr.f32.vlgmr.msra.gmra.mxu0 %v36469_v52  ;;  %v35334_v20 = vpop.f32.mrf.mxu1 }
 0x3de   : > { %35822 = vmatprep.mubr.msk.f32.mxu1 %vm36105_vm0, %v39639_v45  ;;  %35830 = vmatprep.subr.mxu1 %v39639_v45  ;;  %v35349_v18 = vpop.f32.mrf.mxu0  ;;  %v23928_v22 = vadd.f32 %v23927_v2, %v23854_v27  ;;  %v23625_v2 = vadd.f32 %v39258_v32, %v23551_v34 }
 0x3df   : > { %35836 = vmatpush3.msra.mxu0 %v39260_v63  ;;  %35837 = vmatprep.mubr.msk.f32.mxu0 %vm36105_vm0, %v39639_v45 }
 0x3e0   : > { %v24001_v21 = vpop.f32.mrf.mxu1  ;;  %35823 = vmatmul.mubr.f32.vlgmr.msra.gmra.mxu1 %v36510_v1  ;;  %35845 = vmatprep.subr.mxu0 %v39639_v45  ;;  %v24228_v6 = vpop.f32.mrf.mxu0  ;;  %v22719_v1 = vadd.f32 %v39174_v0, %v22645_v9  ;;  %v23697_v26 = vadd.f32 %v39289_v43, %v23625_v2 }
 0x3e1   : > { %35831 = vmatpush3.msra.mxu1 %v38986_v49  ;;  %35838 = vmatmul.mubr.f32.vlgmr.msra.gmra.mxu0 %v36601_v31  ;;  %v31922_v49 = vand.u32 4294901760, %v39329_v16  ;;  %v22344_v31 = vadd.f32 %v39156_v44, %v22272_v17  ;;  %v24002_v0 = vadd.f32 %v24001_v21, %v23928_v22 }
 0x3e2   : > { %v35344_v56 = vpop.f32.mrf.mxu1  ;;  %35832 = vmatprep.mubr.msk.f32.mxu1 %vm36105_vm0, %v39639_v45  ;;  %35846 = vmatpush3.msra.mxu0 %v39277_v40  ;;  %v35359_v36 = vpop.f32.mrf.mxu0  ;;  %v22791_v10 = vadd.f32 %v39197_v46, %v22719_v1  ;;  %v23238_v46 = vadd.f32 %v39240_v29, %v23166_v25 }
 0x3e3   : > { %35847 = vmatprep.mubr.msk.f32.mxu0 %vm36105_vm0, %v39639_v45  ;;  %35840 = vmatprep.subr.mxu1 %v39639_v45  ;;  %v22347_v48 = vadd.f32 %v22344_v31, %v39120_v59  ;;  %v24076_v32 = vadd.f32 %v24075_v19, %v24002_v0 }
 0x3e4   : > { %v24147_v53 = vpop.f32.mrf.mxu1  ;;  %35833 = vmatmul.mubr.f32.vlgmr.msra.gmra.mxu1 %v36469_v52  ;;  %35855 = vmatprep.subr.mxu0 %v39639_v45  ;;  %v24378_v7 = vpop.f32.mrf.mxu0  ;;  %v32262_v52 = vsel %vm243_vm5, %v39775_v62, 0 }
 0x3e5   : > { %35848 = vmatmul.mubr.f32.vlgmr.msra.gmra.mxu0 %v36549_v12  ;;  %35841 = vmatpush3.msra.mxu1 %v31473_v60  ;;  %v31923_v12 = vsub.f32 %v39329_v16, %v31922_v49  ;;  %v39371_v13 = vand.u32 4294901760, %v32262_v52  ;;  %v22794_v50 = vadd.f32 %v22791_v10, %v22347_v48  ;;  %v24148_v5 = vadd.f32 %v24147_v53, %v24076_v32 }
 0x3e6   : > { %v35354_v30 = vpop.f32.mrf.mxu1  ;;  %35842 = vmatprep.mubr.msk.f32.mxu1 %vm36105_vm0, %v39639_v45  ;;  %35856 = vmatpush3.msra.mxu0 %v31471_v61  ;;  %v35369_v44 = vpop.f32.mrf.mxu0 }
 0x3e7   : > { %35857 = vmatprep.mubr.msk.f32.mxu0 %vm36105_vm0, %v39639_v45  ;;  %35850 = vmatprep.subr.mxu1 %v39639_v45  ;;  %v31924_v41 = vand.u32 4294901760, %v31923_v12  ;;  %v23241_v55 = vadd.f32 %v23238_v46, %v22794_v50  ;;  %v39385_v43 = vsub.f32 %v32262_v52, %v39371_v13 }
 0x3e8   : > { %v24304_v40 = vpop.f32.mrf.mxu1  ;;  %35843 = vmatmul.mubr.f32.vlgmr.msra.gmra.mxu1 %v39653_v15  ;;  %35865 = vmatprep.subr.mxu0 %v39639_v45  ;;  %v24526_v61 = vpop.f32.mrf.mxu0 }
 0x3e9   : > { %v24305_v3 = vadd.f32 %v24304_v40, %v24228_v6  ;;  %35858 = vmatmul.mubr.f32.vlgmr.msra.gmra.mxu0 %v39653_v15  ;;  %35851 = vmatpush3.msra.mxu1 %v39260_v63  ;;  %v23700_v27 = vadd.f32 %v23697_v26, %v23241_v55  ;;  %v32373_v9 = vand.u32 4294901760, %v39385_v43 }
 0x3ea   : > { %35866 = vmatpush3.msra.mxu0 %v39309_v58  ;;  %v35364_v51 = vpop.f32.mrf.mxu1  ;;  %35852 = vmatprep.mubr.msk.f32.mxu1 %vm36105_vm0, %v39639_v45  ;;  %v35379_v59 = vpop.f32.mrf.mxu0 }
 0x3eb   : > { %v24379_v11 = vadd.f32 %v24378_v7, %v24305_v3  ;;  %35867 = vmatprep.mubr.msk.f32.mxu0 %vm36105_vm0, %v39639_v45  ;;  %35875 = vmatprep.subr.mxu0 %v39639_v45  ;;  %v24151_v39 = vadd.f32 %v24148_v5, %v23700_v27  ;;  %v32374_v35 = vsub.f32 %v39385_v43, %v32373_v9 }
 0x3ec   : > { %v24452_v29 = vpop.f32.mrf.mxu1  ;;  %35853 = vmatmul.mubr.f32.vlgmr.msra.gmra.mxu1 %v39654_v14  ;;  %35860 = vmatprep.subr.mxu1 %v39639_v45  ;;  %v24688_v33 = vpop.f32.mrf.mxu0 }
 0x3ed   : > { %v24453_v19 = vadd.f32 %v24452_v29, %v24379_v11  ;;  %35868 = vmatmul.mubr.f32.vlgmr.msra.gmra.mxu0 %v39656_v23  ;;  %35861 = vmatpush3.msra.mxu1 %v39260_v63 }
 0x3ee   : > { %35876 = vmatpush3.msra.mxu0 %v39329_v16  ;;  %v35374_v37 = vpop.f32.mrf.mxu1  ;;  %35862 = vmatprep.mubr.msk.f32.mxu1 %vm36105_vm0, %v39639_v45  ;;  %v35389_v14 = vpop.f32.mrf.mxu0 }
 0x3ef   : > { %v24527_v20 = vadd.f32 %v24526_v61, %v24453_v19  ;;  %35870 = vmatprep.subr.mxu1 %v39639_v45  ;;  %35877 = vmatprep.mubr.msk.f32.mxu0 %vm36105_vm0, %v39639_v45 }
 0x3f0   : > { %35885 = vmatprep.subr.mxu0 %v39639_v45  ;;  %v24598_v23 = vpop.f32.mrf.mxu1  ;;  %35863 = vmatmul.mubr.f32.vlgmr.msra.gmra.mxu1 %v39653_v15  ;;  %v24838_v63 = vpop.f32.mrf.mxu0 }
 0x3f1   : > { %v24599_v18 = vadd.f32 %v24598_v23, %v24527_v20  ;;  %35871 = vmatpush3.msra.mxu1 %v31924_v41  ;;  %35878 = vmatmul.mubr.f32.vlgmr.msra.gmra.mxu0 %v39658_v42 }
 0x3f2   : > { %35886 = vmatpush3.msra.mxu0 %v31922_v49  ;;  %v35384_v57 = vpop.f32.mrf.mxu1  ;;  %35872 = vmatprep.mubr.msk.f32.mxu1 %vm36105_vm0, %v39639_v45  ;;  %v35399_v17 = vpop.f32.mrf.mxu0  ;;  %v32375_v49 = vand.u32 4294901760, %v32374_v35 }
 0x3f3   : > { %v24602_v21 = vadd.f32 %v24599_v18, %v24151_v39  ;;  %35880 = vmatprep.subr.mxu1 %v39639_v45  ;;  %35887 = vmatprep.mubr.msk.f32.mxu0 %vm36105_vm0, %v39639_v45 }
 0x3f4   : > { %v24764_v15 = vpop.f32.mrf.mxu1  ;;  %35873 = vmatmul.mubr.f32.vlgmr.msra.gmra.mxu1 %v36588_v28  ;;  %35895 = vmatprep.subr.mxu0 %v39639_v45  ;;  %v24986_v42 = vpop.f32.mrf.mxu0 }
 0x3f5   : > { %v24765_v6 = vadd.f32 %v24764_v15, %v24688_v33  ;;  %35881 = vmatpush3.msra.mxu1 %v39309_v58  ;;  %35888 = vmatmul.mubr.f32.vlgmr.msra.gmra.mxu0 %v36588_v28  ;;  %v24603_v16 = vadd.f32 %v24602_v21, %v37488_v38 }
 0x3f6   : > { %35896 = vmatpush3.msra.mxu0 %v39371_v13  ;;  %v35394_v22 = vpop.f32.mrf.mxu1  ;;  %35882 = vmatprep.mubr.msk.f32.mxu1 %vm36105_vm0, %v39639_v45  ;;  %v35409_v60 = vpop.f32.mrf.mxu0 }
 0x3f7   : > { %v24839_v56 = vadd.f32 %v24838_v63, %v24765_v6  ;;  %35890 = vmatprep.subr.mxu1 %v39639_v45  ;;  %35897 = vmatprep.mubr.msk.f32.mxu0 %vm36105_vm0, %v39639_v45 }
 0x3f8   : > { %35905 = vmatprep.subr.mxu0 %v39639_v45  ;;  %24605 = vrot.lane.b32.xlu0 %v24603_v16, %s36113_s27  ;;  %v24912_v36 = vpop.f32.mrf.mxu1  ;;  %v25134_v1 = vpop.f32.mrf.mxu0  ;;  %s36016_s27 = scalar_lea.vmem %s36015_s15, 256 }
 0x3f9   : > { %v24913_v34 = vadd.f32 %v24912_v36, %v24839_v56  ;;  %35883 = vmatmul.mubr.f32.vlgmr.msra.gmra.mxu1 %v36629_v54  ;;  %35898 = vmatmul.mubr.f32.vlgmr.msra.gmra.mxu0 %v36712_v4  ;;  %p36018_p4 = scmp.lt.s32.totalorder %s36016_s27, %s36010_s24 }
 0x3fa   : > { %35891 = vmatpush3.msra.mxu1 %v39309_v58  ;;  %35906 = vmatpush3.msra.mxu0 %v39385_v43  ;;  %v35404_v31 = vpop.f32.mrf.mxu1  ;;  %v35419_v53 = vpop.f32.mrf.mxu0 }
 0x3fb   : > { %v24987_v7 = vadd.f32 %v24986_v42, %v24913_v34  ;;  %35892 = vmatprep.mubr.msk.f32.mxu1 %vm36105_vm0, %v39639_v45  ;;  %35900 = vmatprep.subr.mxu1 %v39639_v45  ;;  %p36019_p5 = por %p36018_p4, %p36017_p2 }
 0x3fc   : > { %35907 = vmatprep.mubr.msk.f32.mxu0 %vm36105_vm0, %v39639_v45  ;;  %35915 = vmatprep.subr.mxu0 %v39639_v45  ;;  %v25058_v54 = vpop.f32.mrf.mxu1  ;;  %v25284_v4 = vpop.f32.mrf.mxu0 }
 0x3fd   : > { %v25059_v58 = vadd.f32 %v25058_v54, %v24987_v7  ;;  %35893 = vmatmul.mubr.f32.vlgmr.msra.gmra.mxu1 %v36588_v28  ;;  %35908 = vmatmul.mubr.f32.vlgmr.msra.gmra.mxu0 %v36667_v24  ;;  %p36020_p6 = pnand %p36019_p5, %p36013_p1 }
 0x3fe   : > { %35901 = vmatpush3.msra.mxu1 %v32375_v49  ;;  %35916 = vmatpush3.msra.mxu0 %v32373_v9  ;;  %v20552_v25 = vpop.permute.xlu1 %20551  ;;  %v35414_v0 = vpop.f32.mrf.mxu1 }
 0x3ff   : > { %20555 = vst.msk [vmem:[%s37500_s8] sm:$0xff] %vm20554_vm10, %v20552_v25  ;;  %v25135_v30 = vadd.f32 %v25134_v1, %v25059_v58  ;;  %35902 = vmatprep.mubr.msk.f32.mxu1 %vm36105_vm0, %v39639_v45  ;;  %35910 = vmatprep.subr.mxu1 %v39639_v45  ;;  %v35429_v44 = vpop.f32.mrf.mxu0 }
 0x400   : > { %v25210_v62 = vpop.f32.mrf.mxu1  ;;  %35917 = vmatprep.mubr.msk.f32.mxu0 %vm36105_vm0, %v39639_v45 }
 0x401   : > { %v25211_v52 = vadd.f32 %v25210_v62, %v25135_v30  ;;  %35903 = vmatmul.mubr.f32.vlgmr.msra.gmra.mxu1 %v36647_v8  ;;  %v25432_v28 = vpop.f32.mrf.mxu0  ;;  %35918 = vmatmul.mubr.f32.vlgmr.msra.gmra.mxu0 %v36647_v8 }
 0x402   : > { %35911 = vmatpush3.msra.mxu1 %v39371_v13  ;;  %v35424_v24 = vpop.f32.mrf.mxu1  ;;  %35912 = vmatprep.mubr.msk.f32.mxu1 %vm36105_vm0, %v39639_v45 }
 0x403   : > { %v25285_v10 = vadd.f32 %v25284_v4, %v25211_v52  ;;  %35920 = vmatprep.subr.mxu1 %v39639_v45  ;;  %v35439_v2 = vpop.f32.mrf.mxu0 }
 0x404   : > { %v25358_v12 = vpop.f32.mrf.mxu1 }
 0x405   : > { %v25359_v48 = vadd.f32 %v25358_v12, %v25285_v10  ;;  %35913 = vmatmul.mubr.f32.vlgmr.msra.gmra.mxu1 %v36685_v47  ;;  %v25580_v40 = vpop.f32.mrf.mxu0 }
 0x406   : > { %35921 = vmatpush3.msra.mxu1 %v39371_v13  ;;  %v35434_v61 = vpop.f32.mrf.mxu1  ;;  %35922 = vmatprep.mubr.msk.f32.mxu1 %vm36105_vm0, %v39639_v45 }
 0x407   : > { %v25433_v46 = vadd.f32 %v25432_v28, %v25359_v48  ;;  %v35449_v32 = vpop.f32.mrf.mxu0 }
 0x408   : > { %v25504_v3 = vpop.f32.mrf.mxu1 }
 0x409   : > { %v25505_v51 = vadd.f32 %v25504_v3, %v25433_v46  ;;  %35923 = vmatmul.mubr.f32.vlgmr.msra.gmra.mxu1 %v36647_v8  ;;  %v25730_v59 = vpop.f32.mrf.mxu0 }
 0x40a   : > { %v35444_v50 = vpop.f32.mrf.mxu1 }
 0x40b   : > { %v35459_v26 = vpop.f32.mrf.mxu0 }
 0x40c   : > { %v25656_v11 = vpop.f32.mrf.mxu1 }
 0x40d   : > { %v25657_v29 = vadd.f32 %v25656_v11, %v25580_v40  ;;  %v25878_v33 = vpop.f32.mrf.mxu0 }
 0x40e   : > { %v35454_v47 = vpop.f32.mrf.mxu1 }
 0x40f   : > { %v25731_v41 = vadd.f32 %v25730_v59, %v25657_v29  ;;  %v35469_v55 = vpop.f32.mrf.mxu0 }
 0x410   : > { %v25804_v13 = vpop.f32.mrf.mxu1 }
 0x411   : > { %v25805_v5 = vadd.f32 %v25804_v13, %v25731_v41  ;;  %v26027_v19 = vpop.f32.mrf.mxu0 }
 0x412   : > { %v35464_v43 = vpop.f32.mrf.mxu1 }
 0x413   : > { %v25879_v45 = vadd.f32 %v25878_v33, %v25805_v5  ;;  %v35479_v37 = vpop.f32.mrf.mxu0 }
 0x414   : > { %v25950_v14 = vpop.f32.mrf.mxu1 }
 0x415   : > { %v25951_v27 = vadd.f32 %v25950_v14, %v25879_v45  ;;  %v26177_v20 = vpop.f32.mrf.mxu0 }
 0x416   : > { %v35474_v23 = vpop.f32.mrf.mxu1 }
 0x417   : > { %v39446_v8 = vadd.f32 %v25951_v27, %v25505_v51  ;;  %v35489_v63 = vpop.f32.mrf.mxu0 }
 0x418   : > { %v26103_v39 = vpop.f32.mrf.mxu1 }
 0x419   : > { %v39448_v18 = vpop.f32.mrf.mxu0  ;;  %v26104_v51 = vadd.f32 %v26103_v39, %v26027_v19 }
 0x41a   : > { %v35484_v9 = vpop.f32.mrf.mxu1 }
 0x41b   : > { %v35499_v57 = vpop.f32.mrf.mxu0  ;;  %v26178_v33 = vadd.f32 %v26177_v20, %v26104_v51 }
 0x41c   : > { %v26251_v17 = vpop.f32.mrf.mxu1 }
 0x41d   : > { %v26474_v21 = vpop.f32.mrf.mxu0  ;;  %v26252_v37 = vadd.f32 %v26251_v17, %v26178_v33 }
 0x41e   : > { %v35494_v15 = vpop.f32.mrf.mxu1 }
 0x41f   : > { %v35509_v42 = vpop.f32.mrf.mxu0 }
 0x420   : > { %v39450_v6 = vpop.f32.mrf.mxu1 }
 0x421   : > { %v26624_v16 = vpop.f32.mrf.mxu0 }
 0x422   : > { %v35504_v35 = vpop.f32.mrf.mxu1 }
 0x423   : > { %v35519_v22 = vpop.f32.mrf.mxu0 }
 0x424   : > { %v26550_v60 = vpop.f32.mrf.mxu1 }
 0x425   : > { %v26772_v56 = vpop.f32.mrf.mxu0  ;;  %v26551_v26 = vadd.f32 %v26550_v60, %v26474_v21  ;;  %v26326_v21 = vadd.f32 %v39448_v18, %v26252_v37 }
 0x426   : > { %v35514_v36 = vpop.f32.mrf.mxu1 }
 0x427   : > { %v35529_v1 = vpop.f32.mrf.mxu0  ;;  %v26625_v13 = vadd.f32 %v26624_v16, %v26551_v26  ;;  %v26398_v17 = vadd.f32 %v39450_v6, %v26326_v21 }
 0x428   : > { %v26698_v34 = vpop.f32.mrf.mxu1 }
 0x429   : > { %v26921_v49 = vpop.f32.mrf.mxu0  ;;  %v26699_v9 = vadd.f32 %v26698_v34, %v26625_v13  ;;  %v26401_v18 = vadd.f32 %v26398_v17, %v39446_v8 }
 0x42a   : > { %v35524_v31 = vpop.f32.mrf.mxu1 }
 0x42b   : > { %v35539_v53 = vpop.f32.mrf.mxu0  ;;  %v26773_v22 = vadd.f32 %v26772_v56, %v26699_v9 }
 0x42c   : > { %v26844_v7 = vpop.f32.mrf.mxu1 }
 0x42d   : > { %v27071_v54 = vpop.f32.mrf.mxu0  ;;  %v26845_v34 = vadd.f32 %v26844_v7, %v26773_v22 }
 0x42e   : > { %v35534_v4 = vpop.f32.mrf.mxu1 }
 0x42f   : > { %v35549_v58 = vpop.f32.mrf.mxu0 }
 0x430   : > { %v26997_v25 = vpop.f32.mrf.mxu1 }
 0x431   : > { %v27219_v0 = vpop.f32.mrf.mxu0  ;;  %v26998_v47 = vadd.f32 %v26997_v25, %v26921_v49 }
 0x432   : > { %v35544_v30 = vpop.f32.mrf.mxu1 }
 0x433   : > { %v35559_v44 = vpop.f32.mrf.mxu0  ;;  %v27072_v14 = vadd.f32 %v27071_v54, %v26998_v47 }
 0x434   : > { %v27145_v62 = vpop.f32.mrf.mxu1 }
 0x435   : > { %v27380_v52 = vpop.f32.mrf.mxu0  ;;  %v27146_v15 = vadd.f32 %v27145_v62, %v27072_v14 }
 0x436   : > { %v35554_v28 = vpop.f32.mrf.mxu1 }
 0x437   : > { %v35569_v24 = vpop.f32.mrf.mxu0  ;;  %v27220_v1 = vadd.f32 %v27219_v0, %v27146_v15 }
 0x438   : > { %v27291_v10 = vpop.f32.mrf.mxu1 }
 0x439   : > { %v27530_v2 = vpop.f32.mrf.mxu0  ;;  %v27292_v25 = vadd.f32 %v27291_v10, %v27220_v1 }
 0x43a   : > { %v35564_v12 = vpop.f32.mrf.mxu1 }
 0x43b   : > { %v35579_v48 = vpop.f32.mrf.mxu0 }
 0x43c   : > { %v27456_v40 = vpop.f32.mrf.mxu1 }
 0x43d   : > { %v27678_v61 = vpop.f32.mrf.mxu0  ;;  %v27457_v5 = vadd.f32 %v27456_v40, %v27380_v52  ;;  %v26848_v52 = vadd.f32 %v26845_v34, %v26401_v18 }
 0x43e   : > { %v35574_v46 = vpop.f32.mrf.mxu1 }
 0x43f   : > { %v35589_v32 = vpop.f32.mrf.mxu0  ;;  %v27531_v19 = vadd.f32 %v27530_v2, %v27457_v5  ;;  %v27295_v0 = vadd.f32 %v27292_v25, %v26848_v52 }
 0x440   : > { %v27604_v3 = vpop.f32.mrf.mxu1 }
 0x441   : > { %v27831_v59 = vpop.f32.mrf.mxu0  ;;  %v27605_v16 = vadd.f32 %v27604_v3, %v27531_v19 }
 0x442   : > { %v35584_v50 = vpop.f32.mrf.mxu1 }
 0x443   : > { %v35599_v11 = vpop.f32.mrf.mxu0  ;;  %v27679_v54 = vadd.f32 %v27678_v61, %v27605_v16 }
 0x444   : > { %v27750_v29 = vpop.f32.mrf.mxu1 }
 0x445   : > { %v27981_v41 = vpop.f32.mrf.mxu0  ;;  %v27751_v28 = vadd.f32 %v27750_v29, %v27679_v54 }
 0x446   : > { %v35594_v55 = vpop.f32.mrf.mxu1 }
 0x447   : > { %v35609_v43 = vpop.f32.mrf.mxu0  ;;  %v27754_v61 = vadd.f32 %v27751_v28, %v27295_v0 }
 0x448   : > { %v27907_v45 = vpop.f32.mrf.mxu1 }
 0x449   : > { %v27908_v27 = vadd.f32 %v27907_v45, %v27831_v59  ;;  %v28129_v23 = vpop.f32.mrf.mxu0 }
 0x44a   : > { %v35604_v63 = vpop.f32.mrf.mxu1 }
 0x44b   : > { %v35619_v39 = vpop.f32.mrf.mxu0  ;;  %v27982_v20 = vadd.f32 %v27981_v41, %v27908_v27 }
 0x44c   : > { %v28055_v57 = vpop.f32.mrf.mxu1 }
 0x44d   : > { %v28282_v42 = vpop.f32.mrf.mxu0  ;;  %v28056_v49 = vadd.f32 %v28055_v57, %v27982_v20 }
 0x44e   : > { %v35614_v35 = vpop.f32.mrf.mxu1 }
 0x44f   : > { %v35629_v60 = vpop.f32.mrf.mxu0  ;;  %v28130_v30 = vadd.f32 %v28129_v23, %v28056_v49 }
 0x450   : > { %v28201_v36 = vpop.f32.mrf.mxu1 }
 0x451   : > { %v28432_v31 = vpop.f32.mrf.mxu0  ;;  %v28202_v12 = vadd.f32 %v28201_v36, %v28130_v30 }
 0x452   : > { %v35624_v53 = vpop.f32.mrf.mxu1 }
 0x453   : > { %v35639_v4 = vpop.f32.mrf.mxu0  ;;  %v28205_v8 = vadd.f32 %v28202_v12, %v27754_v61 }
 0x454   : > { %v28358_v58 = vpop.f32.mrf.mxu1 }
 0x455   : > { %v28359_v44 = vadd.f32 %v28358_v58, %v28282_v42  ;;  %v28580_v62 = vpop.f32.mrf.mxu0 }
 0x456   : > { %v35634_v56 = vpop.f32.mrf.mxu1 }
 0x457   : > { %v28433_v24 = vadd.f32 %v28432_v31, %v28359_v44  ;;  %v35649_v2 = vpop.f32.mrf.mxu0 }
 0x458   : > { %v28506_v6 = vpop.f32.mrf.mxu1 }
 0x459   : > { %v28507_v48 = vadd.f32 %v28506_v6, %v28433_v24  ;;  %v28742_v40 = vpop.f32.mrf.mxu0 }
 0x45a   : > { %v35644_v7 = vpop.f32.mrf.mxu1 }
 0x45b   : > { %v28581_v46 = vadd.f32 %v28580_v62, %v28507_v48  ;;  %v35659_v32 = vpop.f32.mrf.mxu0 }
 0x45c   : > { %v28652_v3 = vpop.f32.mrf.mxu1 }
 0x45d   : > { %v28653_v10 = vadd.f32 %v28652_v3, %v28581_v46  ;;  %v28892_v51 = vpop.f32.mrf.mxu0 }
 0x45e   : > { %v35654_v59 = vpop.f32.mrf.mxu1 }
 0x45f   : > { %v28656_v50 = vadd.f32 %v28653_v10, %v28205_v8  ;;  %v35669_v26 = vpop.f32.mrf.mxu0 }
 0x460   : > { %v28818_v11 = vpop.f32.mrf.mxu1 }
 0x461   : > { %v28819_v29 = vadd.f32 %v28818_v11, %v28742_v40  ;;  %v28657_v33 = vadd.f32 %v28656_v50, %v37488_v38  ;;  %v29040_v47 = vpop.f32.mrf.mxu0 }
 0x462   : > { %v35664_v41 = vpop.f32.mrf.mxu1 }
 0x463   : > { %v28893_v55 = vadd.f32 %v28892_v51, %v28819_v29  ;;  %28659 = vrot.lane.b32.xlu1 %v28657_v33, %s36114_s28  ;;  %v35679_v13 = vpop.f32.mrf.mxu0 }
 0x464   : > { %v28966_v5 = vpop.f32.mrf.mxu1 }
 0x465   : > { %v28967_v43 = vadd.f32 %v28966_v5, %v28893_v55  ;;  %v29188_v45 = vpop.f32.mrf.mxu0 }
 0x466   : > { %v35674_v37 = vpop.f32.mrf.mxu1 }
 0x467   : > { %v29041_v14 = vadd.f32 %v29040_v47, %v28967_v43  ;;  %v35689_v27 = vpop.f32.mrf.mxu0 }
 0x468   : > { %v29112_v23 = vpop.f32.mrf.mxu1 }
 0x469   : > { %v29113_v63 = vadd.f32 %v29112_v23, %v29041_v14  ;;  %v29338_v9 = vpop.f32.mrf.mxu0 }
 0x46a   : > { %v24606_v19 = vpop.permute.xlu0 %24605  ;;  %v35684_v39 = vpop.f32.mrf.mxu1 }
 0x46b   : > { %24609 = vst.msk [vmem:[%s37500_s8] sm:$0xff] %vm24608_vm11, %v24606_v19  ;;  %v29189_v57 = vadd.f32 %v29188_v45, %v29113_v63  ;;  %v35699_v21 = vpop.f32.mrf.mxu0 }
 0x46c   : > { %v29264_v15 = vpop.f32.mrf.mxu1 }
 0x46d   : > { %v29265_v20 = vadd.f32 %v29264_v15, %v29189_v57  ;;  %v29486_v42 = vpop.f32.mrf.mxu0 }
 0x46e   : > { %v35694_v35 = vpop.f32.mrf.mxu1 }
 0x46f   : > { %v29339_v22 = vadd.f32 %v29338_v9, %v29265_v20  ;;  %v35709_v16 = vpop.f32.mrf.mxu0 }
 0x470   : > { %v29412_v60 = vpop.f32.mrf.mxu1 }
 0x471   : > { %v29413_v36 = vadd.f32 %v29412_v60, %v29339_v22  ;;  %v29634_v17 = vpop.f32.mrf.mxu0 }
 0x472   : > { %v35704_v1 = vpop.f32.mrf.mxu1 }
 0x473   : > { %v29487_v49 = vadd.f32 %v29486_v42, %v29413_v36  ;;  %v35719_v31 = vpop.f32.mrf.mxu0 }
 0x474   : > { %v29558_v53 = vpop.f32.mrf.mxu1 }
 0x475   : > { %v29559_v34 = vadd.f32 %v29558_v53, %v29487_v49  ;;  %v29784_v54 = vpop.f32.mrf.mxu0 }
 0x476   : > { %v35714_v4 = vpop.f32.mrf.mxu1 }
 0x477   : > { %v35729_v58 = vpop.f32.mrf.mxu0 }
 0x478   : > { %v29710_v18 = vpop.f32.mrf.mxu1 }
 0x479   : > { %v29711_v25 = vadd.f32 %v29710_v18, %v29634_v17  ;;  %v29932_v30 = vpop.f32.mrf.mxu0 }
 0x47a   : > { %v35724_v44 = vpop.f32.mrf.mxu1 }
 0x47b   : > { %v29785_v62 = vadd.f32 %v29784_v54, %v29711_v25  ;;  %v35739_v56 = vpop.f32.mrf.mxu0 }
 0x47c   : > { %v29858_v52 = vpop.f32.mrf.mxu1 }
 0x47d   : > { %v29859_v28 = vadd.f32 %v29858_v52, %v29785_v62  ;;  %v30081_v24 = vpop.f32.mrf.mxu0 }
 0x47e   : > { %v35734_v2 = vpop.f32.mrf.mxu1 }
 0x47f   : > { %v29933_v6 = vadd.f32 %v29932_v30, %v29859_v28  ;;  %v35749_v0 = vpop.f32.mrf.mxu0 }
 0x480   : > { %v30004_v12 = vpop.f32.mrf.mxu1 }
 0x481   : > { %v30005_v48 = vadd.f32 %v30004_v12, %v29933_v6  ;;  %v30231_v40 = vpop.f32.mrf.mxu0 }
 0x482   : > { %v35744_v7 = vpop.f32.mrf.mxu1 }
 0x483   : > { %v39457_v61 = vadd.f32 %v30005_v48, %v29559_v34  ;;  %v35759_v46 = vpop.f32.mrf.mxu0 }
 0x484   : > { %v30157_v32 = vpop.f32.mrf.mxu1 }
 0x485   : > { %v39459_v3 = vpop.f32.mrf.mxu0  ;;  %v30158_v54 = vadd.f32 %v30157_v32, %v30081_v24 }
 0x486   : > { %v35754_v8 = vpop.f32.mrf.mxu1 }
 0x487   : > { %v35769_v10 = vpop.f32.mrf.mxu0  ;;  %v30232_v44 = vadd.f32 %v30231_v40, %v30158_v54 }
 0x488   : > { %v30305_v51 = vpop.f32.mrf.mxu1 }
 0x489   : > { %v30528_v59 = vpop.f32.mrf.mxu0  ;;  %v30306_v12 = vadd.f32 %v30305_v51, %v30232_v44 }
 0x48a   : > { %v35764_v50 = vpop.f32.mrf.mxu1 }
 0x48b   : > { %v35779_v26 = vpop.f32.mrf.mxu0 }
 0x48c   : > { %v39461_v11 = vpop.f32.mrf.mxu1 }
 0x48d   : > { %v30678_v29 = vpop.f32.mrf.mxu0 }
 0x48e   : > { %v35774_v33 = vpop.f32.mrf.mxu1 }
 0x48f   : > { %v35789_v47 = vpop.f32.mrf.mxu0 }
 0x490   : > { %v30604_v41 = vpop.f32.mrf.mxu1 }
 0x491   : > { %v30826_v55 = vpop.f32.mrf.mxu0  ;;  %v30605_v18 = vadd.f32 %v30604_v41, %v30528_v59  ;;  %v30380_v59 = vadd.f32 %v39459_v3, %v30306_v12 }
 0x492   : > { %v35784_v13 = vpop.f32.mrf.mxu1 }
 0x493   : > { %v35799_v5 = vpop.f32.mrf.mxu0  ;;  %v30679_v28 = vadd.f32 %v30678_v29, %v30605_v18  ;;  %v30452_v51 = vadd.f32 %v39461_v11, %v30380_v59 }
 0x494   : > { %v30752_v43 = vpop.f32.mrf.mxu1 }
 0x495   : > { %v30975_v45 = vpop.f32.mrf.mxu0  ;;  %v30753_v10 = vadd.f32 %v30752_v43, %v30679_v28  ;;  %v30455_v3 = vadd.f32 %v30452_v51, %v39457_v61 }
 0x496   : > { %v35794_v37 = vpop.f32.mrf.mxu1 }
 0x497   : > { %v35809_v14 = vpop.f32.mrf.mxu0  ;;  %v30827_v41 = vadd.f32 %v30826_v55, %v30753_v10 }
 0x498   : > { %v30898_v27 = vpop.f32.mrf.mxu1 }
 0x499   : > { %v31125_v23 = vpop.f32.mrf.mxu0  ;;  %v30899_v43 = vadd.f32 %v30898_v27, %v30827_v41 }
 0x49a   : > { %v35804_v63 = vpop.f32.mrf.mxu1 }
 0x49b   : > { %v35819_v9 = vpop.f32.mrf.mxu0 }
 0x49c   : > { %v31051_v19 = vpop.f32.mrf.mxu1 }
 0x49d   : > { %v31273_v39 = vpop.f32.mrf.mxu0  ;;  %v31052_v62 = vadd.f32 %v31051_v19, %v30975_v45 }
 0x49e   : > { %v35814_v57 = vpop.f32.mrf.mxu1 }
 0x49f   : > { %v35829_v21 = vpop.f32.mrf.mxu0  ;;  %v31126_v48 = vadd.f32 %v31125_v23, %v31052_v62 }
 0x4a0   : > { %v31199_v15 = vpop.f32.mrf.mxu1 }
 0x4a1   : > { %v31434_v20 = vpop.f32.mrf.mxu0  ;;  %v31200_v26 = vadd.f32 %v31199_v15, %v31126_v48 }
 0x4a2   : > { %v35824_v42 = vpop.f32.mrf.mxu1 }
 0x4a3   : > { %v35839_v35 = vpop.f32.mrf.mxu0  ;;  %v31274_v45 = vadd.f32 %v31273_v39, %v31200_v26  ;;  %v30902_v42 = vadd.f32 %v30899_v43, %v30455_v3 }
 0x4a4   : > { %v31345_v22 = vpop.f32.mrf.mxu1 }
 0x4a5   : > { %v31584_v16 = vpop.f32.mrf.mxu0  ;;  %v31346_v57 = vadd.f32 %v31345_v22, %v31274_v45 }
 0x4a6   : > { %v35834_v60 = vpop.f32.mrf.mxu1 }
 0x4a7   : > { %v35849_v36 = vpop.f32.mrf.mxu0  ;;  %v31349_v11 = vadd.f32 %v31346_v57, %v30902_v42 }
 0x4a8   : > { %v31510_v17 = vpop.f32.mrf.mxu1 }
 0x4a9   : > { %v31732_v1 = vpop.f32.mrf.mxu0  ;;  %v31511_v2 = vadd.f32 %v31510_v17, %v31434_v20 }
 0x4aa   : > { %v35844_v49 = vpop.f32.mrf.mxu1 }
 0x4ab   : > { %v35859_v31 = vpop.f32.mrf.mxu0  ;;  %v31585_v24 = vadd.f32 %v31584_v16, %v31511_v2 }
 0x4ac   : > { %v31658_v53 = vpop.f32.mrf.mxu1 }
 0x4ad   : > { %v31885_v34 = vpop.f32.mrf.mxu0  ;;  %v31659_v29 = vadd.f32 %v31658_v53, %v31585_v24 }
 0x4ae   : > { %v35854_v4 = vpop.f32.mrf.mxu1 }
 0x4af   : > { %v35869_v58 = vpop.f32.mrf.mxu0  ;;  %v31733_v63 = vadd.f32 %v31732_v1, %v31659_v29 }
 0x4b0   : > { %v31804_v25 = vpop.f32.mrf.mxu1 }
 0x4b1   : > { %v32035_v30 = vpop.f32.mrf.mxu0  ;;  %v31805_v35 = vadd.f32 %v31804_v25, %v31733_v63 }
 0x4b2   : > { %v35864_v56 = vpop.f32.mrf.mxu1 }
 0x4b3   : > { %v35879_v52 = vpop.f32.mrf.mxu0  ;;  %v31808_v17 = vadd.f32 %v31805_v35, %v31349_v11 }
 0x4b4   : > { %v31961_v6 = vpop.f32.mrf.mxu1 }
 0x4b5   : > { %v32183_v0 = vpop.f32.mrf.mxu0  ;;  %v31962_v7 = vadd.f32 %v31961_v6, %v31885_v34 }
 0x4b6   : > { %v35874_v46 = vpop.f32.mrf.mxu1 }
 0x4b7   : > { %v35889_v8 = vpop.f32.mrf.mxu0  ;;  %v32036_v40 = vadd.f32 %v32035_v30, %v31962_v7 }
 0x4b9   : > { %v32109_v32 = vpop.f32.mrf.mxu1  ;;  %v32336_v50 = vpop.f32.mrf.mxu0 }
 0x4ba   : > { %v32110_v37 = vadd.f32 %v32109_v32, %v32036_v40 }
 0x4bb   : > { %v35884_v33 = vpop.f32.mrf.mxu1  ;;  %v35899_v47 = vpop.f32.mrf.mxu0 }
 0x4bc   : > { %v32184_v21 = vadd.f32 %v32183_v0, %v32110_v37 }
 0x4bd   : > { %v32255_v13 = vpop.f32.mrf.mxu1  ;;  %v32486_v5 = vpop.f32.mrf.mxu0 }
 0x4be   : > { %v32256_v39 = vadd.f32 %v32255_v13, %v32184_v21 }
 0x4bf   : > { %v35894_v14 = vpop.f32.mrf.mxu1  ;;  %v35909_v23 = vpop.f32.mrf.mxu0 }
 0x4c0   : > { %v32259_v22 = vadd.f32 %v32256_v39, %v31808_v17 }
 0x4c1   : > { %v32412_v9 = vpop.f32.mrf.mxu1  ;;  %v32634_v19 = vpop.f32.mrf.mxu0 }
 0x4c2   : > { %v32413_v15 = vadd.f32 %v32412_v9, %v32336_v50 }
 0x4c3   : > { %v35904_v20 = vpop.f32.mrf.mxu1  ;;  %v35919_v55 = vpop.f32.mrf.mxu0 }
 0x4c4   : > { %v32487_v16 = vadd.f32 %v32486_v5, %v32413_v15 }
 0x4c5   : > { %v32560_v60 = vpop.f32.mrf.mxu1 }
 0x4c6   : > { %v32561_v36 = vadd.f32 %v32560_v60, %v32487_v16 }
 0x4c7   : > { %v35914_v27 = vpop.f32.mrf.mxu1 }
 0x4c8   : > { %v32635_v1 = vadd.f32 %v32634_v19, %v32561_v36 }
 0x4c9   : > { %v32706_v61 = vpop.f32.mrf.mxu1 }
 0x4ca   : > { %v32707_v49 = vadd.f32 %v32706_v61, %v32635_v1 }
 0x4cb   : > { %v35924_v31 = vpop.f32.mrf.mxu1 }
 0x4cc   : > { %v32710_v53 = vadd.f32 %v32707_v49, %v32259_v22 }
 0x4ce   : > { %v32711_v34 = vadd.f32 %v32710_v53, %v37488_v38 }
 0x4d0   : > { %32713 = vrot.lane.b32.xlu0 %v32711_v34, %s36115_s29 }
 0x4d5   : > { %v28660_v54 = vpop.permute.xlu1 %28659 }
 0x4d6   : > { %28663 = vst.msk [vmem:[%s37500_s8] sm:$0xff] %vm28662_vm12, %v28660_v54 }
 0x542   : > { %v32714_v4 = vpop.permute.xlu0 %32713 }
 0x543   : > { %32717 = vst.msk [vmem:[%s37500_s8] sm:$0xff] %vm32716_vm13, %v32714_v4 }
 0x544   : > { %36023 = shalt.err (!%p36020_p6)
}
 0x545   : > { %s36024_s8 = scalar_lea.hbm %s39474_s9, 128  ;;  %s36028_s29 = scalar_lea.hbm %s39526_s3, 512 }
 0x546   : > { %p36025_p7 = scmp.ne.s32.totalorder %s39474_s9, %s36024_s8  ;;  %p36029_p11 = scmp.lt.s32.totalorder %s39474_s9, %s39526_s3 }
 0x547   : > { %p36030_p12 = scmp.lt.s32.totalorder %s36028_s29, %s36024_s8 }
 0x548   : > { %p36026_p9 = pnand %p36025_p7, %p36188_p3 }
 0x549   : > { %p36031_p13 = por %p36030_p12, %p36029_p11 }
 0x54a   : > { %p36027_p10 = pneg %p36026_p9 }
 0x54c   : > { %p36032_p0 = pnand %p36031_p13, %p36027_p10 }
 0x54e   : > { %36035 = shalt.err (!%p36032_p0)
}
 0x54f   : > { %35926 = dma.vmem_to_hbm [thread:$0]  (%p36188_p3), %s32735_s6, 128, %s39474_s9, %s32719_s21  }
 0x550 PF: > { %p35932_p1 = scmp.ge.s32.totalorder %s36102_s19, 2  ;;  %s32746_s10 = sand.u32 1, %s36074_s12  }
 0x551   : > { %s32747_s7 = scalar_lea.sflag [#allocation3], %s32746_s10 }
 0x552   : > { %p35929_p2 = pnand %p35932_p1, %p36197_p8 }
 0x554   : > { %p35930_p4 = pneg %p35929_p2 }
 0x556   : > { %36069 = dma.done.wait (%p35930_p4), %s32747_s7, 128  }
 0x557   : > { %36071 = vsyncadd (%p35930_p4), %s32747_s7, 4294967168  ;;  %s16_s19 = sadd.s32 1, %s36102_s19   ;;  %s39776_s12 = smov %s36078_s13 }
 0x558   : > { %p13_p5 = scmp.ge.s32.totalorder %s16_s19, 6   ;;  %s39777_s13 = smov %s36082_s14 }
 0x559   : > { %s39778_s14 = smov %s36206_s30  ;;  %s39779_s15 = smov %s36094_s17 }
 0x55a   : > { %s39780_s16 = smov %s36098_s18  ;;  %s39781_s17 = smov %s39784_s22 }
 0x55b   : > { %s39782_s18 = smov %s39788_s23  ;;  %15 = sbr.rel (!%p13_p5) target bundleno = 5 (0x5), region = 85 }
 0x560   :  { %32752 = vsyncpa [#allocation3], 1 }
 0x561   :  { %32754 = vsyncpa [#allocation3 + $0x1], 1 }

</bundles_post_ra>
